<compile_context>
chip_gen: v7x
topology: tpu7x:2x2x1
jax: 0.10.0
libtpu: 0.0.40
codegen_flags: <defaults>
</compile_context>

<pallas_src>
import functools

import jax
import jax.numpy as jnp
from jax.experimental import pallas as pl
from jax.experimental.pallas import tpu as pltpu

IGNORE_INDEX = 255


def _cdiv(a, b):
    return -(-a // b)


def _round_up(x, m):
    return ((x + m - 1) // m) * m


def _bilinear_matrix(out_size, in_size):
    """(out_size, in_size) interpolation matrix matching PyTorch
    F.interpolate(..., mode='bilinear', align_corners=False)."""
    scale = in_size / out_size
    src = jnp.maximum(
        (jnp.arange(out_size, dtype=jnp.float32) + 0.5) * scale - 0.5, 0.0)
    i0 = jnp.floor(src).astype(jnp.int32)
    i0 = jnp.minimum(i0, in_size - 1)
    i1 = jnp.minimum(i0 + 1, in_size - 1)
    frac = src - i0.astype(jnp.float32)
    m = ((1.0 - frac)[:, None] * jax.nn.one_hot(i0, in_size, dtype=jnp.float32)
         + frac[:, None] * jax.nn.one_hot(i1, in_size, dtype=jnp.float32))
    return m


# -----------------------------------------------------------------------------
# Fused kernel: Y-direction bilinear upsample (MXU) + softmax cross-entropy.
#   wy_ref     : (TILE_R, h)      bf16  bilinear row weights for this row block
#   colup_ref  : (h, C*W)         bf16  X-upsampled low-res logits for image n
#   labels_ref : (TILE_R, W)      int32 labels, ignore_index = 255
#   pw_ref     : (TILE_R, W)      f32   optional element-wise pixel weight
#   out_ref    : (TILE_R, W)      f32   per-(n, chunk) partial loss accumulator
#   up_ref     : (TILE_R, C*W)    f32   VMEM scratch for the upsampled block
# grid = (N, CHUNKS, RB_PER_CHUNK), semantics = (parallel, parallel, arbitrary)
# -----------------------------------------------------------------------------
def _fused_ce_kernel(wy_ref, colup_ref, labels_ref, *rest,
                     nclass, width, tile_r, out_h, rb_per_chunk, has_pw):
    if has_pw:
        pw_ref, out_ref, up_ref = rest
    else:
        out_ref, up_ref = rest

    ch = pl.program_id(1)
    j = pl.program_id(2)

    @pl.when(j == 0)
    def _():
        out_ref[...] = jnp.zeros_like(out_ref)

    # Fused Y-direction bilinear upsample: one big MXU matmul per row block.
    up_ref[...] = jnp.dot(wy_ref[...], colup_ref[...],
                          preferred_element_type=jnp.float32)

    labels = labels_ref[...]                                   # (TILE_R, W) int32

    # Class c occupies lanes [c*W, (c+1)*W): static lane slices, no relayout.
    m = up_ref[:, 0:width]
    for c in range(1, nclass):
        m = jnp.maximum(m, up_ref[:, c * width:(c + 1) * width])
    s = jnp.zeros_like(m)
    picked = jnp.zeros_like(m)
    for c in range(nclass):
        lc = up_ref[:, c * width:(c + 1) * width]
        s = s + jnp.exp(lc - m)
        picked = jnp.where(labels == c, lc, picked)
    ce = (jnp.log(s) + m) - picked                             # (TILE_R, W)

    if has_pw:
        ce = ce * pw_ref[...].astype(jnp.float32)

    # Mask ignore_index pixels plus ragged-tail / overhang rows (garbage reads
    # in those rows are discarded by the select, never accumulated).
    row_iota = jax.lax.broadcasted_iota(jnp.int32, (tile_r, width), 0)
    global_row = (ch * rb_per_chunk + j) * tile_r + row_iota
    valid = (labels != IGNORE_INDEX) & (global_row < out_h)

    out_ref[...] += jnp.where(valid, ce, 0.0)


def cross_entropy_mean(pred_nchw, label_nhw, pixel_weight=None, loss_weight=1.0,
                       tile_rows=64, storage_dtype=jnp.bfloat16):
    """loss_weight * mean over all N*H*W pixels of
       pw * CE(bilinear_upsample(pred)[n,:,y,x], label[n,y,x]), ignore_index=255."""
    n, c, h, w = pred_nchw.shape
    out_h, out_w = label_nhw.shape[-2], label_nhw.shape[-1]
    cw = c * out_w

    # --- X-direction upsample on the tiny low-res tensor (one small XLA matmul),
    #     emitted straight into the lanes-dense (N, h, C*W) layout, bf16 storage.
    wx_t = _bilinear_matrix(out_w, w).T                                  # (w, W)
    pred_t = jnp.transpose(pred_nchw, (0, 2, 1, 3)).astype(jnp.float32)  # (N,h,C,w)
    colup = jnp.einsum('nhcw,wW->nhcW', pred_t, wx_t)
    colup = colup.reshape(n, h, cw).astype(storage_dtype)

    # --- Row tiling / chunking for the grid.
    tile_r = max(8, min(_round_up(tile_rows, 8), _round_up(out_h, 8)))
    rb = _cdiv(out_h, tile_r)                 # row blocks per image
    chunks = 2 if rb >= 2 else 1              # keep both v7x TensorCores busy
    rb_per_chunk = _cdiv(rb, chunks)
    h_pad = chunks * rb_per_chunk * tile_r

    wy = _bilinear_matrix(out_h, h)                                      # (H, h)
    wy = jnp.pad(wy, ((0, h_pad - out_h), (0, 0))).astype(storage_dtype)

    labels = label_nhw.reshape(n, out_h, out_w).astype(jnp.int32)

    has_pw = pixel_weight is not None

    def _row_block(nn, ch, j):
        return (nn, jnp.minimum(ch * rb_per_chunk + j, rb - 1), 0)

    inputs = [wy, colup, labels]
    in_specs = [
        pl.BlockSpec((tile_r, h), lambda nn, ch, j: (ch * rb_per_chunk + j, 0)),
        pl.BlockSpec((None, h, cw), lambda nn, ch, j: (nn, 0, 0)),
        pl.BlockSpec((None, tile_r, out_w), _row_block),
    ]
    if has_pw:
        inputs.append(pixel_weight.reshape(n, out_h, out_w).astype(jnp.float32))
        in_specs.append(pl.BlockSpec((None, tile_r, out_w), _row_block))

    kernel = functools.partial(
        _fused_ce_kernel, nclass=c, width=out_w, tile_r=tile_r, out_h=out_h,
        rb_per_chunk=rb_per_chunk, has_pw=has_pw)

    dsize = jnp.dtype(storage_dtype).itemsize
    cost = pl.CostEstimate(
        flops=int(2 * n * chunks * rb_per_chunk * tile_r * h * cw
                  + 6 * n * out_h * out_w * c),
        transcendentals=int(n * out_h * out_w * (c + 1)),
        bytes_accessed=int(n * h * cw * dsize
                           + n * out_h * out_w * 4 * (2 if has_pw else 1)
                           + h_pad * h * dsize
                           + n * chunks * tile_r * out_w * 4),
    )

    partials = pl.pallas_call(
        kernel,
        out_shape=jax.ShapeDtypeStruct((n, chunks, tile_r, out_w), jnp.float32),
        grid_spec=pltpu.PrefetchScalarGridSpec(
            num_scalar_prefetch=0,
            grid=(n, chunks, rb_per_chunk),
            in_specs=in_specs,
            out_specs=pl.BlockSpec((None, None, tile_r, out_w),
                                   lambda nn, ch, j: (nn, ch, 0, 0)),
            scratch_shapes=[pltpu.VMEM((tile_r, cw), jnp.float32)],
        ),
        compiler_params=pltpu.CompilerParams(
            dimension_semantics=("parallel", "parallel", "arbitrary")),
        cost_estimate=cost,
    )(*inputs)

    total = jnp.sum(partials)
    return loss_weight * total / jnp.float32(n * out_h * out_w)


# -----------------------------------------------------------------------------
# CmdiseCriterion.forward (core branches present in every call)
# -----------------------------------------------------------------------------
@functools.partial(jax.jit, static_argnames=("loss_weight",))
def cmdise_criterion_forward(source_rgb_pred, target_sec_modal_pred,
                             source_gt, target_pl, target_pw, loss_weight=1.0):
    losses = {}
    losses["source_loss"] = cross_entropy_mean(
        source_rgb_pred, source_gt[:, 0], pixel_weight=None,
        loss_weight=loss_weight)
    losses["target_loss"] = cross_entropy_mean(
        target_sec_modal_pred, target_pl[:, 0], pixel_weight=target_pw,
        loss_weight=loss_weight)
    return losses


# -----------------------------------------------------------------------------
# Pure-JAX f32 reference (gather-based bilinear, PyTorch semantics) for checks.
# -----------------------------------------------------------------------------
def bilinear_resize_last2(x, out_h, out_w):
    _, _, h, w = x.shape
    ys = jnp.maximum((jnp.arange(out_h, dtype=jnp.float32) + 0.5) * (h / out_h) - 0.5, 0.0)
    xs = jnp.maximum((jnp.arange(out_w, dtype=jnp.float32) + 0.5) * (w / out_w) - 0.5, 0.0)
    y0 = jnp.floor(ys).astype(jnp.int32)
    x0 = jnp.floor(xs).astype(jnp.int32)
    y1 = jnp.minimum(y0 + 1, h - 1)
    x1 = jnp.minimum(x0 + 1, w - 1)
    wy = (ys - y0.astype(jnp.float32))[None, None, :, None]
    wx = (xs - x0.astype(jnp.float32))[None, None, None, :]
    rows = x[:, :, y0, :] * (1.0 - wy) + x[:, :, y1, :] * wy
    return rows[:, :, :, x0] * (1.0 - wx) + rows[:, :, :, x1] * wx


def _ref_cross_entropy_mean(pred_nchw, label_nhw, pixel_weight, loss_weight=1.0):
    oh, ow = label_nhw.shape[-2], label_nhw.shape[-1]
    up = bilinear_resize_last2(pred_nchw.astype(jnp.float32), oh, ow)
    logp = jax.nn.log_softmax(up, axis=1)
    lbl = label_nhw.astype(jnp.int32)
    valid = lbl != IGNORE_INDEX
    safe = jnp.where(valid, lbl, 0)
    picked = jnp.take_along_axis(logp, safe[:, None, :, :], axis=1)[:, 0]
    loss = jnp.where(valid, -picked, 0.0)
    if pixel_weight is not None:
        loss = loss * pixel_weight.astype(jnp.float32)
    return loss_weight * loss.mean()


if __name__ == "__main__":
    key = jax.random.PRNGKey(0)
    k1, k2, k3, k4, k5, k6, k7, k8 = jax.random.split(key, 8)

    # ---- Test A: canonical shapes (num_classes=19, preds at H//8) ----
    N, C, H, W = 2, 19, 64, 64
    source_rgb_pred = jax.random.normal(k1, (N, C, H // 8, W // 8), jnp.float32)
    target_sec_modal_pred = jax.random.normal(k2, (N, C, H // 8, W // 8), jnp.float32)
    source_gt = jax.random.randint(k3, (N, 1, H, W), 0, C).astype(jnp.int32)
    target_pl = jax.random.randint(k4, (N, 1, H, W), 0, C).astype(jnp.int32)
    target_pl = target_pl.at[:, :, 0, :].set(IGNORE_INDEX)   # exercise ignore mask
    target_pw = jax.random.uniform(k5, (N, H, W), jnp.float32)

    losses = cmdise_criterion_forward(
        source_rgb_pred, target_sec_modal_pred, source_gt, target_pl, target_pw)
    jax.block_until_ready(losses)

    ref_src = _ref_cross_entropy_mean(source_rgb_pred, source_gt[:, 0], None)
    ref_tgt = _ref_cross_entropy_mean(target_sec_modal_pred, target_pl[:, 0], target_pw)

    assert jnp.isfinite(losses["source_loss"]) and jnp.isfinite(losses["target_loss"])
    assert jnp.allclose(losses["source_loss"], ref_src, rtol=5e-3, atol=2e-3), (
        losses["source_loss"], ref_src)
    assert jnp.allclose(losses["target_loss"], ref_tgt, rtol=5e-3, atol=2e-3), (
        losses["target_loss"], ref_tgt)

    # ---- Test B: ragged rows / odd row-block count / 2-chunk split / W % 128 != 0
    Hb, Wb = 80, 80
    pred_b = jax.random.normal(k6, (N, C, Hb // 8, Wb // 8), jnp.float32)
    lbl_b = jax.random.randint(k7, (N, Hb, Wb), 0, C).astype(jnp.int32)
    lbl_b = lbl_b.at[:, :3, :].set(IGNORE_INDEX)
    pw_b = jax.random.uniform(k8, (N, Hb, Wb), jnp.float32)

    out_b = cross_entropy_mean(pred_b, lbl_b, pixel_weight=pw_b, tile_rows=16)
    jax.block_until_ready(out_b)
    ref_b = _ref_cross_entropy_mean(pred_b, lbl_b, pw_b)
    assert jnp.isfinite(out_b)
    assert jnp.allclose(out_b, ref_b, rtol=5e-3, atol=2e-3), (out_b, ref_b)

    print("KERNEL_OK")
</pallas_src>

<mosaic_0001>
module attributes {stable_mosaic.version = 11 : i64} {
  func.func @_fused_ce_kernel(%arg0: i32, %arg1: i32, %arg2: i32, %arg3: memref<64x8xbf16, #tpu.memory_space<vmem>>, %arg4: memref<1x8x1216xbf16, #tpu.memory_space<vmem>>, %arg5: memref<1x64x64xi32, #tpu.memory_space<vmem>>, %arg6: memref<1x64x64xf32, #tpu.memory_space<vmem>>, %arg7: memref<1x1x64x64xf32, #tpu.memory_space<vmem>>, %arg8: memref<64x1216xf32, #tpu.memory_space<vmem>>) attributes {dimension_semantics = [#tpu.dimension_semantics<parallel>, #tpu.dimension_semantics<parallel>, #tpu.dimension_semantics<arbitrary>], iteration_bounds = array<i64: 2, 1, 1>, scalar_prefetch = 0 : i64, scratch_operands = 1 : i64, tpu.core_type = #tpu.core_type<tc>, window_params = [{transform_indices = @transform_0, window_bounds = array<i64: 64, 8>}, {transform_indices = @transform_1, window_bounds = array<i64: 1, 8, 1216>}, {transform_indices = @transform_2, window_bounds = array<i64: 1, 64, 64>}, {transform_indices = @transform_3, window_bounds = array<i64: 1, 64, 64>}, {transform_indices = @transform_4, window_bounds = array<i64: 1, 1, 64, 64>}]} {
    %c0_i32 = arith.constant 0 : i32
    %0 = arith.cmpi eq, %arg2, %c0_i32 : i32
    %1 = arith.extui %0 : i1 to i32
    %c0_i32_0 = arith.constant 0 : i32
    %2 = arith.cmpi ne, %1, %c0_i32_0 : i32
    scf.if %2 {
      %cst_85 = arith.constant 0.000000e+00 : f32
      %207 = vector.broadcast %cst_85 : f32 to vector<64x64xf32>
      %c0_86 = arith.constant 0 : index
      %c0_87 = arith.constant 0 : index
      %c0_88 = arith.constant 0 : index
      %c0_89 = arith.constant 0 : index
      %208 = vector.load %arg7[%c0_86, %c0_87, %c0_88, %c0_89] : memref<1x1x64x64xf32, #tpu.memory_space<vmem>>, vector<1x1x64x64xf32>
      %209 = vector.shape_cast %208 : vector<1x1x64x64xf32> to vector<64x64xf32>
      %210 = vector.shape_cast %207 : vector<64x64xf32> to vector<1x1x64x64xf32>
      tpu.vector_store %arg7[%c0_86, %c0_87, %c0_88, %c0_89], %210 {strides = array<i32>} : memref<1x1x64x64xf32, #tpu.memory_space<vmem>>, vector<1x1x64x64xf32>,
    } else {
    }
    %c0 = arith.constant 0 : index
    %c0_1 = arith.constant 0 : index
    %3 = vector.load %arg3[%c0, %c0_1] : memref<64x8xbf16, #tpu.memory_space<vmem>>, vector<64x8xbf16>
    %c0_2 = arith.constant 0 : index
    %c0_3 = arith.constant 0 : index
    %c0_4 = arith.constant 0 : index
    %4 = vector.load %arg4[%c0_2, %c0_3, %c0_4] : memref<1x8x1216xbf16, #tpu.memory_space<vmem>>, vector<1x8x1216xbf16>
    %5 = vector.shape_cast %4 : vector<1x8x1216xbf16> to vector<8x1216xbf16>
    %cst = arith.constant dense<0.000000e+00> : vector<64x1216xf32>
    %6 = tpu.matmul %3, %5, %cst {dimension_numbers = #tpu.dot_dimension_numbers<[1], [0], [0], [1], [0, 0, 1, 1], [], []>} : vector<64x8xbf16>, vector<8x1216xbf16>, vector<64x1216xf32> -> vector<64x1216xf32>
    %c0_5 = arith.constant 0 : index
    %c0_6 = arith.constant 0 : index
    %7 = vector.load %arg8[%c0_5, %c0_6] : memref<64x1216xf32, #tpu.memory_space<vmem>>, vector<64x1216xf32>
    tpu.vector_store %arg8[%c0_5, %c0_6], %6 {strides = array<i32>} : memref<64x1216xf32, #tpu.memory_space<vmem>>, vector<64x1216xf32>,
    %c0_7 = arith.constant 0 : index
    %c0_8 = arith.constant 0 : index
    %c0_9 = arith.constant 0 : index
    %8 = vector.load %arg5[%c0_7, %c0_8, %c0_9] : memref<1x64x64xi32, #tpu.memory_space<vmem>>, vector<1x64x64xi32>
    %9 = vector.shape_cast %8 : vector<1x64x64xi32> to vector<64x64xi32>
    %c0_10 = arith.constant 0 : index
    %c0_11 = arith.constant 0 : index
    %10 = vector.load %arg8[%c0_10, %c0_11] : memref<64x1216xf32, #tpu.memory_space<vmem>>, vector<64x64xf32>
    %c0_12 = arith.constant 0 : index
    %c64 = arith.constant 64 : index
    %11 = vector.load %arg8[%c0_12, %c64] : memref<64x1216xf32, #tpu.memory_space<vmem>>, vector<64x64xf32>
    %12 = arith.maximumf %10, %11 : vector<64x64xf32>
    %c0_13 = arith.constant 0 : index
    %c128 = arith.constant 128 : index
    %13 = vector.load %arg8[%c0_13, %c128] : memref<64x1216xf32, #tpu.memory_space<vmem>>, vector<64x64xf32>
    %14 = arith.maximumf %12, %13 : vector<64x64xf32>
    %c0_14 = arith.constant 0 : index
    %c192 = arith.constant 192 : index
    %15 = vector.load %arg8[%c0_14, %c192] : memref<64x1216xf32, #tpu.memory_space<vmem>>, vector<64x64xf32>
    %16 = arith.maximumf %14, %15 : vector<64x64xf32>
    %c0_15 = arith.constant 0 : index
    %c256 = arith.constant 256 : index
    %17 = vector.load %arg8[%c0_15, %c256] : memref<64x1216xf32, #tpu.memory_space<vmem>>, vector<64x64xf32>
    %18 = arith.maximumf %16, %17 : vector<64x64xf32>
    %c0_16 = arith.constant 0 : index
    %c320 = arith.constant 320 : index
    %19 = vector.load %arg8[%c0_16, %c320] : memref<64x1216xf32, #tpu.memory_space<vmem>>, vector<64x64xf32>
    %20 = arith.maximumf %18, %19 : vector<64x64xf32>
    %c0_17 = arith.constant 0 : index
    %c384 = arith.constant 384 : index
    %21 = vector.load %arg8[%c0_17, %c384] : memref<64x1216xf32, #tpu.memory_space<vmem>>, vector<64x64xf32>
    %22 = arith.maximumf %20, %21 : vector<64x64xf32>
    %c0_18 = arith.constant 0 : index
    %c448 = arith.constant 448 : index
    %23 = vector.load %arg8[%c0_18, %c448] : memref<64x1216xf32, #tpu.memory_space<vmem>>, vector<64x64xf32>
    %24 = arith.maximumf %22, %23 : vector<64x64xf32>
    %c0_19 = arith.constant 0 : index
    %c512 = arith.constant 512 : index
    %25 = vector.load %arg8[%c0_19, %c512] : memref<64x1216xf32, #tpu.memory_space<vmem>>, vector<64x64xf32>
    %26 = arith.maximumf %24, %25 : vector<64x64xf32>
    %c0_20 = arith.constant 0 : index
    %c576 = arith.constant 576 : index
    %27 = vector.load %arg8[%c0_20, %c576] : memref<64x1216xf32, #tpu.memory_space<vmem>>, vector<64x64xf32>
    %28 = arith.maximumf %26, %27 : vector<64x64xf32>
    %c0_21 = arith.constant 0 : index
    %c640 = arith.constant 640 : index
    %29 = vector.load %arg8[%c0_21, %c640] : memref<64x1216xf32, #tpu.memory_space<vmem>>, vector<64x64xf32>
    %30 = arith.maximumf %28, %29 : vector<64x64xf32>
    %c0_22 = arith.constant 0 : index
    %c704 = arith.constant 704 : index
    %31 = vector.load %arg8[%c0_22, %c704] : memref<64x1216xf32, #tpu.memory_space<vmem>>, vector<64x64xf32>
    %32 = arith.maximumf %30, %31 : vector<64x64xf32>
    %c0_23 = arith.constant 0 : index
    %c768 = arith.constant 768 : index
    %33 = vector.load %arg8[%c0_23, %c768] : memref<64x1216xf32, #tpu.memory_space<vmem>>, vector<64x64xf32>
    %34 = arith.maximumf %32, %33 : vector<64x64xf32>
    %c0_24 = arith.constant 0 : index
    %c832 = arith.constant 832 : index
    %35 = vector.load %arg8[%c0_24, %c832] : memref<64x1216xf32, #tpu.memory_space<vmem>>, vector<64x64xf32>
    %36 = arith.maximumf %34, %35 : vector<64x64xf32>
    %c0_25 = arith.constant 0 : index
    %c896 = arith.constant 896 : index
    %37 = vector.load %arg8[%c0_25, %c896] : memref<64x1216xf32, #tpu.memory_space<vmem>>, vector<64x64xf32>
    %38 = arith.maximumf %36, %37 : vector<64x64xf32>
    %c0_26 = arith.constant 0 : index
    %c960 = arith.constant 960 : index
    %39 = vector.load %arg8[%c0_26, %c960] : memref<64x1216xf32, #tpu.memory_space<vmem>>, vector<64x64xf32>
    %40 = arith.maximumf %38, %39 : vector<64x64xf32>
    %c0_27 = arith.constant 0 : index
    %c1024 = arith.constant 1024 : index
    %41 = vector.load %arg8[%c0_27, %c1024] : memref<64x1216xf32, #tpu.memory_space<vmem>>, vector<64x64xf32>
    %42 = arith.maximumf %40, %41 : vector<64x64xf32>
    %c0_28 = arith.constant 0 : index
    %c1088 = arith.constant 1088 : index
    %43 = vector.load %arg8[%c0_28, %c1088] : memref<64x1216xf32, #tpu.memory_space<vmem>>, vector<64x64xf32>
    %44 = arith.maximumf %42, %43 : vector<64x64xf32>
    %c0_29 = arith.constant 0 : index
    %c1152 = arith.constant 1152 : index
    %45 = vector.load %arg8[%c0_29, %c1152] : memref<64x1216xf32, #tpu.memory_space<vmem>>, vector<64x64xf32>
    %46 = arith.maximumf %44, %45 : vector<64x64xf32>
    %cst_30 = arith.constant 0.000000e+00 : f32
    %47 = vector.broadcast %cst_30 : f32 to vector<64x64xf32>
    %cst_31 = arith.constant 0.000000e+00 : f32
    %48 = vector.broadcast %cst_31 : f32 to vector<64x64xf32>
    %c0_32 = arith.constant 0 : index
    %c0_33 = arith.constant 0 : index
    %49 = vector.load %arg8[%c0_32, %c0_33] : memref<64x1216xf32, #tpu.memory_space<vmem>>, vector<64x64xf32>
    %50 = arith.subf %49, %46 : vector<64x64xf32>
    %51 = math.exp %50 : vector<64x64xf32>
    %52 = arith.addf %47, %51 : vector<64x64xf32>
    %c0_i32_34 = arith.constant 0 : i32
    %53 = vector.broadcast %c0_i32_34 : i32 to vector<64x64xi32>
    %54 = arith.cmpi eq, %9, %53 : vector<64x64xi32>
    %55 = arith.select %54, %49, %48 : vector<64x64xi1>, vector<64x64xf32>
    %c0_35 = arith.constant 0 : index
    %c64_36 = arith.constant 64 : index
    %56 = vector.load %arg8[%c0_35, %c64_36] : memref<64x1216xf32, #tpu.memory_space<vmem>>, vector<64x64xf32>
    %57 = arith.subf %56, %46 : vector<64x64xf32>
    %58 = math.exp %57 : vector<64x64xf32>
    %59 = arith.addf %52, %58 : vector<64x64xf32>
    %c1_i32 = arith.constant 1 : i32
    %60 = vector.broadcast %c1_i32 : i32 to vector<64x64xi32>
    %61 = arith.cmpi eq, %9, %60 : vector<64x64xi32>
    %62 = arith.select %61, %56, %55 : vector<64x64xi1>, vector<64x64xf32>
    %c0_37 = arith.constant 0 : index
    %c128_38 = arith.constant 128 : index
    %63 = vector.load %arg8[%c0_37, %c128_38] : memref<64x1216xf32, #tpu.memory_space<vmem>>, vector<64x64xf32>
    %64 = arith.subf %63, %46 : vector<64x64xf32>
    %65 = math.exp %64 : vector<64x64xf32>
    %66 = arith.addf %59, %65 : vector<64x64xf32>
    %c2_i32 = arith.constant 2 : i32
    %67 = vector.broadcast %c2_i32 : i32 to vector<64x64xi32>
    %68 = arith.cmpi eq, %9, %67 : vector<64x64xi32>
    %69 = arith.select %68, %63, %62 : vector<64x64xi1>, vector<64x64xf32>
    %c0_39 = arith.constant 0 : index
    %c192_40 = arith.constant 192 : index
    %70 = vector.load %arg8[%c0_39, %c192_40] : memref<64x1216xf32, #tpu.memory_space<vmem>>, vector<64x64xf32>
    %71 = arith.subf %70, %46 : vector<64x64xf32>
    %72 = math.exp %71 : vector<64x64xf32>
    %73 = arith.addf %66, %72 : vector<64x64xf32>
    %c3_i32 = arith.constant 3 : i32
    %74 = vector.broadcast %c3_i32 : i32 to vector<64x64xi32>
    %75 = arith.cmpi eq, %9, %74 : vector<64x64xi32>
    %76 = arith.select %75, %70, %69 : vector<64x64xi1>, vector<64x64xf32>
    %c0_41 = arith.constant 0 : index
    %c256_42 = arith.constant 256 : index
    %77 = vector.load %arg8[%c0_41, %c256_42] : memref<64x1216xf32, #tpu.memory_space<vmem>>, vector<64x64xf32>
    %78 = arith.subf %77, %46 : vector<64x64xf32>
    %79 = math.exp %78 : vector<64x64xf32>
    %80 = arith.addf %73, %79 : vector<64x64xf32>
    %c4_i32 = arith.constant 4 : i32
    %81 = vector.broadcast %c4_i32 : i32 to vector<64x64xi32>
    %82 = arith.cmpi eq, %9, %81 : vector<64x64xi32>
    %83 = arith.select %82, %77, %76 : vector<64x64xi1>, vector<64x64xf32>
    %c0_43 = arith.constant 0 : index
    %c320_44 = arith.constant 320 : index
    %84 = vector.load %arg8[%c0_43, %c320_44] : memref<64x1216xf32, #tpu.memory_space<vmem>>, vector<64x64xf32>
    %85 = arith.subf %84, %46 : vector<64x64xf32>
    %86 = math.exp %85 : vector<64x64xf32>
    %87 = arith.addf %80, %86 : vector<64x64xf32>
    %c5_i32 = arith.constant 5 : i32
    %88 = vector.broadcast %c5_i32 : i32 to vector<64x64xi32>
    %89 = arith.cmpi eq, %9, %88 : vector<64x64xi32>
    %90 = arith.select %89, %84, %83 : vector<64x64xi1>, vector<64x64xf32>
    %c0_45 = arith.constant 0 : index
    %c384_46 = arith.constant 384 : index
    %91 = vector.load %arg8[%c0_45, %c384_46] : memref<64x1216xf32, #tpu.memory_space<vmem>>, vector<64x64xf32>
    %92 = arith.subf %91, %46 : vector<64x64xf32>
    %93 = math.exp %92 : vector<64x64xf32>
    %94 = arith.addf %87, %93 : vector<64x64xf32>
    %c6_i32 = arith.constant 6 : i32
    %95 = vector.broadcast %c6_i32 : i32 to vector<64x64xi32>
    %96 = arith.cmpi eq, %9, %95 : vector<64x64xi32>
    %97 = arith.select %96, %91, %90 : vector<64x64xi1>, vector<64x64xf32>
    %c0_47 = arith.constant 0 : index
    %c448_48 = arith.constant 448 : index
    %98 = vector.load %arg8[%c0_47, %c448_48] : memref<64x1216xf32, #tpu.memory_space<vmem>>, vector<64x64xf32>
    %99 = arith.subf %98, %46 : vector<64x64xf32>
    %100 = math.exp %99 : vector<64x64xf32>
    %101 = arith.addf %94, %100 : vector<64x64xf32>
    %c7_i32 = arith.constant 7 : i32
    %102 = vector.broadcast %c7_i32 : i32 to vector<64x64xi32>
    %103 = arith.cmpi eq, %9, %102 : vector<64x64xi32>
    %104 = arith.select %103, %98, %97 : vector<64x64xi1>, vector<64x64xf32>
    %c0_49 = arith.constant 0 : index
    %c512_50 = arith.constant 512 : index
    %105 = vector.load %arg8[%c0_49, %c512_50] : memref<64x1216xf32, #tpu.memory_space<vmem>>, vector<64x64xf32>
    %106 = arith.subf %105, %46 : vector<64x64xf32>
    %107 = math.exp %106 : vector<64x64xf32>
    %108 = arith.addf %101, %107 : vector<64x64xf32>
    %c8_i32 = arith.constant 8 : i32
    %109 = vector.broadcast %c8_i32 : i32 to vector<64x64xi32>
    %110 = arith.cmpi eq, %9, %109 : vector<64x64xi32>
    %111 = arith.select %110, %105, %104 : vector<64x64xi1>, vector<64x64xf32>
    %c0_51 = arith.constant 0 : index
    %c576_52 = arith.constant 576 : index
    %112 = vector.load %arg8[%c0_51, %c576_52] : memref<64x1216xf32, #tpu.memory_space<vmem>>, vector<64x64xf32>
    %113 = arith.subf %112, %46 : vector<64x64xf32>
    %114 = math.exp %113 : vector<64x64xf32>
    %115 = arith.addf %108, %114 : vector<64x64xf32>
    %c9_i32 = arith.constant 9 : i32
    %116 = vector.broadcast %c9_i32 : i32 to vector<64x64xi32>
    %117 = arith.cmpi eq, %9, %116 : vector<64x64xi32>
    %118 = arith.select %117, %112, %111 : vector<64x64xi1>, vector<64x64xf32>
    %c0_53 = arith.constant 0 : index
    %c640_54 = arith.constant 640 : index
    %119 = vector.load %arg8[%c0_53, %c640_54] : memref<64x1216xf32, #tpu.memory_space<vmem>>, vector<64x64xf32>
    %120 = arith.subf %119, %46 : vector<64x64xf32>
    %121 = math.exp %120 : vector<64x64xf32>
    %122 = arith.addf %115, %121 : vector<64x64xf32>
    %c10_i32 = arith.constant 10 : i32
    %123 = vector.broadcast %c10_i32 : i32 to vector<64x64xi32>
    %124 = arith.cmpi eq, %9, %123 : vector<64x64xi32>
    %125 = arith.select %124, %119, %118 : vector<64x64xi1>, vector<64x64xf32>
    %c0_55 = arith.constant 0 : index
    %c704_56 = arith.constant 704 : index
    %126 = vector.load %arg8[%c0_55, %c704_56] : memref<64x1216xf32, #tpu.memory_space<vmem>>, vector<64x64xf32>
    %127 = arith.subf %126, %46 : vector<64x64xf32>
    %128 = math.exp %127 : vector<64x64xf32>
    %129 = arith.addf %122, %128 : vector<64x64xf32>
    %c11_i32 = arith.constant 11 : i32
    %130 = vector.broadcast %c11_i32 : i32 to vector<64x64xi32>
    %131 = arith.cmpi eq, %9, %130 : vector<64x64xi32>
    %132 = arith.select %131, %126, %125 : vector<64x64xi1>, vector<64x64xf32>
    %c0_57 = arith.constant 0 : index
    %c768_58 = arith.constant 768 : index
    %133 = vector.load %arg8[%c0_57, %c768_58] : memref<64x1216xf32, #tpu.memory_space<vmem>>, vector<64x64xf32>
    %134 = arith.subf %133, %46 : vector<64x64xf32>
    %135 = math.exp %134 : vector<64x64xf32>
    %136 = arith.addf %129, %135 : vector<64x64xf32>
    %c12_i32 = arith.constant 12 : i32
    %137 = vector.broadcast %c12_i32 : i32 to vector<64x64xi32>
    %138 = arith.cmpi eq, %9, %137 : vector<64x64xi32>
    %139 = arith.select %138, %133, %132 : vector<64x64xi1>, vector<64x64xf32>
    %c0_59 = arith.constant 0 : index
    %c832_60 = arith.constant 832 : index
    %140 = vector.load %arg8[%c0_59, %c832_60] : memref<64x1216xf32, #tpu.memory_space<vmem>>, vector<64x64xf32>
    %141 = arith.subf %140, %46 : vector<64x64xf32>
    %142 = math.exp %141 : vector<64x64xf32>
    %143 = arith.addf %136, %142 : vector<64x64xf32>
    %c13_i32 = arith.constant 13 : i32
    %144 = vector.broadcast %c13_i32 : i32 to vector<64x64xi32>
    %145 = arith.cmpi eq, %9, %144 : vector<64x64xi32>
    %146 = arith.select %145, %140, %139 : vector<64x64xi1>, vector<64x64xf32>
    %c0_61 = arith.constant 0 : index
    %c896_62 = arith.constant 896 : index
    %147 = vector.load %arg8[%c0_61, %c896_62] : memref<64x1216xf32, #tpu.memory_space<vmem>>, vector<64x64xf32>
    %148 = arith.subf %147, %46 : vector<64x64xf32>
    %149 = math.exp %148 : vector<64x64xf32>
    %150 = arith.addf %143, %149 : vector<64x64xf32>
    %c14_i32 = arith.constant 14 : i32
    %151 = vector.broadcast %c14_i32 : i32 to vector<64x64xi32>
    %152 = arith.cmpi eq, %9, %151 : vector<64x64xi32>
    %153 = arith.select %152, %147, %146 : vector<64x64xi1>, vector<64x64xf32>
    %c0_63 = arith.constant 0 : index
    %c960_64 = arith.constant 960 : index
    %154 = vector.load %arg8[%c0_63, %c960_64] : memref<64x1216xf32, #tpu.memory_space<vmem>>, vector<64x64xf32>
    %155 = arith.subf %154, %46 : vector<64x64xf32>
    %156 = math.exp %155 : vector<64x64xf32>
    %157 = arith.addf %150, %156 : vector<64x64xf32>
    %c15_i32 = arith.constant 15 : i32
    %158 = vector.broadcast %c15_i32 : i32 to vector<64x64xi32>
    %159 = arith.cmpi eq, %9, %158 : vector<64x64xi32>
    %160 = arith.select %159, %154, %153 : vector<64x64xi1>, vector<64x64xf32>
    %c0_65 = arith.constant 0 : index
    %c1024_66 = arith.constant 1024 : index
    %161 = vector.load %arg8[%c0_65, %c1024_66] : memref<64x1216xf32, #tpu.memory_space<vmem>>, vector<64x64xf32>
    %162 = arith.subf %161, %46 : vector<64x64xf32>
    %163 = math.exp %162 : vector<64x64xf32>
    %164 = arith.addf %157, %163 : vector<64x64xf32>
    %c16_i32 = arith.constant 16 : i32
    %165 = vector.broadcast %c16_i32 : i32 to vector<64x64xi32>
    %166 = arith.cmpi eq, %9, %165 : vector<64x64xi32>
    %167 = arith.select %166, %161, %160 : vector<64x64xi1>, vector<64x64xf32>
    %c0_67 = arith.constant 0 : index
    %c1088_68 = arith.constant 1088 : index
    %168 = vector.load %arg8[%c0_67, %c1088_68] : memref<64x1216xf32, #tpu.memory_space<vmem>>, vector<64x64xf32>
    %169 = arith.subf %168, %46 : vector<64x64xf32>
    %170 = math.exp %169 : vector<64x64xf32>
    %171 = arith.addf %164, %170 : vector<64x64xf32>
    %c17_i32 = arith.constant 17 : i32
    %172 = vector.broadcast %c17_i32 : i32 to vector<64x64xi32>
    %173 = arith.cmpi eq, %9, %172 : vector<64x64xi32>
    %174 = arith.select %173, %168, %167 : vector<64x64xi1>, vector<64x64xf32>
    %c0_69 = arith.constant 0 : index
    %c1152_70 = arith.constant 1152 : index
    %175 = vector.load %arg8[%c0_69, %c1152_70] : memref<64x1216xf32, #tpu.memory_space<vmem>>, vector<64x64xf32>
    %176 = arith.subf %175, %46 : vector<64x64xf32>
    %177 = math.exp %176 : vector<64x64xf32>
    %178 = arith.addf %171, %177 : vector<64x64xf32>
    %c18_i32 = arith.constant 18 : i32
    %179 = vector.broadcast %c18_i32 : i32 to vector<64x64xi32>
    %180 = arith.cmpi eq, %9, %179 : vector<64x64xi32>
    %181 = arith.select %180, %175, %174 : vector<64x64xi1>, vector<64x64xf32>
    %182 = math.log %178 : vector<64x64xf32>
    %183 = arith.addf %182, %46 : vector<64x64xf32>
    %184 = arith.subf %183, %181 : vector<64x64xf32>
    %c0_71 = arith.constant 0 : index
    %c0_72 = arith.constant 0 : index
    %c0_73 = arith.constant 0 : index
    %185 = vector.load %arg6[%c0_71, %c0_72, %c0_73] : memref<1x64x64xf32, #tpu.memory_space<vmem>>, vector<1x64x64xf32>
    %186 = vector.shape_cast %185 : vector<1x64x64xf32> to vector<64x64xf32>
    %187 = arith.mulf %184, %186 : vector<64x64xf32>
    %188 = tpu.iota {dimensions = array<i32: 0>} : vector<64x64xi32>
    %c1_i32_74 = arith.constant 1 : i32
    %189 = arith.muli %arg1, %c1_i32_74 : i32
    %190 = arith.addi %189, %arg2 : i32
    %c64_i32 = arith.constant 64 : i32
    %191 = arith.muli %190, %c64_i32 : i32
    %192 = vector.broadcast %191 : i32 to vector<64x64xi32>
    %193 = arith.addi %192, %188 : vector<64x64xi32>
    %c255_i32 = arith.constant 255 : i32
    %194 = vector.broadcast %c255_i32 : i32 to vector<64x64xi32>
    %195 = arith.cmpi ne, %9, %194 : vector<64x64xi32>
    %c64_i32_75 = arith.constant 64 : i32
    %196 = vector.broadcast %c64_i32_75 : i32 to vector<64x64xi32>
    %197 = arith.cmpi slt, %193, %196 : vector<64x64xi32>
    %198 = arith.andi %195, %197 : vector<64x64xi1>
    %c0_76 = arith.constant 0 : index
    %c0_77 = arith.constant 0 : index
    %c0_78 = arith.constant 0 : index
    %c0_79 = arith.constant 0 : index
    %199 = vector.load %arg7[%c0_76, %c0_77, %c0_78, %c0_79] : memref<1x1x64x64xf32, #tpu.memory_space<vmem>>, vector<1x1x64x64xf32>
    %200 = vector.shape_cast %199 : vector<1x1x64x64xf32> to vector<64x64xf32>
    %cst_80 = arith.constant 0.000000e+00 : f32
    %201 = vector.broadcast %cst_80 : f32 to vector<64x64xf32>
    %202 = arith.select %198, %187, %201 : vector<64x64xi1>, vector<64x64xf32>
    %203 = arith.addf %200, %202 : vector<64x64xf32>
    %c0_81 = arith.constant 0 : index
    %c0_82 = arith.constant 0 : index
    %c0_83 = arith.constant 0 : index
    %c0_84 = arith.constant 0 : index
    %204 = vector.load %arg7[%c0_81, %c0_82, %c0_83, %c0_84] : memref<1x1x64x64xf32, #tpu.memory_space<vmem>>, vector<1x1x64x64xf32>
    %205 = vector.shape_cast %204 : vector<1x1x64x64xf32> to vector<64x64xf32>
    %206 = vector.shape_cast %203 : vector<64x64xf32> to vector<1x1x64x64xf32>
    tpu.vector_store %arg7[%c0_81, %c0_82, %c0_83, %c0_84], %206 {strides = array<i32>} : memref<1x1x64x64xf32, #tpu.memory_space<vmem>>, vector<1x1x64x64xf32>,
    return
  }
  func.func @transform_0(%arg0: i32, %arg1: i32, %arg2: i32) -> (i32, i32) {
    %c1_i32 = arith.constant 1 : i32
    %0 = arith.muli %arg1, %c1_i32 : i32
    %1 = arith.addi %0, %arg2 : i32
    %c0_i32 = arith.constant 0 : i32
    %c0_i32_0 = arith.constant 0 : i32
    return %1, %c0_i32 : i32, i32
  }
  func.func @transform_1(%arg0: i32, %arg1: i32, %arg2: i32) -> (i32, i32, i32) {
    %c0_i32 = arith.constant 0 : i32
    %c0_i32_0 = arith.constant 0 : i32
    %c0_i32_1 = arith.constant 0 : i32
    return %arg0, %c0_i32, %c0_i32_0 : i32, i32, i32
  }
  func.func @transform_2(%arg0: i32, %arg1: i32, %arg2: i32) -> (i32, i32, i32) {
    %c1_i32 = arith.constant 1 : i32
    %0 = arith.muli %arg1, %c1_i32 : i32
    %1 = arith.addi %0, %arg2 : i32
    %c0_i32 = arith.constant 0 : i32
    %2 = arith.minsi %1, %c0_i32 : i32
    %c0_i32_0 = arith.constant 0 : i32
    %c0_i32_1 = arith.constant 0 : i32
    return %arg0, %2, %c0_i32_0 : i32, i32, i32
  }
  func.func @transform_3(%arg0: i32, %arg1: i32, %arg2: i32) -> (i32, i32, i32) {
    %c1_i32 = arith.constant 1 : i32
    %0 = arith.muli %arg1, %c1_i32 : i32
    %1 = arith.addi %0, %arg2 : i32
    %c0_i32 = arith.constant 0 : i32
    %2 = arith.minsi %1, %c0_i32 : i32
    %c0_i32_0 = arith.constant 0 : i32
    %c0_i32_1 = arith.constant 0 : i32
    return %arg0, %2, %c0_i32_0 : i32, i32, i32
  }
  func.func @transform_4(%arg0: i32, %arg1: i32, %arg2: i32) -> (i32, i32, i32, i32) {
    %c0_i32 = arith.constant 0 : i32
    %c0_i32_0 = arith.constant 0 : i32
    %c0_i32_1 = arith.constant 0 : i32
    return %arg0, %arg1, %c0_i32, %c0_i32_0 : i32, i32, i32, i32
  }
}

module attributes {stable_mosaic.version = 11 : i64} {
  func.func @_fused_ce_kernel(%arg0: i32, %arg1: i32, %arg2: i32, %arg3: memref<64x8xbf16, #tpu.memory_space<vmem>>, %arg4: memref<1x8x1216xbf16, #tpu.memory_space<vmem>>, %arg5: memref<1x64x64xi32, #tpu.memory_space<vmem>>, %arg6: memref<1x1x64x64xf32, #tpu.memory_space<vmem>>, %arg7: memref<64x1216xf32, #tpu.memory_space<vmem>>) attributes {dimension_semantics = [#tpu.dimension_semantics<parallel>, #tpu.dimension_semantics<parallel>, #tpu.dimension_semantics<arbitrary>], iteration_bounds = array<i64: 2, 1, 1>, scalar_prefetch = 0 : i64, scratch_operands = 1 : i64, tpu.core_type = #tpu.core_type<tc>, window_params = [{transform_indices = @transform_0, window_bounds = array<i64: 64, 8>}, {transform_indices = @transform_1, window_bounds = array<i64: 1, 8, 1216>}, {transform_indices = @transform_2, window_bounds = array<i64: 1, 64, 64>}, {transform_indices = @transform_3, window_bounds = array<i64: 1, 1, 64, 64>}]} {
    %c0_i32 = arith.constant 0 : i32
    %0 = arith.cmpi eq, %arg2, %c0_i32 : i32
    %1 = arith.extui %0 : i1 to i32
    %c0_i32_0 = arith.constant 0 : i32
    %2 = arith.cmpi ne, %1, %c0_i32_0 : i32
    scf.if %2 {
      %cst_82 = arith.constant 0.000000e+00 : f32
      %204 = vector.broadcast %cst_82 : f32 to vector<64x64xf32>
      %c0_83 = arith.constant 0 : index
      %c0_84 = arith.constant 0 : index
      %c0_85 = arith.constant 0 : index
      %c0_86 = arith.constant 0 : index
      %205 = vector.load %arg6[%c0_83, %c0_84, %c0_85, %c0_86] : memref<1x1x64x64xf32, #tpu.memory_space<vmem>>, vector<1x1x64x64xf32>
      %206 = vector.shape_cast %205 : vector<1x1x64x64xf32> to vector<64x64xf32>
      %207 = vector.shape_cast %204 : vector<64x64xf32> to vector<1x1x64x64xf32>
      tpu.vector_store %arg6[%c0_83, %c0_84, %c0_85, %c0_86], %207 {strides = array<i32>} : memref<1x1x64x64xf32, #tpu.memory_space<vmem>>, vector<1x1x64x64xf32>,
    } else {
    }
    %c0 = arith.constant 0 : index
    %c0_1 = arith.constant 0 : index
    %3 = vector.load %arg3[%c0, %c0_1] : memref<64x8xbf16, #tpu.memory_space<vmem>>, vector<64x8xbf16>
    %c0_2 = arith.constant 0 : index
    %c0_3 = arith.constant 0 : index
    %c0_4 = arith.constant 0 : index
    %4 = vector.load %arg4[%c0_2, %c0_3, %c0_4] : memref<1x8x1216xbf16, #tpu.memory_space<vmem>>, vector<1x8x1216xbf16>
    %5 = vector.shape_cast %4 : vector<1x8x1216xbf16> to vector<8x1216xbf16>
    %cst = arith.constant dense<0.000000e+00> : vector<64x1216xf32>
    %6 = tpu.matmul %3, %5, %cst {dimension_numbers = #tpu.dot_dimension_numbers<[1], [0], [0], [1], [0, 0, 1, 1], [], []>} : vector<64x8xbf16>, vector<8x1216xbf16>, vector<64x1216xf32> -> vector<64x1216xf32>
    %c0_5 = arith.constant 0 : index
    %c0_6 = arith.constant 0 : index
    %7 = vector.load %arg7[%c0_5, %c0_6] : memref<64x1216xf32, #tpu.memory_space<vmem>>, vector<64x1216xf32>
    tpu.vector_store %arg7[%c0_5, %c0_6], %6 {strides = array<i32>} : memref<64x1216xf32, #tpu.memory_space<vmem>>, vector<64x1216xf32>,
    %c0_7 = arith.constant 0 : index
    %c0_8 = arith.constant 0 : index
    %c0_9 = arith.constant 0 : index
    %8 = vector.load %arg5[%c0_7, %c0_8, %c0_9] : memref<1x64x64xi32, #tpu.memory_space<vmem>>, vector<1x64x64xi32>
    %9 = vector.shape_cast %8 : vector<1x64x64xi32> to vector<64x64xi32>
    %c0_10 = arith.constant 0 : index
    %c0_11 = arith.constant 0 : index
    %10 = vector.load %arg7[%c0_10, %c0_11] : memref<64x1216xf32, #tpu.memory_space<vmem>>, vector<64x64xf32>
    %c0_12 = arith.constant 0 : index
    %c64 = arith.constant 64 : index
    %11 = vector.load %arg7[%c0_12, %c64] : memref<64x1216xf32, #tpu.memory_space<vmem>>, vector<64x64xf32>
    %12 = arith.maximumf %10, %11 : vector<64x64xf32>
    %c0_13 = arith.constant 0 : index
    %c128 = arith.constant 128 : index
    %13 = vector.load %arg7[%c0_13, %c128] : memref<64x1216xf32, #tpu.memory_space<vmem>>, vector<64x64xf32>
    %14 = arith.maximumf %12, %13 : vector<64x64xf32>
    %c0_14 = arith.constant 0 : index
    %c192 = arith.constant 192 : index
    %15 = vector.load %arg7[%c0_14, %c192] : memref<64x1216xf32, #tpu.memory_space<vmem>>, vector<64x64xf32>
    %16 = arith.maximumf %14, %15 : vector<64x64xf32>
    %c0_15 = arith.constant 0 : index
    %c256 = arith.constant 256 : index
    %17 = vector.load %arg7[%c0_15, %c256] : memref<64x1216xf32, #tpu.memory_space<vmem>>, vector<64x64xf32>
    %18 = arith.maximumf %16, %17 : vector<64x64xf32>
    %c0_16 = arith.constant 0 : index
    %c320 = arith.constant 320 : index
    %19 = vector.load %arg7[%c0_16, %c320] : memref<64x1216xf32, #tpu.memory_space<vmem>>, vector<64x64xf32>
    %20 = arith.maximumf %18, %19 : vector<64x64xf32>
    %c0_17 = arith.constant 0 : index
    %c384 = arith.constant 384 : index
    %21 = vector.load %arg7[%c0_17, %c384] : memref<64x1216xf32, #tpu.memory_space<vmem>>, vector<64x64xf32>
    %22 = arith.maximumf %20, %21 : vector<64x64xf32>
    %c0_18 = arith.constant 0 : index
    %c448 = arith.constant 448 : index
    %23 = vector.load %arg7[%c0_18, %c448] : memref<64x1216xf32, #tpu.memory_space<vmem>>, vector<64x64xf32>
    %24 = arith.maximumf %22, %23 : vector<64x64xf32>
    %c0_19 = arith.constant 0 : index
    %c512 = arith.constant 512 : index
    %25 = vector.load %arg7[%c0_19, %c512] : memref<64x1216xf32, #tpu.memory_space<vmem>>, vector<64x64xf32>
    %26 = arith.maximumf %24, %25 : vector<64x64xf32>
    %c0_20 = arith.constant 0 : index
    %c576 = arith.constant 576 : index
    %27 = vector.load %arg7[%c0_20, %c576] : memref<64x1216xf32, #tpu.memory_space<vmem>>, vector<64x64xf32>
    %28 = arith.maximumf %26, %27 : vector<64x64xf32>
    %c0_21 = arith.constant 0 : index
    %c640 = arith.constant 640 : index
    %29 = vector.load %arg7[%c0_21, %c640] : memref<64x1216xf32, #tpu.memory_space<vmem>>, vector<64x64xf32>
    %30 = arith.maximumf %28, %29 : vector<64x64xf32>
    %c0_22 = arith.constant 0 : index
    %c704 = arith.constant 704 : index
    %31 = vector.load %arg7[%c0_22, %c704] : memref<64x1216xf32, #tpu.memory_space<vmem>>, vector<64x64xf32>
    %32 = arith.maximumf %30, %31 : vector<64x64xf32>
    %c0_23 = arith.constant 0 : index
    %c768 = arith.constant 768 : index
    %33 = vector.load %arg7[%c0_23, %c768] : memref<64x1216xf32, #tpu.memory_space<vmem>>, vector<64x64xf32>
    %34 = arith.maximumf %32, %33 : vector<64x64xf32>
    %c0_24 = arith.constant 0 : index
    %c832 = arith.constant 832 : index
    %35 = vector.load %arg7[%c0_24, %c832] : memref<64x1216xf32, #tpu.memory_space<vmem>>, vector<64x64xf32>
    %36 = arith.maximumf %34, %35 : vector<64x64xf32>
    %c0_25 = arith.constant 0 : index
    %c896 = arith.constant 896 : index
    %37 = vector.load %arg7[%c0_25, %c896] : memref<64x1216xf32, #tpu.memory_space<vmem>>, vector<64x64xf32>
    %38 = arith.maximumf %36, %37 : vector<64x64xf32>
    %c0_26 = arith.constant 0 : index
    %c960 = arith.constant 960 : index
    %39 = vector.load %arg7[%c0_26, %c960] : memref<64x1216xf32, #tpu.memory_space<vmem>>, vector<64x64xf32>
    %40 = arith.maximumf %38, %39 : vector<64x64xf32>
    %c0_27 = arith.constant 0 : index
    %c1024 = arith.constant 1024 : index
    %41 = vector.load %arg7[%c0_27, %c1024] : memref<64x1216xf32, #tpu.memory_space<vmem>>, vector<64x64xf32>
    %42 = arith.maximumf %40, %41 : vector<64x64xf32>
    %c0_28 = arith.constant 0 : index
    %c1088 = arith.constant 1088 : index
    %43 = vector.load %arg7[%c0_28, %c1088] : memref<64x1216xf32, #tpu.memory_space<vmem>>, vector<64x64xf32>
    %44 = arith.maximumf %42, %43 : vector<64x64xf32>
    %c0_29 = arith.constant 0 : index
    %c1152 = arith.constant 1152 : index
    %45 = vector.load %arg7[%c0_29, %c1152] : memref<64x1216xf32, #tpu.memory_space<vmem>>, vector<64x64xf32>
    %46 = arith.maximumf %44, %45 : vector<64x64xf32>
    %cst_30 = arith.constant 0.000000e+00 : f32
    %47 = vector.broadcast %cst_30 : f32 to vector<64x64xf32>
    %cst_31 = arith.constant 0.000000e+00 : f32
    %48 = vector.broadcast %cst_31 : f32 to vector<64x64xf32>
    %c0_32 = arith.constant 0 : index
    %c0_33 = arith.constant 0 : index
    %49 = vector.load %arg7[%c0_32, %c0_33] : memref<64x1216xf32, #tpu.memory_space<vmem>>, vector<64x64xf32>
    %50 = arith.subf %49, %46 : vector<64x64xf32>
    %51 = math.exp %50 : vector<64x64xf32>
    %52 = arith.addf %47, %51 : vector<64x64xf32>
    %c0_i32_34 = arith.constant 0 : i32
    %53 = vector.broadcast %c0_i32_34 : i32 to vector<64x64xi32>
    %54 = arith.cmpi eq, %9, %53 : vector<64x64xi32>
    %55 = arith.select %54, %49, %48 : vector<64x64xi1>, vector<64x64xf32>
    %c0_35 = arith.constant 0 : index
    %c64_36 = arith.constant 64 : index
    %56 = vector.load %arg7[%c0_35, %c64_36] : memref<64x1216xf32, #tpu.memory_space<vmem>>, vector<64x64xf32>
    %57 = arith.subf %56, %46 : vector<64x64xf32>
    %58 = math.exp %57 : vector<64x64xf32>
    %59 = arith.addf %52, %58 : vector<64x64xf32>
    %c1_i32 = arith.constant 1 : i32
    %60 = vector.broadcast %c1_i32 : i32 to vector<64x64xi32>
    %61 = arith.cmpi eq, %9, %60 : vector<64x64xi32>
    %62 = arith.select %61, %56, %55 : vector<64x64xi1>, vector<64x64xf32>
    %c0_37 = arith.constant 0 : index
    %c128_38 = arith.constant 128 : index
    %63 = vector.load %arg7[%c0_37, %c128_38] : memref<64x1216xf32, #tpu.memory_space<vmem>>, vector<64x64xf32>
    %64 = arith.subf %63, %46 : vector<64x64xf32>
    %65 = math.exp %64 : vector<64x64xf32>
    %66 = arith.addf %59, %65 : vector<64x64xf32>
    %c2_i32 = arith.constant 2 : i32
    %67 = vector.broadcast %c2_i32 : i32 to vector<64x64xi32>
    %68 = arith.cmpi eq, %9, %67 : vector<64x64xi32>
    %69 = arith.select %68, %63, %62 : vector<64x64xi1>, vector<64x64xf32>
    %c0_39 = arith.constant 0 : index
    %c192_40 = arith.constant 192 : index
    %70 = vector.load %arg7[%c0_39, %c192_40] : memref<64x1216xf32, #tpu.memory_space<vmem>>, vector<64x64xf32>
    %71 = arith.subf %70, %46 : vector<64x64xf32>
    %72 = math.exp %71 : vector<64x64xf32>
    %73 = arith.addf %66, %72 : vector<64x64xf32>
    %c3_i32 = arith.constant 3 : i32
    %74 = vector.broadcast %c3_i32 : i32 to vector<64x64xi32>
    %75 = arith.cmpi eq, %9, %74 : vector<64x64xi32>
    %76 = arith.select %75, %70, %69 : vector<64x64xi1>, vector<64x64xf32>
    %c0_41 = arith.constant 0 : index
    %c256_42 = arith.constant 256 : index
    %77 = vector.load %arg7[%c0_41, %c256_42] : memref<64x1216xf32, #tpu.memory_space<vmem>>, vector<64x64xf32>
    %78 = arith.subf %77, %46 : vector<64x64xf32>
    %79 = math.exp %78 : vector<64x64xf32>
    %80 = arith.addf %73, %79 : vector<64x64xf32>
    %c4_i32 = arith.constant 4 : i32
    %81 = vector.broadcast %c4_i32 : i32 to vector<64x64xi32>
    %82 = arith.cmpi eq, %9, %81 : vector<64x64xi32>
    %83 = arith.select %82, %77, %76 : vector<64x64xi1>, vector<64x64xf32>
    %c0_43 = arith.constant 0 : index
    %c320_44 = arith.constant 320 : index
    %84 = vector.load %arg7[%c0_43, %c320_44] : memref<64x1216xf32, #tpu.memory_space<vmem>>, vector<64x64xf32>
    %85 = arith.subf %84, %46 : vector<64x64xf32>
    %86 = math.exp %85 : vector<64x64xf32>
    %87 = arith.addf %80, %86 : vector<64x64xf32>
    %c5_i32 = arith.constant 5 : i32
    %88 = vector.broadcast %c5_i32 : i32 to vector<64x64xi32>
    %89 = arith.cmpi eq, %9, %88 : vector<64x64xi32>
    %90 = arith.select %89, %84, %83 : vector<64x64xi1>, vector<64x64xf32>
    %c0_45 = arith.constant 0 : index
    %c384_46 = arith.constant 384 : index
    %91 = vector.load %arg7[%c0_45, %c384_46] : memref<64x1216xf32, #tpu.memory_space<vmem>>, vector<64x64xf32>
    %92 = arith.subf %91, %46 : vector<64x64xf32>
    %93 = math.exp %92 : vector<64x64xf32>
    %94 = arith.addf %87, %93 : vector<64x64xf32>
    %c6_i32 = arith.constant 6 : i32
    %95 = vector.broadcast %c6_i32 : i32 to vector<64x64xi32>
    %96 = arith.cmpi eq, %9, %95 : vector<64x64xi32>
    %97 = arith.select %96, %91, %90 : vector<64x64xi1>, vector<64x64xf32>
    %c0_47 = arith.constant 0 : index
    %c448_48 = arith.constant 448 : index
    %98 = vector.load %arg7[%c0_47, %c448_48] : memref<64x1216xf32, #tpu.memory_space<vmem>>, vector<64x64xf32>
    %99 = arith.subf %98, %46 : vector<64x64xf32>
    %100 = math.exp %99 : vector<64x64xf32>
    %101 = arith.addf %94, %100 : vector<64x64xf32>
    %c7_i32 = arith.constant 7 : i32
    %102 = vector.broadcast %c7_i32 : i32 to vector<64x64xi32>
    %103 = arith.cmpi eq, %9, %102 : vector<64x64xi32>
    %104 = arith.select %103, %98, %97 : vector<64x64xi1>, vector<64x64xf32>
    %c0_49 = arith.constant 0 : index
    %c512_50 = arith.constant 512 : index
    %105 = vector.load %arg7[%c0_49, %c512_50] : memref<64x1216xf32, #tpu.memory_space<vmem>>, vector<64x64xf32>
    %106 = arith.subf %105, %46 : vector<64x64xf32>
    %107 = math.exp %106 : vector<64x64xf32>
    %108 = arith.addf %101, %107 : vector<64x64xf32>
    %c8_i32 = arith.constant 8 : i32
    %109 = vector.broadcast %c8_i32 : i32 to vector<64x64xi32>
    %110 = arith.cmpi eq, %9, %109 : vector<64x64xi32>
    %111 = arith.select %110, %105, %104 : vector<64x64xi1>, vector<64x64xf32>
    %c0_51 = arith.constant 0 : index
    %c576_52 = arith.constant 576 : index
    %112 = vector.load %arg7[%c0_51, %c576_52] : memref<64x1216xf32, #tpu.memory_space<vmem>>, vector<64x64xf32>
    %113 = arith.subf %112, %46 : vector<64x64xf32>
    %114 = math.exp %113 : vector<64x64xf32>
    %115 = arith.addf %108, %114 : vector<64x64xf32>
    %c9_i32 = arith.constant 9 : i32
    %116 = vector.broadcast %c9_i32 : i32 to vector<64x64xi32>
    %117 = arith.cmpi eq, %9, %116 : vector<64x64xi32>
    %118 = arith.select %117, %112, %111 : vector<64x64xi1>, vector<64x64xf32>
    %c0_53 = arith.constant 0 : index
    %c640_54 = arith.constant 640 : index
    %119 = vector.load %arg7[%c0_53, %c640_54] : memref<64x1216xf32, #tpu.memory_space<vmem>>, vector<64x64xf32>
    %120 = arith.subf %119, %46 : vector<64x64xf32>
    %121 = math.exp %120 : vector<64x64xf32>
    %122 = arith.addf %115, %121 : vector<64x64xf32>
    %c10_i32 = arith.constant 10 : i32
    %123 = vector.broadcast %c10_i32 : i32 to vector<64x64xi32>
    %124 = arith.cmpi eq, %9, %123 : vector<64x64xi32>
    %125 = arith.select %124, %119, %118 : vector<64x64xi1>, vector<64x64xf32>
    %c0_55 = arith.constant 0 : index
    %c704_56 = arith.constant 704 : index
    %126 = vector.load %arg7[%c0_55, %c704_56] : memref<64x1216xf32, #tpu.memory_space<vmem>>, vector<64x64xf32>
    %127 = arith.subf %126, %46 : vector<64x64xf32>
    %128 = math.exp %127 : vector<64x64xf32>
    %129 = arith.addf %122, %128 : vector<64x64xf32>
    %c11_i32 = arith.constant 11 : i32
    %130 = vector.broadcast %c11_i32 : i32 to vector<64x64xi32>
    %131 = arith.cmpi eq, %9, %130 : vector<64x64xi32>
    %132 = arith.select %131, %126, %125 : vector<64x64xi1>, vector<64x64xf32>
    %c0_57 = arith.constant 0 : index
    %c768_58 = arith.constant 768 : index
    %133 = vector.load %arg7[%c0_57, %c768_58] : memref<64x1216xf32, #tpu.memory_space<vmem>>, vector<64x64xf32>
    %134 = arith.subf %133, %46 : vector<64x64xf32>
    %135 = math.exp %134 : vector<64x64xf32>
    %136 = arith.addf %129, %135 : vector<64x64xf32>
    %c12_i32 = arith.constant 12 : i32
    %137 = vector.broadcast %c12_i32 : i32 to vector<64x64xi32>
    %138 = arith.cmpi eq, %9, %137 : vector<64x64xi32>
    %139 = arith.select %138, %133, %132 : vector<64x64xi1>, vector<64x64xf32>
    %c0_59 = arith.constant 0 : index
    %c832_60 = arith.constant 832 : index
    %140 = vector.load %arg7[%c0_59, %c832_60] : memref<64x1216xf32, #tpu.memory_space<vmem>>, vector<64x64xf32>
    %141 = arith.subf %140, %46 : vector<64x64xf32>
    %142 = math.exp %141 : vector<64x64xf32>
    %143 = arith.addf %136, %142 : vector<64x64xf32>
    %c13_i32 = arith.constant 13 : i32
    %144 = vector.broadcast %c13_i32 : i32 to vector<64x64xi32>
    %145 = arith.cmpi eq, %9, %144 : vector<64x64xi32>
    %146 = arith.select %145, %140, %139 : vector<64x64xi1>, vector<64x64xf32>
    %c0_61 = arith.constant 0 : index
    %c896_62 = arith.constant 896 : index
    %147 = vector.load %arg7[%c0_61, %c896_62] : memref<64x1216xf32, #tpu.memory_space<vmem>>, vector<64x64xf32>
    %148 = arith.subf %147, %46 : vector<64x64xf32>
    %149 = math.exp %148 : vector<64x64xf32>
    %150 = arith.addf %143, %149 : vector<64x64xf32>
    %c14_i32 = arith.constant 14 : i32
    %151 = vector.broadcast %c14_i32 : i32 to vector<64x64xi32>
    %152 = arith.cmpi eq, %9, %151 : vector<64x64xi32>
    %153 = arith.select %152, %147, %146 : vector<64x64xi1>, vector<64x64xf32>
    %c0_63 = arith.constant 0 : index
    %c960_64 = arith.constant 960 : index
    %154 = vector.load %arg7[%c0_63, %c960_64] : memref<64x1216xf32, #tpu.memory_space<vmem>>, vector<64x64xf32>
    %155 = arith.subf %154, %46 : vector<64x64xf32>
    %156 = math.exp %155 : vector<64x64xf32>
    %157 = arith.addf %150, %156 : vector<64x64xf32>
    %c15_i32 = arith.constant 15 : i32
    %158 = vector.broadcast %c15_i32 : i32 to vector<64x64xi32>
    %159 = arith.cmpi eq, %9, %158 : vector<64x64xi32>
    %160 = arith.select %159, %154, %153 : vector<64x64xi1>, vector<64x64xf32>
    %c0_65 = arith.constant 0 : index
    %c1024_66 = arith.constant 1024 : index
    %161 = vector.load %arg7[%c0_65, %c1024_66] : memref<64x1216xf32, #tpu.memory_space<vmem>>, vector<64x64xf32>
    %162 = arith.subf %161, %46 : vector<64x64xf32>
    %163 = math.exp %162 : vector<64x64xf32>
    %164 = arith.addf %157, %163 : vector<64x64xf32>
    %c16_i32 = arith.constant 16 : i32
    %165 = vector.broadcast %c16_i32 : i32 to vector<64x64xi32>
    %166 = arith.cmpi eq, %9, %165 : vector<64x64xi32>
    %167 = arith.select %166, %161, %160 : vector<64x64xi1>, vector<64x64xf32>
    %c0_67 = arith.constant 0 : index
    %c1088_68 = arith.constant 1088 : index
    %168 = vector.load %arg7[%c0_67, %c1088_68] : memref<64x1216xf32, #tpu.memory_space<vmem>>, vector<64x64xf32>
    %169 = arith.subf %168, %46 : vector<64x64xf32>
    %170 = math.exp %169 : vector<64x64xf32>
    %171 = arith.addf %164, %170 : vector<64x64xf32>
    %c17_i32 = arith.constant 17 : i32
    %172 = vector.broadcast %c17_i32 : i32 to vector<64x64xi32>
    %173 = arith.cmpi eq, %9, %172 : vector<64x64xi32>
    %174 = arith.select %173, %168, %167 : vector<64x64xi1>, vector<64x64xf32>
    %c0_69 = arith.constant 0 : index
    %c1152_70 = arith.constant 1152 : index
    %175 = vector.load %arg7[%c0_69, %c1152_70] : memref<64x1216xf32, #tpu.memory_space<vmem>>, vector<64x64xf32>
    %176 = arith.subf %175, %46 : vector<64x64xf32>
    %177 = math.exp %176 : vector<64x64xf32>
    %178 = arith.addf %171, %177 : vector<64x64xf32>
    %c18_i32 = arith.constant 18 : i32
    %179 = vector.broadcast %c18_i32 : i32 to vector<64x64xi32>
    %180 = arith.cmpi eq, %9, %179 : vector<64x64xi32>
    %181 = arith.select %180, %175, %174 : vector<64x64xi1>, vector<64x64xf32>
    %182 = math.log %178 : vector<64x64xf32>
    %183 = arith.addf %182, %46 : vector<64x64xf32>
    %184 = arith.subf %183, %181 : vector<64x64xf32>
    %185 = tpu.iota {dimensions = array<i32: 0>} : vector<64x64xi32>
    %c1_i32_71 = arith.constant 1 : i32
    %186 = arith.muli %arg1, %c1_i32_71 : i32
    %187 = arith.addi %186, %arg2 : i32
    %c64_i32 = arith.constant 64 : i32
    %188 = arith.muli %187, %c64_i32 : i32
    %189 = vector.broadcast %188 : i32 to vector<64x64xi32>
    %190 = arith.addi %189, %185 : vector<64x64xi32>
    %c255_i32 = arith.constant 255 : i32
    %191 = vector.broadcast %c255_i32 : i32 to vector<64x64xi32>
    %192 = arith.cmpi ne, %9, %191 : vector<64x64xi32>
    %c64_i32_72 = arith.constant 64 : i32
    %193 = vector.broadcast %c64_i32_72 : i32 to vector<64x64xi32>
    %194 = arith.cmpi slt, %190, %193 : vector<64x64xi32>
    %195 = arith.andi %192, %194 : vector<64x64xi1>
    %c0_73 = arith.constant 0 : index
    %c0_74 = arith.constant 0 : index
    %c0_75 = arith.constant 0 : index
    %c0_76 = arith.constant 0 : index
    %196 = vector.load %arg6[%c0_73, %c0_74, %c0_75, %c0_76] : memref<1x1x64x64xf32, #tpu.memory_space<vmem>>, vector<1x1x64x64xf32>
    %197 = vector.shape_cast %196 : vector<1x1x64x64xf32> to vector<64x64xf32>
    %cst_77 = arith.constant 0.000000e+00 : f32
    %198 = vector.broadcast %cst_77 : f32 to vector<64x64xf32>
    %199 = arith.select %195, %184, %198 : vector<64x64xi1>, vector<64x64xf32>
    %200 = arith.addf %197, %199 : vector<64x64xf32>
    %c0_78 = arith.constant 0 : index
    %c0_79 = arith.constant 0 : index
    %c0_80 = arith.constant 0 : index
    %c0_81 = arith.constant 0 : index
    %201 = vector.load %arg6[%c0_78, %c0_79, %c0_80, %c0_81] : memref<1x1x64x64xf32, #tpu.memory_space<vmem>>, vector<1x1x64x64xf32>
    %202 = vector.shape_cast %201 : vector<1x1x64x64xf32> to vector<64x64xf32>
    %203 = vector.shape_cast %200 : vector<64x64xf32> to vector<1x1x64x64xf32>
    tpu.vector_store %arg6[%c0_78, %c0_79, %c0_80, %c0_81], %203 {strides = array<i32>} : memref<1x1x64x64xf32, #tpu.memory_space<vmem>>, vector<1x1x64x64xf32>,
    return
  }
  func.func @transform_0(%arg0: i32, %arg1: i32, %arg2: i32) -> (i32, i32) {
    %c1_i32 = arith.constant 1 : i32
    %0 = arith.muli %arg1, %c1_i32 : i32
    %1 = arith.addi %0, %arg2 : i32
    %c0_i32 = arith.constant 0 : i32
    %c0_i32_0 = arith.constant 0 : i32
    return %1, %c0_i32 : i32, i32
  }
  func.func @transform_1(%arg0: i32, %arg1: i32, %arg2: i32) -> (i32, i32, i32) {
    %c0_i32 = arith.constant 0 : i32
    %c0_i32_0 = arith.constant 0 : i32
    %c0_i32_1 = arith.constant 0 : i32
    return %arg0, %c0_i32, %c0_i32_0 : i32, i32, i32
  }
  func.func @transform_2(%arg0: i32, %arg1: i32, %arg2: i32) -> (i32, i32, i32) {
    %c1_i32 = arith.constant 1 : i32
    %0 = arith.muli %arg1, %c1_i32 : i32
    %1 = arith.addi %0, %arg2 : i32
    %c0_i32 = arith.constant 0 : i32
    %2 = arith.minsi %1, %c0_i32 : i32
    %c0_i32_0 = arith.constant 0 : i32
    %c0_i32_1 = arith.constant 0 : i32
    return %arg0, %2, %c0_i32_0 : i32, i32, i32
  }
  func.func @transform_3(%arg0: i32, %arg1: i32, %arg2: i32) -> (i32, i32, i32, i32) {
    %c0_i32 = arith.constant 0 : i32
    %c0_i32_0 = arith.constant 0 : i32
    %c0_i32_1 = arith.constant 0 : i32
    return %arg0, %arg1, %c0_i32, %c0_i32_0 : i32, i32, i32, i32
  }
}

</mosaic_0001>

<bundles_post_ra>
// kernel: cmdise_criterion_forward.3
= control target key start
LH: loop header
LB: loop body
LE: loop exit
PB: predicated region body
PF: predicated region fallthrough
CT: control target
= control target key end

     0   :  { %s3515_s15 = smov 0   ;;  %s3517_s16 = smov 0   ;;  %s5422_s0 = inlined_call_operand.vmem [shape: bf16[64,8], index: 0, kind: input, shape index: {}]   ;;  %s5423_s1 = inlined_call_operand.vmem [shape: bf16[2,8,1216], index: 1, kind: input, shape index: {}]   ;;  %s5424_s2 = inlined_call_operand.vmem [shape: s32[2,64,64], index: 2, kind: input, shape index: {}]   ;;  %s5425_s3 = inlined_call_operand.vmem [shape: f32[2,64,64], index: 3, kind: input, shape index: {}]   ;;  %s5426_s4 = inlined_call_operand.vmem [shape: f32[2,1,64,64], index: 4, kind: output, shape index: {}]  }
   0x1   :  { %s3519_s17 = smov 0  }
   0x2 LB: > { %s33_s18 = sadd.s32 1, %s3481_s16  ;;  %p2951_p0 = scmp.ge.s32.totalorder %s3485_s17, 1  ;;  %s3485_s17 = sphi %s3519_s17, %s14_s17   ;;  %s3481_s16 = sphi %s3517_s16, %s5675_s16   ;;  %s3477_s15 = sphi %s3515_s15, %s5674_s15  }
   0x3   : > { %p35_p1 = scmp.ge.s32.totalorder %s33_s18, 2  ;;  %p256_p2 = scmp.lt.s32.totalorder %s3485_s17, 3 }
   0x5   : > { %s5677_s18 = smov (%p35_p1, %s33_s18), 0  ;;  %p257_p3 = pnand %p2951_p0, %p256_p2 }
   0x7   : > { %260 = sbr.rel (%p257_p3) target bundleno = 920 (0x398), region = 36 }
   0xe   : > { %p324_p4 = scmp.lt.s32.totalorder %s3477_s15, 1  ;;  %v3487_v0 = vmov 0   ;;  %vm455_vm0 = vcmask 1043456   ;;  %v3035_v4 = vld [vmem:[%s5422_s0] sm:$0xff]   ;;  %v3036_v8 = vld [vmem:[%s5422_s0 + $0x10] sm:$0xff]   ;;  %vm442_vm1 = vcmask 64512  }
   0xf   : > { %518 = vmatprep.mubr.bf16.mxu0 %v3487_v0  ;;  %538 = vmatprep.mubr.bf16.mxu1 %v3487_v0  ;;  %v3037_v19 = vld [vmem:[%s5422_s0 + $0x8] sm:$0xff]   ;;  %v3040_v20 = vld [vmem:[%s5422_s0 + $0x18] sm:$0xff]   ;;  %s3488_s9 = smov 64   ;;  %vm375_vm10 = vcmask 523264  }
  0x10   : > { %s5679_s15 = smov (!%p324_p4, %s3477_s15), 1 }
  0x11   : > { %s3005_s19 = smul.u32 40, %s5679_s15  ;;  %s3603_s5 = sshll.u32 %s5679_s15, 6 }
  0x12   : > { %s3609_s8 = scalar_lea.vmem %s5424_s2, %s3603_s5  ;;  %s4873_s12 = scalar_lea.vmem %s5426_s4, %s3603_s5 }
  0x13   : > { %s328_s22 = scalar_lea.vmem %s5423_s1, %s3005_s19  ;;  %v3612_v25 = vld [vmem:[%s3609_s8] sm:$0xff]  ;;  %v3618_v27 = vld [vmem:[%s3609_s8 + $0x8] sm:$0xff]  ;;  %v3656_v39 = vld [vmem:[%s3609_s8 + $0x10] sm:$0xff]  ;;  %s5274_s15 = scalar_lea.vmem %s5425_s3, %s3603_s5 }
  0x14   : > { %v392_v1 = vld [vmem:[%s328_s22] sm:$0xff]  ;;  %v393_v5 = vld [vmem:[%s328_s22 + $0x8] sm:$0xff]  ;;  %v394_v6 = vld [vmem:[%s328_s22 + $0x10] sm:$0xff]  ;;  %vm1484_vm2 = vcmp.eq.s32.totalorder %v3612_v25, 0  ;;  %vm1485_vm5 = vcmp.eq.s32.totalorder %v3618_v27, 0  ;;  %vm1486_vm6 = vcmp.eq.s32.totalorder %v3656_v39, 0 }
  0x15   : > { %v2964_v2 = vcombine.high %v392_v1, %v392_v1  ;;  %v2963_v3 = vcombine.low %v392_v1, %v392_v1  ;;  %v2966_v9 = vcombine.high %v393_v5, %v393_v5  ;;  %v2965_v10 = vcombine.low %v393_v5, %v393_v5  ;;  %v395_v12 = vld [vmem:[%s328_s22 + $0x18] sm:$0xff]  ;;  %v396_v13 = vld [vmem:[%s328_s22 + $0x20] sm:$0xff]  ;;  %v3621_v28 = vld [vmem:[%s3609_s8 + $0x28] sm:$0xff] }
  0x16   : > { %v2968_v11 = vcombine.high %v394_v6, %v394_v6  ;;  %v2967_v14 = vcombine.low %v394_v6, %v394_v6  ;;  %v2970_v17 = vcombine.high %v395_v12, %v395_v12  ;;  %v2972_v18 = vcombine.high %v396_v13, %v396_v13  ;;  %v3615_v26 = vld [vmem:[%s3609_s8 + $0x20] sm:$0xff]  ;;  %v3659_v40 = vld [vmem:[%s3609_s8 + $0x30] sm:$0xff]  ;;  %v3686_v47 = vld [vmem:[%s3609_s8 + $0x18] sm:$0xff] }
  0x17   : > { %2973 = vmatprep.subr.msk.bf16.mxu0 %vm455_vm0, %v2964_v2  ;;  %3003 = vmatprep.subr.msk.bf16.mxu1 %vm455_vm0, %v2964_v2  ;;  %v457_v7 = vsel %vm455_vm0, %v2963_v3, 0  ;;  %v463_v15 = vsel %vm455_vm0, %v2965_v10, 0  ;;  %v2969_v21 = vcombine.low %v395_v12, %v395_v12  ;;  %v2971_v22 = vcombine.low %v396_v13, %v396_v13  ;;  %v3689_v48 = vld [vmem:[%s3609_s8 + $0x38] sm:$0xff] }
  0x18   : > { %487 = vmatpush1.bf16.msra.mxu0 %v457_v7  ;;  %3004 = vmatpush1.bf16.msra.mxu1 %v457_v7  ;;  %v469_v16 = vsel %vm455_vm0, %v2967_v14, 0  ;;  %vm1488_vm3 = vcmp.eq.s32.totalorder %v3615_v26, 0  ;;  %vm1489_vm4 = vcmp.eq.s32.totalorder %v3621_v28, 0  ;;  %vm1490_vm7 = vcmp.eq.s32.totalorder %v3659_v40, 0 }
  0x19   : > { %2978 = vmatprep.subr.msk.bf16.mxu1 %vm455_vm0, %v2966_v9  ;;  %2983 = vmatprep.subr.msk.bf16.mxu0 %vm455_vm0, %v2968_v11  ;;  %v475_v23 = vsel %vm455_vm0, %v2969_v21, 0  ;;  %v481_v24 = vsel %vm455_vm0, %v2971_v22, 0  ;;  %vm1487_vm8 = vcmp.eq.s32.totalorder %v3686_v47, 0  ;;  %vm1491_vm9 = vcmp.eq.s32.totalorder %v3689_v48, 0 }
  0x1a   : > { %vm1596_vm11 = vcmp.eq.s32.totalorder %v3612_v25, 1  ;;  %vm1644_vm12 = vcmp.eq.s32.totalorder %v3612_v25, 2  ;;  %vm1601_vm13 = vcmp.eq.s32.totalorder %v3621_v28, 1  ;;  %vm1649_vm14 = vcmp.eq.s32.totalorder %v3621_v28, 2 }
  0x1b   : > { %2974 = vmatmul.mubr.msk.bf16.vlgmr.msra.gmra.mrb[0].mxu0 %vm442_vm1, %v3035_v4  ;;  %2976 = vmatmul.mubr.msk.bf16.vlgmr.msra.gmra.mrb[0].mxu1 %vm442_vm1, %v3036_v8  ;;  %vm1600_vm15 = vcmp.eq.s32.totalorder %v3615_v26, 1 }
  0x1c   : > { %528 = vmatprep.mubr.bf16.mxu0 %v3487_v0  ;;  %548 = vmatprep.mubr.bf16.mxu1 %v3487_v0 }
  0x1d   : > { %560 = vmatpush1.bf16.msra.mxu1 %v463_v15  ;;  %633 = vmatpush1.bf16.msra.mxu0 %v469_v16 }
  0x1e   : > { %2988 = vmatprep.subr.msk.bf16.mxu1 %vm455_vm0, %v2970_v17  ;;  %2993 = vmatprep.subr.msk.bf16.mxu0 %vm455_vm0, %v2972_v18  ;;  %vm1648_vm0 = vcmp.eq.s32.totalorder %v3615_v26, 2 }
  0x23   : > { %2975 = vmatmul.mubr.msk.bf16.gmra.mrb[4].mxu0 %vm442_vm1, %v3037_v19  ;;  %2977 = vmatmul.mubr.msk.bf16.gmra.mrb[4].mxu1 %vm442_vm1, %v3040_v20 }
  0x24   : > { %591 = vmatprep.mubr.bf16.mxu1 %v3487_v0  ;;  %664 = vmatprep.mubr.bf16.mxu0 %v3487_v0 }
  0x2b   : > { %2979 = vmatmul.mubr.msk.bf16.vlgmr.msra.gmra.mrb[8].mxu1 %vm442_vm1, %v3035_v4  ;;  %2984 = vmatmul.mubr.msk.bf16.vlgmr.msra.gmra.mrb[8].mxu0 %vm442_vm1, %v3035_v4 }
  0x2c   : > { %601 = vmatprep.mubr.bf16.mxu1 %v3487_v0  ;;  %674 = vmatprep.mubr.bf16.mxu0 %v3487_v0 }
  0x2d   : > { %706 = vmatpush1.bf16.msra.mxu1 %v475_v23  ;;  %779 = vmatpush1.bf16.msra.mxu0 %v481_v24 }
  0x33   : > { %2980 = vmatmul.mubr.msk.bf16.gmra.mrb[12].mxu1 %vm442_vm1, %v3037_v19  ;;  %2985 = vmatmul.mubr.msk.bf16.gmra.mrb[12].mxu0 %vm442_vm1, %v3037_v19 }
  0x34   : > { %611 = vmatprep.mubr.bf16.mxu1 %v3487_v0  ;;  %684 = vmatprep.mubr.bf16.mxu0 %v3487_v0 }
  0x3b   : > { %2981 = vmatmul.mubr.msk.bf16.gmra.mrb[16].mxu1 %vm442_vm1, %v3036_v8  ;;  %2986 = vmatmul.mubr.msk.bf16.gmra.mrb[16].mxu0 %vm442_vm1, %v3036_v8 }
  0x3c   : > { %621 = vmatprep.mubr.bf16.mxu1 %v3487_v0  ;;  %694 = vmatprep.mubr.bf16.mxu0 %v3487_v0 }
  0x43   : > { %2982 = vmatmul.mubr.msk.bf16.gmra.mrb[20].mxu1 %vm442_vm1, %v3040_v20  ;;  %2987 = vmatmul.mubr.msk.bf16.gmra.mrb[20].mxu0 %vm442_vm1, %v3040_v20 }
  0x44   : > { %737 = vmatprep.mubr.bf16.mxu1 %v3487_v0  ;;  %810 = vmatprep.mubr.bf16.mxu0 %v3487_v0 }
  0x4b   : > { %2989 = vmatmul.mubr.msk.bf16.vlgmr.msra.gmra.mrb[24].mxu1 %vm442_vm1, %v3035_v4  ;;  %2994 = vmatmul.mubr.msk.bf16.vlgmr.msra.gmra.mrb[24].mxu0 %vm442_vm1, %v3035_v4 }
  0x4c   : > { %747 = vmatprep.mubr.bf16.mxu1 %v3487_v0  ;;  %820 = vmatprep.mubr.bf16.mxu0 %v3487_v0 }
  0x53   : > { %2990 = vmatmul.mubr.msk.bf16.gmra.mrb[28].mxu1 %vm442_vm1, %v3037_v19  ;;  %2995 = vmatmul.mubr.msk.bf16.gmra.mrb[28].mxu0 %vm442_vm1, %v3037_v19 }
  0x54   : > { %757 = vmatprep.mubr.bf16.mxu1 %v3487_v0  ;;  %830 = vmatprep.mubr.bf16.mxu0 %v3487_v0 }
  0x5b   : > { %2991 = vmatmul.mubr.msk.bf16.gmra.mrb[32].mxu1 %vm442_vm1, %v3036_v8  ;;  %2996 = vmatmul.mubr.msk.bf16.gmra.mrb[32].mxu0 %vm442_vm1, %v3036_v8 }
  0x5c   : > { %767 = vmatprep.mubr.bf16.mxu1 %v3487_v0  ;;  %840 = vmatprep.mubr.bf16.mxu0 %v3487_v0 }
  0x63   : > { %2992 = vmatmul.mubr.msk.bf16.gmra.mrb[36].mxu1 %vm442_vm1, %v3040_v20  ;;  %2997 = vmatmul.mubr.msk.bf16.gmra.mrb[36].mxu0 %vm442_vm1, %v3040_v20  ;;  %vm1724_vm1 = vcmp.eq.s32.totalorder %v3612_v25, 3 }
  0xee   : > { %v3625_v29 = vpop.f32.mrb[0].mxu0  ;;  %v3627_v30 = vpop.f32.mrb[0].mxu1 }
  0xef   : > { %851 = vst [vmem:[#allocation2] sm:$0xff] %v3625_v29  ;;  %892 = vst [vmem:[#allocation2 + $0x140] sm:$0xff] %v3627_v30  ;;  %v3633_v31 = vpop.f32.mrb[1].mxu0  ;;  %v3635_v32 = vpop.f32.mrb[1].mxu1  ;;  %956 = vrot.lane.b32.xlu0 %v3625_v29, %s3488_s9  ;;  %v3640_v33 = vsel %vm1484_vm2, %v3625_v29, 0.0  ;;  %v3643_v34 = vsel %vm1488_vm3, %v3627_v30, 0.0 }
  0xf0   : > { %v980_v35 = vmax.f32 %v3625_v29, %v3633_v31  ;;  %852 = vst [vmem:[#allocation2 + $0x8] sm:$0xff] %v3633_v31  ;;  %v984_v36 = vmax.f32 %v3627_v30, %v3635_v32  ;;  %893 = vst [vmem:[#allocation2 + $0x148] sm:$0xff] %v3635_v32  ;;  %v3651_v37 = vpop.f32.mrb[2].mxu0  ;;  %v3653_v38 = vpop.f32.mrb[2].mxu1  ;;  %vm1772_vm2 = vcmp.eq.s32.totalorder %v3612_v25, 4  ;;  %vm1729_vm3 = vcmp.eq.s32.totalorder %v3621_v28, 3 }
  0xf1   : > { %862 = vst [vmem:[#allocation2 + $0x50] sm:$0xff] %v3651_v37  ;;  %902 = vst [vmem:[#allocation2 + $0x190] sm:$0xff] %v3653_v38  ;;  %v3663_v41 = vpop.f32.mrb[3].mxu0  ;;  %v3665_v42 = vpop.f32.mrb[3].mxu1  ;;  %966 = vrot.lane.b32.xlu1 %v3653_v38, %s3488_s9  ;;  %v3672_v43 = vsel %vm1489_vm4, %v3653_v38, 0.0  ;;  %v3677_v44 = vsel %vm1485_vm5, %v3651_v37, 0.0 }
  0xf2   : > { %v981_v45 = vmax.f32 %v3651_v37, %v3663_v41  ;;  %863 = vst [vmem:[#allocation2 + $0x58] sm:$0xff] %v3663_v41  ;;  %v985_v46 = vmax.f32 %v3653_v38, %v3665_v42  ;;  %903 = vst [vmem:[#allocation2 + $0x198] sm:$0xff] %v3665_v42  ;;  %vm1777_vm4 = vcmp.eq.s32.totalorder %v3621_v28, 4  ;;  %vm1728_vm5 = vcmp.eq.s32.totalorder %v3615_v26, 3 }
  0xf3   : > { %964 = vrot.lane.b32.xlu0 %v3627_v30, %s3488_s9 }
  0xf5   : > { %1014 = vrot.lane.b32.xlu1 %v3663_v41, %s3488_s9 }
  0xf6   : > { %v530_v49 = vpop.f32.mrb[4].mxu0  ;;  %v3697_v50 = vpop.f32.mrb[4].mxu1 }
  0xf7   : > { %872 = vst [vmem:[#allocation2 + $0xa0] sm:$0xff] %v530_v49  ;;  %v3701_v51 = vpop.f32.mrb[5].mxu0  ;;  %912 = vst [vmem:[#allocation2 + $0x1e0] sm:$0xff] %v3697_v50  ;;  %1012 = vrot.lane.b32.xlu0 %v3633_v31, %s3488_s9  ;;  %v3706_v52 = vpop.f32.mrb[5].mxu1  ;;  %v3708_v53 = vsel %vm1486_vm6, %v530_v49, 0.0  ;;  %v3711_v54 = vsel %vm1490_vm7, %v3697_v50, 0.0 }
  0xf8   : > { %5498 = vst [vmem:[#allocation3_spill] sm:$0xff] %v3706_v52  ;;  %5499 = vst [vmem:[#allocation4_spill] sm:$0xff] %v3711_v54  ;;  %v982_v55 = vmax.f32 %v530_v49, %v3701_v51  ;;  %v534_v56 = vpop.f32.mrb[6].mxu0  ;;  %v986_v57 = vmax.f32 %v3697_v50, %v3706_v52  ;;  %v3718_v58 = vpop.f32.mrb[6].mxu1  ;;  %vm1776_vm6 = vcmp.eq.s32.totalorder %v3615_v26, 4  ;;  %vm1598_vm7 = vcmp.eq.s32.totalorder %v3656_v39, 1 }
  0xf9   : > { %873 = vst [vmem:[#allocation2 + $0xa8] sm:$0xff] %v3701_v51  ;;  %913 = vst [vmem:[#allocation2 + $0x1e8] sm:$0xff] %v3706_v52  ;;  %v3720_v59 = vpop.f32.mrb[7].mxu0  ;;  %1022 = vrot.lane.b32.xlu1 %v3665_v42, %s3488_s9  ;;  %v3725_v60 = vpop.f32.mrb[7].mxu1  ;;  %v3729_v61 = vsel %vm1487_vm8, %v534_v56, 0.0  ;;  %v3734_v62 = vsel %vm1491_vm9, %v3718_v58, 0.0 }
  0xfa   : > { %882 = vst [vmem:[#allocation2 + $0xf0] sm:$0xff] %v534_v56  ;;  %5500 = vst [vmem:[#allocation5_spill] sm:$0xff] %v3720_v59  ;;  %v983_v63 = vmax.f32 %v534_v56, %v3720_v59  ;;  %vm1646_vm8 = vcmp.eq.s32.totalorder %v3656_v39, 2  ;;  %vm1597_vm9 = vcmp.eq.s32.totalorder %v3618_v27, 1 }
  0xfb   : > { %922 = vst [vmem:[#allocation2 + $0x230] sm:$0xff] %v3718_v58  ;;  %5501 = vst [vmem:[#allocation6_spill] sm:$0xff] %v3725_v60  ;;  %1020 = vrot.lane.b32.xlu0 %v3635_v32, %s3488_s9 }
  0xfc   : > { %5502 = vst [vmem:[#allocation7_spill] sm:$0xff] %v3734_v62  ;;  %883 = vst [vmem:[#allocation2 + $0xf8] sm:$0xff] %v3720_v59 }
  0xfd   : > { %923 = vst [vmem:[#allocation2 + $0x238] sm:$0xff] %v3725_v60  ;;  %960 = vrot.lane.b32.xlu1 %v530_v49, %s3488_s9 }
  0xfe   : > { %v3744_v1 = vpop.f32.mrb[8].mxu1  ;;  %v3746_v2 = vpop.f32.mrb[8].mxu0 }
  0xff   : > { %5503 = vst [vmem:[#allocation8_spill] sm:$0xff] %v3746_v2  ;;  %958 = vrot.lane.b32.xlu0 %v3651_v37, %s3488_s9  ;;  %v996_v3 = vmax.f32 %v980_v35, %v3744_v1  ;;  %853 = vst [vmem:[#allocation2 + $0x10] sm:$0xff] %v3744_v1  ;;  %v3752_v4 = vpop.f32.mrb[9].mxu1  ;;  %v3755_v5 = vpop.f32.mrb[9].mxu0 }
 0x100   : > { %5504 = vst [vmem:[#allocation9_spill] sm:$0xff] %v3752_v4  ;;  %855 = vst [vmem:[#allocation2 + $0x20] sm:$0xff] %v3746_v2  ;;  %v3758_v6 = vpop.f32.mrb[10].mxu1  ;;  %v3761_v7 = vpop.f32.mrb[10].mxu0 }
 0x101   : > { %5505 = vst [vmem:[#allocation10_spill] sm:$0xff] %v3755_v5  ;;  %854 = vst [vmem:[#allocation2 + $0x18] sm:$0xff] %v3752_v4  ;;  %962 = vrot.lane.b32.xlu1 %v534_v56, %s3488_s9  ;;  %v1036_v8 = vmax.f32 %v996_v3, %v3752_v4  ;;  %v997_v9 = vmax.f32 %v981_v45, %v3758_v6  ;;  %v3767_v10 = vpop.f32.mrb[11].mxu1  ;;  %v3770_v11 = vpop.f32.mrb[11].mxu0 }
 0x102   : > { %5506 = vst [vmem:[#allocation11_spill] sm:$0xff] %v3758_v6  ;;  %856 = vst [vmem:[#allocation2 + $0x28] sm:$0xff] %v3755_v5 }
 0x103   : > { %5507 = vst [vmem:[#allocation12_spill] sm:$0xff] %v3761_v7  ;;  %864 = vst [vmem:[#allocation2 + $0x60] sm:$0xff] %v3758_v6  ;;  %968 = vrot.lane.b32.xlu0 %v3697_v50, %s3488_s9  ;;  %v1037_v12 = vmax.f32 %v997_v9, %v3767_v10  ;;  %v3778_v13 = vmax.f32 %v1036_v8, %v3746_v2 }
 0x104   : > { %5508 = vst [vmem:[#allocation13_spill] sm:$0xff] %v3767_v10  ;;  %866 = vst [vmem:[#allocation2 + $0x70] sm:$0xff] %v3761_v7 }
 0x105   : > { %5509 = vst [vmem:[#allocation14_spill] sm:$0xff] %v3770_v11  ;;  %865 = vst [vmem:[#allocation2 + $0x68] sm:$0xff] %v3767_v10  ;;  %970 = vrot.lane.b32.xlu1 %v3718_v58, %s3488_s9  ;;  %v3785_v15 = vmax.f32 %v1037_v12, %v3761_v7 }
 0x106   : > { %867 = vst [vmem:[#allocation2 + $0x78] sm:$0xff] %v3770_v11  ;;  %v3787_v16 = vpop.f32.mrb[12].mxu1  ;;  %v3789_v17 = vpop.f32.mrb[12].mxu0 }
 0x107   : > { %5510 = vst [vmem:[#allocation15_spill] sm:$0xff] %v3787_v16  ;;  %5511 = vst [vmem:[#allocation16_spill] sm:$0xff] %v3789_v17  ;;  %1016 = vrot.lane.b32.xlu0 %v3701_v51, %s3488_s9  ;;  %v998_v19 = vmax.f32 %v982_v55, %v3787_v16  ;;  %v3797_v20 = vpop.f32.mrb[13].mxu1  ;;  %v3800_v21 = vpop.f32.mrb[13].mxu0 }
 0x108   : > { %874 = vst [vmem:[#allocation2 + $0xb0] sm:$0xff] %v3787_v16  ;;  %5512 = vst [vmem:[#allocation17_spill] sm:$0xff] %v3797_v20  ;;  %v3803_v22 = vpop.f32.mrb[14].mxu1  ;;  %v3806_v23 = vpop.f32.mrb[14].mxu0 }
 0x109   : > { %876 = vst [vmem:[#allocation2 + $0xc0] sm:$0xff] %v3789_v17  ;;  %5513 = vst [vmem:[#allocation18_spill] sm:$0xff] %v3800_v21  ;;  %1018 = vrot.lane.b32.xlu1 %v3720_v59, %s3488_s9  ;;  %v1038_v24 = vmax.f32 %v998_v19, %v3797_v20  ;;  %v999_v29 = vmax.f32 %v983_v63, %v3803_v22  ;;  %v3813_v35 = vpop.f32.mrb[15].mxu1  ;;  %v3816_v37 = vpop.f32.mrb[15].mxu0 }
 0x10a   : > { %875 = vst [vmem:[#allocation2 + $0xb8] sm:$0xff] %v3797_v20  ;;  %5514 = vst [vmem:[#allocation19_spill] sm:$0xff] %v3803_v22 }
 0x10b   : > { %877 = vst [vmem:[#allocation2 + $0xc8] sm:$0xff] %v3800_v21  ;;  %5515 = vst [vmem:[#allocation20_spill] sm:$0xff] %v3806_v23  ;;  %1024 = vrot.lane.b32.xlu0 %v3706_v52, %s3488_s9  ;;  %v1039_v45 = vmax.f32 %v999_v29, %v3813_v35  ;;  %v3824_v49 = vmax.f32 %v1038_v24, %v3789_v17 }
 0x10c   : > { %884 = vst [vmem:[#allocation2 + $0x100] sm:$0xff] %v3803_v22  ;;  %5516 = vst [vmem:[#allocation21_spill] sm:$0xff] %v3813_v35 }
 0x10d   : > { %886 = vst [vmem:[#allocation2 + $0x110] sm:$0xff] %v3806_v23  ;;  %5517 = vst [vmem:[#allocation22_spill] sm:$0xff] %v3816_v37  ;;  %1026 = vrot.lane.b32.xlu1 %v3725_v60, %s3488_s9  ;;  %v3831_v56 = vmax.f32 %v1039_v45, %v3806_v23 }
 0x10e   : > { %885 = vst [vmem:[#allocation2 + $0x108] sm:$0xff] %v3813_v35  ;;  %887 = vst [vmem:[#allocation2 + $0x118] sm:$0xff] %v3816_v37  ;;  %v3833_v63 = vpop.f32.mrb[16].mxu1  ;;  %v3835_v3 = vpop.f32.mrb[16].mxu0 }
 0x10f   : > { %5518 = vst [vmem:[#allocation23_spill] sm:$0xff] %v3835_v3  ;;  %1068 = vrot.lane.b32.xlu0 %v3744_v1, %s3488_s9  ;;  %v1000_v9 = vmax.f32 %v984_v36, %v3833_v63  ;;  %894 = vst [vmem:[#allocation2 + $0x150] sm:$0xff] %v3833_v63  ;;  %v3846_v12 = vpop.f32.mrb[17].mxu1  ;;  %v3849_v19 = vpop.f32.mrb[17].mxu0 }
 0x110   : > { %5519 = vst [vmem:[#allocation24_spill] sm:$0xff] %v3846_v12  ;;  %896 = vst [vmem:[#allocation2 + $0x160] sm:$0xff] %v3835_v3  ;;  %v3852_v24 = vpop.f32.mrb[18].mxu1  ;;  %v3855_v29 = vpop.f32.mrb[18].mxu0 }
 0x111   : > { %895 = vst [vmem:[#allocation2 + $0x158] sm:$0xff] %v3846_v12  ;;  %897 = vst [vmem:[#allocation2 + $0x168] sm:$0xff] %v3849_v19  ;;  %1070 = vrot.lane.b32.xlu1 %v3758_v6, %s3488_s9  ;;  %v1040_v30 = vmax.f32 %v1000_v9, %v3846_v12  ;;  %v1001_v36 = vmax.f32 %v985_v46, %v3852_v24  ;;  %v3865_v45 = vpop.f32.mrb[19].mxu1  ;;  %v3868_v8 = vpop.f32.mrb[19].mxu0 }
 0x112   : > { %5520 = vst [vmem:[#allocation25_spill] sm:$0xff] %v3855_v29  ;;  %904 = vst [vmem:[#allocation2 + $0x1a0] sm:$0xff] %v3852_v24 }
 0x113   : > { %906 = vst [vmem:[#allocation2 + $0x1b0] sm:$0xff] %v3855_v29  ;;  %905 = vst [vmem:[#allocation2 + $0x1a8] sm:$0xff] %v3865_v45  ;;  %1180 = vrot.lane.b32.xlu0 %v3746_v2, %s3488_s9  ;;  %v1041_v9 = vmax.f32 %v1001_v36, %v3865_v45  ;;  %v3876_v38 = vmax.f32 %v1040_v30, %v3835_v3 }
 0x114   : > { %907 = vst [vmem:[#allocation2 + $0x1b8] sm:$0xff] %v3868_v8 }
 0x115   : > { %1182 = vrot.lane.b32.xlu1 %v3761_v7, %s3488_s9  ;;  %v3883_v55 = vmax.f32 %v1041_v9, %v3855_v29 }
 0x116   : > { %v3885_v18 = vpop.f32.mrb[20].mxu1  ;;  %v3887_v14 = vpop.f32.mrb[20].mxu0 }
 0x117   : > { %1124 = vrot.lane.b32.xlu0 %v3752_v4, %s3488_s9  ;;  %v1002_v36 = vmax.f32 %v986_v57, %v3885_v18  ;;  %914 = vst [vmem:[#allocation2 + $0x1f0] sm:$0xff] %v3885_v18  ;;  %v3898_v46 = vpop.f32.mrb[21].mxu1  ;;  %916 = vst [vmem:[#allocation2 + $0x200] sm:$0xff] %v3887_v14  ;;  %v3901_v9 = vpop.f32.mrb[21].mxu0  ;;  %v5521_v57 = vmax.f32 %v3718_v58, %v3725_v60 }
 0x118   : > { %915 = vst [vmem:[#allocation2 + $0x1f8] sm:$0xff] %v3898_v46  ;;  %v3904_v0 = vpop.f32.mrb[22].mxu1  ;;  %917 = vst [vmem:[#allocation2 + $0x208] sm:$0xff] %v3901_v9  ;;  %v3907_v30 = vpop.f32.mrb[22].mxu0 }
 0x119   : > { %1126 = vrot.lane.b32.xlu1 %v3767_v10, %s3488_s9  ;;  %v1042_v50 = vmax.f32 %v1002_v36, %v3898_v46  ;;  %v1003_v7 = vmax.f32 %v5521_v57, %v3904_v0  ;;  %924 = vst [vmem:[#allocation2 + $0x240] sm:$0xff] %v3904_v0  ;;  %v3917_v2 = vpop.f32.mrb[23].mxu1  ;;  %926 = vst [vmem:[#allocation2 + $0x250] sm:$0xff] %v3907_v30  ;;  %v3920_v4 = vpop.f32.mrb[23].mxu0 }
 0x11a   : > { %925 = vst [vmem:[#allocation2 + $0x248] sm:$0xff] %v3917_v2  ;;  %927 = vst [vmem:[#allocation2 + $0x258] sm:$0xff] %v3920_v4 }
 0x11b   : > { %1236 = vrot.lane.b32.xlu0 %v3755_v5, %s3488_s9  ;;  %v1043_v36 = vmax.f32 %v1003_v7, %v3917_v2  ;;  %v3928_v58 = vmax.f32 %v1042_v50, %v3887_v14  ;;  %v5522_v50 = vmax.f32 %v3778_v13, %v3755_v5 }
 0x11d   : > { %1238 = vrot.lane.b32.xlu1 %v3770_v11, %s3488_s9  ;;  %v3935_v10 = vmax.f32 %v1043_v36, %v3907_v30 }
 0x11e   : > { %v3937_v60 = vpop.f32.mrb[24].mxu1  ;;  %v3939_v62 = vpop.f32.mrb[24].mxu0 }
 0x11f   : > { %1072 = vrot.lane.b32.xlu0 %v3787_v16, %s3488_s9  ;;  %v1108_v52 = vmax.f32 %v5522_v50, %v3937_v60  ;;  %857 = vst [vmem:[#allocation2 + $0x30] sm:$0xff] %v3937_v60  ;;  %v3950_v36 = vpop.f32.mrb[25].mxu1  ;;  %859 = vst [vmem:[#allocation2 + $0x40] sm:$0xff] %v3939_v62  ;;  %v814_v57 = vpop.f32.mrb[25].mxu0  ;;  %v5523_v50 = vmax.f32 %v3785_v15, %v3770_v11 }
 0x120   : > { %858 = vst [vmem:[#allocation2 + $0x38] sm:$0xff] %v3950_v36  ;;  %v3954_v54 = vpop.f32.mrb[26].mxu1  ;;  %861 = vst.msk [vmem:[#allocation2 + $0x48] sm:$0xff] %vm375_vm10, %v814_v57  ;;  %v3957_v16 = vpop.f32.mrb[26].mxu0 }
 0x121   : > { %1074 = vrot.lane.b32.xlu1 %v3803_v22, %s3488_s9  ;;  %v1148_v13 = vmax.f32 %v1108_v52, %v3950_v36  ;;  %v1109_v7 = vmax.f32 %v5523_v50, %v3954_v54  ;;  %868 = vst [vmem:[#allocation2 + $0x80] sm:$0xff] %v3954_v54  ;;  %v3967_v5 = vpop.f32.mrb[27].mxu1  ;;  %870 = vst [vmem:[#allocation2 + $0x90] sm:$0xff] %v3957_v16  ;;  %v818_v6 = vpop.f32.mrb[27].mxu0 }
 0x122   : > { %869 = vst [vmem:[#allocation2 + $0x88] sm:$0xff] %v3967_v5  ;;  %871 = vst.msk [vmem:[#allocation2 + $0x98] sm:$0xff] %vm375_vm10, %v818_v6  ;;  %v5527_v6 = vmax.f32 %v3824_v49, %v3800_v21 }
 0x123   : > { %1184 = vrot.lane.b32.xlu0 %v3789_v17, %s3488_s9  ;;  %v1149_v52 = vmax.f32 %v1109_v7, %v3967_v5  ;;  %v3976_v57 = vmax.f32 %v1148_v13, %v3939_v62 }
 0x125   : > { %5524 = vst [vmem:[#allocation26_spill] sm:$0xff] %v3976_v57  ;;  %1186 = vrot.lane.b32.xlu1 %v3806_v23, %s3488_s9  ;;  %v3981_v15 = vmax.f32 %v1149_v52, %v3957_v16 }
 0x126   : > { %v3983_v50 = vpop.f32.mrb[28].mxu1  ;;  %v3985_v11 = vpop.f32.mrb[28].mxu0 }
 0x127   : > { %5525 = vst [vmem:[#allocation27_spill] sm:$0xff] %v3981_v15  ;;  %5526 = vst [vmem:[#allocation28_spill] sm:$0xff] %v3985_v11  ;;  %1128 = vrot.lane.b32.xlu0 %v3797_v20, %s3488_s9  ;;  %v1110_v7 = vmax.f32 %v5527_v6, %v3983_v50  ;;  %v3994_v13 = vpop.f32.mrb[29].mxu1  ;;  %v824_v52 = vpop.f32.mrb[29].mxu0  ;;  %v5530_v6 = vmax.f32 %v3831_v56, %v3816_v37 }
 0x128   : > { %878 = vst [vmem:[#allocation2 + $0xd0] sm:$0xff] %v3983_v50  ;;  %5528 = vst [vmem:[#allocation29_spill] sm:$0xff] %v3994_v13  ;;  %v3998_v15 = vpop.f32.mrb[30].mxu1  ;;  %v4001_v57 = vpop.f32.mrb[30].mxu0 }
 0x129   : > { %880 = vst [vmem:[#allocation2 + $0xe0] sm:$0xff] %v3985_v11  ;;  %879 = vst [vmem:[#allocation2 + $0xd8] sm:$0xff] %v3994_v13  ;;  %1130 = vrot.lane.b32.xlu1 %v3813_v35, %s3488_s9  ;;  %v1150_v49 = vmax.f32 %v1110_v7, %v3994_v13  ;;  %v1111_v23 = vmax.f32 %v5530_v6, %v3998_v15  ;;  %v4012_v17 = vpop.f32.mrb[31].mxu1  ;;  %v828_v20 = vpop.f32.mrb[31].mxu0 }
 0x12a   : > { %881 = vst.msk [vmem:[#allocation2 + $0xe8] sm:$0xff] %vm375_vm10, %v824_v52  ;;  %5529 = vst [vmem:[#allocation30_spill] sm:$0xff] %v4001_v57 }
 0x12b   : > { %888 = vst [vmem:[#allocation2 + $0x120] sm:$0xff] %v3998_v15  ;;  %890 = vst [vmem:[#allocation2 + $0x130] sm:$0xff] %v4001_v57  ;;  %1240 = vrot.lane.b32.xlu0 %v3800_v21, %s3488_s9  ;;  %v4019_v7 = vmax.f32 %v1150_v49, %v3985_v11  ;;  %v1151_v56 = vmax.f32 %v1111_v23, %v4001_v57 }
 0x12c   : > { %5531 = vst [vmem:[#allocation31_spill] sm:$0xff] %v4012_v17  ;;  %889 = vst [vmem:[#allocation2 + $0x128] sm:$0xff] %v4012_v17 }
 0x12d   : > { %891 = vst.msk [vmem:[#allocation2 + $0x138] sm:$0xff] %vm375_vm10, %v828_v20  ;;  %5532 = vst [vmem:[#allocation32_spill] sm:$0xff] %v4019_v7  ;;  %1242 = vrot.lane.b32.xlu1 %v3816_v37, %s3488_s9  ;;  %v4025_v52 = vmax.f32 %v1151_v56, %v4012_v17  ;;  %v5535_v20 = vmax.f32 %v3876_v38, %v3849_v19 }
 0x12e   : > { %v4027_v6 = vpop.f32.mrb[32].mxu1  ;;  %v4029_v35 = vpop.f32.mrb[32].mxu0 }
 0x12f   : > { %5533 = vst [vmem:[#allocation33_spill] sm:$0xff] %v4025_v52  ;;  %5534 = vst [vmem:[#allocation34_spill] sm:$0xff] %v4029_v35  ;;  %1076 = vrot.lane.b32.xlu0 %v3833_v63, %s3488_s9  ;;  %v1112_v49 = vmax.f32 %v5535_v20, %v4027_v6  ;;  %v4038_v23 = vpop.f32.mrb[33].mxu1  ;;  %v834_v56 = vpop.f32.mrb[33].mxu0  ;;  %v5538_v20 = vmax.f32 %v3883_v55, %v3868_v8 }
 0x130   : > { %898 = vst [vmem:[#allocation2 + $0x170] sm:$0xff] %v4027_v6  ;;  %5536 = vst [vmem:[#allocation35_spill] sm:$0xff] %v4038_v23  ;;  %v4042_v52 = vpop.f32.mrb[34].mxu1  ;;  %v4045_v7 = vpop.f32.mrb[34].mxu0 }
 0x131   : > { %900 = vst [vmem:[#allocation2 + $0x180] sm:$0xff] %v4029_v35  ;;  %899 = vst [vmem:[#allocation2 + $0x178] sm:$0xff] %v4038_v23  ;;  %1078 = vrot.lane.b32.xlu1 %v3852_v24, %s3488_s9  ;;  %v1152_v38 = vmax.f32 %v1112_v49, %v4038_v23  ;;  %v4054_v37 = vmax.f32 %v5538_v20, %v4042_v52  ;;  %v4058_v21 = vpop.f32.mrb[35].mxu1 }
 0x132   : > { %901 = vst.msk [vmem:[#allocation2 + $0x188] sm:$0xff] %vm375_vm10, %v834_v56  ;;  %5537 = vst [vmem:[#allocation36_spill] sm:$0xff] %v4045_v7  ;;  %v838_v56 = vpop.f32.mrb[35].mxu0 }
 0x133   : > { %908 = vst [vmem:[#allocation2 + $0x1c0] sm:$0xff] %v4042_v52  ;;  %910 = vst [vmem:[#allocation2 + $0x1d0] sm:$0xff] %v4045_v7  ;;  %1188 = vrot.lane.b32.xlu0 %v3835_v3, %s3488_s9  ;;  %v4065_v49 = vmax.f32 %v1152_v38, %v4029_v35 }
 0x134   : > { %5539 = vst [vmem:[#allocation37_spill] sm:$0xff] %v4058_v21  ;;  %909 = vst [vmem:[#allocation2 + $0x1c8] sm:$0xff] %v4058_v21 }
 0x135   : > { %911 = vst.msk [vmem:[#allocation2 + $0x1d8] sm:$0xff] %vm375_vm10, %v838_v56  ;;  %5540 = vst [vmem:[#allocation38_spill] sm:$0xff] %v4065_v49  ;;  %1190 = vrot.lane.b32.xlu1 %v3855_v29, %s3488_s9  ;;  %v5542_v56 = vmax.f32 %v3928_v58, %v3901_v9 }
 0x136   : > { %v4069_v55 = vpop.f32.mrb[36].mxu1  ;;  %v4071_v20 = vpop.f32.mrb[36].mxu0 }
 0x137   : > { %5541 = vst [vmem:[#allocation39_spill] sm:$0xff] %v4071_v20  ;;  %1132 = vrot.lane.b32.xlu0 %v3846_v12, %s3488_s9  ;;  %v1114_v22 = vmax.f32 %v5542_v56, %v4069_v55  ;;  %918 = vst [vmem:[#allocation2 + $0x210] sm:$0xff] %v4069_v55  ;;  %v4080_v3 = vpop.f32.mrb[37].mxu1  ;;  %v844_v38 = vpop.f32.mrb[37].mxu0  ;;  %v5545_v56 = vmax.f32 %v3935_v10, %v3920_v4 }
 0x138   : > { %5543 = vst [vmem:[#allocation40_spill] sm:$0xff] %v4080_v3  ;;  %920 = vst [vmem:[#allocation2 + $0x220] sm:$0xff] %v4071_v20  ;;  %v4084_v49 = vpop.f32.mrb[38].mxu1  ;;  %v4087_v29 = vpop.f32.mrb[38].mxu0 }
 0x139   : > { %919 = vst [vmem:[#allocation2 + $0x218] sm:$0xff] %v4080_v3  ;;  %921 = vst.msk [vmem:[#allocation2 + $0x228] sm:$0xff] %vm375_vm10, %v844_v38  ;;  %1134 = vrot.lane.b32.xlu1 %v3865_v45, %s3488_s9  ;;  %v1154_v58 = vmax.f32 %v1114_v22, %v4080_v3  ;;  %v1115_v12 = vmax.f32 %v5545_v56, %v4084_v49  ;;  %v4097_v59 = vpop.f32.mrb[39].mxu1  ;;  %v848_v56 = vpop.f32.mrb[39].mxu0 }
 0x13a   : > { %5544 = vst [vmem:[#allocation41_spill] sm:$0xff] %v4087_v29  ;;  %928 = vst [vmem:[#allocation2 + $0x260] sm:$0xff] %v4084_v49 }
 0x13b   : > { %5546 = vst [vmem:[#allocation42_spill] sm:$0xff] %v4097_v59  ;;  %930 = vst [vmem:[#allocation2 + $0x270] sm:$0xff] %v4087_v29  ;;  %1244 = vrot.lane.b32.xlu0 %v3849_v19, %s3488_s9  ;;  %v1155_v38 = vmax.f32 %v1115_v12, %v4097_v59  ;;  %v4105_v22 = vmax.f32 %v1154_v58, %v4071_v20 }
 0x13c   : > { %929 = vst [vmem:[#allocation2 + $0x268] sm:$0xff] %v4097_v59  ;;  %931 = vst.msk [vmem:[#allocation2 + $0x278] sm:$0xff] %vm375_vm10, %v848_v56 }
 0x13d   : > { %5547 = vst [vmem:[#allocation43_spill] sm:$0xff] %v4105_v22  ;;  %1246 = vrot.lane.b32.xlu1 %v3868_v8, %s3488_s9  ;;  %v4110_v10 = vmax.f32 %v1155_v38, %v4087_v29 }
 0x13f   : > { %5548 = vst [vmem:[#allocation44_spill] sm:$0xff] %v4110_v10  ;;  %1080 = vrot.lane.b32.xlu0 %v3885_v18, %s3488_s9 }
 0x141   : > { %1082 = vrot.lane.b32.xlu1 %v3904_v0, %s3488_s9 }
 0x143   : > { %1192 = vrot.lane.b32.xlu0 %v3887_v14, %s3488_s9 }
 0x145   : > { %1194 = vrot.lane.b32.xlu1 %v3907_v30, %s3488_s9 }
 0x147   : > { %1136 = vrot.lane.b32.xlu0 %v3898_v46, %s3488_s9 }
 0x149   : > { %1138 = vrot.lane.b32.xlu1 %v3917_v2, %s3488_s9 }
 0x14b   : > { %1248 = vrot.lane.b32.xlu0 %v3901_v9, %s3488_s9 }
 0x14d   : > { %1250 = vrot.lane.b32.xlu1 %v3920_v4, %s3488_s9 }
 0x14f   : > { %1292 = vrot.lane.b32.xlu0 %v3937_v60, %s3488_s9 }
 0x151   : > { %1294 = vrot.lane.b32.xlu1 %v3954_v54, %s3488_s9 }
 0x153   : > { %1404 = vrot.lane.b32.xlu0 %v3939_v62, %s3488_s9 }
 0x155   : > { %1406 = vrot.lane.b32.xlu1 %v3957_v16, %s3488_s9 }
 0x157   : > { %1348 = vrot.lane.b32.xlu0 %v3950_v36, %s3488_s9 }
 0x159   : > { %1350 = vrot.lane.b32.xlu1 %v3967_v5, %s3488_s9 }
 0x15b   : > { %1296 = vrot.lane.b32.xlu0 %v3983_v50, %s3488_s9 }
 0x15d   : > { %1298 = vrot.lane.b32.xlu1 %v3998_v15, %s3488_s9 }
 0x15f   : > { %1408 = vrot.lane.b32.xlu0 %v3985_v11, %s3488_s9 }
 0x161   : > { %v4149_v12 = vpop.permute.xlu0 %956  ;;  %1410 = vrot.lane.b32.xlu1 %v4001_v57, %s3488_s9 }
 0x162   : > { %v1604_v58 = vsel %vm1596_vm11, %v4149_v12, %v3640_v33  ;;  %vm1645_vm11 = vcmp.eq.s32.totalorder %v3618_v27, 2 }
 0x163   : > { %v967_v38 = vpop.permute.xlu1 %966  ;;  %1352 = vrot.lane.b32.xlu0 %v3994_v13, %s3488_s9  ;;  %v1652_v56 = vsel %vm1644_vm12, %v3633_v31, %v1604_v58  ;;  %vm1599_vm12 = vcmp.eq.s32.totalorder %v3686_v47, 1 }
 0x164   : > { %v1153_v10 = vmax.f32 %v4054_v37, %v967_v38  ;;  %v1609_v22 = vsel %vm1601_vm13, %v967_v38, %v3672_v43  ;;  %vm1725_vm13 = vcmp.eq.s32.totalorder %v3618_v27, 3  ;;  %v5556_v37 = vld [vmem:[#allocation4_spill] sm:$0xff] }
 0x165   : > { %v4164_v57 = vpop.permute.xlu0 %964  ;;  %1354 = vrot.lane.b32.xlu1 %v4012_v17, %s3488_s9  ;;  %v1657_v33 = vsel %vm1649_vm14, %v3665_v42, %v1609_v22  ;;  %vm1647_vm14 = vcmp.eq.s32.totalorder %v3686_v47, 2  ;;  %v5576_v17 = vld [vmem:[#allocation18_spill] sm:$0xff] }
 0x166   : > { %5549 = vst [vmem:[#allocation45_spill] sm:$0xff] %v4164_v57  ;;  %v4170_v11 = vmax.f32 %v1153_v10, %v4045_v7  ;;  %v1608_v13 = vsel %vm1600_vm15, %v4164_v57, %v3643_v34  ;;  %vm1773_vm15 = vcmp.eq.s32.totalorder %v3618_v27, 4 }
 0x167   : > { %v4174_v31 = vpop.permute.xlu1 %1014  ;;  %1300 = vrot.lane.b32.xlu0 %v4027_v6, %s3488_s9  ;;  %v1656_v43 = vsel %vm1648_vm0, %v3635_v32, %v1608_v13  ;;  %vm1602_vm0 = vcmp.eq.s32.totalorder %v3659_v40, 1 }
 0x168   : > { %5550 = vst [vmem:[#allocation46_spill] sm:$0xff] %v4170_v11 }
 0x169   : > { %v4183_v42 = vpop.permute.xlu0 %1012  ;;  %1302 = vrot.lane.b32.xlu1 %v4042_v52, %s3488_s9 }
 0x16a   : > { %v1732_v34 = vsel %vm1724_vm1, %v4183_v42, %v1652_v56  ;;  %vm1650_vm1 = vcmp.eq.s32.totalorder %v3659_v40, 2 }
 0x16b   : > { %v4190_v22 = vpop.permute.xlu1 %1022  ;;  %1412 = vrot.lane.b32.xlu0 %v4029_v35, %s3488_s9  ;;  %v4196_v32 = vsel %vm1772_vm2, %v3744_v1, %v1732_v34  ;;  %vm1603_vm2 = vcmp.eq.s32.totalorder %v3689_v48, 1 }
 0x16c   : > { %5551 = vst [vmem:[#allocation47_spill] sm:$0xff] %v4190_v22  ;;  %v1737_v13 = vsel %vm1729_vm3, %v4190_v22, %v1657_v33  ;;  %vm1651_vm3 = vcmp.eq.s32.totalorder %v3689_v48, 2 }
 0x16d   : > { %v4200_v10 = vpop.permute.xlu0 %1020  ;;  %1414 = vrot.lane.b32.xlu1 %v4045_v7, %s3488_s9  ;;  %v4206_v58 = vsel %vm1777_vm4, %v3852_v24, %v1737_v13  ;;  %vm1726_vm4 = vcmp.eq.s32.totalorder %v3656_v39, 3 }
 0x16e   : > { %5552 = vst [vmem:[#allocation48_spill] sm:$0xff] %v4200_v10  ;;  %v1736_v38 = vsel %vm1728_vm5, %v4200_v10, %v1656_v43  ;;  %vm1774_vm5 = vcmp.eq.s32.totalorder %v3656_v39, 4 }
 0x16f   : > { %v4210_v1 = vpop.permute.xlu1 %960  ;;  %1356 = vrot.lane.b32.xlu0 %v4038_v23, %s3488_s9  ;;  %v4216_v56 = vsel %vm1776_vm6, %v3833_v63, %v1736_v38  ;;  %v5559_v23 = vld [vmem:[#allocation7_spill] sm:$0xff]  ;;  %vm1727_vm6 = vcmp.eq.s32.totalorder %v3686_v47, 3 }
 0x170   : > { %v1606_v33 = vsel %vm1598_vm7, %v4210_v1, %v3708_v53  ;;  %vm1775_vm7 = vcmp.eq.s32.totalorder %v3686_v47, 4 }
 0x171   : > { %v4221_v24 = vpop.permute.xlu0 %958  ;;  %1358 = vrot.lane.b32.xlu1 %v4058_v21, %s3488_s9  ;;  %v1654_v43 = vsel %vm1646_vm8, %v3701_v51, %v1606_v33  ;;  %v5555_v33 = vld [vmem:[#allocation11_spill] sm:$0xff]  ;;  %vm1730_vm8 = vcmp.eq.s32.totalorder %v3659_v40, 3 }
 0x172   : > { %v1605_v63 = vsel %vm1597_vm9, %v4221_v24, %v3677_v44  ;;  %vm1778_vm9 = vcmp.eq.s32.totalorder %v3659_v40, 4 }
 0x173   : > { %v1653_v53 = vsel %vm1645_vm11, %v3663_v41, %v1605_v63  ;;  %v4233_v34 = vpop.permute.xlu1 %962  ;;  %1304 = vrot.lane.b32.xlu0 %v4069_v55, %s3488_s9  ;;  %v5554_v41 = vld [vmem:[#allocation5_spill] sm:$0xff]  ;;  %vm1731_vm11 = vcmp.eq.s32.totalorder %v3689_v48, 3 }
 0x174   : > { %v1607_v51 = vsel %vm1599_vm12, %v4233_v34, %v3729_v61  ;;  %v1733_v44 = vsel %vm1725_vm13, %v4174_v31, %v1653_v53  ;;  %v5558_v53 = vld [vmem:[#allocation3_spill] sm:$0xff]  ;;  %vm1779_vm12 = vcmp.eq.s32.totalorder %v3689_v48, 4  ;;  %vm1852_vm13 = vcmp.eq.s32.totalorder %v3612_v25, 5 }
 0x175   : > { %v4242_v13 = vpop.permute.xlu0 %968  ;;  %1306 = vrot.lane.b32.xlu1 %v4084_v49, %s3488_s9  ;;  %v1655_v38 = vsel %vm1647_vm14, %v5554_v41, %v1607_v51  ;;  %v1781_v63 = vsel %vm1773_vm15, %v5555_v33, %v1733_v44  ;;  %vm1900_vm14 = vcmp.eq.s32.totalorder %v3612_v25, 6  ;;  %vm1853_vm15 = vcmp.eq.s32.totalorder %v3618_v27, 5 }
 0x176   : > { %5553 = vst [vmem:[#allocation49_spill] sm:$0xff] %v4242_v13  ;;  %v1610_v7 = vsel %vm1602_vm0, %v4242_v13, %v5556_v37  ;;  %v5560_v37 = vld [vmem:[#allocation6_spill] sm:$0xff]  ;;  %vm1901_vm0 = vcmp.eq.s32.totalorder %v3618_v27, 6 }
 0x177   : > { %v4252_v61 = vpop.permute.xlu1 %970  ;;  %1360 = vrot.lane.b32.xlu0 %v4080_v3, %s3488_s9  ;;  %v1658_v35 = vsel %vm1650_vm1, %v5558_v53, %v1610_v7  ;;  %v5561_v7 = vld [vmem:[#allocation15_spill] sm:$0xff]  ;;  %v5566_v3 = vld [vmem:[#allocation13_spill] sm:$0xff]  ;;  %vm1980_vm1 = vcmp.eq.s32.totalorder %v3612_v25, 7  ;;  %v5569_v13 = vld [vmem:[#allocation10_spill] sm:$0xff] }
 0x178   : > { %5557 = vst [vmem:[#allocation5_spill] sm:$0xff] %v4252_v61  ;;  %v1611_v21 = vsel %vm1603_vm2, %v4252_v61, %v5559_v23  ;;  %vm2028_vm2 = vcmp.eq.s32.totalorder %v3612_v25, 8 }
 0x179   : > { %v4261_v51 = vpop.permute.xlu0 %1016  ;;  %1362 = vrot.lane.b32.xlu1 %v4097_v59, %s3488_s9  ;;  %v1659_v44 = vsel %vm1651_vm3, %v5560_v37, %v1611_v21  ;;  %v5563_v21 = vld [vmem:[#allocation19_spill] sm:$0xff]  ;;  %vm1981_vm3 = vcmp.eq.s32.totalorder %v3618_v27, 7 }
 0x17a   : > { %v1734_v41 = vsel %vm1726_vm4, %v4261_v51, %v1654_v43  ;;  %vm2108_vm4 = vcmp.eq.s32.totalorder %v3612_v25, 9 }
 0x17b   : > { %v4269_v33 = vpop.permute.xlu1 %1018  ;;  %1416 = vrot.lane.b32.xlu0 %v4071_v20, %s3488_s9  ;;  %v1782_v23 = vsel %vm1774_vm5, %v5561_v7, %v1734_v41  ;;  %vm2029_vm5 = vcmp.eq.s32.totalorder %v3618_v27, 8 }
 0x17c   : > { %v1735_v53 = vsel %vm1727_vm6, %v4269_v33, %v1655_v38  ;;  %vm2156_vm6 = vcmp.eq.s32.totalorder %v3612_v25, 10 }
 0x17d   : > { %v4277_v59 = vpop.permute.xlu0 %1024  ;;  %1418 = vrot.lane.b32.xlu1 %v4087_v29, %s3488_s9  ;;  %v1783_v43 = vsel %vm1775_vm7, %v5563_v21, %v1735_v53  ;;  %vm2236_vm7 = vcmp.eq.s32.totalorder %v3612_v25, 11 }
 0x17e   : > { %5562 = vst [vmem:[#allocation11_spill] sm:$0xff] %v4277_v59  ;;  %v1738_v37 = vsel %vm1730_vm8, %v4277_v59, %v1658_v35  ;;  %vm2109_vm8 = vcmp.eq.s32.totalorder %v3618_v27, 9 }
 0x17f   : > { %v4285_v20 = vpop.permute.xlu1 %1026  ;;  %v4289_v38 = vsel %vm1778_vm9, %v3885_v18, %v1738_v37  ;;  %v5565_v18 = vld [vmem:[#allocation9_spill] sm:$0xff]  ;;  %vm2157_vm9 = vcmp.eq.s32.totalorder %v3618_v27, 10 }
 0x180   : > { %5564 = vst [vmem:[#allocation4_spill] sm:$0xff] %v4285_v20  ;;  %v1739_v41 = vsel %vm1731_vm11, %v4285_v20, %v1659_v44  ;;  %vm2284_vm11 = vcmp.eq.s32.totalorder %v3612_v25, 12 }
 0x181   : > { %v4293_v7 = vpop.permute.xlu0 %1068  ;;  %v4297_v53 = vsel %vm1779_vm12, %v3904_v0, %v1739_v41  ;;  %vm2237_vm12 = vcmp.eq.s32.totalorder %v3618_v27, 11 }
 0x182   : > { %v1860_v35 = vsel %vm1852_vm13, %v4293_v7, %v4196_v32  ;;  %vm2285_vm13 = vcmp.eq.s32.totalorder %v3618_v27, 12 }
 0x183   : > { %v4302_v21 = vpop.permute.xlu1 %1070  ;;  %v1908_v37 = vsel %vm1900_vm14, %v5565_v18, %v1860_v35  ;;  %vm1854_vm14 = vcmp.eq.s32.totalorder %v3656_v39, 5 }
 0x184   : > { %v1861_v44 = vsel %vm1853_vm15, %v4302_v21, %v1781_v63  ;;  %v5567_v63 = vld [vmem:[#allocation8_spill] sm:$0xff]  ;;  %vm1902_vm15 = vcmp.eq.s32.totalorder %v3656_v39, 6 }
 0x185   : > { %v4306_v29 = vpop.permute.xlu0 %1180  ;;  %v1909_v20 = vsel %vm1901_vm0, %v5566_v3, %v1861_v44  ;;  %vm1855_vm0 = vcmp.eq.s32.totalorder %v3686_v47, 5 }
 0x187   : > { %v4309_v59 = vpop.permute.xlu1 %1182 }
 0x189   : > { %v4313_v0 = vpop.permute.xlu0 %1124 }
 0x18a   : > { %v1988_v32 = vsel %vm1980_vm1, %v4313_v0, %v1908_v37  ;;  %v5568_v37 = vld [vmem:[#allocation12_spill] sm:$0xff]  ;;  %vm1903_vm1 = vcmp.eq.s32.totalorder %v3686_v47, 6 }
 0x18b   : > { %v2036_v3 = vsel %vm2028_vm2, %v5567_v63, %v1988_v32  ;;  %v4321_v41 = vpop.permute.xlu1 %1126  ;;  %vm1982_vm2 = vcmp.eq.s32.totalorder %v3656_v39, 7 }
 0x18c   : > { %v1989_v35 = vsel %vm1981_vm3, %v4321_v41, %v1909_v20  ;;  %v2116_v18 = vsel %vm2108_vm4, %v4306_v29, %v2036_v3  ;;  %v5570_v3 = vld [vmem:[#allocation14_spill] sm:$0xff]  ;;  %vm2030_vm3 = vcmp.eq.s32.totalorder %v3656_v39, 8  ;;  %vm1983_vm4 = vcmp.eq.s32.totalorder %v3686_v47, 7 }
 0x18d   : > { %v2037_v44 = vsel %vm2029_vm5, %v5568_v37, %v1989_v35  ;;  %v4330_v61 = vpop.permute.xlu0 %1236  ;;  %v2164_v32 = vsel %vm2156_vm6, %v5569_v13, %v2116_v18  ;;  %v5571_v37 = vld [vmem:[#allocation17_spill] sm:$0xff]  ;;  %vm2110_vm5 = vcmp.eq.s32.totalorder %v3656_v39, 9  ;;  %vm2031_vm6 = vcmp.eq.s32.totalorder %v3686_v47, 8 }
 0x18e   : > { %v2244_v63 = vsel %vm2236_vm7, %v4330_v61, %v2164_v32  ;;  %v2117_v11 = vsel %vm2109_vm8, %v4309_v59, %v2037_v44  ;;  %v5572_v32 = vld [vmem:[#allocation21_spill] sm:$0xff]  ;;  %vm2158_vm7 = vcmp.eq.s32.totalorder %v3656_v39, 10  ;;  %vm2238_vm8 = vcmp.eq.s32.totalorder %v3656_v39, 11 }
 0x18f   : > { %v4337_v20 = vpop.permute.xlu1 %1238  ;;  %v2165_v22 = vsel %vm2157_vm9, %v5570_v3, %v2117_v11  ;;  %v4342_v25 = vsel %vm2284_vm11, %v3937_v60, %v2244_v63  ;;  %vm2111_vm9 = vcmp.eq.s32.totalorder %v3686_v47, 9  ;;  %vm2159_vm11 = vcmp.eq.s32.totalorder %v3686_v47, 10 }
 0x190   : > { %v2245_v35 = vsel %vm2237_vm12, %v4337_v20, %v2165_v22  ;;  %vm2286_vm12 = vcmp.eq.s32.totalorder %v3656_v39, 12 }
 0x191   : > { %v4346_v13 = vpop.permute.xlu0 %1072  ;;  %v4350_v18 = vsel %vm2285_vm13, %v3954_v54, %v2245_v35  ;;  %vm2239_vm13 = vcmp.eq.s32.totalorder %v3686_v47, 11 }
 0x192   : > { %v1862_v27 = vsel %vm1854_vm14, %v4346_v13, %v1782_v23  ;;  %vm2287_vm14 = vcmp.eq.s32.totalorder %v3686_v47, 12 }
 0x193   : > { %v4354_v11 = vpop.permute.xlu1 %1074  ;;  %v1910_v60 = vsel %vm1902_vm15, %v5571_v37, %v1862_v27  ;;  %vm1856_vm15 = vcmp.eq.s32.totalorder %v3615_v26, 5 }
 0x194   : > { %v1863_v44 = vsel %vm1855_vm0, %v4354_v11, %v1783_v43  ;;  %v5573_v43 = vld [vmem:[#allocation16_spill] sm:$0xff]  ;;  %vm1904_vm0 = vcmp.eq.s32.totalorder %v3615_v26, 6 }
 0x195   : > { %v4358_v22 = vpop.permute.xlu0 %1184  ;;  %v1911_v63 = vsel %vm1903_vm1, %v5572_v32, %v1863_v44  ;;  %vm1857_vm1 = vcmp.eq.s32.totalorder %v3621_v28, 5 }
 0x197   : > { %v4361_v3 = vpop.permute.xlu1 %1186 }
 0x199   : > { %v4365_v54 = vpop.permute.xlu0 %1128 }
 0x19a   : > { %v1990_v23 = vsel %vm1982_vm2, %v4365_v54, %v1910_v60  ;;  %v5575_v60 = vld [vmem:[#allocation20_spill] sm:$0xff]  ;;  %vm1905_vm2 = vcmp.eq.s32.totalorder %v3621_v28, 6 }
 0x19b   : > { %v2038_v35 = vsel %vm2030_vm3, %v5573_v43, %v1990_v23  ;;  %v4373_v27 = vpop.permute.xlu1 %1130  ;;  %vm1984_vm3 = vcmp.eq.s32.totalorder %v3615_v26, 7 }
 0x19c   : > { %5574 = vst [vmem:[#allocation3_spill] sm:$0xff] %v4373_v27  ;;  %v1991_v37 = vsel %vm1983_vm4, %v4373_v27, %v1911_v63  ;;  %v2118_v44 = vsel %vm2110_vm5, %v4358_v22, %v2038_v35  ;;  %v5577_v35 = vld [vmem:[#allocation22_spill] sm:$0xff]  ;;  %vm2032_vm4 = vcmp.eq.s32.totalorder %v3615_v26, 8  ;;  %vm1985_vm5 = vcmp.eq.s32.totalorder %v3621_v28, 7 }
 0x19d   : > { %v2039_v32 = vsel %vm2031_vm6, %v5575_v60, %v1991_v37  ;;  %v4382_v10 = vpop.permute.xlu0 %1240  ;;  %v2166_v23 = vsel %vm2158_vm7, %v5576_v17, %v2118_v44  ;;  %vm2112_vm6 = vcmp.eq.s32.totalorder %v3615_v26, 9  ;;  %vm2033_vm7 = vcmp.eq.s32.totalorder %v3621_v28, 8 }
 0x19e   : > { %v2246_v43 = vsel %vm2238_vm8, %v4382_v10, %v2166_v23  ;;  %v2119_v57 = vsel %vm2111_vm9, %v4361_v3, %v2039_v32  ;;  %vm2160_vm8 = vcmp.eq.s32.totalorder %v3615_v26, 10  ;;  %vm2240_vm9 = vcmp.eq.s32.totalorder %v3615_v26, 11 }
 0x19f   : > { %v4389_v63 = vpop.permute.xlu1 %1242  ;;  %v2167_v27 = vsel %vm2159_vm11, %v5577_v35, %v2119_v57  ;;  %v4394_v39 = vsel %vm2286_vm12, %v3983_v50, %v2246_v43  ;;  %v5579_v50 = vld [vmem:[#allocation24_spill] sm:$0xff]  ;;  %vm2113_vm11 = vcmp.eq.s32.totalorder %v3621_v28, 9  ;;  %vm2161_vm12 = vcmp.eq.s32.totalorder %v3621_v28, 10 }
 0x1a0   : > { %v2247_v37 = vsel %vm2239_vm13, %v4389_v63, %v2167_v27  ;;  %vm2288_vm13 = vcmp.eq.s32.totalorder %v3615_v26, 12 }
 0x1a1   : > { %v4398_v17 = vpop.permute.xlu0 %1076  ;;  %v4402_v44 = vsel %vm2287_vm14, %v3998_v15, %v2247_v37  ;;  %vm2241_vm14 = vcmp.eq.s32.totalorder %v3621_v28, 11 }
 0x1a2   : > { %v1864_v47 = vsel %vm1856_vm15, %v4398_v17, %v4216_v56 }
 0x1a3   : > { %v4407_v57 = vpop.permute.xlu1 %1078  ;;  %v1912_v60 = vsel %vm1904_vm0, %v5579_v50, %v1864_v47  ;;  %v5582_v50 = vld [vmem:[#allocation25_spill] sm:$0xff]  ;;  %vm1858_vm0 = vcmp.eq.s32.totalorder %v3659_v40, 5 }
 0x1a4   : > { %5578 = vst [vmem:[#allocation7_spill] sm:$0xff] %v4407_v57  ;;  %v1865_v27 = vsel %vm1857_vm1, %v4407_v57, %v4206_v58  ;;  %v4443_v57 = vld [vmem:[%s3609_s8 + $0x28] sm:$0xff]  ;;  %vm1906_vm1 = vcmp.eq.s32.totalorder %v3659_v40, 6 }
 0x1a5   : > { %v4412_v32 = vpop.permute.xlu0 %1188  ;;  %v1913_v23 = vsel %vm1905_vm2, %v3865_v45, %v1865_v27  ;;  %v5581_v45 = vld [vmem:[#allocation23_spill] sm:$0xff]  ;;  %vm2289_vm15 = vcmp.eq.s32.totalorder %v4443_v57, 12  ;;  %vm1859_vm2 = vcmp.eq.s32.totalorder %v3689_v48, 5 }
 0x1a7   : > { %v4415_v43 = vpop.permute.xlu1 %1190 }
 0x1a9   : > { %v4419_v15 = vpop.permute.xlu0 %1132 }
 0x1aa   : > { %5580 = vst [vmem:[#allocation6_spill] sm:$0xff] %v4419_v15  ;;  %v1992_v56 = vsel %vm1984_vm3, %v4419_v15, %v1912_v60  ;;  %vm1907_vm3 = vcmp.eq.s32.totalorder %v3689_v48, 6 }
 0x1ab   : > { %v2040_v58 = vsel %vm2032_vm4, %v5581_v45, %v1992_v56  ;;  %v4427_v35 = vpop.permute.xlu1 %1134  ;;  %vm1986_vm4 = vcmp.eq.s32.totalorder %v3659_v40, 7 }
 0x1ac   : > { %v1993_v37 = vsel %vm1985_vm5, %v4427_v35, %v1913_v23  ;;  %v2120_v47 = vsel %vm2112_vm6, %v4412_v32, %v2040_v58  ;;  %vm2034_vm5 = vcmp.eq.s32.totalorder %v3659_v40, 8  ;;  %vm1987_vm6 = vcmp.eq.s32.totalorder %v3689_v48, 7 }
 0x1ad   : > { %v2041_v60 = vsel %vm2033_vm7, %v5582_v50, %v1993_v37  ;;  %v4436_v27 = vpop.permute.xlu0 %1244  ;;  %v2168_v56 = vsel %vm2160_vm8, %v3849_v19, %v2120_v47  ;;  %vm2035_vm7 = vcmp.eq.s32.totalorder %v3689_v48, 8 }
 0x1ae   : > { %v2248_v45 = vsel %vm2240_vm9, %v4436_v27, %v2168_v56  ;;  %v2121_v15 = vsel %vm2113_vm11, %v4415_v43, %v2041_v60 }
 0x1af   : > { %v4446_v23 = vpop.permute.xlu1 %1246  ;;  %v2169_v26 = vsel %vm2161_vm12, %v3868_v8, %v2121_v15  ;;  %v4451_v58 = vsel %vm2288_vm13, %v4027_v6, %v2248_v45  ;;  %vm2115_vm12 = vcmp.eq.s32.totalorder %v3689_v48, 9  ;;  %vm2163_vm13 = vcmp.eq.s32.totalorder %v3689_v48, 10 }
 0x1b0   : > { %v2249_v19 = vsel %vm2241_vm14, %v4446_v23, %v2169_v26  ;;  %v5584_v26 = vld [vmem:[#allocation27_spill] sm:$0xff] }
 0x1b1   : > { %v4455_v28 = vpop.permute.xlu0 %1080  ;;  %v4459_v37 = vsel %vm2289_vm15, %v4042_v52, %v2249_v19 }
 0x1b2   : > { %v1866_v8 = vsel %vm1858_vm0, %v4455_v28, %v4289_v38  ;;  %v5583_v38 = vld [vmem:[#allocation26_spill] sm:$0xff] }
 0x1b3   : > { %v4464_v15 = vpop.permute.xlu1 %1082  ;;  %v1914_v6 = vsel %vm1906_vm1, %v3898_v46, %v1866_v8  ;;  %v4481_v46 = vld [vmem:[%s3609_s8 + $0x30] sm:$0xff] }
 0x1b4   : > { %v1867_v47 = vsel %vm1859_vm2, %v4464_v15, %v4297_v53  ;;  %vm2114_vm8 = vcmp.eq.s32.totalorder %v4481_v46, 9  ;;  %v1204_v53 = vmax.f32 %v5583_v38, %v4149_v12  ;;  %vm2162_vm9 = vcmp.eq.s32.totalorder %v4481_v46, 10 }
 0x1b5   : > { %v4469_v50 = vpop.permute.xlu0 %1192  ;;  %v1915_v60 = vsel %vm1907_vm3, %v3917_v2, %v1867_v47  ;;  %vm2242_vm11 = vcmp.eq.s32.totalorder %v4481_v46, 11  ;;  %vm2290_vm14 = vcmp.eq.s32.totalorder %v4481_v46, 12  ;;  %v1205_v12 = vmax.f32 %v5584_v26, %v4174_v31 }
 0x1b6   : > { %v1220_v19 = vmax.f32 %v1204_v53, %v4183_v42 }
 0x1b7   : > { %v4472_v56 = vpop.permute.xlu1 %1194  ;;  %v1221_v31 = vmax.f32 %v1205_v12, %v4221_v24 }
 0x1b8   : > { %v1260_v42 = vmax.f32 %v1220_v19, %v4293_v7 }
 0x1b9   : > { %v4476_v52 = vpop.permute.xlu0 %1136  ;;  %v1261_v7 = vmax.f32 %v1221_v31, %v4302_v21 }
 0x1ba   : > { %v1994_v2 = vsel %vm1986_vm4, %v4476_v52, %v1914_v6  ;;  %v1276_v26 = vmax.f32 %v1260_v42, %v4306_v29 }
 0x1bb   : > { %v2042_v40 = vsel %vm2034_vm5, %v3887_v14, %v1994_v2  ;;  %v4490_v45 = vpop.permute.xlu1 %1138  ;;  %v4507_v2 = vld [vmem:[%s3609_s8 + $0x38] sm:$0xff] }
 0x1bc   : > { %v1995_v8 = vsel %vm1987_vm6, %v4490_v45, %v1915_v60  ;;  %v2122_v6 = vsel %vm2114_vm8, %v4469_v50, %v2042_v40  ;;  %vm2243_vm15 = vcmp.eq.s32.totalorder %v4507_v2, 11  ;;  %vm2291_vm0 = vcmp.eq.s32.totalorder %v4507_v2, 12  ;;  %v3370_v40 = vld [vmem:[%s3609_s8] sm:$0xff] }
 0x1bd   : > { %v2043_v14 = vsel %vm2035_vm7, %v3907_v30, %v1995_v8  ;;  %v4503_v47 = vpop.permute.xlu0 %1248  ;;  %v2170_v38 = vsel %vm2162_vm9, %v3901_v9, %v2122_v6  ;;  %vm2364_vm1 = vcmp.eq.s32.totalorder %v3370_v40, 13  ;;  %vm2412_vm2 = vcmp.eq.s32.totalorder %v3370_v40, 14  ;;  %v4534_v8 = vld [vmem:[%s3609_s8 + $0x8] sm:$0xff] }
 0x1be   : > { %v2250_v60 = vsel %vm2242_vm11, %v4503_v47, %v2170_v38  ;;  %v2123_v30 = vsel %vm2115_vm12, %v4472_v56, %v2043_v14  ;;  %vm2365_vm3 = vcmp.eq.s32.totalorder %v4534_v8, 13  ;;  %vm2413_vm4 = vcmp.eq.s32.totalorder %v4534_v8, 14 }
 0x1bf   : > { %v4519_v9 = vpop.permute.xlu1 %1250  ;;  %v2171_v53 = vsel %vm2163_vm13, %v3920_v4, %v2123_v30  ;;  %v4528_v24 = vsel %vm2290_vm14, %v4069_v55, %v2250_v60  ;;  %v1277_v4 = vmax.f32 %v1261_v7, %v4309_v59  ;;  %v1316_v55 = vmax.f32 %v1276_v26, %v4313_v0 }
 0x1c0   : > { %v2251_v12 = vsel %vm2243_vm15, %v4519_v9, %v2171_v53  ;;  %vm2492_vm5 = vcmp.eq.s32.totalorder %v3370_v40, 15  ;;  %vm2540_vm6 = vcmp.eq.s32.totalorder %v3370_v40, 16  ;;  %vm2620_vm7 = vcmp.eq.s32.totalorder %v3370_v40, 17 }
 0x1c1   : > { %v1293_v19 = vpop.permute.xlu0 %1292  ;;  %v4540_v48 = vsel %vm2291_vm0, %v4084_v49, %v2251_v12  ;;  %v1317_v14 = vmax.f32 %v1277_v4, %v4321_v41  ;;  %v1332_v38 = vmax.f32 %v1316_v55, %v4330_v61  ;;  %v5585_v49 = vld [vmem:[#allocation32_spill] sm:$0xff]  ;;  %vm2668_vm8 = vcmp.eq.s32.totalorder %v3370_v40, 18  ;;  %v4574_v55 = vld [vmem:[%s3609_s8 + $0x18] sm:$0xff] }
 0x1c2   : > { %v2372_v21 = vsel %vm2364_vm1, %v1293_v19, %v4342_v25  ;;  %v1206_v42 = vmax.f32 %v5585_v49, %v4210_v1  ;;  %vm2493_vm9 = vcmp.eq.s32.totalorder %v4534_v8, 15  ;;  %vm2541_vm11 = vcmp.eq.s32.totalorder %v4534_v8, 16 }
 0x1c3   : > { %v1295_v29 = vpop.permute.xlu1 %1294  ;;  %v2420_v6 = vsel %vm2412_vm2, %v3950_v36, %v2372_v21  ;;  %v1333_v0 = vmax.f32 %v1317_v14, %v4337_v20  ;;  %v1372_v25 = vmax.f32 %v1332_v38, %v1293_v19  ;;  %v5586_v36 = vld [vmem:[#allocation33_spill] sm:$0xff]  ;;  %vm2621_vm12 = vcmp.eq.s32.totalorder %v4534_v8, 17  ;;  %v1437_v38 = vld [vmem:[#allocation2 + $0x98] sm:$0xff] }
 0x1c4   : > { %v2373_v31 = vsel %vm2365_vm3, %v1295_v29, %v4350_v18  ;;  %v1207_v41 = vmax.f32 %v5586_v36, %v4233_v34  ;;  %v1222_v61 = vmax.f32 %v1206_v42, %v4261_v51  ;;  %vm2669_vm13 = vcmp.eq.s32.totalorder %v4534_v8, 18  ;;  %v4564_v34 = vld [vmem:[%s3609_s8 + $0x10] sm:$0xff]  ;;  %v5590_v8 = vld [vmem:[#allocation38_spill] sm:$0xff] }
 0x1c5   : > { %v1405_v60 = vpop.permute.xlu0 %1404  ;;  %v2421_v59 = vsel %vm2413_vm4, %v3967_v5, %v2373_v31  ;;  %v1373_v1 = vmax.f32 %v1333_v0, %v1295_v29  ;;  %vm2366_vm14 = vcmp.eq.s32.totalorder %v4564_v34, 13  ;;  %vm2414_vm15 = vcmp.eq.s32.totalorder %v4564_v34, 14  ;;  %v5588_v0 = vld [vmem:[#allocation3_spill] sm:$0xff] }
 0x1c6   : > { %v1388_v18 = vmax.f32 %v1372_v25, %v1405_v60  ;;  %v1223_v5 = vmax.f32 %v1207_v41, %v4269_v33  ;;  %v1262_v20 = vmax.f32 %v1222_v61, %v4346_v13  ;;  %v1436_v33 = vld [vmem:[#allocation2 + $0x48] sm:$0xff]  ;;  %vm2367_vm0 = vcmp.eq.s32.totalorder %v4574_v55, 13  ;;  %v5589_v41 = vld [vmem:[#allocation45_spill] sm:$0xff] }
 0x1c7   : > { %v1407_v30 = vpop.permute.xlu1 %1406  ;;  %vm2415_vm1 = vcmp.eq.s32.totalorder %v4574_v55, 14  ;;  %v1208_v61 = vmax.f32 %v5590_v8, %v5589_v41  ;;  %vm2494_vm2 = vcmp.eq.s32.totalorder %v4564_v34, 15  ;;  %vm2542_vm3 = vcmp.eq.s32.totalorder %v4564_v34, 16 }
 0x1c8   : > { %v1389_v51 = vmax.f32 %v1373_v1, %v1407_v30  ;;  %v1263_v12 = vmax.f32 %v1223_v5, %v4354_v11  ;;  %v1278_v19 = vmax.f32 %v1262_v20, %v4358_v22  ;;  %v5591_v1 = vld [vmem:[#allocation31_spill] sm:$0xff]  ;;  %vm2622_vm4 = vcmp.eq.s32.totalorder %v4564_v34, 17 }
 0x1c9   : > { %v1349_v53 = vpop.permute.xlu0 %1348 }
 0x1ca   : > { %v1428_v7 = vmax.f32 %v1388_v18, %v1349_v53  ;;  %v2500_v26 = vsel %vm2492_vm5, %v1349_v53, %v2420_v6  ;;  %v1279_v11 = vmax.f32 %v1263_v12, %v4361_v3  ;;  %v1318_v49 = vmax.f32 %v1278_v19, %v4365_v54  ;;  %v5595_v12 = vld [vmem:[#allocation37_spill] sm:$0xff] }
 0x1cb   : > { %v2548_v13 = vsel %vm2540_vm6, %v3939_v62, %v2500_v26  ;;  %v1351_v4 = vpop.permute.xlu1 %1350  ;;  %vm2670_vm5 = vcmp.eq.s32.totalorder %v4564_v34, 18  ;;  %vm2495_vm6 = vcmp.eq.s32.totalorder %v4574_v55, 15  ;;  %v5594_v26 = vld [vmem:[#allocation46_spill] sm:$0xff] }
 0x1cc   : > { %v4577_v21 = vmax.f32 %v1428_v7, %v1436_v33  ;;  %v2628_v29 = vsel %vm2620_vm7, %v1405_v60, %v2548_v13  ;;  %v1429_v6 = vmax.f32 %v1389_v51, %v1351_v4  ;;  %v2501_v14 = vsel %vm2493_vm9, %v1351_v4, %v2421_v59  ;;  %v5587_v59 = vld [vmem:[#allocation29_spill] sm:$0xff] }
 0x1cd   : > { %v4584_v22 = vsel %vm2668_vm8, %v1436_v33, %v2628_v29  ;;  %v2549_v62 = vsel %vm2541_vm11, %v3957_v16, %v2501_v14  ;;  %v1297_v31 = vpop.permute.xlu0 %1296  ;;  %v1319_v25 = vmax.f32 %v1279_v11, %v5588_v0  ;;  %v1334_v36 = vmax.f32 %v1318_v49, %v4382_v10  ;;  %v5592_v10 = vld [vmem:[#allocation48_spill] sm:$0xff]  ;;  %v4632_v29 = vld [vmem:[%s3609_s8 + $0x20] sm:$0xff] }
 0x1ce   : > { %v4591_v42 = vmax.f32 %v1429_v6, %v1437_v38  ;;  %v2629_v60 = vsel %vm2621_vm12, %v1407_v30, %v2549_v62  ;;  %v2374_v3 = vsel %vm2366_vm14, %v1297_v31, %v4394_v39  ;;  %1508 = vrot.lane.b32.xlu0 %v4577_v21, %s3488_s9  ;;  %v1224_v53 = vmax.f32 %v1208_v61, %v5592_v10  ;;  %v1438_v49 = vld [vmem:[#allocation2 + $0xe8] sm:$0xff]  ;;  %v5601_v61 = vld [vmem:[#allocation6_spill] sm:$0xff] }
 0x1cf   : > { %v4602_v16 = vsel %vm2669_vm13, %v1437_v38, %v2629_v60  ;;  %v1299_v40 = vpop.permute.xlu1 %1298  ;;  %v2422_v54 = vsel %vm2414_vm15, %v5587_v59, %v2374_v3  ;;  %v1335_v5 = vmax.f32 %v1319_v25, %v4389_v63  ;;  %v1374_v20 = vmax.f32 %v1334_v36, %v1297_v31  ;;  %v5593_v63 = vld [vmem:[#allocation47_spill] sm:$0xff]  ;;  %v1439_v25 = vld [vmem:[#allocation2 + $0x138] sm:$0xff] }
 0x1d0   : > { %v2375_v39 = vsel %vm2367_vm0, %v1299_v40, %v4402_v44  ;;  %1510 = vrot.lane.b32.xlu1 %v4591_v42, %s3488_s9  ;;  %vm2543_vm7 = vcmp.eq.s32.totalorder %v4574_v55, 16  ;;  %v5596_v19 = vmax.f32 %v5594_v26, %v5595_v12  ;;  %v1264_v13 = vmax.f32 %v1224_v53, %v4398_v17  ;;  %v5597_v38 = vld [vmem:[#allocation7_spill] sm:$0xff]  ;;  %v5598_v17 = vld [vmem:[#allocation28_spill] sm:$0xff]  ;;  %v5600_v36 = vld [vmem:[#allocation30_spill] sm:$0xff] }
 0x1d1   : > { %v1409_v30 = vpop.permute.xlu0 %1408  ;;  %v2423_v18 = vsel %vm2415_vm1, %v5591_v1, %v2375_v39  ;;  %v1375_v44 = vmax.f32 %v1335_v5, %v1299_v40  ;;  %vm2623_vm8 = vcmp.eq.s32.totalorder %v4574_v55, 17  ;;  %vm2368_vm9 = vcmp.eq.s32.totalorder %v4632_v29, 13 }
 0x1d2   : > { %v1390_v7 = vmax.f32 %v1374_v20, %v1409_v30  ;;  %v1225_v33 = vmax.f32 %v5596_v19, %v5593_v63  ;;  %vm2671_vm11 = vcmp.eq.s32.totalorder %v4574_v55, 18  ;;  %v1280_v31 = vmax.f32 %v1264_v13, %v4412_v32  ;;  %v5605_v63 = vld [vmem:[#allocation35_spill] sm:$0xff]  ;;  %v5607_v19 = vld [vmem:[#allocation44_spill] sm:$0xff] }
 0x1d3   : > { %v1411_v51 = vpop.permute.xlu1 %1410  ;;  %vm2416_vm12 = vcmp.eq.s32.totalorder %v4632_v29, 14  ;;  %vm2369_vm13 = vcmp.eq.s32.totalorder %v4443_v57, 13  ;;  %vm2417_vm14 = vcmp.eq.s32.totalorder %v4443_v57, 14  ;;  %vm2496_vm15 = vcmp.eq.s32.totalorder %v4632_v29, 15  ;;  %v5608_v13 = vld [vmem:[#allocation11_spill] sm:$0xff] }
 0x1d4   : > { %v1391_v6 = vmax.f32 %v1375_v44, %v1411_v51  ;;  %v1265_v62 = vmax.f32 %v1225_v33, %v5597_v38  ;;  %v5604_v44 = vld [vmem:[#allocation43_spill] sm:$0xff]  ;;  %vm2544_vm0 = vcmp.eq.s32.totalorder %v4632_v29, 16  ;;  %vm2624_vm1 = vcmp.eq.s32.totalorder %v4632_v29, 17 }
 0x1d5   : > { %v1353_v4 = vpop.permute.xlu0 %1352 }
 0x1d6   : > { %v1430_v14 = vmax.f32 %v1390_v7, %v1353_v4  ;;  %v2502_v11 = vsel %vm2494_vm2, %v1353_v4, %v2422_v54  ;;  %v1281_v8 = vmax.f32 %v1265_v62, %v4415_v43  ;;  %vm2672_vm2 = vcmp.eq.s32.totalorder %v4632_v29, 18 }
 0x1d7   : > { %v2550_v60 = vsel %vm2542_vm3, %v5598_v17, %v2502_v11  ;;  %v1355_v3 = vpop.permute.xlu1 %1354  ;;  %vm2497_vm3 = vcmp.eq.s32.totalorder %v4443_v57, 15 }
 0x1d8   : > { %v4644_v40 = vmax.f32 %v1430_v14, %v1438_v49  ;;  %v2630_v59 = vsel %vm2622_vm4, %v1409_v30, %v2550_v60  ;;  %v1431_v54 = vmax.f32 %v1391_v6, %v1355_v3  ;;  %v2503_v0 = vsel %vm2495_vm6, %v1355_v3, %v2423_v18 }
 0x1d9   : > { %v4652_v32 = vsel %vm2670_vm5, %v1438_v49, %v2630_v59  ;;  %v2551_v39 = vsel %vm2543_vm7, %v5600_v36, %v2503_v0  ;;  %v1301_v41 = vpop.permute.xlu0 %1300  ;;  %v1320_v30 = vmax.f32 %v1280_v31, %v5601_v61  ;;  %v1321_v43 = vmax.f32 %v1281_v8, %v4427_v35  ;;  %v1440_v59 = vld [vmem:[#allocation2 + $0x188] sm:$0xff] }
 0x1da   : > { %5599 = vst [vmem:[#allocation15_spill] sm:$0xff] %v4652_v32  ;;  %v4661_v1 = vmax.f32 %v1431_v54, %v1439_v25  ;;  %v2631_v34 = vsel %vm2623_vm8, %v1411_v51, %v2551_v39  ;;  %1512 = vrot.lane.b32.xlu0 %v4644_v40, %s3488_s9  ;;  %v2376_v5 = vsel %vm2368_vm9, %v1301_v41, %v4451_v58  ;;  %v5603_v51 = vld [vmem:[#allocation49_spill] sm:$0xff]  ;;  %vm2545_vm4 = vcmp.eq.s32.totalorder %v4443_v57, 16  ;;  %v5610_v54 = vld [vmem:[#allocation34_spill] sm:$0xff]  ;;  %v5612_v8 = vld [vmem:[#allocation36_spill] sm:$0xff] }
 0x1db   : > { %v4669_v18 = vsel %vm2671_vm11, %v1439_v25, %v2631_v34  ;;  %v1303_v20 = vpop.permute.xlu1 %1302  ;;  %v1336_v10 = vmax.f32 %v1320_v30, %v4436_v27  ;;  %v1210_v7 = vmax.f32 %v5604_v44, %v5603_v51  ;;  %v2424_v26 = vsel %vm2416_vm12, %v5605_v63, %v2376_v5  ;;  %v5052_v32 = vld [vmem:[#allocation2 + $0x1a8] sm:$0xff] }
 0x1dc   : > { %5602 = vst [vmem:[#allocation19_spill] sm:$0xff] %v4669_v18  ;;  %v2377_v53 = vsel %vm2369_vm13, %v1303_v20, %v4459_v37  ;;  %1514 = vrot.lane.b32.xlu1 %v4661_v1, %s3488_s9  ;;  %v1337_v35 = vmax.f32 %v1321_v43, %v4446_v23  ;;  %v5606_v37 = vld [vmem:[#allocation5_spill] sm:$0xff]  ;;  %v5609_v23 = vld [vmem:[#allocation4_spill] sm:$0xff]  ;;  %vm2625_vm5 = vcmp.eq.s32.totalorder %v4443_v57, 17  ;;  %vm2370_vm6 = vcmp.eq.s32.totalorder %v4481_v46, 13  ;;  %5627 = vst [vmem:[#allocation22_spill] sm:$0xff] %v5052_v32 }
 0x1dd   : > { %v1413_v55 = vpop.permute.xlu0 %1412  ;;  %v2425_v58 = vsel %vm2417_vm14, %v5595_v12, %v2377_v53  ;;  %v1376_v27 = vmax.f32 %v1336_v10, %v1301_v41  ;;  %v1211_v33 = vmax.f32 %v5607_v19, %v5606_v37  ;;  %v1226_v4 = vmax.f32 %v1210_v7, %v5608_v13 }
 0x1de   : > { %v1377_v14 = vmax.f32 %v1337_v35, %v1303_v20  ;;  %vm2673_vm7 = vcmp.eq.s32.totalorder %v4443_v57, 18  ;;  %vm2418_vm8 = vcmp.eq.s32.totalorder %v4481_v46, 14  ;;  %vm2371_vm9 = vcmp.eq.s32.totalorder %v4507_v2, 13  ;;  %v5614_v57 = vld [vmem:[#allocation40_spill] sm:$0xff] }
 0x1df   : > { %v1415_v6 = vpop.permute.xlu1 %1414  ;;  %v1392_v11 = vmax.f32 %v1376_v27, %v1413_v55  ;;  %v1227_v12 = vmax.f32 %v1211_v33, %v5609_v23  ;;  %v1266_v38 = vmax.f32 %v1226_v4, %v4455_v28  ;;  %vm2419_vm11 = vcmp.eq.s32.totalorder %v4507_v2, 14  ;;  %v5617_v33 = vld [vmem:[#allocation41_spill] sm:$0xff] }
 0x1e0   : > { %v1393_v31 = vmax.f32 %v1377_v14, %v1415_v6  ;;  %vm2498_vm12 = vcmp.eq.s32.totalorder %v4481_v46, 15  ;;  %vm2546_vm13 = vcmp.eq.s32.totalorder %v4481_v46, 16  ;;  %vm2499_vm14 = vcmp.eq.s32.totalorder %v4507_v2, 15 }
 0x1e1   : > { %v1357_v62 = vpop.permute.xlu0 %1356  ;;  %v1267_v60 = vmax.f32 %v1227_v12, %v4464_v15  ;;  %v1282_v3 = vmax.f32 %v1266_v38, %v4469_v50  ;;  %v1441_v50 = vld [vmem:[#allocation2 + $0x1d8] sm:$0xff] }
 0x1e2   : > { %v1432_v49 = vmax.f32 %v1392_v11, %v1357_v62  ;;  %v2504_v17 = vsel %vm2496_vm15, %v1357_v62, %v2424_v26  ;;  %vm2547_vm15 = vcmp.eq.s32.totalorder %v4507_v2, 16  ;;  %v5616_v26 = vld [vmem:[#allocation39_spill] sm:$0xff]  ;;  %v1443_v62 = vld [vmem:[#allocation2 + $0x278] sm:$0xff] }
 0x1e3   : > { %v2552_v28 = vsel %vm2544_vm0, %v5610_v54, %v2504_v17  ;;  %v1359_v0 = vpop.permute.xlu1 %1358  ;;  %v1283_v34 = vmax.f32 %v1267_v60, %v4472_v56  ;;  %v1322_v5 = vmax.f32 %v1282_v3, %v4476_v52  ;;  %vm2626_vm0 = vcmp.eq.s32.totalorder %v4481_v46, 17  ;;  %v4780_v3 = vld [vmem:[#allocation2 + $0x28] sm:$0xff]  ;;  %v4784_v54 = vld [vmem:[#allocation2 + $0x30] sm:$0xff] }
 0x1e4   : > { %v4710_v25 = vmax.f32 %v1432_v49, %v1440_v59  ;;  %v2632_v36 = vsel %vm2624_vm1, %v1413_v55, %v2552_v28  ;;  %v1433_v39 = vmax.f32 %v1393_v31, %v1359_v0  ;;  %v2505_v41 = vsel %vm2497_vm3, %v1359_v0, %v2425_v58  ;;  %v4788_v0 = vld [vmem:[#allocation2 + $0x38] sm:$0xff] }
 0x1e5   : > { %v4718_v15 = vsel %vm2672_vm2, %v1440_v59, %v2632_v36  ;;  %v2553_v61 = vsel %vm2545_vm4, %v5612_v8, %v2505_v41  ;;  %v1305_v30 = vpop.permute.xlu0 %1304  ;;  %v1323_v56 = vmax.f32 %v1283_v34, %v4490_v45  ;;  %v1338_v52 = vmax.f32 %v1322_v5, %v4503_v47  ;;  %v4794_v41 = vld [vmem:[#allocation2 + $0x8] sm:$0xff]  ;;  %v4798_v8 = vld [vmem:[#allocation2 + $0x40] sm:$0xff]  ;;  %v4806_v5 = vld [vmem:[#allocation2 + $0x58] sm:$0xff] }
 0x1e6   : > { %5611 = vst [vmem:[#allocation9_spill] sm:$0xff] %v4718_v15  ;;  %v4727_v20 = vmax.f32 %v1433_v39, %v1441_v50  ;;  %v2633_v29 = vsel %vm2625_vm5, %v1415_v6, %v2553_v61  ;;  %1516 = vrot.lane.b32.xlu0 %v4710_v25, %s3488_s9  ;;  %v2378_v10 = vsel %vm2370_vm6, %v1305_v30, %v4528_v24  ;;  %v5615_v24 = vld [vmem:[#allocation42_spill] sm:$0xff]  ;;  %vm2674_vm1 = vcmp.eq.s32.totalorder %v4481_v46, 18  ;;  %v1442_v6 = vld [vmem:[#allocation2 + $0x228] sm:$0xff] }
 0x1e7   : > { %v4735_v43 = vsel %vm2673_vm7, %v1441_v50, %v2633_v29  ;;  %v1307_v53 = vpop.permute.xlu1 %1306  ;;  %v2426_v44 = vsel %vm2418_vm8, %v5614_v57, %v2378_v10  ;;  %v1339_v45 = vmax.f32 %v1323_v56, %v4519_v9  ;;  %v1378_v47 = vmax.f32 %v1338_v52, %v1305_v30  ;;  %v4802_v30 = vld [vmem:[#allocation2 + $0x50] sm:$0xff]  ;;  %v4810_v10 = vld [vmem:[#allocation2 + $0x78] sm:$0xff]  ;;  %v4814_v56 = vld [vmem:[#allocation2 + $0x80] sm:$0xff] }
 0x1e8   : > { %5613 = vst [vmem:[#allocation13_spill] sm:$0xff] %v4735_v43  ;;  %v2379_v51 = vsel %vm2371_vm9, %v1307_v53, %v4540_v48  ;;  %1518 = vrot.lane.b32.xlu1 %v4727_v20, %s3488_s9  ;;  %vm2627_vm2 = vcmp.eq.s32.totalorder %v4507_v2, 17  ;;  %vm2675_vm3 = vcmp.eq.s32.totalorder %v4507_v2, 18  ;;  %v4776_v2 = vld [vmem:[#allocation2] sm:$0xff] }
 0x1e9   : > { %v1361_v7 = vpop.permute.xlu0 %1360  ;;  %v2427_v55 = vsel %vm2419_vm11, %v5615_v24, %v2379_v51  ;;  %v1379_v35 = vmax.f32 %v1339_v45, %v1307_v53  ;;  %v4818_v51 = vld [vmem:[#allocation2 + $0x88] sm:$0xff]  ;;  %v4826_v45 = vld [vmem:[#allocation2 + $0x10] sm:$0xff] }
 0x1ea   : > { %v2506_v48 = vsel %vm2498_vm12, %v1361_v7, %v2426_v44  ;;  %v1394_v27 = vmax.f32 %v1378_v47, %v1361_v7  ;;  %v4822_v44 = vld [vmem:[#allocation2 + $0x90] sm:$0xff] }
 0x1eb   : > { %v1363_v63 = vpop.permute.xlu1 %1362  ;;  %v2554_v58 = vsel %vm2546_vm13, %v5616_v26, %v2506_v48 }
 0x1ec   : > { %v2507_v37 = vsel %vm2499_vm14, %v1363_v63, %v2427_v55  ;;  %v1395_v9 = vmax.f32 %v1379_v35, %v1363_v63  ;;  %v4830_v63 = vld [vmem:[#allocation2 + $0x60] sm:$0xff] }
 0x1ed   : > { %v1417_v19 = vpop.permute.xlu0 %1416  ;;  %v2555_v13 = vsel %vm2547_vm15, %v5617_v33, %v2507_v37 }
 0x1ee   : > { %v1434_v4 = vmax.f32 %v1394_v27, %v1417_v19  ;;  %v2634_v14 = vsel %vm2626_vm0, %v1417_v19, %v2554_v58 }
 0x1ef   : > { %v4762_v11 = vsel %vm2674_vm1, %v1442_v6, %v2634_v14  ;;  %v1419_v23 = vpop.permute.xlu1 %1418 }
 0x1f0   : > { %5618 = vst [vmem:[#allocation8_spill] sm:$0xff] %v4762_v11  ;;  %v4764_v12 = vmax.f32 %v1434_v4, %v1442_v6  ;;  %v1435_v38 = vmax.f32 %v1395_v9, %v1419_v23  ;;  %v2635_v31 = vsel %vm2627_vm2, %v1419_v23, %v2555_v13  ;;  %v4840_v6 = vld [vmem:[#allocation2 + $0x18] sm:$0xff]  ;;  %v4844_v23 = vld [vmem:[#allocation2 + $0x68] sm:$0xff]  ;;  %v4994_v11 = vld [vmem:[#allocation2 + $0x130] sm:$0xff] }
 0x1f1   : > { %v4766_v46 = vsel %vm2675_vm3, %v1443_v62, %v2635_v31 }
 0x1f2   : > { %5619 = vst [vmem:[#allocation12_spill] sm:$0xff] %v4764_v12  ;;  %5620 = vst [vmem:[#allocation10_spill] sm:$0xff] %v4766_v46  ;;  %v4768_v49 = vmax.f32 %v1435_v38, %v1443_v62  ;;  %1520 = vrot.lane.b32.xlu0 %v4764_v12, %s3488_s9  ;;  %v4848_v62 = vld [vmem:[#allocation2 + $0x20] sm:$0xff] }
 0x1f4   : > { %5621 = vst [vmem:[#allocation14_spill] sm:$0xff] %v4768_v49  ;;  %1522 = vrot.lane.b32.xlu1 %v4768_v49, %s3488_s9 }
 0x240   : > { %v4774_v17 = vpop.permute.xlu0 %1508 }
 0x241   : > { %v1532_v60 = vsub.f32 %v4776_v2, %v4774_v17  ;;  %v2172_v59 = vsub.f32 %v4780_v3, %v4774_v17  ;;  %v2300_v28 = vsub.f32 %v4784_v54, %v4774_v17  ;;  %v2428_v36 = vsub.f32 %v4788_v0, %v4774_v17 }
 0x242   : > { %v4792_v39 = vpop.permute.xlu1 %1510  ;;  %v1660_v50 = vsub.f32 %v4794_v41, %v4774_v17  ;;  %v2556_v61 = vsub.f32 %v4798_v8, %v4774_v17  ;;  %v1788_v47 = vsub.f32 %v4826_v45, %v4774_v17  ;;  %v1916_v14 = vsub.f32 %v4840_v6, %v4774_v17 }
 0x243   : > { %v1533_v34 = vsub.f32 %v4802_v30, %v4792_v39  ;;  %v1661_v29 = vsub.f32 %v4806_v5, %v4792_v39  ;;  %v2173_v53 = vsub.f32 %v4810_v10, %v4792_v39  ;;  %v2301_v52 = vsub.f32 %v4814_v56, %v4792_v39 }
 0x244   : > { %v2429_v57 = vsub.f32 %v4818_v51, %v4792_v39  ;;  %v2557_v7 = vsub.f32 %v4822_v44, %v4792_v39  ;;  %v1540_v24 = vmul.f32 1.442695, %v1532_v60  ;;  %v1668_v48 = vmul.f32 1.442695, %v1660_v50 }
 0x245   : > { %v1542_v55 = vmul.f32 1.442695, %v1533_v34  ;;  %v1789_v26 = vsub.f32 %v4830_v63, %v4792_v39  ;;  %v1670_v58 = vmul.f32 1.442695, %v1661_v29  ;;  %v1796_v35 = vmul.f32 1.442695, %v1788_v47 }
 0x246   : > { %3047 = vpow2.f32 %v1540_v24  ;;  %v1917_v38 = vsub.f32 %v4844_v23, %v4792_v39  ;;  %v2044_v31 = vsub.f32 %v4848_v62, %v4774_v17  ;;  %v1924_v60 = vmul.f32 1.442695, %v1916_v14  ;;  %v4852_v29 = vld [vmem:[#allocation2 + $0x70] sm:$0xff] }
 0x247   : > { %3049 = vpow2.f32 %v1542_v55  ;;  %v1798_v27 = vmul.f32 1.442695, %v1789_v26  ;;  %v2045_v24 = vsub.f32 %v4852_v29, %v4792_v39 }
 0x248   : > { %3051 = vpow2.f32 %v1668_v48  ;;  %v1926_v50 = vmul.f32 1.442695, %v1917_v38  ;;  %v2052_v34 = vmul.f32 1.442695, %v2044_v31  ;;  %v4913_v31 = vld [vmem:[#allocation2 + $0xa8] sm:$0xff] }
 0x249   : > { %3053 = vpow2.f32 %v1670_v58  ;;  %v2054_v55 = vmul.f32 1.442695, %v2045_v24  ;;  %v2180_v58 = vmul.f32 1.442695, %v2172_v59 }
 0x24a   : > { %3055 = vpow2.f32 %v1796_v35  ;;  %v2182_v35 = vmul.f32 1.442695, %v2173_v53  ;;  %v4882_v53 = vld [vmem:[#allocation2 + $0xa0] sm:$0xff] }
 0x24b   : > { %3057 = vpow2.f32 %v1798_v27 }
 0x24c   : > { %3059 = vpow2.f32 %v1924_v60  ;;  %v4875_v59 = vpop.permute.xlu0 %1512 }
 0x24d   : > { %3061 = vpow2.f32 %v1926_v50  ;;  %v1662_v60 = vsub.f32 %v4913_v31, %v4875_v59 }
 0x24e   : > { %3063 = vpow2.f32 %v2052_v34  ;;  %v4918_v34 = vld [vmem:[#allocation2 + $0xf8] sm:$0xff] }
 0x24f   : > { %3065 = vpow2.f32 %v2054_v55  ;;  %v1672_v55 = vmul.f32 1.442695, %v1662_v60 }
 0x250   : > { %v3048_v37 = vpop.eup %3047  ;;  %3067 = vpow2.f32 %v2180_v58  ;;  %v4928_v58 = vld [vmem:[#allocation2 + $0x100] sm:$0xff] }
 0x251   : > { %v3050_v19 = vpop.eup %3049  ;;  %1564 = vrot.lane.b32.xlu0 %v3048_v37, %s3488_s9  ;;  %v2308_v37 = vmul.f32 1.442695, %v2300_v28  ;;  %3069 = vpow2.f32 %v2182_v35  ;;  %v2438_v28 = vmul.f32 1.442695, %v2429_v57  ;;  %v4905_v57 = vld [vmem:[#allocation2 + $0xf0] sm:$0xff] }
 0x252   : > { %1566 = vrot.lane.b32.xlu1 %v3050_v19, %s3488_s9  ;;  %v3052_v33 = vpop.eup %3051  ;;  %v2310_v19 = vmul.f32 1.442695, %v2301_v52  ;;  %v1534_v52 = vsub.f32 %v4882_v53, %v4875_v59 }
 0x253   : > { %v3054_v13 = vpop.eup %3053  ;;  %3071 = vpow2.f32 %v2308_v37 }
 0x254   : > { %v3056_v9 = vpop.eup %3055  ;;  %3073 = vpow2.f32 %v2310_v19  ;;  %v1544_v38 = vmul.f32 1.442695, %v1534_v52 }
 0x255   : > { %1692 = vrot.lane.b32.xlu0 %v3052_v33, %s3488_s9  ;;  %v3058_v4 = vpop.eup %3057  ;;  %v2436_v33 = vmul.f32 1.442695, %v2428_v36  ;;  %v4880_v36 = vpop.permute.xlu1 %1514 }
 0x256   : > { %1694 = vrot.lane.b32.xlu1 %v3054_v13, %s3488_s9  ;;  %v3060_v47 = vpop.eup %3059  ;;  %v2564_v13 = vmul.f32 1.442695, %v2556_v61  ;;  %v1535_v17 = vsub.f32 %v4905_v57, %v4880_v36  ;;  %v2566_v61 = vmul.f32 1.442695, %v2557_v7  ;;  %v1663_v39 = vsub.f32 %v4918_v34, %v4880_v36 }
 0x257   : > { %v3062_v48 = vpop.eup %3061  ;;  %3075 = vpow2.f32 %v2436_v33  ;;  %v1791_v35 = vsub.f32 %v4928_v58, %v4880_v36  ;;  %v4933_v33 = vld [vmem:[#allocation2 + $0xb8] sm:$0xff] }
 0x258   : > { %v3064_v26 = vpop.eup %3063  ;;  %3077 = vpow2.f32 %v2438_v28  ;;  %v1546_v50 = vmul.f32 1.442695, %v1535_v17  ;;  %v1918_v28 = vsub.f32 %v4933_v33, %v4875_v59 }
 0x259   : > { %1820 = vrot.lane.b32.xlu0 %v3056_v9, %s3488_s9  ;;  %v3066_v27 = vpop.eup %3065  ;;  %v3489_v9 = vmov 0.0   ;;  %3079 = vpow2.f32 %v2564_v13  ;;  %v1802_v52 = vmul.f32 1.442695, %v1791_v35  ;;  %v4938_v13 = vld [vmem:[#allocation2 + $0x108] sm:$0xff] }
 0x25a   : > { %1822 = vrot.lane.b32.xlu1 %v3058_v4, %s3488_s9  ;;  %376 = vst.msk [vmem:[%s4873_s12] sm:$0xff] %vm375_vm10, %v3489_v9  ;;  %377 = vst.msk [vmem:[%s4873_s12 + $0x8] sm:$0xff] %vm375_vm10, %v3489_v9  ;;  %v3068_v4 = vpop.eup %3067  ;;  %3081 = vpow2.f32 %v2566_v61 }
 0x25b   : > { %378 = vst.msk [vmem:[%s4873_s12 + $0x10] sm:$0xff] %vm375_vm10, %v3489_v9  ;;  %379 = vst.msk [vmem:[%s4873_s12 + $0x18] sm:$0xff] %vm375_vm10, %v3489_v9  ;;  %v3070_v14 = vpop.eup %3069  ;;  %3083 = vpow2.f32 %v1544_v38 }
 0x25c   : > { %380 = vst.msk [vmem:[%s4873_s12 + $0x20] sm:$0xff] %vm375_vm10, %v3489_v9  ;;  %381 = vst.msk [vmem:[%s4873_s12 + $0x28] sm:$0xff] %vm375_vm10, %v3489_v9  ;;  %3085 = vpow2.f32 %v1546_v50  ;;  %v4948_v50 = vld [vmem:[#allocation2 + $0x110] sm:$0xff] }
 0x25d   : > { %1948 = vrot.lane.b32.xlu0 %v3060_v47, %s3488_s9  ;;  %382 = vst.msk [vmem:[%s4873_s12 + $0x30] sm:$0xff] %vm375_vm10, %v3489_v9  ;;  %383 = vst.msk [vmem:[%s4873_s12 + $0x38] sm:$0xff] %vm375_vm10, %v3489_v9  ;;  %v3072_v7 = vpop.eup %3071  ;;  %v4923_v47 = vld [vmem:[#allocation2 + $0xb0] sm:$0xff]  ;;  %3087 = vpow2.f32 %v1672_v55  ;;  %v1919_v9 = vsub.f32 %v4938_v13, %v4880_v36 }
 0x25e   : > { %1950 = vrot.lane.b32.xlu1 %v3062_v48, %s3488_s9  ;;  %v3074_v24 = vpop.eup %3073  ;;  %v1790_v48 = vsub.f32 %v4923_v47, %v4875_v59 }
 0x25f   : > { %v1930_v60 = vmul.f32 1.442695, %v1919_v9  ;;  %v4963_v9 = vld [vmem:[#allocation2 + $0xd0] sm:$0xff] }
 0x260   : > { %v1800_v19 = vmul.f32 1.442695, %v1790_v48  ;;  %v4953_v48 = vld [vmem:[#allocation2 + $0xc8] sm:$0xff] }
 0x261   : > { %2076 = vrot.lane.b32.xlu0 %v3064_v26, %s3488_s9  ;;  %v1674_v26 = vmul.f32 1.442695, %v1663_v39  ;;  %v2047_v39 = vsub.f32 %v4948_v50, %v4880_v36 }
 0x262   : > { %2078 = vrot.lane.b32.xlu1 %v3066_v27, %s3488_s9  ;;  %v3076_v27 = vpop.eup %3075 }
 0x263   : > { %v3078_v37 = vpop.eup %3077  ;;  %3089 = vpow2.f32 %v1674_v26  ;;  %v2174_v26 = vsub.f32 %v4953_v48, %v4875_v59  ;;  %v2058_v35 = vmul.f32 1.442695, %v2047_v39 }
 0x264   : > { %v3080_v17 = vpop.eup %3079  ;;  %3091 = vpow2.f32 %v1800_v19 }
 0x265   : > { %2204 = vrot.lane.b32.xlu0 %v3068_v4, %s3488_s9  ;;  %v3082_v61 = vpop.eup %3081  ;;  %v1928_v4 = vmul.f32 1.442695, %v1918_v28  ;;  %3093 = vpow2.f32 %v1802_v52  ;;  %v2184_v52 = vmul.f32 1.442695, %v2174_v26 }
 0x266   : > { %2206 = vrot.lane.b32.xlu1 %v3070_v14, %s3488_s9  ;;  %v4943_v14 = vld [vmem:[#allocation2 + $0xc0] sm:$0xff] }
 0x267   : > { %v2046_v38 = vsub.f32 %v4943_v14, %v4875_v59  ;;  %3095 = vpow2.f32 %v1928_v4  ;;  %v4968_v4 = vld [vmem:[#allocation2 + $0x120] sm:$0xff] }
 0x268   : > { %3097 = vpow2.f32 %v1930_v60 }
 0x269   : > { %2332 = vrot.lane.b32.xlu0 %v3072_v7, %s3488_s9  ;;  %v3084_v7 = vpop.eup %3083  ;;  %v2056_v55 = vmul.f32 1.442695, %v2046_v38  ;;  %v2303_v38 = vsub.f32 %v4968_v4, %v4880_v36 }
 0x26a   : > { %2334 = vrot.lane.b32.xlu1 %v3074_v24, %s3488_s9  ;;  %v3086_v24 = vpop.eup %3085 }
 0x26b   : > { %v3088_v19 = vpop.eup %3087  ;;  %3099 = vpow2.f32 %v2056_v55  ;;  %v4975_v55 = vld [vmem:[#allocation2 + $0xd8] sm:$0xff] }
 0x26c   : > { %3101 = vpow2.f32 %v2058_v35  ;;  %v2430_v26 = vsub.f32 %v4975_v55, %v4875_v59  ;;  %v2314_v35 = vmul.f32 1.442695, %v2303_v38 }
 0x26d   : > { %2460 = vrot.lane.b32.xlu0 %v3076_v27, %s3488_s9  ;;  %v4958_v27 = vld [vmem:[#allocation2 + $0x118] sm:$0xff]  ;;  %v3090_v28 = vpop.eup %3089  ;;  %3103 = vpow2.f32 %v2184_v52 }
 0x26e   : > { %2462 = vrot.lane.b32.xlu1 %v3078_v37, %s3488_s9  ;;  %v2175_v37 = vsub.f32 %v4958_v27, %v4880_v36  ;;  %v3092_v60 = vpop.eup %3091 }
 0x26f   : > { %v3094_v39 = vpop.eup %3093 }
 0x271   : > { %2588 = vrot.lane.b32.xlu0 %v3080_v17, %s3488_s9  ;;  %v2302_v17 = vsub.f32 %v4963_v9, %v4875_v59 }
 0x272   : > { %2590 = vrot.lane.b32.xlu1 %v3082_v61, %s3488_s9  ;;  %v2186_v61 = vmul.f32 1.442695, %v2175_v37  ;;  %v4980_v37 = vld [vmem:[#allocation2 + $0x128] sm:$0xff] }
 0x274   : > { %3105 = vpow2.f32 %v2186_v61  ;;  %v4989_v61 = vld [vmem:[#allocation2 + $0xe0] sm:$0xff] }
 0x275   : > { %1568 = vrot.lane.b32.xlu0 %v3084_v7, %s3488_s9  ;;  %v1452_v7 = vsub.f32 %v4776_v2, %v4577_v21  ;;  %v1453_v2 = vsub.f32 %v4802_v30, %v4591_v42  ;;  %v2558_v38 = vsub.f32 %v4989_v61, %v4875_v59  ;;  %v2559_v30 = vsub.f32 %v4994_v11, %v4880_v36 }
 0x276   : > { %1570 = vrot.lane.b32.xlu1 %v3086_v24, %s3488_s9  ;;  %v2312_v24 = vmul.f32 1.442695, %v2302_v17 }
 0x277   : > { %v1460_v17 = vmul.f32 1.442695, %v1452_v7  ;;  %v4998_v7 = vpop.permute.xlu0 %1516 }
 0x278   : > { %3107 = vpow2.f32 %v2312_v24  ;;  %v1462_v24 = vmul.f32 1.442695, %v1453_v2  ;;  %v2570_v2 = vmul.f32 1.442695, %v2559_v30  ;;  %v5021_v30 = vld [vmem:[#allocation2 + $0x148] sm:$0xff] }
 0x279   : > { %1696 = vrot.lane.b32.xlu0 %v3088_v19, %s3488_s9  ;;  %v2431_v19 = vsub.f32 %v4980_v37, %v4880_v36  ;;  %3109 = vpow2.f32 %v2314_v35  ;;  %v1740_v35 = vsub.f32 %v4826_v45, %v4577_v21  ;;  %v5007_v36 = vld [vmem:[#allocation2 + $0x140] sm:$0xff]  ;;  %v1741_v45 = vsub.f32 %v4830_v63, %v4591_v42  ;;  %5622 = vst [vmem:[#allocation17_spill] sm:$0xff] %v5021_v30  ;;  %v5026_v63 = vld [vmem:[#allocation2 + $0x198] sm:$0xff] }
 0x27a   : > { %1698 = vrot.lane.b32.xlu1 %v3090_v28, %s3488_s9  ;;  %v3096_v28 = vpop.eup %3095  ;;  %3111 = vpow2.f32 %v1460_v17  ;;  %v1664_v15 = vsub.f32 %v5021_v30, %v4998_v7  ;;  %5623 = vst [vmem:[#allocation21_spill] sm:$0xff] %v5026_v63 }
 0x27b   : > { %v3098_v52 = vpop.eup %3097  ;;  %v2442_v46 = vmul.f32 1.442695, %v2431_v19  ;;  %v2568_v19 = vmul.f32 1.442695, %v2558_v38  ;;  %v1748_v38 = vmul.f32 1.442695, %v1740_v35 }
 0x27c   : > { %v1750_v35 = vmul.f32 1.442695, %v1741_v45  ;;  %v5038_v45 = vld [vmem:[#allocation2 + $0x1a0] sm:$0xff] }
 0x27d   : > { %1824 = vrot.lane.b32.xlu0 %v3092_v60, %s3488_s9  ;;  %v1612_v60 = vsub.f32 %v4794_v41, %v4577_v21  ;;  %v5000_v41 = vpop.permute.xlu1 %1518  ;;  %5625 = vst [vmem:[#allocation20_spill] sm:$0xff] %v5038_v45 }
 0x27e   : > { %1826 = vrot.lane.b32.xlu1 %v3094_v39, %s3488_s9  ;;  %v2440_v39 = vmul.f32 1.442695, %v2430_v26  ;;  %v1613_v26 = vsub.f32 %v4806_v5, %v4591_v42  ;;  %v5012_v5 = vld [vmem:[#allocation2 + $0x190] sm:$0xff] }
 0x27f   : > { %v1620_v59 = vmul.f32 1.442695, %v1612_v60  ;;  %v1537_v17 = vsub.f32 %v5012_v5, %v5000_v41 }
 0x280   : > { %3113 = vpow2.f32 %v2440_v39 }
 0x281   : > { %1952 = vrot.lane.b32.xlu0 %v3096_v28, %s3488_s9  ;;  %v3100_v28 = vpop.eup %3099  ;;  %3115 = vpow2.f32 %v2442_v46 }
 0x282   : > { %1954 = vrot.lane.b32.xlu1 %v3098_v52, %s3488_s9  ;;  %v3102_v43 = vpop.eup %3101  ;;  %v1536_v52 = vsub.f32 %v5007_v36, %v4998_v7  ;;  %3117 = vpow2.f32 %v1462_v24  ;;  %v1550_v24 = vmul.f32 1.442695, %v1537_v17 }
 0x283   : > { %v3104_v60 = vpop.eup %3103  ;;  %3119 = vpow2.f32 %v1620_v59 }
 0x284   : > { %v3106_v39 = vpop.eup %3105  ;;  %3121 = vpow2.f32 %v2568_v19  ;;  %v1548_v46 = vmul.f32 1.442695, %v1536_v52 }
 0x285   : > { %2080 = vrot.lane.b32.xlu0 %v3100_v28, %s3488_s9  ;;  %v1622_v28 = vmul.f32 1.442695, %v1613_v26  ;;  %3123 = vpow2.f32 %v2570_v2  ;;  %v1665_v26 = vsub.f32 %v5026_v63, %v5000_v41  ;;  %v3108_v59 = vpop.eup %3107  ;;  %v5033_v2 = vld [vmem:[#allocation2 + $0x150] sm:$0xff] }
 0x286   : > { %2082 = vrot.lane.b32.xlu1 %v3102_v43, %s3488_s9  ;;  %v1868_v43 = vsub.f32 %v4840_v6, %v4577_v21  ;;  %v1869_v6 = vsub.f32 %v4844_v23, %v4591_v42  ;;  %v3110_v19 = vpop.eup %3109  ;;  %5624 = vst [vmem:[#allocation16_spill] sm:$0xff] %v5033_v2  ;;  %v1792_v17 = vsub.f32 %v5033_v2, %v4998_v7  ;;  %v5057_v2 = vld [vmem:[#allocation2 + $0x160] sm:$0xff] }
 0x287   : > { %3125 = vpow2.f32 %v1622_v28  ;;  %v1678_v28 = vmul.f32 1.442695, %v1665_v26  ;;  %v1793_v23 = vsub.f32 %v5038_v45, %v5000_v41  ;;  %v5047_v26 = vld [vmem:[#allocation2 + $0x158] sm:$0xff]  ;;  %5628 = vst [vmem:[#allocation24_spill] sm:$0xff] %v5057_v2 }
 0x288   : > { %3127 = vpow2.f32 %v1748_v38  ;;  %v1876_v52 = vmul.f32 1.442695, %v1868_v43  ;;  %v5044_v43 = vpop.permute.xlu1 %1522  ;;  %5626 = vst [vmem:[#allocation18_spill] sm:$0xff] %v5047_v26  ;;  %v1920_v49 = vsub.f32 %v5047_v26, %v4998_v7 }
 0x289   : > { %2208 = vrot.lane.b32.xlu0 %v3104_v60, %s3488_s9  ;;  %3129 = vpow2.f32 %v1548_v46  ;;  %v1676_v60 = vmul.f32 1.442695, %v1664_v15  ;;  %v1878_v15 = vmul.f32 1.442695, %v1869_v6  ;;  %v1806_v18 = vmul.f32 1.442695, %v1793_v23 }
 0x28a   : > { %2210 = vrot.lane.b32.xlu1 %v3106_v39, %s3488_s9  ;;  %v3112_v39 = vpop.eup %3111  ;;  %3131 = vpow2.f32 %v1550_v24  ;;  %v1804_v24 = vmul.f32 1.442695, %v1792_v17 }
 0x28b   : > { %v3114_v38 = vpop.eup %3113  ;;  %3133 = vpow2.f32 %v1750_v35  ;;  %v1921_v35 = vsub.f32 %v5052_v32, %v5000_v41 }
 0x28c   : > { %v3116_v46 = vpop.eup %3115  ;;  %3135 = vpow2.f32 %v1876_v52 }
 0x28d   : > { %2336 = vrot.lane.b32.xlu0 %v3108_v59, %s3488_s9  ;;  %v5042_v59 = vpop.permute.xlu0 %1520  ;;  %3137 = vpow2.f32 %v1676_v60 }
 0x28e   : > { %2338 = vrot.lane.b32.xlu1 %v3110_v19, %s3488_s9  ;;  %v3118_v19 = vpop.eup %3117  ;;  %3139 = vpow2.f32 %v1678_v28  ;;  %v2048_v28 = vsub.f32 %v5057_v2, %v4998_v7 }
 0x28f   : > { %v3120_v12 = vpop.eup %3119  ;;  %3141 = vpow2.f32 %v1878_v15 }
 0x290   : > { %v3122_v52 = vpop.eup %3121  ;;  %3143 = vpow2.f32 %v1804_v24 }
 0x291   : > { %2464 = vrot.lane.b32.xlu0 %v3114_v38, %s3488_s9  ;;  %v3124_v17 = vpop.eup %3123  ;;  %3145 = vpow2.f32 %v1806_v18 }
 0x292   : > { %2466 = vrot.lane.b32.xlu1 %v3116_v46, %s3488_s9  ;;  %v3126_v26 = vpop.eup %3125  ;;  %v1932_v46 = vmul.f32 1.442695, %v1920_v49 }
 0x293   : > { %v3128_v32 = vpop.eup %3127 }
 0x294   : > { %v3130_v24 = vpop.eup %3129  ;;  %3147 = vpow2.f32 %v1932_v46 }
 0x295   : > { %2592 = vrot.lane.b32.xlu0 %v3122_v52, %s3488_s9  ;;  %v3132_v63 = vpop.eup %3131 }
 0x296   : > { %2594 = vrot.lane.b32.xlu1 %v3124_v17, %s3488_s9  ;;  %v3134_v30 = vpop.eup %3133 }
 0x297   : > { %v3136_v17 = vpop.eup %3135 }
 0x298   : > { %v3138_v46 = vpop.eup %3137 }
 0x299   : > { %1572 = vrot.lane.b32.xlu0 %v3130_v24, %s3488_s9 }
 0x29a   : > { %1574 = vrot.lane.b32.xlu1 %v3132_v63, %s3488_s9  ;;  %v5077_v63 = vld [vmem:[#allocation2 + $0x170] sm:$0xff] }
 0x29d   : > { %1700 = vrot.lane.b32.xlu0 %v3138_v46, %s3488_s9 }
 0x2c3   : > { %v1565_v6 = vpop.permute.xlu0 %1564 }
 0x2c4   : > { %v1588_v38 = vadd.f32 %v3112_v39, %v1565_v6  ;;  %v1567_v60 = vpop.permute.xlu1 %1566  ;;  %v1934_v39 = vmul.f32 1.442695, %v1921_v35  ;;  %v5062_v6 = vld [vmem:[#allocation2 + $0x1b0] sm:$0xff] }
 0x2c5   : > { %v1589_v45 = vadd.f32 %v3118_v19, %v1567_v60  ;;  %5629 = vst [vmem:[#allocation23_spill] sm:$0xff] %v5062_v6  ;;  %v2049_v15 = vsub.f32 %v5062_v6, %v5000_v41 }
 0x2c6   : > { %v1636_v23 = vadd.f32 %v3120_v12, %v1588_v38  ;;  %v2060_v12 = vmul.f32 1.442695, %v2048_v28  ;;  %v5067_v38 = vld [vmem:[#allocation2 + $0x168] sm:$0xff]  ;;  %3149 = vpow2.f32 %v1934_v39  ;;  %v2304_v39 = vsub.f32 %v5077_v63, %v4998_v7 }
 0x2c7   : > { %v1693_v19 = vpop.permute.xlu0 %1692  ;;  %v1637_v52 = vadd.f32 %v3126_v26, %v1589_v45  ;;  %5630 = vst [vmem:[#allocation25_spill] sm:$0xff] %v5067_v38  ;;  %v2176_v18 = vsub.f32 %v5067_v38, %v4998_v7  ;;  %v2062_v45 = vmul.f32 1.442695, %v2049_v15  ;;  %v5072_v26 = vld [vmem:[#allocation2 + $0x1b8] sm:$0xff] }
 0x2c8   : > { %v1716_v49 = vadd.f32 %v1693_v19, %v1636_v23  ;;  %v1695_v60 = vpop.permute.xlu1 %1694  ;;  %v2177_v23 = vsub.f32 %v5072_v26, %v5000_v41  ;;  %3151 = vpow2.f32 %v2060_v12 }
 0x2c9   : > { %v1717_v2 = vadd.f32 %v1695_v60, %v1637_v52  ;;  %v3140_v60 = vpop.eup %3139  ;;  %3153 = vpow2.f32 %v2062_v45 }
 0x2ca   : > { %v1764_v35 = vadd.f32 %v3128_v32, %v1716_v49  ;;  %v3142_v6 = vpop.eup %3141  ;;  %v2188_v32 = vmul.f32 1.442695, %v2176_v18  ;;  %1702 = vrot.lane.b32.xlu1 %v3140_v60, %s3488_s9 }
 0x2cb   : > { %v1821_v19 = vpop.permute.xlu0 %1820  ;;  %v1765_v52 = vadd.f32 %v3134_v30, %v1717_v2  ;;  %v2190_v30 = vmul.f32 1.442695, %v2177_v23  ;;  %v5084_v2 = vld [vmem:[#allocation2 + $0x1c0] sm:$0xff]  ;;  %v3144_v12 = vpop.eup %3143  ;;  %v5096_v23 = vld [vmem:[#allocation2 + $0x1c8] sm:$0xff] }
 0x2cc   : > { %v1844_v28 = vadd.f32 %v1821_v19, %v1764_v35  ;;  %v1823_v24 = vpop.permute.xlu1 %1822  ;;  %v2305_v49 = vsub.f32 %v5084_v2, %v5000_v41  ;;  %v3146_v18 = vpop.eup %3145  ;;  %1828 = vrot.lane.b32.xlu0 %v3144_v12, %s3488_s9  ;;  %3155 = vpow2.f32 %v2188_v32  ;;  %v2316_v19 = vmul.f32 1.442695, %v2304_v39  ;;  %v5106_v39 = vld [vmem:[#allocation2 + $0x1d0] sm:$0xff] }
 0x2cd   : > { %v1845_v38 = vadd.f32 %v1823_v24, %v1765_v52  ;;  %v5091_v52 = vld [vmem:[#allocation2 + $0x178] sm:$0xff]  ;;  %3157 = vpow2.f32 %v2190_v30  ;;  %v5101_v24 = vld [vmem:[#allocation2 + $0x180] sm:$0xff]  ;;  %v2561_v30 = vsub.f32 %v5106_v39, %v5000_v41 }
 0x2ce   : > { %v5082_v15 = vadd.f32 %v3136_v17, %v1844_v28  ;;  %v2432_v17 = vsub.f32 %v5091_v52, %v4998_v7  ;;  %1830 = vrot.lane.b32.xlu1 %v3146_v18, %s3488_s9  ;;  %v2318_v45 = vmul.f32 1.442695, %v2305_v49  ;;  %3159 = vpow2.f32 %v2316_v19  ;;  %v5111_v19 = vld [vmem:[#allocation2 + $0x1e0] sm:$0xff] }
 0x2cf   : > { %v5088_v35 = vadd.f32 %v3142_v6, %v1845_v38  ;;  %v2433_v6 = vsub.f32 %v5096_v23, %v5000_v41  ;;  %v3148_v38 = vpop.eup %3147  ;;  %v2560_v60 = vsub.f32 %v5101_v24, %v4998_v7  ;;  %5631 = vst [vmem:[#allocation26_spill] sm:$0xff] %v5111_v19  ;;  %v1538_v7 = vsub.f32 %v5111_v19, %v5042_v59 }
 0x2d0   : > { %v3150_v46 = vpop.eup %3149  ;;  %1956 = vrot.lane.b32.xlu0 %v3148_v38, %s3488_s9  ;;  %v2444_v28 = vmul.f32 1.442695, %v2432_v17  ;;  %3161 = vpow2.f32 %v2318_v45  ;;  %v2574_v17 = vmul.f32 1.442695, %v2561_v30  ;;  %v5116_v45 = vld [vmem:[#allocation2 + $0x230] sm:$0xff]  ;;  %v5126_v30 = vld [vmem:[#allocation2 + $0x238] sm:$0xff] }
 0x2d1   : > { %v2446_v32 = vmul.f32 1.442695, %v2433_v6  ;;  %v2572_v18 = vmul.f32 1.442695, %v2560_v60  ;;  %5632 = vst [vmem:[#allocation27_spill] sm:$0xff] %v5116_v45  ;;  %v1539_v41 = vsub.f32 %v5116_v45, %v5044_v43  ;;  %5634 = vst [vmem:[#allocation33_spill] sm:$0xff] %v5126_v30 }
 0x2d2   : > { %1958 = vrot.lane.b32.xlu1 %v3150_v46, %s3488_s9  ;;  %v3152_v49 = vpop.eup %3151  ;;  %3163 = vpow2.f32 %v2444_v28  ;;  %v1552_v46 = vmul.f32 1.442695, %v1538_v7  ;;  %v5121_v28 = vld [vmem:[#allocation2 + $0x1e8] sm:$0xff]  ;;  %v1997_v7 = vsub.f32 %v4852_v29, %v4591_v42 }
 0x2d3   : > { %v3154_v12 = vpop.eup %3153  ;;  %3165 = vpow2.f32 %v2446_v32  ;;  %5633 = vst [vmem:[#allocation32_spill] sm:$0xff] %v5121_v28  ;;  %v1666_v60 = vsub.f32 %v5121_v28, %v5042_v59  ;;  %v1554_v32 = vmul.f32 1.442695, %v1539_v41 }
 0x2d4   : > { %2084 = vrot.lane.b32.xlu0 %v3152_v49, %s3488_s9  ;;  %3167 = vpow2.f32 %v2572_v18  ;;  %v1667_v49 = vsub.f32 %v5126_v30, %v5044_v43  ;;  %v5140_v30 = vld [vmem:[#allocation2 + $0x240] sm:$0xff]  ;;  %v2006_v29 = vmul.f32 1.442695, %v1997_v7 }
 0x2d5   : > { %3169 = vpow2.f32 %v2574_v17  ;;  %v1680_v28 = vmul.f32 1.442695, %v1666_v60  ;;  %5636 = vst [vmem:[#allocation3_spill] sm:$0xff] %v5140_v30 }
 0x2d6   : > { %2086 = vrot.lane.b32.xlu1 %v3154_v12, %s3488_s9  ;;  %v3156_v6 = vpop.eup %3155  ;;  %3171 = vpow2.f32 %v1552_v46  ;;  %v1682_v41 = vmul.f32 1.442695, %v1667_v49  ;;  %v2124_v46 = vsub.f32 %v4780_v3, %v4577_v21 }
 0x2d7   : > { %v3158_v38 = vpop.eup %3157  ;;  %3173 = vpow2.f32 %v1554_v32 }
 0x2d8   : > { %2212 = vrot.lane.b32.xlu0 %v3156_v6, %s3488_s9  ;;  %v3160_v12 = vpop.eup %3159  ;;  %v1996_v6 = vsub.f32 %v4848_v62, %v4577_v21  ;;  %v1795_v62 = vsub.f32 %v5140_v30, %v5044_v43  ;;  %3175 = vpow2.f32 %v1680_v28  ;;  %v2132_v3 = vmul.f32 1.442695, %v2124_v46 }
 0x2d9   : > { %3177 = vpow2.f32 %v1682_v41 }
 0x2da   : > { %2214 = vrot.lane.b32.xlu1 %v3158_v38, %s3488_s9  ;;  %v3162_v18 = vpop.eup %3161  ;;  %v5135_v38 = vld [vmem:[#allocation2 + $0x1f0] sm:$0xff]  ;;  %v2004_v45 = vmul.f32 1.442695, %v1996_v6  ;;  %v1810_v49 = vmul.f32 1.442695, %v1795_v62 }
 0x2db   : > { %5635 = vst [vmem:[#allocation29_spill] sm:$0xff] %v5135_v38  ;;  %v1794_v17 = vsub.f32 %v5135_v38, %v5042_v59  ;;  %v5147_v38 = vld [vmem:[#allocation2 + $0x1f8] sm:$0xff]  ;;  %v5162_v62 = vld [vmem:[#allocation2 + $0x250] sm:$0xff] }
 0x2dc   : > { %2340 = vrot.lane.b32.xlu0 %v3160_v12, %s3488_s9  ;;  %v3164_v12 = vpop.eup %3163  ;;  %5637 = vst [vmem:[#allocation45_spill] sm:$0xff] %v5147_v38  ;;  %v1922_v32 = vsub.f32 %v5147_v38, %v5042_v59  ;;  %3179 = vpow2.f32 %v2004_v45  ;;  %5640 = vst [vmem:[#allocation48_spill] sm:$0xff] %v5162_v62  ;;  %v2051_v45 = vsub.f32 %v5162_v62, %v5044_v43  ;;  %v5185_v38 = vld [vmem:[#allocation2 + $0x260] sm:$0xff] }
 0x2dd   : > { %v3166_v19 = vpop.eup %3165  ;;  %v1808_v60 = vmul.f32 1.442695, %v1794_v17  ;;  %3181 = vpow2.f32 %v2006_v29  ;;  %v5157_v17 = vld [vmem:[#allocation2 + $0x200] sm:$0xff]  ;;  %v2125_v29 = vsub.f32 %v4810_v10, %v4591_v42  ;;  %v1949_v10 = vpop.permute.xlu0 %1948 }
 0x2de   : > { %2342 = vrot.lane.b32.xlu1 %v3162_v18, %s3488_s9  ;;  %v5152_v18 = vld [vmem:[#allocation2 + $0x248] sm:$0xff]  ;;  %v3168_v7 = vpop.eup %3167  ;;  %v1936_v28 = vmul.f32 1.442695, %v1922_v32  ;;  %5639 = vst [vmem:[#allocation31_spill] sm:$0xff] %v5157_v17 }
 0x2df   : > { %5638 = vst [vmem:[#allocation38_spill] sm:$0xff] %v5152_v18  ;;  %v1923_v6 = vsub.f32 %v5152_v18, %v5044_v43  ;;  %3183 = vpow2.f32 %v1808_v60  ;;  %v5169_v60 = vld [vmem:[#allocation2 + $0x208] sm:$0xff] }
 0x2e0   : > { %2468 = vrot.lane.b32.xlu0 %v3164_v12, %s3488_s9  ;;  %v3170_v12 = vpop.eup %3169  ;;  %3185 = vpow2.f32 %v1810_v49  ;;  %5641 = vst [vmem:[#allocation47_spill] sm:$0xff] %v5169_v60  ;;  %v2178_v32 = vsub.f32 %v5169_v60, %v5042_v59  ;;  %v2066_v49 = vmul.f32 1.442695, %v2051_v45  ;;  %v1972_v45 = vadd.f32 %v1949_v10, %v5082_v15 }
 0x2e1   : > { %v1938_v41 = vmul.f32 1.442695, %v1923_v6  ;;  %v3172_v18 = vpop.eup %3171  ;;  %3187 = vpow2.f32 %v2132_v3  ;;  %v5174_v6 = vld [vmem:[#allocation2 + $0x258] sm:$0xff]  ;;  %v2252_v15 = vsub.f32 %v4784_v54, %v4577_v21 }
 0x2e2   : > { %2470 = vrot.lane.b32.xlu1 %v3166_v19, %s3488_s9  ;;  %v2050_v19 = vsub.f32 %v5157_v17, %v5042_v59  ;;  %3189 = vpow2.f32 %v1936_v28  ;;  %5642 = vst [vmem:[#allocation46_spill] sm:$0xff] %v5174_v6  ;;  %v2134_v28 = vmul.f32 1.442695, %v2125_v29  ;;  %v2192_v62 = vmul.f32 1.442695, %v2178_v32  ;;  %v5179_v17 = vld [vmem:[#allocation2 + $0x210] sm:$0xff] }
 0x2e3   : > { %3191 = vpow2.f32 %v1938_v41  ;;  %5643 = vst [vmem:[#allocation37_spill] sm:$0xff] %v5179_v17  ;;  %v2306_v41 = vsub.f32 %v5179_v17, %v5042_v59  ;;  %v2307_v29 = vsub.f32 %v5185_v38, %v5044_v43  ;;  %v2077_v17 = vpop.permute.xlu0 %2076 }
 0x2e4   : > { %2596 = vrot.lane.b32.xlu0 %v3168_v7, %s3488_s9  ;;  %v3174_v7 = vpop.eup %3173  ;;  %v2064_v46 = vmul.f32 1.442695, %v2050_v19 }
 0x2e6   : > { %2598 = vrot.lane.b32.xlu1 %v3170_v12, %s3488_s9  ;;  %v3176_v12 = vpop.eup %3175  ;;  %3193 = vpow2.f32 %v2064_v46 }
 0x2e7   : > { %v3178_v3 = vpop.eup %3177  ;;  %3195 = vpow2.f32 %v2066_v49  ;;  %v2320_v49 = vmul.f32 1.442695, %v2306_v41 }
 0x2e8   : > { %1576 = vrot.lane.b32.xlu0 %v3172_v18, %s3488_s9  ;;  %v2179_v18 = vsub.f32 %v5174_v6, %v5044_v43  ;;  %v3180_v19 = vpop.eup %3179  ;;  %3197 = vpow2.f32 %v2134_v28 }
 0x2e9   : > { %v3182_v6 = vpop.eup %3181  ;;  %3199 = vpow2.f32 %v2192_v62  ;;  %v2253_v62 = vsub.f32 %v4814_v56, %v4591_v42 }
 0x2ea   : > { %1578 = vrot.lane.b32.xlu1 %v3174_v7, %s3488_s9  ;;  %v1951_v7 = vpop.permute.xlu1 %1950  ;;  %v2194_v60 = vmul.f32 1.442695, %v2179_v18  ;;  %v3184_v32 = vpop.eup %3183  ;;  %v5193_v18 = vld [vmem:[#allocation2 + $0x218] sm:$0xff] }
 0x2eb   : > { %v1973_v46 = vadd.f32 %v1951_v7, %v5088_v35  ;;  %v3186_v30 = vpop.eup %3185  ;;  %v2434_v10 = vsub.f32 %v5193_v18, %v5042_v59  ;;  %v5198_v7 = vld [vmem:[#allocation2 + $0x268] sm:$0xff] }
 0x2ec   : > { %1704 = vrot.lane.b32.xlu0 %v3176_v12, %s3488_s9  ;;  %v2020_v12 = vadd.f32 %v3180_v19, %v1972_v45  ;;  %v3188_v19 = vpop.eup %3187  ;;  %3201 = vpow2.f32 %v2194_v60  ;;  %v2322_v45 = vmul.f32 1.442695, %v2307_v29  ;;  %v5207_v60 = vld [vmem:[#allocation2 + $0x220] sm:$0xff] }
 0x2ed   : > { %v3190_v28 = vpop.eup %3189  ;;  %3203 = vpow2.f32 %v2320_v49  ;;  %v2562_v29 = vsub.f32 %v5207_v60, %v5042_v59 }
 0x2ee   : > { %1706 = vrot.lane.b32.xlu1 %v3178_v3, %s3488_s9  ;;  %v2021_v3 = vadd.f32 %v3182_v6, %v1973_v46  ;;  %v2100_v35 = vadd.f32 %v2077_v17, %v2020_v12  ;;  %v2435_v6 = vsub.f32 %v5198_v7, %v5044_v43  ;;  %v3192_v41 = vpop.eup %3191  ;;  %v2260_v46 = vmul.f32 1.442695, %v2252_v15  ;;  %v5212_v12 = vld [vmem:[#allocation2 + $0x270] sm:$0xff] }
 0x2ef   : > { %v2448_v17 = vmul.f32 1.442695, %v2434_v10  ;;  %3205 = vpow2.f32 %v2322_v45  ;;  %v2563_v56 = vsub.f32 %v5212_v12, %v5044_v43  ;;  %v2079_v10 = vpop.permute.xlu1 %2078  ;;  %v2508_v43 = vsub.f32 %v4798_v8, %v4577_v21 }
 0x2f0   : > { %1832 = vrot.lane.b32.xlu0 %v3184_v32, %s3488_s9  ;;  %v2148_v54 = vadd.f32 %v3188_v19, %v2100_v35  ;;  %v2450_v32 = vmul.f32 1.442695, %v2435_v6  ;;  %v3194_v15 = vpop.eup %3193  ;;  %v2262_v35 = vmul.f32 1.442695, %v2253_v62  ;;  %3207 = vpow2.f32 %v2260_v46 }
 0x2f1   : > { %v3196_v49 = vpop.eup %3195  ;;  %3209 = vpow2.f32 %v2448_v17  ;;  %v2576_v19 = vmul.f32 1.442695, %v2562_v29  ;;  %v2101_v45 = vadd.f32 %v2079_v10, %v2021_v3  ;;  %v2516_v3 = vmul.f32 1.442695, %v2508_v43  ;;  %v2205_v10 = vpop.permute.xlu0 %2204 }
 0x2f2   : > { %1834 = vrot.lane.b32.xlu1 %v3186_v30, %s3488_s9  ;;  %v2380_v30 = vsub.f32 %v4788_v0, %v4577_v21  ;;  %v2381_v0 = vsub.f32 %v4818_v51, %v4591_v42  ;;  %v3198_v6 = vpop.eup %3197  ;;  %3211 = vpow2.f32 %v2450_v32  ;;  %v3448_v32 = vld [vmem:[#allocation2 + $0x98] sm:$0xff] }
 0x2f3   : > { %v3200_v62 = vpop.eup %3199  ;;  %3213 = vpow2.f32 %v2262_v35 }
 0x2f4   : > { %1960 = vrot.lane.b32.xlu0 %v3190_v28, %s3488_s9  ;;  %v2388_v59 = vmul.f32 1.442695, %v2380_v30  ;;  %v2578_v28 = vmul.f32 1.442695, %v2563_v56  ;;  %v2390_v51 = vmul.f32 1.442695, %v2381_v0  ;;  %v2637_v56 = vsub.f32 %v3448_v32, %v4591_v42 }
 0x2f5   : > { %v3447_v30 = vld [vmem:[#allocation2 + $0x48] sm:$0xff]  ;;  %v1455_v0 = vsub.f32 %v4905_v57, %v4661_v1 }
 0x2f6   : > { %1962 = vrot.lane.b32.xlu1 %v3192_v41, %s3488_s9  ;;  %v2149_v41 = vadd.f32 %v3198_v6, %v2101_v45  ;;  %v3202_v46 = vpop.eup %3201  ;;  %3215 = vpow2.f32 %v2388_v59  ;;  %v2636_v17 = vsub.f32 %v3447_v30, %v4577_v21  ;;  %v2228_v6 = vadd.f32 %v2205_v10, %v2148_v54 }
 0x2f7   : > { %3217 = vpow2.f32 %v2576_v19  ;;  %v3204_v8 = vpop.eup %3203  ;;  %v1614_v19 = vsub.f32 %v4913_v31, %v4644_v40  ;;  %v2646_v43 = vmul.f32 1.442695, %v2637_v56  ;;  %v2333_v31 = vpop.permute.xlu0 %2332 }
 0x2f8   : > { %2088 = vrot.lane.b32.xlu0 %v3194_v15, %s3488_s9  ;;  %v2509_v15 = vsub.f32 %v4822_v44, %v4591_v42  ;;  %3219 = vpow2.f32 %v2578_v28  ;;  %v1454_v44 = vsub.f32 %v4882_v53, %v4644_v40  ;;  %v2644_v59 = vmul.f32 1.442695, %v2636_v17  ;;  %v2207_v28 = vpop.permute.xlu1 %2206 }
 0x2f9   : > { %3221 = vpow2.f32 %v2390_v51  ;;  %v3206_v35 = vpop.eup %3205  ;;  %v1615_v53 = vsub.f32 %v4918_v34, %v4661_v1  ;;  %v2229_v51 = vadd.f32 %v2207_v28, %v2149_v41  ;;  %v1624_v54 = vmul.f32 1.442695, %v1614_v19 }
 0x2fa   : > { %2090 = vrot.lane.b32.xlu1 %v3196_v49, %s3488_s9  ;;  %v2518_v29 = vmul.f32 1.442695, %v2509_v15  ;;  %v3208_v49 = vpop.eup %3207  ;;  %3223 = vpow2.f32 %v2516_v3  ;;  %v1464_v57 = vmul.f32 1.442695, %v1454_v44  ;;  %v1466_v3 = vmul.f32 1.442695, %v1455_v0 }
 0x2fb   : > { %v3210_v45 = vpop.eup %3209  ;;  %v1626_v56 = vmul.f32 1.442695, %v1615_v53  ;;  %v1743_v41 = vsub.f32 %v4928_v58, %v4661_v1  ;;  %v2461_v10 = vpop.permute.xlu0 %2460  ;;  %v1871_v58 = vsub.f32 %v4938_v13, %v4661_v1  ;;  %v1999_v13 = vsub.f32 %v4948_v50, %v4661_v1 }
 0x2fc   : > { %2216 = vrot.lane.b32.xlu0 %v3200_v62, %s3488_s9  ;;  %3225 = vpow2.f32 %v2518_v29  ;;  %v3212_v62 = vpop.eup %3211  ;;  %v2335_v32 = vpop.permute.xlu1 %2334  ;;  %v2127_v50 = vsub.f32 %v4958_v27, %v4661_v1 }
 0x2fd   : > { %v3214_v15 = vpop.eup %3213  ;;  %3227 = vpow2.f32 %v2644_v59  ;;  %v1754_v28 = vmul.f32 1.442695, %v1743_v41 }
 0x2fe   : > { %2218 = vrot.lane.b32.xlu1 %v3202_v46, %s3488_s9  ;;  %v2276_v46 = vadd.f32 %v3208_v49, %v2228_v6  ;;  %v2277_v17 = vadd.f32 %v3214_v15, %v2229_v51  ;;  %3229 = vpow2.f32 %v2646_v43 }
 0x2ff   : > { %3231 = vpow2.f32 %v1464_v57  ;;  %v2589_v15 = vpop.permute.xlu0 %2588 }
 0x300   : > { %2344 = vrot.lane.b32.xlu0 %v3204_v8, %s3488_s9  ;;  %v3216_v30 = vpop.eup %3215  ;;  %v1742_v8 = vsub.f32 %v4923_v47, %v4644_v40  ;;  %v2356_v34 = vadd.f32 %v2333_v31, %v2276_v46  ;;  %v2357_v44 = vadd.f32 %v2335_v32, %v2277_v17  ;;  %3233 = vpow2.f32 %v1466_v3  ;;  %v2463_v6 = vpop.permute.xlu1 %2462 }
 0x301   : > { %v3218_v29 = vpop.eup %3217  ;;  %v1870_v47 = vsub.f32 %v4933_v33, %v4644_v40  ;;  %3235 = vpow2.f32 %v1624_v54  ;;  %v1882_v33 = vmul.f32 1.442695, %v1871_v58  ;;  %v1998_v3 = vsub.f32 %v4943_v14, %v4644_v40 }
 0x302   : > { %2346 = vrot.lane.b32.xlu1 %v3206_v35, %s3488_s9  ;;  %v3220_v35 = vpop.eup %3219  ;;  %v2404_v49 = vadd.f32 %v3216_v30, %v2356_v34  ;;  %v1752_v19 = vmul.f32 1.442695, %v1742_v8  ;;  %3237 = vpow2.f32 %v1626_v56 }
 0x303   : > { %v3222_v0 = vpop.eup %3221  ;;  %v1880_v57 = vmul.f32 1.442695, %v1870_v47  ;;  %v1569_v56 = vpop.permute.xlu0 %1568  ;;  %v2008_v41 = vmul.f32 1.442695, %v1998_v3 }
 0x304   : > { %2472 = vrot.lane.b32.xlu0 %v3210_v45, %s3488_s9  ;;  %v2405_v59 = vadd.f32 %v3222_v0, %v2357_v44  ;;  %v2484_v45 = vadd.f32 %v2461_v10, %v2404_v49  ;;  %v3224_v43 = vpop.eup %3223  ;;  %3239 = vpow2.f32 %v1752_v19  ;;  %v2591_v31 = vpop.permute.xlu1 %2590  ;;  %v2010_v49 = vmul.f32 1.442695, %v1999_v13 }
 0x305   : > { %3241 = vpow2.f32 %v1754_v28 }
 0x306   : > { %2474 = vrot.lane.b32.xlu1 %v3212_v62, %s3488_s9  ;;  %v2485_v53 = vadd.f32 %v2463_v6, %v2405_v59  ;;  %v3226_v62 = vpop.eup %3225  ;;  %v2532_v51 = vadd.f32 %v3224_v43, %v2484_v45  ;;  %3243 = vpow2.f32 %v1880_v57 }
 0x307   : > { %v3228_v17 = vpop.eup %3227  ;;  %3245 = vpow2.f32 %v1882_v33  ;;  %v1697_v58 = vpop.permute.xlu0 %1696 }
 0x308   : > { %2600 = vrot.lane.b32.xlu0 %v3218_v29, %s3488_s9  ;;  %v2533_v46 = vadd.f32 %v3226_v62, %v2485_v53  ;;  %v2612_v30 = vadd.f32 %v2589_v15, %v2532_v51  ;;  %v3230_v8 = vpop.eup %3229  ;;  %v1571_v0 = vpop.permute.xlu1 %1570  ;;  %v2138_v53 = vmul.f32 1.442695, %v2127_v50  ;;  %v2255_v62 = vsub.f32 %v4968_v4, %v4661_v1 }
 0x309   : > { %v3232_v34 = vpop.eup %3231  ;;  %v2383_v4 = vsub.f32 %v4980_v37, %v4661_v1  ;;  %v2511_v50 = vsub.f32 %v4994_v11, %v4661_v1 }
 0x30a   : > { %2602 = vrot.lane.b32.xlu1 %v3220_v35, %s3488_s9  ;;  %v2613_v54 = vadd.f32 %v2591_v31, %v2533_v46  ;;  %v2660_v29 = vadd.f32 %v3228_v17, %v2612_v30  ;;  %v2126_v35 = vsub.f32 %v4953_v48, %v4644_v40  ;;  %v3234_v14 = vpop.eup %3233  ;;  %v1590_v44 = vadd.f32 %v3232_v34, %v1569_v56 }
 0x30b   : > { %v3236_v47 = vpop.eup %3235  ;;  %v1591_v10 = vadd.f32 %v3234_v14, %v1571_v0  ;;  %v2254_v48 = vsub.f32 %v4963_v9, %v4644_v40  ;;  %v2382_v46 = vsub.f32 %v4975_v55, %v4644_v40  ;;  %v1825_v33 = vpop.permute.xlu0 %1824  ;;  %v2266_v17 = vmul.f32 1.442695, %v2255_v62  ;;  %v3450_v55 = vld [vmem:[#allocation2 + $0x138] sm:$0xff] }
 0x30c   : > { %v2661_v32 = vadd.f32 %v3230_v8, %v2613_v54  ;;  %3247 = vlog2.f32 %v2660_v29  ;;  %v3238_v59 = vpop.eup %3237  ;;  %v1638_v19 = vadd.f32 %v3236_v47, %v1590_v44  ;;  %v2136_v6 = vmul.f32 1.442695, %v2126_v35  ;;  %v1699_v43 = vpop.permute.xlu1 %1698  ;;  %v3449_v8 = vld [vmem:[#allocation2 + $0xe8] sm:$0xff] }
 0x30d   : > { %v1639_v45 = vadd.f32 %v3238_v59, %v1591_v10  ;;  %v2264_v30 = vmul.f32 1.442695, %v2254_v48  ;;  %v2638_v29 = vsub.f32 %v3449_v8, %v4644_v40  ;;  %v2639_v56 = vsub.f32 %v3450_v55, %v4661_v1 }
 0x30e   : > { %3249 = vlog2.f32 %v2661_v32  ;;  %v1718_v28 = vadd.f32 %v1697_v58, %v1638_v19  ;;  %v3240_v27 = vpop.eup %3239  ;;  %v2392_v35 = vmul.f32 1.442695, %v2382_v46  ;;  %v2510_v14 = vsub.f32 %v4989_v61, %v4644_v40 }
 0x30f   : > { %3251 = vpow2.f32 %v2008_v41  ;;  %v1719_v51 = vadd.f32 %v1699_v43, %v1639_v45  ;;  %v3242_v57 = vpop.eup %3241  ;;  %v1953_v0 = vpop.permute.xlu0 %1952  ;;  %v2394_v61 = vmul.f32 1.442695, %v2383_v4  ;;  %v2648_v58 = vmul.f32 1.442695, %v2638_v29  ;;  %v2716_v43 = vld [vmem:[%s5274_s15] sm:$0xff] }
 0x310   : > { %3253 = vpow2.f32 %v2010_v49  ;;  %v1766_v15 = vadd.f32 %v3240_v27, %v1718_v28  ;;  %v3244_v31 = vpop.eup %3243  ;;  %v1827_v13 = vpop.permute.xlu1 %1826  ;;  %v2650_v28 = vmul.f32 1.442695, %v2639_v56  ;;  %v2520_v11 = vmul.f32 1.442695, %v2510_v14 }
 0x311   : > { %v1767_v3 = vadd.f32 %v3242_v57, %v1719_v51  ;;  %3255 = vpow2.f32 %v2136_v6  ;;  %v3246_v54 = vpop.eup %3245  ;;  %v2717_v51 = vld [vmem:[%s5274_s15 + $0x8] sm:$0xff]  ;;  %v2522_v46 = vmul.f32 1.442695, %v2511_v50 }
 0x312   : > { %v1846_v9 = vadd.f32 %v1825_v33, %v1766_v15  ;;  %3257 = vpow2.f32 %v2138_v53  ;;  %v3451_v33 = vld [vmem:[%s3609_s8] sm:$0xff] }
 0x313   : > { %v1847_v34 = vadd.f32 %v1827_v13, %v1767_v3  ;;  %3259 = vpow2.f32 %v2264_v30  ;;  %v2081_v57 = vpop.permute.xlu0 %2080  ;;  %vm2752_vm4 = vcmp.ne.s32.totalorder %v3451_v33, 255  ;;  %v3452_v13 = vld [vmem:[%s3609_s8 + $0x8] sm:$0xff] }
 0x314   : > { %v1894_v41 = vadd.f32 %v3244_v31, %v1846_v9  ;;  %v1955_v59 = vpop.permute.xlu1 %1954  ;;  %3261 = vpow2.f32 %v2266_v17  ;;  %v2776_v31 = vld [vmem:[%s4873_s12] sm:$0xff]  ;;  %vm2753_vm5 = vcmp.ne.s32.totalorder %v3452_v13, 255 }
 0x315   : > { %v1895_v49 = vadd.f32 %v3246_v54, %v1847_v34  ;;  %3263 = vpow2.f32 %v2392_v35  ;;  %v2777_v54 = vld [vmem:[%s4873_s12 + $0x8] sm:$0xff]  ;;  %v1457_v34 = vsub.f32 %v5012_v5, %v4727_v20  ;;  %v5645_v35 = vld [vmem:[#allocation21_spill] sm:$0xff] }
 0x316   : > { %v3248_v32 = vpop.eup %3247  ;;  %v1974_v10 = vadd.f32 %v1953_v0, %v1894_v41  ;;  %3265 = vpow2.f32 %v2394_v61 }
 0x317   : > { %v2685_v37 = vmul.f32 0.6931472, %v3248_v32  ;;  %v1975_v6 = vadd.f32 %v1955_v59, %v1895_v49  ;;  %v2209_v56 = vpop.permute.xlu0 %2208  ;;  %3267 = vpow2.f32 %v2520_v11  ;;  %v1470_v61 = vmul.f32 1.442695, %v1457_v34 }
 0x318   : > { %v3250_v44 = vpop.eup %3249  ;;  %v2083_v30 = vpop.permute.xlu1 %2082  ;;  %3269 = vpow2.f32 %v2522_v46 }
 0x319   : > { %v2687_v47 = vmul.f32 0.6931472, %v3250_v44  ;;  %v3252_v19 = vpop.eup %3251  ;;  %v2700_v45 = vadd.f32 %v2685_v37, %v4577_v21  ;;  %3271 = vpow2.f32 %v2648_v58 }
 0x31a   : > { %v3254_v48 = vpop.eup %3253  ;;  %v2022_v62 = vadd.f32 %v3252_v19, %v1974_v10  ;;  %3273 = vpow2.f32 %v2650_v28 }
 0x31b   : > { %v2701_v53 = vadd.f32 %v2687_v47, %v4591_v42  ;;  %v2708_v27 = vsub.f32 %v2700_v45, %v4584_v22  ;;  %v2023_v15 = vadd.f32 %v3254_v48, %v1975_v6  ;;  %v3256_v42 = vpop.eup %3255  ;;  %v1456_v22 = vsub.f32 %v5007_v36, %v4710_v25  ;;  %v2337_v19 = vpop.permute.xlu0 %2336  ;;  %v5646_v48 = vld [vmem:[#allocation16_spill] sm:$0xff] }
 0x31c   : > { %v2102_v3 = vadd.f32 %v2081_v57, %v2022_v62  ;;  %v3258_v4 = vpop.eup %3257  ;;  %v1617_v36 = vsub.f32 %v5645_v35, %v4727_v20  ;;  %v2211_v0 = vpop.permute.xlu1 %2210 }
 0x31d   : > { %v2709_v21 = vsub.f32 %v2701_v53, %v4602_v16  ;;  %v2724_v9 = vmul.f32 %v2716_v43, %v2708_v27  ;;  %v2103_v17 = vadd.f32 %v2083_v30, %v2023_v15  ;;  %v5644_v16 = vld [vmem:[#allocation17_spill] sm:$0xff]  ;;  %v3260_v49 = vpop.eup %3259  ;;  %v1468_v47 = vmul.f32 1.442695, %v1456_v22  ;;  %v5647_v27 = vld [vmem:[#allocation20_spill] sm:$0xff] }
 0x31e   : > { %v2150_v29 = vadd.f32 %v3256_v42, %v2102_v3  ;;  %v1616_v32 = vsub.f32 %v5644_v16, %v4710_v25  ;;  %v3262_v10 = vpop.eup %3261  ;;  %v1744_v43 = vsub.f32 %v5646_v48, %v4710_v25  ;;  %v1630_v11 = vmul.f32 1.442695, %v1617_v36  ;;  %v5651_v36 = vld [vmem:[#allocation23_spill] sm:$0xff] }
 0x31f   : > { %v2725_v8 = vmul.f32 %v2717_v51, %v2709_v21  ;;  %v2784_v55 = vsel %vm2752_vm4, %v2724_v9, 0.0  ;;  %v2151_v41 = vadd.f32 %v3258_v4, %v2103_v17  ;;  %v1745_v51 = vsub.f32 %v5647_v27, %v4727_v20  ;;  %v3264_v57 = vpop.eup %3263  ;;  %v5648_v21 = vld [vmem:[#allocation18_spill] sm:$0xff]  ;;  %v2465_v3 = vpop.permute.xlu0 %2464 }
 0x320   : > { %v2792_v14 = vadd.f32 %v2784_v55, %v2776_v31  ;;  %v2230_v37 = vadd.f32 %v2209_v56, %v2150_v29  ;;  %v1628_v6 = vmul.f32 1.442695, %v1616_v32  ;;  %v2339_v62 = vpop.permute.xlu1 %2338  ;;  %3275 = vpow2.f32 %v1468_v47  ;;  %v3266_v46 = vpop.eup %3265  ;;  %v5649_v31 = vld [vmem:[#allocation22_spill] sm:$0xff]  ;;  %v5650_v55 = vld [vmem:[#allocation24_spill] sm:$0xff] }
 0x321   : > { %v2785_v44 = vsel %vm2753_vm5, %v2725_v8, 0.0  ;;  %v2231_v50 = vadd.f32 %v2211_v0, %v2151_v41  ;;  %3277 = vpow2.f32 %v1470_v61  ;;  %v1872_v58 = vsub.f32 %v5648_v21, %v4710_v25  ;;  %v3268_v22 = vpop.eup %3267 }
 0x322   : > { %v2793_v5 = vadd.f32 %v2785_v44, %v2777_v54  ;;  %2800 = vst.msk [vmem:[%s4873_s12] sm:$0xff] %vm375_vm10, %v2792_v14  ;;  %v2278_v59 = vadd.f32 %v3260_v49, %v2230_v37  ;;  %3279 = vpow2.f32 %v1628_v6  ;;  %v1756_v42 = vmul.f32 1.442695, %v1744_v43  ;;  %v3270_v54 = vpop.eup %3269 }
 0x323   : > { %v2279_v45 = vadd.f32 %v3262_v10, %v2231_v50  ;;  %v1873_v28 = vsub.f32 %v5649_v31, %v4727_v20  ;;  %3281 = vpow2.f32 %v1630_v11  ;;  %v1758_v17 = vmul.f32 1.442695, %v1745_v51  ;;  %v2593_v34 = vpop.permute.xlu0 %2592  ;;  %v3272_v44 = vpop.eup %3271 }
 0x324   : > { %2801 = vst.msk [vmem:[%s4873_s12 + $0x8] sm:$0xff] %vm375_vm10, %v2793_v5  ;;  %v2358_v53 = vadd.f32 %v2337_v19, %v2278_v59  ;;  %v2467_v13 = vpop.permute.xlu1 %2466  ;;  %v1884_v29 = vmul.f32 1.442695, %v1872_v58  ;;  %3283 = vpow2.f32 %v1756_v42  ;;  %v2000_v56 = vsub.f32 %v5650_v55, %v4710_v25  ;;  %v3274_v0 = vpop.eup %3273  ;;  %v5652_v59 = vld [vmem:[#allocation25_spill] sm:$0xff]  ;;  %v3454_v55 = vld [vmem:[#allocation2 + $0x1d8] sm:$0xff] }
 0x325   : > { %v2359_v15 = vadd.f32 %v2339_v62, %v2279_v45  ;;  %v1886_v32 = vmul.f32 1.442695, %v1873_v28  ;;  %3285 = vpow2.f32 %v1758_v17  ;;  %v2001_v14 = vsub.f32 %v5651_v36, %v4727_v20 }
 0x326   : > { %v2406_v33 = vadd.f32 %v3264_v57, %v2358_v53  ;;  %3287 = vpow2.f32 %v1884_v29  ;;  %v2012_v10 = vmul.f32 1.442695, %v2000_v56  ;;  %v2128_v61 = vsub.f32 %v5652_v59, %v4710_v25  ;;  %v3453_v29 = vld [vmem:[#allocation2 + $0x188] sm:$0xff] }
 0x327   : > { %v2407_v30 = vadd.f32 %v3266_v46, %v2359_v15  ;;  %v1573_v47 = vpop.permute.xlu0 %1572  ;;  %3289 = vpow2.f32 %v1886_v32  ;;  %v2014_v48 = vmul.f32 1.442695, %v2001_v14  ;;  %v2129_v43 = vsub.f32 %v5072_v26, %v4727_v20 }
 0x328   : > { %v2486_v9 = vadd.f32 %v2465_v3, %v2406_v33  ;;  %v2595_v35 = vpop.permute.xlu1 %2594  ;;  %v2140_v15 = vmul.f32 1.442695, %v2128_v61  ;;  %v2256_v46 = vsub.f32 %v5077_v63, %v4710_v25  ;;  %v2257_v3 = vsub.f32 %v5084_v2, %v4727_v20 }
 0x329   : > { %v2487_v4 = vadd.f32 %v2467_v13, %v2407_v30  ;;  %v2142_v58 = vmul.f32 1.442695, %v2129_v43  ;;  %v2384_v28 = vsub.f32 %v5091_v52, %v4710_v25  ;;  %v2641_v52 = vsub.f32 %v3454_v55, %v4727_v20  ;;  %v5653_v43 = vld [vmem:[#allocation15_spill] sm:$0xff] }
 0x32a   : > { %v2534_v8 = vadd.f32 %v3268_v22, %v2486_v9  ;;  %v3276_v5 = vpop.eup %3275  ;;  %v2268_v17 = vmul.f32 1.442695, %v2256_v46 }
 0x32b   : > { %v2535_v16 = vadd.f32 %v3270_v54, %v2487_v4  ;;  %v3278_v19 = vpop.eup %3277  ;;  %v1592_v45 = vadd.f32 %v3276_v5, %v1573_v47  ;;  %v1701_v51 = vpop.permute.xlu0 %1700  ;;  %v2270_v54 = vmul.f32 1.442695, %v2257_v3  ;;  %v3456_v3 = vld [vmem:[%s3609_s8 + $0x18] sm:$0xff] }
 0x32c   : > { %v2614_v41 = vadd.f32 %v2593_v34, %v2534_v8  ;;  %v1575_v6 = vpop.permute.xlu1 %1574  ;;  %v3280_v53 = vpop.eup %3279  ;;  %v2385_v8 = vsub.f32 %v5096_v23, %v4727_v20  ;;  %v2640_v34 = vsub.f32 %v3453_v29, %v4710_v25  ;;  %v2513_v23 = vsub.f32 %v5106_v39, %v4727_v20 }
 0x32d   : > { %v2615_v37 = vadd.f32 %v2595_v35, %v2535_v16  ;;  %v1593_v62 = vadd.f32 %v3278_v19, %v1575_v6  ;;  %v3282_v11 = vpop.eup %3281  ;;  %v1640_v27 = vadd.f32 %v3280_v53, %v1592_v45  ;;  %v2512_v35 = vsub.f32 %v5101_v24, %v4710_v25  ;;  %v2718_v45 = vld [vmem:[%s5274_s15 + $0x10] sm:$0xff] }
 0x32e   : > { %v2662_v49 = vadd.f32 %v3272_v44, %v2614_v41  ;;  %v3284_v26 = vpop.eup %3283  ;;  %v2396_v41 = vmul.f32 1.442695, %v2384_v28  ;;  %v2654_v19 = vmul.f32 1.442695, %v2641_v52  ;;  %vm2755_vm7 = vcmp.ne.s32.totalorder %v3456_v3, 255 }
 0x32f   : > { %v2663_v50 = vadd.f32 %v3274_v0, %v2615_v37  ;;  %v1641_v57 = vadd.f32 %v3282_v11, %v1593_v62  ;;  %v1720_v33 = vadd.f32 %v1701_v51, %v1640_v27  ;;  %v3286_v42 = vpop.eup %3285  ;;  %v2524_v39 = vmul.f32 1.442695, %v2512_v35  ;;  %v2719_v62 = vld [vmem:[%s5274_s15 + $0x18] sm:$0xff] }
 0x330   : > { %3291 = vlog2.f32 %v2662_v49  ;;  %v3288_v22 = vpop.eup %3287  ;;  %v2526_v51 = vmul.f32 1.442695, %v2513_v23 }
 0x331   : > { %3293 = vlog2.f32 %v2663_v50  ;;  %v1768_v31 = vadd.f32 %v3284_v26, %v1720_v33  ;;  %v3290_v2 = vpop.eup %3289  ;;  %v2398_v50 = vmul.f32 1.442695, %v2385_v8 }
 0x332   : > { %3295 = vpow2.f32 %v2012_v10  ;;  %v2652_v10 = vmul.f32 1.442695, %v2640_v34 }
 0x333   : > { %3297 = vpow2.f32 %v2014_v48 }
 0x334   : > { %3299 = vpow2.f32 %v2140_v15 }
 0x335   : > { %3301 = vpow2.f32 %v2142_v58 }
 0x336   : > { %3303 = vpow2.f32 %v2268_v17 }
 0x337   : > { %3305 = vpow2.f32 %v2270_v54  ;;  %v5659_v54 = vld [vmem:[#allocation32_spill] sm:$0xff] }
 0x338   : > { %3307 = vpow2.f32 %v2396_v41 }
 0x339   : > { %3309 = vpow2.f32 %v2398_v50 }
 0x33a   : > { %v3292_v32 = vpop.eup %3291  ;;  %3311 = vpow2.f32 %v2524_v39 }
 0x33b   : > { %v3294_v36 = vpop.eup %3293  ;;  %v2689_v14 = vmul.f32 0.6931472, %v3292_v32  ;;  %3313 = vpow2.f32 %v2526_v51 }
 0x33c   : > { %v1703_v21 = vpop.permute.xlu1 %1702  ;;  %v2691_v0 = vmul.f32 0.6931472, %v3294_v36  ;;  %v3296_v47 = vpop.eup %3295  ;;  %3315 = vpow2.f32 %v2652_v10 }
 0x33d   : > { %v1721_v30 = vadd.f32 %v1703_v21, %v1641_v57  ;;  %v2702_v24 = vadd.f32 %v2689_v14, %v4644_v40  ;;  %v3298_v61 = vpop.eup %3297  ;;  %v3455_v57 = vld [vmem:[%s3609_s8 + $0x10] sm:$0xff]  ;;  %v5654_v40 = vld [vmem:[#allocation19_spill] sm:$0xff]  ;;  %3317 = vpow2.f32 %v2654_v19 }
 0x33e   : > { %v1829_v9 = vpop.permute.xlu0 %1828  ;;  %v2703_v6 = vadd.f32 %v2691_v0, %v4661_v1  ;;  %vm2754_vm6 = vcmp.ne.s32.totalorder %v3455_v57, 255  ;;  %v3300_v1 = vpop.eup %3299  ;;  %v2778_v21 = vld [vmem:[%s4873_s12 + $0x10] sm:$0xff] }
 0x33f   : > { %v1769_v13 = vadd.f32 %v3286_v42, %v1721_v30  ;;  %v1848_v63 = vadd.f32 %v1829_v9, %v1768_v31  ;;  %v2710_v53 = vsub.f32 %v2702_v24, %v5653_v43  ;;  %v5655_v30 = vld [vmem:[#allocation12_spill] sm:$0xff]  ;;  %v5656_v42 = vld [vmem:[#allocation26_spill] sm:$0xff]  ;;  %v3302_v28 = vpop.eup %3301 }
 0x340   : > { %v1831_v4 = vpop.permute.xlu1 %1830  ;;  %v2711_v15 = vsub.f32 %v2703_v6, %v5654_v40  ;;  %v1458_v31 = vsub.f32 %v5656_v42, %v5655_v30  ;;  %v2779_v9 = vld [vmem:[%s4873_s12 + $0x18] sm:$0xff]  ;;  %v1618_v8 = vsub.f32 %v5659_v54, %v5655_v30  ;;  %v3304_v35 = vpop.eup %3303  ;;  %v5662_v6 = vld [vmem:[#allocation3_spill] sm:$0xff] }
 0x341   : > { %v1849_v16 = vadd.f32 %v1831_v4, %v1769_v13  ;;  %v1896_v56 = vadd.f32 %v3288_v22, %v1848_v63  ;;  %v2726_v58 = vmul.f32 %v2718_v45, %v2710_v53  ;;  %v5657_v22 = vld [vmem:[#allocation14_spill] sm:$0xff]  ;;  %v5658_v63 = vld [vmem:[#allocation27_spill] sm:$0xff] }
 0x342   : > { %v1957_v44 = vpop.permute.xlu0 %1956  ;;  %v2727_v13 = vmul.f32 %v2719_v62, %v2711_v15  ;;  %v1459_v4 = vsub.f32 %v5658_v63, %v5657_v22  ;;  %v1632_v50 = vmul.f32 1.442695, %v1618_v8  ;;  %v5664_v40 = vld [vmem:[#allocation38_spill] sm:$0xff] }
 0x343   : > { %v1897_v37 = vadd.f32 %v3290_v2, %v1849_v16  ;;  %v1976_v49 = vadd.f32 %v1957_v44, %v1896_v56  ;;  %v2786_v2 = vsel %vm2754_vm6, %v2726_v58, 0.0  ;;  %v5660_v16 = vld [vmem:[#allocation33_spill] sm:$0xff]  ;;  %v1472_v44 = vmul.f32 1.442695, %v1458_v31 }
 0x344   : > { %v1959_v5 = vpop.permute.xlu1 %1958  ;;  %v1619_v32 = vsub.f32 %v5660_v16, %v5657_v22  ;;  %v2794_v55 = vadd.f32 %v2786_v2, %v2778_v21  ;;  %v2787_v52 = vsel %vm2755_vm7, %v2727_v13, 0.0  ;;  %v1474_v0 = vmul.f32 1.442695, %v1459_v4  ;;  %v5666_v4 = vld [vmem:[#allocation48_spill] sm:$0xff] }
 0x345   : > { %v1977_v59 = vadd.f32 %v1959_v5, %v1897_v37  ;;  %v2024_v48 = vadd.f32 %v3296_v47, %v1976_v49  ;;  %v2795_v36 = vadd.f32 %v2787_v52, %v2779_v9  ;;  %v3306_v37 = vpop.eup %3305  ;;  %v5661_v47 = vld [vmem:[#allocation29_spill] sm:$0xff]  ;;  %3319 = vpow2.f32 %v1472_v44  ;;  %v5665_v9 = vld [vmem:[#allocation31_spill] sm:$0xff] }
 0x346   : > { %v2085_v11 = vpop.permute.xlu0 %2084  ;;  %2802 = vst.msk [vmem:[%s4873_s12 + $0x10] sm:$0xff] %vm375_vm10, %v2794_v55  ;;  %v1746_v24 = vsub.f32 %v5661_v47, %v5655_v30  ;;  %v1634_v45 = vmul.f32 1.442695, %v1619_v32  ;;  %v3308_v39 = vpop.eup %3307  ;;  %3321 = vpow2.f32 %v1474_v0  ;;  %v1875_v19 = vsub.f32 %v5664_v40, %v5657_v22 }
 0x347   : > { %v2025_v27 = vadd.f32 %v3298_v61, %v1977_v59  ;;  %v2104_v46 = vadd.f32 %v2085_v11, %v2024_v48  ;;  %2803 = vst.msk [vmem:[%s4873_s12 + $0x18] sm:$0xff] %vm375_vm10, %v2795_v36  ;;  %v1747_v48 = vsub.f32 %v5662_v6, %v5657_v22  ;;  %v3310_v53 = vpop.eup %3309  ;;  %v5663_v11 = vld [vmem:[#allocation45_spill] sm:$0xff]  ;;  %3323 = vpow2.f32 %v1632_v50 }
 0x348   : > { %v2087_v33 = vpop.permute.xlu1 %2086  ;;  %v1874_v10 = vsub.f32 %v5663_v11, %v5655_v30  ;;  %v1760_v57 = vmul.f32 1.442695, %v1746_v24  ;;  %3325 = vpow2.f32 %v1634_v45  ;;  %v2002_v13 = vsub.f32 %v5665_v9, %v5655_v30 }
 0x349   : > { %v2105_v26 = vadd.f32 %v2087_v33, %v2025_v27  ;;  %v2152_v17 = vadd.f32 %v3300_v1, %v2104_v46  ;;  %v1762_v33 = vmul.f32 1.442695, %v1747_v48  ;;  %v3312_v1 = vpop.eup %3311  ;;  %v2003_v54 = vsub.f32 %v5666_v4, %v5657_v22 }
 0x34a   : > { %v2213_v29 = vpop.permute.xlu0 %2212  ;;  %v3314_v58 = vpop.eup %3313  ;;  %3327 = vpow2.f32 %v1760_v57  ;;  %v2016_v52 = vmul.f32 1.442695, %v2002_v13  ;;  %v2515_v13 = vsub.f32 %v5212_v12, %v5657_v22 }
 0x34b   : > { %v2153_v34 = vadd.f32 %v3302_v28, %v2105_v26  ;;  %v2232_v56 = vadd.f32 %v2213_v29, %v2152_v17  ;;  %v1888_v26 = vmul.f32 1.442695, %v1874_v10  ;;  %v1890_v28 = vmul.f32 1.442695, %v1875_v19  ;;  %v3316_v8 = vpop.eup %3315 }
 0x34c   : > { %v2215_v41 = vpop.permute.xlu1 %2214  ;;  %3329 = vpow2.f32 %v1762_v33  ;;  %v3318_v29 = vpop.eup %3317  ;;  %v2018_v44 = vmul.f32 1.442695, %v2003_v54 }
 0x34d   : > { %v2233_v14 = vadd.f32 %v2215_v41, %v2153_v34  ;;  %v2280_v23 = vadd.f32 %v3304_v35, %v2232_v56  ;;  %3331 = vpow2.f32 %v1888_v26  ;;  %v5667_v56 = vld [vmem:[#allocation47_spill] sm:$0xff] }
 0x34e   : > { %v2341_v49 = vpop.permute.xlu0 %2340  ;;  %3333 = vpow2.f32 %v1890_v28  ;;  %v2130_v41 = vsub.f32 %v5667_v56, %v5655_v30 }
 0x34f   : > { %v2281_v5 = vadd.f32 %v3306_v37, %v2233_v14  ;;  %v2360_v59 = vadd.f32 %v2341_v49, %v2280_v23  ;;  %v3320_v16 = vpop.eup %3319  ;;  %v5668_v37 = vld [vmem:[#allocation46_spill] sm:$0xff] }
 0x350   : > { %v2343_v61 = vpop.permute.xlu1 %2342  ;;  %v3322_v35 = vpop.eup %3321  ;;  %v2131_v23 = vsub.f32 %v5668_v37, %v5657_v22  ;;  %v3459_v37 = vld [vmem:[%s3609_s8 + $0x20] sm:$0xff] }
 0x351   : > { %v2361_v43 = vadd.f32 %v2343_v61, %v2281_v5  ;;  %v2408_v62 = vadd.f32 %v3308_v39, %v2360_v59  ;;  %v3324_v0 = vpop.eup %3323  ;;  %v2144_v59 = vmul.f32 1.442695, %v2130_v41  ;;  %v5669_v61 = vld [vmem:[#allocation37_spill] sm:$0xff]  ;;  %vm2756_vm8 = vcmp.ne.s32.totalorder %v3459_v37, 255  ;;  %v2723_v37 = vld [vmem:[%s5274_s15 + $0x38] sm:$0xff] }
 0x352   : > { %v2469_v27 = vpop.permute.xlu0 %2468  ;;  %v3326_v5 = vpop.eup %3325  ;;  %v2258_v45 = vsub.f32 %v5669_v61, %v5655_v30  ;;  %v2146_v39 = vmul.f32 1.442695, %v2131_v23  ;;  %v5670_v41 = vld [vmem:[#allocation9_spill] sm:$0xff] }
 0x353   : > { %v2409_v51 = vadd.f32 %v3310_v53, %v2361_v43  ;;  %v2488_v15 = vadd.f32 %v2469_v27, %v2408_v62  ;;  %v2259_v43 = vsub.f32 %v5185_v38, %v5657_v22  ;;  %v2386_v27 = vsub.f32 %v5193_v18, %v5655_v30  ;;  %v5671_v23 = vld [vmem:[#allocation13_spill] sm:$0xff] }
 0x354   : > { %v2471_v46 = vpop.permute.xlu1 %2470  ;;  %v3328_v53 = vpop.eup %3327  ;;  %v2272_v40 = vmul.f32 1.442695, %v2258_v45  ;;  %v2514_v18 = vsub.f32 %v5207_v60, %v5655_v30 }
 0x355   : > { %v2489_v21 = vadd.f32 %v2471_v46, %v2409_v51  ;;  %v2536_v3 = vadd.f32 %v3312_v1, %v2488_v15  ;;  %v2274_v33 = vmul.f32 1.442695, %v2259_v43  ;;  %v2387_v1 = vsub.f32 %v5198_v7, %v5657_v22 }
 0x356   : > { %v2597_v42 = vpop.permute.xlu0 %2596  ;;  %v3330_v11 = vpop.eup %3329  ;;  %v2400_v26 = vmul.f32 1.442695, %v2386_v27  ;;  %v2528_v56 = vmul.f32 1.442695, %v2514_v18 }
 0x357   : > { %v2537_v31 = vadd.f32 %v3314_v58, %v2489_v21  ;;  %v2616_v17 = vadd.f32 %v2597_v42, %v2536_v3  ;;  %v3332_v19 = vpop.eup %3331  ;;  %v2402_v4 = vmul.f32 1.442695, %v2387_v1 }
 0x358   : > { %v2599_v63 = vpop.permute.xlu1 %2598  ;;  %v3334_v38 = vpop.eup %3333 }
 0x359   : > { %v2617_v2 = vadd.f32 %v2599_v63, %v2537_v31  ;;  %v2664_v34 = vadd.f32 %v3316_v8, %v2616_v17  ;;  %v3457_v8 = vld [vmem:[#allocation2 + $0x228] sm:$0xff] }
 0x35a   : > { %v1577_v55 = vpop.permute.xlu0 %1576 }
 0x35b   : > { %v2665_v32 = vadd.f32 %v3318_v29, %v2617_v2  ;;  %3335 = vlog2.f32 %v2664_v34  ;;  %v1594_v36 = vadd.f32 %v3320_v16, %v1577_v55  ;;  %v2642_v2 = vsub.f32 %v3457_v8, %v5655_v30  ;;  %v3458_v16 = vld [vmem:[#allocation2 + $0x278] sm:$0xff]  ;;  %v2720_v55 = vld [vmem:[%s5274_s15 + $0x20] sm:$0xff] }
 0x35c   : > { %v1579_v14 = vpop.permute.xlu1 %1578 }
 0x35d   : > { %3337 = vlog2.f32 %v2665_v32  ;;  %v1595_v49 = vadd.f32 %v3322_v35, %v1579_v14  ;;  %v1642_v50 = vadd.f32 %v3324_v0, %v1594_v36  ;;  %v2643_v32 = vsub.f32 %v3458_v16, %v5657_v22  ;;  %v2721_v36 = vld [vmem:[%s5274_s15 + $0x28] sm:$0xff] }
 0x35e   : > { %v1705_v47 = vpop.permute.xlu0 %1704  ;;  %3339 = vpow2.f32 %v2016_v52  ;;  %v2656_v45 = vmul.f32 1.442695, %v2642_v2 }
 0x35f   : > { %v1643_v24 = vadd.f32 %v3326_v5, %v1595_v49  ;;  %v1722_v6 = vadd.f32 %v1705_v47, %v1642_v50  ;;  %3341 = vpow2.f32 %v2018_v44  ;;  %v2780_v50 = vld [vmem:[%s4873_s12 + $0x20] sm:$0xff]  ;;  %v2658_v43 = vmul.f32 1.442695, %v2643_v32 }
 0x360   : > { %v1707_v48 = vpop.permute.xlu1 %1706  ;;  %3343 = vpow2.f32 %v2144_v59 }
 0x361   : > { %v1723_v62 = vadd.f32 %v1707_v48, %v1643_v24  ;;  %v1770_v10 = vadd.f32 %v3328_v53, %v1722_v6  ;;  %3345 = vpow2.f32 %v2146_v39  ;;  %v3460_v24 = vld [vmem:[%s3609_s8 + $0x28] sm:$0xff] }
 0x362   : > { %v1833_v51 = vpop.permute.xlu0 %1832  ;;  %3347 = vpow2.f32 %v2272_v40  ;;  %vm2757_vm9 = vcmp.ne.s32.totalorder %v3460_v24, 255  ;;  %v2781_v6 = vld [vmem:[%s4873_s12 + $0x28] sm:$0xff] }
 0x363   : > { %v1771_v57 = vadd.f32 %v3330_v11, %v1723_v62  ;;  %v1850_v15 = vadd.f32 %v1833_v51, %v1770_v10  ;;  %3349 = vpow2.f32 %v2274_v33 }
 0x364   : > { %v1835_v46 = vpop.permute.xlu1 %1834  ;;  %3351 = vpow2.f32 %v2400_v26 }
 0x365   : > { %v1851_v21 = vadd.f32 %v1835_v46, %v1771_v57  ;;  %v3336_v58 = vpop.eup %3335  ;;  %v1898_v3 = vadd.f32 %v3332_v19, %v1850_v15  ;;  %3353 = vpow2.f32 %v2402_v4 }
 0x366   : > { %v2693_v31 = vmul.f32 0.6931472, %v3336_v58  ;;  %v1961_v28 = vpop.permute.xlu0 %1960  ;;  %3355 = vpow2.f32 %v2528_v56 }
 0x367   : > { %v3338_v42 = vpop.eup %3337  ;;  %v1899_v9 = vadd.f32 %v3334_v38, %v1851_v21  ;;  %v1978_v63 = vadd.f32 %v1961_v28, %v1898_v3 }
 0x368   : > { %v2695_v17 = vmul.f32 0.6931472, %v3338_v42  ;;  %v1963_v7 = vpop.permute.xlu1 %1962  ;;  %v3340_v54 = vpop.eup %3339  ;;  %v2704_v60 = vadd.f32 %v2693_v31, %v4710_v25  ;;  %v2530_v25 = vmul.f32 1.442695, %v2515_v13 }
 0x369   : > { %v1979_v29 = vadd.f32 %v1963_v7, %v1899_v9  ;;  %v3342_v34 = vpop.eup %3341  ;;  %v2026_v52 = vadd.f32 %v3340_v54, %v1978_v63 }
 0x36a   : > { %v2705_v12 = vadd.f32 %v2695_v17, %v4727_v20  ;;  %v2712_v35 = vsub.f32 %v2704_v60, %v5670_v41  ;;  %v2089_v14 = vpop.permute.xlu0 %2088  ;;  %v3344_v20 = vpop.eup %3343  ;;  %3357 = vpow2.f32 %v2530_v25 }
 0x36b   : > { %v2027_v44 = vadd.f32 %v3342_v34, %v1979_v29  ;;  %v2106_v49 = vadd.f32 %v2089_v14, %v2026_v52  ;;  %v3346_v61 = vpop.eup %3345  ;;  %3359 = vpow2.f32 %v2656_v45 }
 0x36c   : > { %v2713_v0 = vsub.f32 %v2705_v12, %v5671_v23  ;;  %v2091_v5 = vpop.permute.xlu1 %2090  ;;  %v2728_v47 = vmul.f32 %v2720_v55, %v2712_v35  ;;  %v3348_v40 = vpop.eup %3347  ;;  %3361 = vpow2.f32 %v2658_v43  ;;  %v3461_v23 = vld [vmem:[%s3609_s8 + $0x30] sm:$0xff] }
 0x36d   : > { %v2107_v59 = vadd.f32 %v2091_v5, %v2027_v44  ;;  %v2154_v39 = vadd.f32 %v3344_v20, %v2106_v49  ;;  %v3350_v46 = vpop.eup %3349  ;;  %v5672_v44 = vld [vmem:[#allocation8_spill] sm:$0xff]  ;;  %vm2758_vm11 = vcmp.ne.s32.totalorder %v3461_v23, 255  ;;  %v2782_v5 = vld [vmem:[%s4873_s12 + $0x30] sm:$0xff] }
 0x36e   : > { %v2729_v48 = vmul.f32 %v2721_v36, %v2713_v0  ;;  %v2788_v53 = vsel %vm2756_vm8, %v2728_v47, 0.0  ;;  %v2217_v62 = vpop.permute.xlu0 %2216  ;;  %v3352_v3 = vpop.eup %3351  ;;  %v2722_v36 = vld [vmem:[%s5274_s15 + $0x30] sm:$0xff]  ;;  %v5673_v0 = vld [vmem:[#allocation10_spill] sm:$0xff] }
 0x36f   : > { %v2155_v11 = vadd.f32 %v3346_v61, %v2107_v59  ;;  %v2796_v10 = vadd.f32 %v2788_v53, %v2780_v50  ;;  %v2234_v51 = vadd.f32 %v2217_v62, %v2154_v39  ;;  %v3354_v18 = vpop.eup %3353  ;;  %v3462_v50 = vld [vmem:[%s3609_s8 + $0x38] sm:$0xff] }
 0x370   : > { %v2789_v27 = vsel %vm2757_vm9, %v2729_v48, 0.0  ;;  %v2219_v57 = vpop.permute.xlu1 %2218  ;;  %v3356_v17 = vpop.eup %3355  ;;  %vm2759_vm12 = vcmp.ne.s32.totalorder %v3462_v50, 255  ;;  %v2783_v47 = vld [vmem:[%s4873_s12 + $0x38] sm:$0xff] }
 0x371   : > { %v2797_v19 = vadd.f32 %v2789_v27, %v2781_v6  ;;  %v2235_v15 = vadd.f32 %v2219_v57, %v2155_v11  ;;  %2804 = vst.msk [vmem:[%s4873_s12 + $0x20] sm:$0xff] %vm375_vm10, %v2796_v10  ;;  %v2282_v33 = vadd.f32 %v3348_v40, %v2234_v51 }
 0x372   : > { %v2345_v1 = vpop.permute.xlu0 %2344 }
 0x373   : > { %2805 = vst.msk [vmem:[%s4873_s12 + $0x28] sm:$0xff] %vm375_vm10, %v2797_v19  ;;  %v2283_v38 = vadd.f32 %v3350_v46, %v2235_v15  ;;  %v2362_v21 = vadd.f32 %v2345_v1, %v2282_v33 }
 0x374   : > { %v2347_v58 = vpop.permute.xlu1 %2346  ;;  %v3358_v7 = vpop.eup %3357 }
 0x375   : > { %v2363_v26 = vadd.f32 %v2347_v58, %v2283_v38  ;;  %v2410_v42 = vadd.f32 %v3352_v3, %v2362_v21  ;;  %v3360_v29 = vpop.eup %3359 }
 0x376   : > { %v2473_v31 = vpop.permute.xlu0 %2472  ;;  %v3362_v16 = vpop.eup %3361 }
 0x377   : > { %v2411_v28 = vadd.f32 %v3354_v18, %v2363_v26  ;;  %v2490_v9 = vadd.f32 %v2473_v31, %v2410_v42 }
 0x378   : > { %v2475_v13 = vpop.permute.xlu1 %2474 }
 0x379   : > { %v2491_v63 = vadd.f32 %v2475_v13, %v2411_v28  ;;  %v2538_v4 = vadd.f32 %v3356_v17, %v2490_v9 }
 0x37a   : > { %v2601_v54 = vpop.permute.xlu0 %2600 }
 0x37b   : > { %v2539_v8 = vadd.f32 %v3358_v7, %v2491_v63  ;;  %v2618_v2 = vadd.f32 %v2601_v54, %v2538_v4 }
 0x37c   : > { %v2603_v60 = vpop.permute.xlu1 %2602 }
 0x37d   : > { %v2619_v34 = vadd.f32 %v2603_v60, %v2539_v8  ;;  %v2666_v32 = vadd.f32 %v3360_v29, %v2618_v2 }
 0x37f   : > { %v2667_v55 = vadd.f32 %v3362_v16, %v2619_v34  ;;  %3363 = vlog2.f32 %v2666_v32 }
 0x381   : > { %3365 = vlog2.f32 %v2667_v55 }
 0x389   : > { %v3364_v12 = vpop.eup %3363 }
 0x38a   : > { %v2697_v56 = vmul.f32 0.6931472, %v3364_v12 }
 0x38b   : > { %v3366_v52 = vpop.eup %3365 }
 0x38c   : > { %v2699_v41 = vmul.f32 0.6931472, %v3366_v52  ;;  %v2706_v35 = vadd.f32 %v2697_v56, %v5655_v30 }
 0x38e   : > { %v2707_v14 = vadd.f32 %v2699_v41, %v5657_v22  ;;  %v2714_v25 = vsub.f32 %v2706_v35, %v5672_v44 }
 0x390   : > { %v2715_v49 = vsub.f32 %v2707_v14, %v5673_v0  ;;  %v2730_v20 = vmul.f32 %v2722_v36, %v2714_v25 }
 0x392   : > { %v2731_v24 = vmul.f32 %v2723_v37, %v2715_v49  ;;  %v2790_v59 = vsel %vm2758_vm11, %v2730_v20, 0.0 }
 0x393   : > { %v2798_v30 = vadd.f32 %v2790_v59, %v2782_v5 }
 0x394   : > { %v2791_v61 = vsel %vm2759_vm12, %v2731_v24, 0.0 }
 0x395   : > { %v2799_v45 = vadd.f32 %v2791_v61, %v2783_v47  ;;  %2806 = vst.msk [vmem:[%s4873_s12 + $0x30] sm:$0xff] %vm375_vm10, %v2798_v30 }
 0x397   : > { %2807 = vst.msk [vmem:[%s4873_s12 + $0x38] sm:$0xff] %vm375_vm10, %v2799_v45 }
 0x398 PF: > { %s14_s17 = sadd.s32 1, %s3485_s17   ;;  %s5674_s15 = smov %s3481_s16 }
 0x399   : > { %p11_p5 = scmp.ge.s32.totalorder %s14_s17, 4   ;;  %s5675_s16 = smov %s5677_s18 }
 0x39b   :  { %13 = sbr.rel (!%p11_p5) target bundleno = 2 (0x2), region = 79 }

// kernel: cmdise_criterion_forward.2
= control target key start
LH: loop header
LB: loop body
LE: loop exit
PB: predicated region body
PF: predicated region fallthrough
CT: control target
= control target key end

     0   :  { %s3389_s12 = smov 0   ;;  %s3391_s13 = smov 0   ;;  %s5284_s0 = inlined_call_operand.vmem [shape: bf16[64,8], index: 0, kind: input, shape index: {}]   ;;  %s5285_s1 = inlined_call_operand.vmem [shape: bf16[2,8,1216], index: 1, kind: input, shape index: {}]   ;;  %s5286_s2 = inlined_call_operand.vmem [shape: s32[2,64,64], index: 2, kind: input, shape index: {}]   ;;  %s5287_s3 = inlined_call_operand.vmem [shape: f32[2,1,64,64], index: 3, kind: output, shape index: {}]  }
   0x1   :  { %s3393_s14 = smov 0  }
   0x2 LB: > { %s32_s15 = sadd.s32 1, %s3360_s13  ;;  %p2833_p0 = scmp.ge.s32.totalorder %s3364_s14, 1  ;;  %s3364_s14 = sphi %s3393_s14, %s13_s14   ;;  %s3360_s13 = sphi %s3391_s13, %s5536_s13   ;;  %s3356_s12 = sphi %s3389_s12, %s5535_s12  }
   0x3   : > { %p34_p1 = scmp.ge.s32.totalorder %s32_s15, 2  ;;  %p202_p2 = scmp.lt.s32.totalorder %s3364_s14, 3 }
   0x5   : > { %s5538_s15 = smov (%p34_p1, %s32_s15), 0  ;;  %p203_p3 = pnand %p2833_p0, %p202_p2 }
   0x7   : > { %206 = sbr.rel (%p203_p3) target bundleno = 918 (0x396), region = 32 }
   0xe   : > { %p256_p4 = scmp.lt.s32.totalorder %s3356_s12, 1  ;;  %v3366_v0 = vmov 0   ;;  %vm371_vm0 = vcmask 1043456   ;;  %v2914_v4 = vld [vmem:[%s5284_s0] sm:$0xff]   ;;  %v2915_v8 = vld [vmem:[%s5284_s0 + $0x10] sm:$0xff]   ;;  %vm358_vm1 = vcmask 64512  }
   0xf   : > { %434 = vmatprep.mubr.bf16.mxu0 %v3366_v0  ;;  %454 = vmatprep.mubr.bf16.mxu1 %v3366_v0  ;;  %v2916_v19 = vld [vmem:[%s5284_s0 + $0x8] sm:$0xff]   ;;  %v2919_v20 = vld [vmem:[%s5284_s0 + $0x18] sm:$0xff]   ;;  %s3367_s5 = smov 64   ;;  %vm291_vm10 = vcmask 523264  }
  0x10   : > { %s5540_s12 = smov (!%p256_p4, %s3356_s12), 1 }
  0x11   : > { %s2884_s16 = smul.u32 40, %s5540_s12  ;;  %s2880_s28 = sshll.u32 %s5540_s12, 6 }
  0x12   : > { %s3482_s4 = scalar_lea.vmem %s5286_s2, %s2880_s28  ;;  %s4747_s8 = scalar_lea.vmem %s5287_s3, %s2880_s28 }
  0x13   : > { %s260_s19 = scalar_lea.vmem %s5285_s1, %s2884_s16  ;;  %v3485_v25 = vld [vmem:[%s3482_s4] sm:$0xff]  ;;  %v3491_v27 = vld [vmem:[%s3482_s4 + $0x8] sm:$0xff]  ;;  %v3529_v39 = vld [vmem:[%s3482_s4 + $0x10] sm:$0xff] }
  0x14   : > { %v308_v1 = vld [vmem:[%s260_s19] sm:$0xff]  ;;  %v309_v5 = vld [vmem:[%s260_s19 + $0x8] sm:$0xff]  ;;  %v310_v6 = vld [vmem:[%s260_s19 + $0x10] sm:$0xff]  ;;  %vm1400_vm2 = vcmp.eq.s32.totalorder %v3485_v25, 0  ;;  %vm1401_vm5 = vcmp.eq.s32.totalorder %v3491_v27, 0  ;;  %vm1402_vm6 = vcmp.eq.s32.totalorder %v3529_v39, 0 }
  0x15   : > { %v2844_v2 = vcombine.high %v308_v1, %v308_v1  ;;  %v2843_v3 = vcombine.low %v308_v1, %v308_v1  ;;  %v2846_v9 = vcombine.high %v309_v5, %v309_v5  ;;  %v2845_v10 = vcombine.low %v309_v5, %v309_v5  ;;  %v311_v12 = vld [vmem:[%s260_s19 + $0x18] sm:$0xff]  ;;  %v312_v13 = vld [vmem:[%s260_s19 + $0x20] sm:$0xff]  ;;  %v3494_v28 = vld [vmem:[%s3482_s4 + $0x28] sm:$0xff] }
  0x16   : > { %v2848_v11 = vcombine.high %v310_v6, %v310_v6  ;;  %v2847_v14 = vcombine.low %v310_v6, %v310_v6  ;;  %v2850_v17 = vcombine.high %v311_v12, %v311_v12  ;;  %v2852_v18 = vcombine.high %v312_v13, %v312_v13  ;;  %v3488_v26 = vld [vmem:[%s3482_s4 + $0x20] sm:$0xff]  ;;  %v3532_v40 = vld [vmem:[%s3482_s4 + $0x30] sm:$0xff]  ;;  %v3559_v47 = vld [vmem:[%s3482_s4 + $0x18] sm:$0xff] }
  0x17   : > { %2853 = vmatprep.subr.msk.bf16.mxu0 %vm371_vm0, %v2844_v2  ;;  %2882 = vmatprep.subr.msk.bf16.mxu1 %vm371_vm0, %v2844_v2  ;;  %v373_v7 = vsel %vm371_vm0, %v2843_v3, 0  ;;  %v379_v15 = vsel %vm371_vm0, %v2845_v10, 0  ;;  %v2849_v21 = vcombine.low %v311_v12, %v311_v12  ;;  %v2851_v22 = vcombine.low %v312_v13, %v312_v13  ;;  %v3562_v48 = vld [vmem:[%s3482_s4 + $0x38] sm:$0xff] }
  0x18   : > { %403 = vmatpush1.bf16.msra.mxu0 %v373_v7  ;;  %2883 = vmatpush1.bf16.msra.mxu1 %v373_v7  ;;  %v385_v16 = vsel %vm371_vm0, %v2847_v14, 0  ;;  %vm1404_vm3 = vcmp.eq.s32.totalorder %v3488_v26, 0  ;;  %vm1405_vm4 = vcmp.eq.s32.totalorder %v3494_v28, 0  ;;  %vm1406_vm7 = vcmp.eq.s32.totalorder %v3532_v40, 0 }
  0x19   : > { %2858 = vmatprep.subr.msk.bf16.mxu1 %vm371_vm0, %v2846_v9  ;;  %2863 = vmatprep.subr.msk.bf16.mxu0 %vm371_vm0, %v2848_v11  ;;  %v391_v23 = vsel %vm371_vm0, %v2849_v21, 0  ;;  %v397_v24 = vsel %vm371_vm0, %v2851_v22, 0  ;;  %vm1403_vm8 = vcmp.eq.s32.totalorder %v3559_v47, 0  ;;  %vm1407_vm9 = vcmp.eq.s32.totalorder %v3562_v48, 0 }
  0x1a   : > { %vm1512_vm11 = vcmp.eq.s32.totalorder %v3485_v25, 1  ;;  %vm1560_vm12 = vcmp.eq.s32.totalorder %v3485_v25, 2  ;;  %vm1517_vm13 = vcmp.eq.s32.totalorder %v3494_v28, 1  ;;  %vm1565_vm14 = vcmp.eq.s32.totalorder %v3494_v28, 2 }
  0x1b   : > { %2854 = vmatmul.mubr.msk.bf16.vlgmr.msra.gmra.mrb[0].mxu0 %vm358_vm1, %v2914_v4  ;;  %2856 = vmatmul.mubr.msk.bf16.vlgmr.msra.gmra.mrb[0].mxu1 %vm358_vm1, %v2915_v8  ;;  %vm1516_vm15 = vcmp.eq.s32.totalorder %v3488_v26, 1 }
  0x1c   : > { %444 = vmatprep.mubr.bf16.mxu0 %v3366_v0  ;;  %464 = vmatprep.mubr.bf16.mxu1 %v3366_v0 }
  0x1d   : > { %476 = vmatpush1.bf16.msra.mxu1 %v379_v15  ;;  %549 = vmatpush1.bf16.msra.mxu0 %v385_v16 }
  0x1e   : > { %2868 = vmatprep.subr.msk.bf16.mxu1 %vm371_vm0, %v2850_v17  ;;  %2873 = vmatprep.subr.msk.bf16.mxu0 %vm371_vm0, %v2852_v18  ;;  %vm1564_vm0 = vcmp.eq.s32.totalorder %v3488_v26, 2 }
  0x23   : > { %2855 = vmatmul.mubr.msk.bf16.gmra.mrb[4].mxu0 %vm358_vm1, %v2916_v19  ;;  %2857 = vmatmul.mubr.msk.bf16.gmra.mrb[4].mxu1 %vm358_vm1, %v2919_v20 }
  0x24   : > { %507 = vmatprep.mubr.bf16.mxu1 %v3366_v0  ;;  %580 = vmatprep.mubr.bf16.mxu0 %v3366_v0 }
  0x2b   : > { %2859 = vmatmul.mubr.msk.bf16.vlgmr.msra.gmra.mrb[8].mxu1 %vm358_vm1, %v2914_v4  ;;  %2864 = vmatmul.mubr.msk.bf16.vlgmr.msra.gmra.mrb[8].mxu0 %vm358_vm1, %v2914_v4 }
  0x2c   : > { %517 = vmatprep.mubr.bf16.mxu1 %v3366_v0  ;;  %590 = vmatprep.mubr.bf16.mxu0 %v3366_v0 }
  0x2d   : > { %622 = vmatpush1.bf16.msra.mxu1 %v391_v23  ;;  %695 = vmatpush1.bf16.msra.mxu0 %v397_v24 }
  0x33   : > { %2860 = vmatmul.mubr.msk.bf16.gmra.mrb[12].mxu1 %vm358_vm1, %v2916_v19  ;;  %2865 = vmatmul.mubr.msk.bf16.gmra.mrb[12].mxu0 %vm358_vm1, %v2916_v19 }
  0x34   : > { %527 = vmatprep.mubr.bf16.mxu1 %v3366_v0  ;;  %600 = vmatprep.mubr.bf16.mxu0 %v3366_v0 }
  0x3b   : > { %2861 = vmatmul.mubr.msk.bf16.gmra.mrb[16].mxu1 %vm358_vm1, %v2915_v8  ;;  %2866 = vmatmul.mubr.msk.bf16.gmra.mrb[16].mxu0 %vm358_vm1, %v2915_v8 }
  0x3c   : > { %537 = vmatprep.mubr.bf16.mxu1 %v3366_v0  ;;  %610 = vmatprep.mubr.bf16.mxu0 %v3366_v0 }
  0x43   : > { %2862 = vmatmul.mubr.msk.bf16.gmra.mrb[20].mxu1 %vm358_vm1, %v2919_v20  ;;  %2867 = vmatmul.mubr.msk.bf16.gmra.mrb[20].mxu0 %vm358_vm1, %v2919_v20 }
  0x44   : > { %653 = vmatprep.mubr.bf16.mxu1 %v3366_v0  ;;  %726 = vmatprep.mubr.bf16.mxu0 %v3366_v0 }
  0x4b   : > { %2869 = vmatmul.mubr.msk.bf16.vlgmr.msra.gmra.mrb[24].mxu1 %vm358_vm1, %v2914_v4  ;;  %2874 = vmatmul.mubr.msk.bf16.vlgmr.msra.gmra.mrb[24].mxu0 %vm358_vm1, %v2914_v4 }
  0x4c   : > { %663 = vmatprep.mubr.bf16.mxu1 %v3366_v0  ;;  %736 = vmatprep.mubr.bf16.mxu0 %v3366_v0 }
  0x53   : > { %2870 = vmatmul.mubr.msk.bf16.gmra.mrb[28].mxu1 %vm358_vm1, %v2916_v19  ;;  %2875 = vmatmul.mubr.msk.bf16.gmra.mrb[28].mxu0 %vm358_vm1, %v2916_v19 }
  0x54   : > { %673 = vmatprep.mubr.bf16.mxu1 %v3366_v0  ;;  %746 = vmatprep.mubr.bf16.mxu0 %v3366_v0 }
  0x5b   : > { %2871 = vmatmul.mubr.msk.bf16.gmra.mrb[32].mxu1 %vm358_vm1, %v2915_v8  ;;  %2876 = vmatmul.mubr.msk.bf16.gmra.mrb[32].mxu0 %vm358_vm1, %v2915_v8 }
  0x5c   : > { %683 = vmatprep.mubr.bf16.mxu1 %v3366_v0  ;;  %756 = vmatprep.mubr.bf16.mxu0 %v3366_v0 }
  0x63   : > { %2872 = vmatmul.mubr.msk.bf16.gmra.mrb[36].mxu1 %vm358_vm1, %v2919_v20  ;;  %2877 = vmatmul.mubr.msk.bf16.gmra.mrb[36].mxu0 %vm358_vm1, %v2919_v20  ;;  %vm1640_vm1 = vcmp.eq.s32.totalorder %v3485_v25, 3 }
  0xee   : > { %v3498_v29 = vpop.f32.mrb[0].mxu0  ;;  %v3500_v30 = vpop.f32.mrb[0].mxu1 }
  0xef   : > { %767 = vst [vmem:[#allocation2] sm:$0xff] %v3498_v29  ;;  %808 = vst [vmem:[#allocation2 + $0x140] sm:$0xff] %v3500_v30  ;;  %v3506_v31 = vpop.f32.mrb[1].mxu0  ;;  %v3508_v32 = vpop.f32.mrb[1].mxu1  ;;  %872 = vrot.lane.b32.xlu0 %v3498_v29, %s3367_s5  ;;  %v3513_v33 = vsel %vm1400_vm2, %v3498_v29, 0.0  ;;  %v3516_v34 = vsel %vm1404_vm3, %v3500_v30, 0.0 }
  0xf0   : > { %v896_v35 = vmax.f32 %v3498_v29, %v3506_v31  ;;  %768 = vst [vmem:[#allocation2 + $0x8] sm:$0xff] %v3506_v31  ;;  %v900_v36 = vmax.f32 %v3500_v30, %v3508_v32  ;;  %809 = vst [vmem:[#allocation2 + $0x148] sm:$0xff] %v3508_v32  ;;  %v3524_v37 = vpop.f32.mrb[2].mxu0  ;;  %v3526_v38 = vpop.f32.mrb[2].mxu1  ;;  %vm1688_vm2 = vcmp.eq.s32.totalorder %v3485_v25, 4  ;;  %vm1645_vm3 = vcmp.eq.s32.totalorder %v3494_v28, 3 }
  0xf1   : > { %778 = vst [vmem:[#allocation2 + $0x50] sm:$0xff] %v3524_v37  ;;  %818 = vst [vmem:[#allocation2 + $0x190] sm:$0xff] %v3526_v38  ;;  %v3536_v41 = vpop.f32.mrb[3].mxu0  ;;  %v3538_v42 = vpop.f32.mrb[3].mxu1  ;;  %882 = vrot.lane.b32.xlu1 %v3526_v38, %s3367_s5  ;;  %v3545_v43 = vsel %vm1405_vm4, %v3526_v38, 0.0  ;;  %v3550_v44 = vsel %vm1401_vm5, %v3524_v37, 0.0 }
  0xf2   : > { %v897_v45 = vmax.f32 %v3524_v37, %v3536_v41  ;;  %779 = vst [vmem:[#allocation2 + $0x58] sm:$0xff] %v3536_v41  ;;  %v901_v46 = vmax.f32 %v3526_v38, %v3538_v42  ;;  %819 = vst [vmem:[#allocation2 + $0x198] sm:$0xff] %v3538_v42  ;;  %vm1693_vm4 = vcmp.eq.s32.totalorder %v3494_v28, 4  ;;  %vm1644_vm5 = vcmp.eq.s32.totalorder %v3488_v26, 3 }
  0xf3   : > { %880 = vrot.lane.b32.xlu0 %v3500_v30, %s3367_s5 }
  0xf5   : > { %930 = vrot.lane.b32.xlu1 %v3536_v41, %s3367_s5 }
  0xf6   : > { %v446_v49 = vpop.f32.mrb[4].mxu0  ;;  %v3570_v50 = vpop.f32.mrb[4].mxu1 }
  0xf7   : > { %788 = vst [vmem:[#allocation2 + $0xa0] sm:$0xff] %v446_v49  ;;  %v3574_v51 = vpop.f32.mrb[5].mxu0  ;;  %828 = vst [vmem:[#allocation2 + $0x1e0] sm:$0xff] %v3570_v50  ;;  %928 = vrot.lane.b32.xlu0 %v3506_v31, %s3367_s5  ;;  %v3579_v52 = vpop.f32.mrb[5].mxu1  ;;  %v3581_v53 = vsel %vm1402_vm6, %v446_v49, 0.0  ;;  %v3584_v54 = vsel %vm1406_vm7, %v3570_v50, 0.0 }
  0xf8   : > { %5359 = vst [vmem:[#allocation3_spill] sm:$0xff] %v3579_v52  ;;  %5360 = vst [vmem:[#allocation4_spill] sm:$0xff] %v3584_v54  ;;  %v898_v55 = vmax.f32 %v446_v49, %v3574_v51  ;;  %v450_v56 = vpop.f32.mrb[6].mxu0  ;;  %v902_v57 = vmax.f32 %v3570_v50, %v3579_v52  ;;  %v3591_v58 = vpop.f32.mrb[6].mxu1  ;;  %vm1692_vm6 = vcmp.eq.s32.totalorder %v3488_v26, 4  ;;  %vm1514_vm7 = vcmp.eq.s32.totalorder %v3529_v39, 1 }
  0xf9   : > { %789 = vst [vmem:[#allocation2 + $0xa8] sm:$0xff] %v3574_v51  ;;  %829 = vst [vmem:[#allocation2 + $0x1e8] sm:$0xff] %v3579_v52  ;;  %v3593_v59 = vpop.f32.mrb[7].mxu0  ;;  %938 = vrot.lane.b32.xlu1 %v3538_v42, %s3367_s5  ;;  %v3598_v60 = vpop.f32.mrb[7].mxu1  ;;  %v3602_v61 = vsel %vm1403_vm8, %v450_v56, 0.0  ;;  %v3607_v62 = vsel %vm1407_vm9, %v3591_v58, 0.0 }
  0xfa   : > { %798 = vst [vmem:[#allocation2 + $0xf0] sm:$0xff] %v450_v56  ;;  %5361 = vst [vmem:[#allocation5_spill] sm:$0xff] %v3593_v59  ;;  %v899_v63 = vmax.f32 %v450_v56, %v3593_v59  ;;  %vm1562_vm8 = vcmp.eq.s32.totalorder %v3529_v39, 2  ;;  %vm1513_vm9 = vcmp.eq.s32.totalorder %v3491_v27, 1 }
  0xfb   : > { %838 = vst [vmem:[#allocation2 + $0x230] sm:$0xff] %v3591_v58  ;;  %5362 = vst [vmem:[#allocation6_spill] sm:$0xff] %v3598_v60  ;;  %936 = vrot.lane.b32.xlu0 %v3508_v32, %s3367_s5 }
  0xfc   : > { %5363 = vst [vmem:[#allocation7_spill] sm:$0xff] %v3607_v62  ;;  %799 = vst [vmem:[#allocation2 + $0xf8] sm:$0xff] %v3593_v59 }
  0xfd   : > { %839 = vst [vmem:[#allocation2 + $0x238] sm:$0xff] %v3598_v60  ;;  %876 = vrot.lane.b32.xlu1 %v446_v49, %s3367_s5 }
  0xfe   : > { %v3617_v1 = vpop.f32.mrb[8].mxu1  ;;  %v3619_v2 = vpop.f32.mrb[8].mxu0 }
  0xff   : > { %5364 = vst [vmem:[#allocation8_spill] sm:$0xff] %v3619_v2  ;;  %874 = vrot.lane.b32.xlu0 %v3524_v37, %s3367_s5  ;;  %v912_v3 = vmax.f32 %v896_v35, %v3617_v1  ;;  %769 = vst [vmem:[#allocation2 + $0x10] sm:$0xff] %v3617_v1  ;;  %v3625_v4 = vpop.f32.mrb[9].mxu1  ;;  %v3628_v5 = vpop.f32.mrb[9].mxu0 }
 0x100   : > { %5365 = vst [vmem:[#allocation9_spill] sm:$0xff] %v3625_v4  ;;  %771 = vst [vmem:[#allocation2 + $0x20] sm:$0xff] %v3619_v2  ;;  %v3631_v6 = vpop.f32.mrb[10].mxu1  ;;  %v3634_v7 = vpop.f32.mrb[10].mxu0 }
 0x101   : > { %5366 = vst [vmem:[#allocation10_spill] sm:$0xff] %v3628_v5  ;;  %770 = vst [vmem:[#allocation2 + $0x18] sm:$0xff] %v3625_v4  ;;  %878 = vrot.lane.b32.xlu1 %v450_v56, %s3367_s5  ;;  %v952_v8 = vmax.f32 %v912_v3, %v3625_v4  ;;  %v913_v9 = vmax.f32 %v897_v45, %v3631_v6  ;;  %v3640_v10 = vpop.f32.mrb[11].mxu1  ;;  %v3643_v11 = vpop.f32.mrb[11].mxu0 }
 0x102   : > { %5367 = vst [vmem:[#allocation11_spill] sm:$0xff] %v3631_v6  ;;  %772 = vst [vmem:[#allocation2 + $0x28] sm:$0xff] %v3628_v5 }
 0x103   : > { %5368 = vst [vmem:[#allocation12_spill] sm:$0xff] %v3634_v7  ;;  %780 = vst [vmem:[#allocation2 + $0x60] sm:$0xff] %v3631_v6  ;;  %884 = vrot.lane.b32.xlu0 %v3570_v50, %s3367_s5  ;;  %v953_v12 = vmax.f32 %v913_v9, %v3640_v10  ;;  %v3651_v13 = vmax.f32 %v952_v8, %v3619_v2 }
 0x104   : > { %5369 = vst [vmem:[#allocation13_spill] sm:$0xff] %v3640_v10  ;;  %782 = vst [vmem:[#allocation2 + $0x70] sm:$0xff] %v3634_v7 }
 0x105   : > { %5370 = vst [vmem:[#allocation14_spill] sm:$0xff] %v3643_v11  ;;  %781 = vst [vmem:[#allocation2 + $0x68] sm:$0xff] %v3640_v10  ;;  %886 = vrot.lane.b32.xlu1 %v3591_v58, %s3367_s5  ;;  %v3658_v15 = vmax.f32 %v953_v12, %v3634_v7 }
 0x106   : > { %783 = vst [vmem:[#allocation2 + $0x78] sm:$0xff] %v3643_v11  ;;  %v3660_v16 = vpop.f32.mrb[12].mxu1  ;;  %v3662_v17 = vpop.f32.mrb[12].mxu0 }
 0x107   : > { %5371 = vst [vmem:[#allocation15_spill] sm:$0xff] %v3660_v16  ;;  %5372 = vst [vmem:[#allocation16_spill] sm:$0xff] %v3662_v17  ;;  %932 = vrot.lane.b32.xlu0 %v3574_v51, %s3367_s5  ;;  %v914_v19 = vmax.f32 %v898_v55, %v3660_v16  ;;  %v3670_v20 = vpop.f32.mrb[13].mxu1  ;;  %v3673_v21 = vpop.f32.mrb[13].mxu0 }
 0x108   : > { %790 = vst [vmem:[#allocation2 + $0xb0] sm:$0xff] %v3660_v16  ;;  %5373 = vst [vmem:[#allocation17_spill] sm:$0xff] %v3670_v20  ;;  %v3676_v22 = vpop.f32.mrb[14].mxu1  ;;  %v3679_v23 = vpop.f32.mrb[14].mxu0 }
 0x109   : > { %792 = vst [vmem:[#allocation2 + $0xc0] sm:$0xff] %v3662_v17  ;;  %5374 = vst [vmem:[#allocation18_spill] sm:$0xff] %v3673_v21  ;;  %934 = vrot.lane.b32.xlu1 %v3593_v59, %s3367_s5  ;;  %v954_v24 = vmax.f32 %v914_v19, %v3670_v20  ;;  %v915_v29 = vmax.f32 %v899_v63, %v3676_v22  ;;  %v3686_v35 = vpop.f32.mrb[15].mxu1  ;;  %v3689_v37 = vpop.f32.mrb[15].mxu0 }
 0x10a   : > { %791 = vst [vmem:[#allocation2 + $0xb8] sm:$0xff] %v3670_v20  ;;  %5375 = vst [vmem:[#allocation19_spill] sm:$0xff] %v3676_v22 }
 0x10b   : > { %793 = vst [vmem:[#allocation2 + $0xc8] sm:$0xff] %v3673_v21  ;;  %5376 = vst [vmem:[#allocation20_spill] sm:$0xff] %v3679_v23  ;;  %940 = vrot.lane.b32.xlu0 %v3579_v52, %s3367_s5  ;;  %v955_v45 = vmax.f32 %v915_v29, %v3686_v35  ;;  %v3697_v49 = vmax.f32 %v954_v24, %v3662_v17 }
 0x10c   : > { %800 = vst [vmem:[#allocation2 + $0x100] sm:$0xff] %v3676_v22  ;;  %5377 = vst [vmem:[#allocation21_spill] sm:$0xff] %v3686_v35 }
 0x10d   : > { %802 = vst [vmem:[#allocation2 + $0x110] sm:$0xff] %v3679_v23  ;;  %5378 = vst [vmem:[#allocation22_spill] sm:$0xff] %v3689_v37  ;;  %942 = vrot.lane.b32.xlu1 %v3598_v60, %s3367_s5  ;;  %v3704_v56 = vmax.f32 %v955_v45, %v3679_v23 }
 0x10e   : > { %801 = vst [vmem:[#allocation2 + $0x108] sm:$0xff] %v3686_v35  ;;  %803 = vst [vmem:[#allocation2 + $0x118] sm:$0xff] %v3689_v37  ;;  %v3706_v63 = vpop.f32.mrb[16].mxu1  ;;  %v3708_v3 = vpop.f32.mrb[16].mxu0 }
 0x10f   : > { %5379 = vst [vmem:[#allocation23_spill] sm:$0xff] %v3708_v3  ;;  %984 = vrot.lane.b32.xlu0 %v3617_v1, %s3367_s5  ;;  %v916_v9 = vmax.f32 %v900_v36, %v3706_v63  ;;  %810 = vst [vmem:[#allocation2 + $0x150] sm:$0xff] %v3706_v63  ;;  %v3719_v12 = vpop.f32.mrb[17].mxu1  ;;  %v3722_v19 = vpop.f32.mrb[17].mxu0 }
 0x110   : > { %5380 = vst [vmem:[#allocation24_spill] sm:$0xff] %v3719_v12  ;;  %812 = vst [vmem:[#allocation2 + $0x160] sm:$0xff] %v3708_v3  ;;  %v3725_v24 = vpop.f32.mrb[18].mxu1  ;;  %v3728_v29 = vpop.f32.mrb[18].mxu0 }
 0x111   : > { %811 = vst [vmem:[#allocation2 + $0x158] sm:$0xff] %v3719_v12  ;;  %813 = vst [vmem:[#allocation2 + $0x168] sm:$0xff] %v3722_v19  ;;  %986 = vrot.lane.b32.xlu1 %v3631_v6, %s3367_s5  ;;  %v956_v30 = vmax.f32 %v916_v9, %v3719_v12  ;;  %v917_v36 = vmax.f32 %v901_v46, %v3725_v24  ;;  %v3738_v45 = vpop.f32.mrb[19].mxu1  ;;  %v3741_v8 = vpop.f32.mrb[19].mxu0 }
 0x112   : > { %5381 = vst [vmem:[#allocation25_spill] sm:$0xff] %v3728_v29  ;;  %820 = vst [vmem:[#allocation2 + $0x1a0] sm:$0xff] %v3725_v24 }
 0x113   : > { %822 = vst [vmem:[#allocation2 + $0x1b0] sm:$0xff] %v3728_v29  ;;  %821 = vst [vmem:[#allocation2 + $0x1a8] sm:$0xff] %v3738_v45  ;;  %1096 = vrot.lane.b32.xlu0 %v3619_v2, %s3367_s5  ;;  %v957_v9 = vmax.f32 %v917_v36, %v3738_v45  ;;  %v3749_v38 = vmax.f32 %v956_v30, %v3708_v3 }
 0x114   : > { %823 = vst [vmem:[#allocation2 + $0x1b8] sm:$0xff] %v3741_v8 }
 0x115   : > { %1098 = vrot.lane.b32.xlu1 %v3634_v7, %s3367_s5  ;;  %v3756_v55 = vmax.f32 %v957_v9, %v3728_v29 }
 0x116   : > { %v3758_v18 = vpop.f32.mrb[20].mxu1  ;;  %v3760_v14 = vpop.f32.mrb[20].mxu0 }
 0x117   : > { %1040 = vrot.lane.b32.xlu0 %v3625_v4, %s3367_s5  ;;  %v918_v36 = vmax.f32 %v902_v57, %v3758_v18  ;;  %830 = vst [vmem:[#allocation2 + $0x1f0] sm:$0xff] %v3758_v18  ;;  %v3771_v46 = vpop.f32.mrb[21].mxu1  ;;  %832 = vst [vmem:[#allocation2 + $0x200] sm:$0xff] %v3760_v14  ;;  %v3774_v9 = vpop.f32.mrb[21].mxu0  ;;  %v5382_v57 = vmax.f32 %v3591_v58, %v3598_v60 }
 0x118   : > { %831 = vst [vmem:[#allocation2 + $0x1f8] sm:$0xff] %v3771_v46  ;;  %v3777_v0 = vpop.f32.mrb[22].mxu1  ;;  %833 = vst [vmem:[#allocation2 + $0x208] sm:$0xff] %v3774_v9  ;;  %v3780_v30 = vpop.f32.mrb[22].mxu0 }
 0x119   : > { %1042 = vrot.lane.b32.xlu1 %v3640_v10, %s3367_s5  ;;  %v958_v50 = vmax.f32 %v918_v36, %v3771_v46  ;;  %v919_v7 = vmax.f32 %v5382_v57, %v3777_v0  ;;  %840 = vst [vmem:[#allocation2 + $0x240] sm:$0xff] %v3777_v0  ;;  %v3790_v2 = vpop.f32.mrb[23].mxu1  ;;  %842 = vst [vmem:[#allocation2 + $0x250] sm:$0xff] %v3780_v30  ;;  %v3793_v4 = vpop.f32.mrb[23].mxu0 }
 0x11a   : > { %841 = vst [vmem:[#allocation2 + $0x248] sm:$0xff] %v3790_v2  ;;  %843 = vst [vmem:[#allocation2 + $0x258] sm:$0xff] %v3793_v4 }
 0x11b   : > { %1152 = vrot.lane.b32.xlu0 %v3628_v5, %s3367_s5  ;;  %v959_v36 = vmax.f32 %v919_v7, %v3790_v2  ;;  %v3801_v58 = vmax.f32 %v958_v50, %v3760_v14  ;;  %v5383_v50 = vmax.f32 %v3651_v13, %v3628_v5 }
 0x11d   : > { %1154 = vrot.lane.b32.xlu1 %v3643_v11, %s3367_s5  ;;  %v3808_v10 = vmax.f32 %v959_v36, %v3780_v30 }
 0x11e   : > { %v3810_v60 = vpop.f32.mrb[24].mxu1  ;;  %v3812_v62 = vpop.f32.mrb[24].mxu0 }
 0x11f   : > { %988 = vrot.lane.b32.xlu0 %v3660_v16, %s3367_s5  ;;  %v1024_v52 = vmax.f32 %v5383_v50, %v3810_v60  ;;  %773 = vst [vmem:[#allocation2 + $0x30] sm:$0xff] %v3810_v60  ;;  %v3823_v36 = vpop.f32.mrb[25].mxu1  ;;  %775 = vst [vmem:[#allocation2 + $0x40] sm:$0xff] %v3812_v62  ;;  %v730_v57 = vpop.f32.mrb[25].mxu0  ;;  %v5384_v50 = vmax.f32 %v3658_v15, %v3643_v11 }
 0x120   : > { %774 = vst [vmem:[#allocation2 + $0x38] sm:$0xff] %v3823_v36  ;;  %v3827_v54 = vpop.f32.mrb[26].mxu1  ;;  %777 = vst.msk [vmem:[#allocation2 + $0x48] sm:$0xff] %vm291_vm10, %v730_v57  ;;  %v3830_v16 = vpop.f32.mrb[26].mxu0 }
 0x121   : > { %990 = vrot.lane.b32.xlu1 %v3676_v22, %s3367_s5  ;;  %v1064_v13 = vmax.f32 %v1024_v52, %v3823_v36  ;;  %v1025_v7 = vmax.f32 %v5384_v50, %v3827_v54  ;;  %784 = vst [vmem:[#allocation2 + $0x80] sm:$0xff] %v3827_v54  ;;  %v3840_v5 = vpop.f32.mrb[27].mxu1  ;;  %786 = vst [vmem:[#allocation2 + $0x90] sm:$0xff] %v3830_v16  ;;  %v734_v6 = vpop.f32.mrb[27].mxu0 }
 0x122   : > { %785 = vst [vmem:[#allocation2 + $0x88] sm:$0xff] %v3840_v5  ;;  %787 = vst.msk [vmem:[#allocation2 + $0x98] sm:$0xff] %vm291_vm10, %v734_v6  ;;  %v5388_v6 = vmax.f32 %v3697_v49, %v3673_v21 }
 0x123   : > { %1100 = vrot.lane.b32.xlu0 %v3662_v17, %s3367_s5  ;;  %v1065_v52 = vmax.f32 %v1025_v7, %v3840_v5  ;;  %v3849_v57 = vmax.f32 %v1064_v13, %v3812_v62 }
 0x125   : > { %5385 = vst [vmem:[#allocation26_spill] sm:$0xff] %v3849_v57  ;;  %1102 = vrot.lane.b32.xlu1 %v3679_v23, %s3367_s5  ;;  %v3854_v15 = vmax.f32 %v1065_v52, %v3830_v16 }
 0x126   : > { %v3856_v50 = vpop.f32.mrb[28].mxu1  ;;  %v3858_v11 = vpop.f32.mrb[28].mxu0 }
 0x127   : > { %5386 = vst [vmem:[#allocation27_spill] sm:$0xff] %v3854_v15  ;;  %5387 = vst [vmem:[#allocation28_spill] sm:$0xff] %v3858_v11  ;;  %1044 = vrot.lane.b32.xlu0 %v3670_v20, %s3367_s5  ;;  %v1026_v7 = vmax.f32 %v5388_v6, %v3856_v50  ;;  %v3867_v13 = vpop.f32.mrb[29].mxu1  ;;  %v740_v52 = vpop.f32.mrb[29].mxu0  ;;  %v5391_v6 = vmax.f32 %v3704_v56, %v3689_v37 }
 0x128   : > { %794 = vst [vmem:[#allocation2 + $0xd0] sm:$0xff] %v3856_v50  ;;  %5389 = vst [vmem:[#allocation29_spill] sm:$0xff] %v3867_v13  ;;  %v3871_v15 = vpop.f32.mrb[30].mxu1  ;;  %v3874_v57 = vpop.f32.mrb[30].mxu0 }
 0x129   : > { %796 = vst [vmem:[#allocation2 + $0xe0] sm:$0xff] %v3858_v11  ;;  %795 = vst [vmem:[#allocation2 + $0xd8] sm:$0xff] %v3867_v13  ;;  %1046 = vrot.lane.b32.xlu1 %v3686_v35, %s3367_s5  ;;  %v1066_v49 = vmax.f32 %v1026_v7, %v3867_v13  ;;  %v1027_v23 = vmax.f32 %v5391_v6, %v3871_v15  ;;  %v3885_v17 = vpop.f32.mrb[31].mxu1  ;;  %v744_v20 = vpop.f32.mrb[31].mxu0 }
 0x12a   : > { %797 = vst.msk [vmem:[#allocation2 + $0xe8] sm:$0xff] %vm291_vm10, %v740_v52  ;;  %5390 = vst [vmem:[#allocation30_spill] sm:$0xff] %v3874_v57 }
 0x12b   : > { %804 = vst [vmem:[#allocation2 + $0x120] sm:$0xff] %v3871_v15  ;;  %806 = vst [vmem:[#allocation2 + $0x130] sm:$0xff] %v3874_v57  ;;  %1156 = vrot.lane.b32.xlu0 %v3673_v21, %s3367_s5  ;;  %v3892_v7 = vmax.f32 %v1066_v49, %v3858_v11  ;;  %v1067_v56 = vmax.f32 %v1027_v23, %v3874_v57 }
 0x12c   : > { %5392 = vst [vmem:[#allocation31_spill] sm:$0xff] %v3885_v17  ;;  %805 = vst [vmem:[#allocation2 + $0x128] sm:$0xff] %v3885_v17 }
 0x12d   : > { %807 = vst.msk [vmem:[#allocation2 + $0x138] sm:$0xff] %vm291_vm10, %v744_v20  ;;  %5393 = vst [vmem:[#allocation32_spill] sm:$0xff] %v3892_v7  ;;  %1158 = vrot.lane.b32.xlu1 %v3689_v37, %s3367_s5  ;;  %v3898_v52 = vmax.f32 %v1067_v56, %v3885_v17  ;;  %v5396_v20 = vmax.f32 %v3749_v38, %v3722_v19 }
 0x12e   : > { %v3900_v6 = vpop.f32.mrb[32].mxu1  ;;  %v3902_v35 = vpop.f32.mrb[32].mxu0 }
 0x12f   : > { %5394 = vst [vmem:[#allocation33_spill] sm:$0xff] %v3898_v52  ;;  %5395 = vst [vmem:[#allocation34_spill] sm:$0xff] %v3902_v35  ;;  %992 = vrot.lane.b32.xlu0 %v3706_v63, %s3367_s5  ;;  %v1028_v49 = vmax.f32 %v5396_v20, %v3900_v6  ;;  %v3911_v23 = vpop.f32.mrb[33].mxu1  ;;  %v750_v56 = vpop.f32.mrb[33].mxu0  ;;  %v5399_v20 = vmax.f32 %v3756_v55, %v3741_v8 }
 0x130   : > { %814 = vst [vmem:[#allocation2 + $0x170] sm:$0xff] %v3900_v6  ;;  %5397 = vst [vmem:[#allocation35_spill] sm:$0xff] %v3911_v23  ;;  %v3915_v52 = vpop.f32.mrb[34].mxu1  ;;  %v3918_v7 = vpop.f32.mrb[34].mxu0 }
 0x131   : > { %816 = vst [vmem:[#allocation2 + $0x180] sm:$0xff] %v3902_v35  ;;  %815 = vst [vmem:[#allocation2 + $0x178] sm:$0xff] %v3911_v23  ;;  %994 = vrot.lane.b32.xlu1 %v3725_v24, %s3367_s5  ;;  %v1068_v38 = vmax.f32 %v1028_v49, %v3911_v23  ;;  %v3927_v37 = vmax.f32 %v5399_v20, %v3915_v52  ;;  %v3931_v21 = vpop.f32.mrb[35].mxu1 }
 0x132   : > { %817 = vst.msk [vmem:[#allocation2 + $0x188] sm:$0xff] %vm291_vm10, %v750_v56  ;;  %5398 = vst [vmem:[#allocation36_spill] sm:$0xff] %v3918_v7  ;;  %v754_v56 = vpop.f32.mrb[35].mxu0 }
 0x133   : > { %824 = vst [vmem:[#allocation2 + $0x1c0] sm:$0xff] %v3915_v52  ;;  %826 = vst [vmem:[#allocation2 + $0x1d0] sm:$0xff] %v3918_v7  ;;  %1104 = vrot.lane.b32.xlu0 %v3708_v3, %s3367_s5  ;;  %v3938_v49 = vmax.f32 %v1068_v38, %v3902_v35 }
 0x134   : > { %5400 = vst [vmem:[#allocation37_spill] sm:$0xff] %v3931_v21  ;;  %825 = vst [vmem:[#allocation2 + $0x1c8] sm:$0xff] %v3931_v21 }
 0x135   : > { %827 = vst.msk [vmem:[#allocation2 + $0x1d8] sm:$0xff] %vm291_vm10, %v754_v56  ;;  %5401 = vst [vmem:[#allocation38_spill] sm:$0xff] %v3938_v49  ;;  %1106 = vrot.lane.b32.xlu1 %v3728_v29, %s3367_s5  ;;  %v5403_v56 = vmax.f32 %v3801_v58, %v3774_v9 }
 0x136   : > { %v3942_v55 = vpop.f32.mrb[36].mxu1  ;;  %v3944_v20 = vpop.f32.mrb[36].mxu0 }
 0x137   : > { %5402 = vst [vmem:[#allocation39_spill] sm:$0xff] %v3944_v20  ;;  %1048 = vrot.lane.b32.xlu0 %v3719_v12, %s3367_s5  ;;  %v1030_v22 = vmax.f32 %v5403_v56, %v3942_v55  ;;  %834 = vst [vmem:[#allocation2 + $0x210] sm:$0xff] %v3942_v55  ;;  %v3953_v3 = vpop.f32.mrb[37].mxu1  ;;  %v760_v38 = vpop.f32.mrb[37].mxu0  ;;  %v5406_v56 = vmax.f32 %v3808_v10, %v3793_v4 }
 0x138   : > { %5404 = vst [vmem:[#allocation40_spill] sm:$0xff] %v3953_v3  ;;  %836 = vst [vmem:[#allocation2 + $0x220] sm:$0xff] %v3944_v20  ;;  %v3957_v49 = vpop.f32.mrb[38].mxu1  ;;  %v3960_v29 = vpop.f32.mrb[38].mxu0 }
 0x139   : > { %835 = vst [vmem:[#allocation2 + $0x218] sm:$0xff] %v3953_v3  ;;  %837 = vst.msk [vmem:[#allocation2 + $0x228] sm:$0xff] %vm291_vm10, %v760_v38  ;;  %1050 = vrot.lane.b32.xlu1 %v3738_v45, %s3367_s5  ;;  %v1070_v58 = vmax.f32 %v1030_v22, %v3953_v3  ;;  %v1031_v12 = vmax.f32 %v5406_v56, %v3957_v49  ;;  %v3970_v59 = vpop.f32.mrb[39].mxu1  ;;  %v764_v56 = vpop.f32.mrb[39].mxu0 }
 0x13a   : > { %5405 = vst [vmem:[#allocation41_spill] sm:$0xff] %v3960_v29  ;;  %844 = vst [vmem:[#allocation2 + $0x260] sm:$0xff] %v3957_v49 }
 0x13b   : > { %5407 = vst [vmem:[#allocation42_spill] sm:$0xff] %v3970_v59  ;;  %846 = vst [vmem:[#allocation2 + $0x270] sm:$0xff] %v3960_v29  ;;  %1160 = vrot.lane.b32.xlu0 %v3722_v19, %s3367_s5  ;;  %v1071_v38 = vmax.f32 %v1031_v12, %v3970_v59  ;;  %v3978_v22 = vmax.f32 %v1070_v58, %v3944_v20 }
 0x13c   : > { %845 = vst [vmem:[#allocation2 + $0x268] sm:$0xff] %v3970_v59  ;;  %847 = vst.msk [vmem:[#allocation2 + $0x278] sm:$0xff] %vm291_vm10, %v764_v56 }
 0x13d   : > { %5408 = vst [vmem:[#allocation43_spill] sm:$0xff] %v3978_v22  ;;  %1162 = vrot.lane.b32.xlu1 %v3741_v8, %s3367_s5  ;;  %v3983_v10 = vmax.f32 %v1071_v38, %v3960_v29 }
 0x13f   : > { %5409 = vst [vmem:[#allocation44_spill] sm:$0xff] %v3983_v10  ;;  %996 = vrot.lane.b32.xlu0 %v3758_v18, %s3367_s5 }
 0x141   : > { %998 = vrot.lane.b32.xlu1 %v3777_v0, %s3367_s5 }
 0x143   : > { %1108 = vrot.lane.b32.xlu0 %v3760_v14, %s3367_s5 }
 0x145   : > { %1110 = vrot.lane.b32.xlu1 %v3780_v30, %s3367_s5 }
 0x147   : > { %1052 = vrot.lane.b32.xlu0 %v3771_v46, %s3367_s5 }
 0x149   : > { %1054 = vrot.lane.b32.xlu1 %v3790_v2, %s3367_s5 }
 0x14b   : > { %1164 = vrot.lane.b32.xlu0 %v3774_v9, %s3367_s5 }
 0x14d   : > { %1166 = vrot.lane.b32.xlu1 %v3793_v4, %s3367_s5 }
 0x14f   : > { %1208 = vrot.lane.b32.xlu0 %v3810_v60, %s3367_s5 }
 0x151   : > { %1210 = vrot.lane.b32.xlu1 %v3827_v54, %s3367_s5 }
 0x153   : > { %1320 = vrot.lane.b32.xlu0 %v3812_v62, %s3367_s5 }
 0x155   : > { %1322 = vrot.lane.b32.xlu1 %v3830_v16, %s3367_s5 }
 0x157   : > { %1264 = vrot.lane.b32.xlu0 %v3823_v36, %s3367_s5 }
 0x159   : > { %1266 = vrot.lane.b32.xlu1 %v3840_v5, %s3367_s5 }
 0x15b   : > { %1212 = vrot.lane.b32.xlu0 %v3856_v50, %s3367_s5 }
 0x15d   : > { %1214 = vrot.lane.b32.xlu1 %v3871_v15, %s3367_s5 }
 0x15f   : > { %1324 = vrot.lane.b32.xlu0 %v3858_v11, %s3367_s5 }
 0x161   : > { %v4022_v12 = vpop.permute.xlu0 %872  ;;  %1326 = vrot.lane.b32.xlu1 %v3874_v57, %s3367_s5 }
 0x162   : > { %v1520_v58 = vsel %vm1512_vm11, %v4022_v12, %v3513_v33  ;;  %vm1561_vm11 = vcmp.eq.s32.totalorder %v3491_v27, 2 }
 0x163   : > { %v883_v38 = vpop.permute.xlu1 %882  ;;  %1268 = vrot.lane.b32.xlu0 %v3867_v13, %s3367_s5  ;;  %v1568_v56 = vsel %vm1560_vm12, %v3506_v31, %v1520_v58  ;;  %vm1515_vm12 = vcmp.eq.s32.totalorder %v3559_v47, 1 }
 0x164   : > { %v1069_v10 = vmax.f32 %v3927_v37, %v883_v38  ;;  %v1525_v22 = vsel %vm1517_vm13, %v883_v38, %v3545_v43  ;;  %vm1641_vm13 = vcmp.eq.s32.totalorder %v3491_v27, 3  ;;  %v5417_v37 = vld [vmem:[#allocation4_spill] sm:$0xff] }
 0x165   : > { %v4037_v57 = vpop.permute.xlu0 %880  ;;  %1270 = vrot.lane.b32.xlu1 %v3885_v17, %s3367_s5  ;;  %v1573_v33 = vsel %vm1565_vm14, %v3538_v42, %v1525_v22  ;;  %vm1563_vm14 = vcmp.eq.s32.totalorder %v3559_v47, 2  ;;  %v5437_v17 = vld [vmem:[#allocation18_spill] sm:$0xff] }
 0x166   : > { %5410 = vst [vmem:[#allocation45_spill] sm:$0xff] %v4037_v57  ;;  %v4043_v11 = vmax.f32 %v1069_v10, %v3918_v7  ;;  %v1524_v13 = vsel %vm1516_vm15, %v4037_v57, %v3516_v34  ;;  %vm1689_vm15 = vcmp.eq.s32.totalorder %v3491_v27, 4 }
 0x167   : > { %v4047_v31 = vpop.permute.xlu1 %930  ;;  %1216 = vrot.lane.b32.xlu0 %v3900_v6, %s3367_s5  ;;  %v1572_v43 = vsel %vm1564_vm0, %v3508_v32, %v1524_v13  ;;  %vm1518_vm0 = vcmp.eq.s32.totalorder %v3532_v40, 1 }
 0x168   : > { %5411 = vst [vmem:[#allocation46_spill] sm:$0xff] %v4043_v11 }
 0x169   : > { %v4056_v42 = vpop.permute.xlu0 %928  ;;  %1218 = vrot.lane.b32.xlu1 %v3915_v52, %s3367_s5 }
 0x16a   : > { %v1648_v34 = vsel %vm1640_vm1, %v4056_v42, %v1568_v56  ;;  %vm1566_vm1 = vcmp.eq.s32.totalorder %v3532_v40, 2 }
 0x16b   : > { %v4063_v22 = vpop.permute.xlu1 %938  ;;  %1328 = vrot.lane.b32.xlu0 %v3902_v35, %s3367_s5  ;;  %v4069_v32 = vsel %vm1688_vm2, %v3617_v1, %v1648_v34  ;;  %vm1519_vm2 = vcmp.eq.s32.totalorder %v3562_v48, 1 }
 0x16c   : > { %5412 = vst [vmem:[#allocation47_spill] sm:$0xff] %v4063_v22  ;;  %v1653_v13 = vsel %vm1645_vm3, %v4063_v22, %v1573_v33  ;;  %vm1567_vm3 = vcmp.eq.s32.totalorder %v3562_v48, 2 }
 0x16d   : > { %v4073_v10 = vpop.permute.xlu0 %936  ;;  %1330 = vrot.lane.b32.xlu1 %v3918_v7, %s3367_s5  ;;  %v4079_v58 = vsel %vm1693_vm4, %v3725_v24, %v1653_v13  ;;  %vm1642_vm4 = vcmp.eq.s32.totalorder %v3529_v39, 3 }
 0x16e   : > { %5413 = vst [vmem:[#allocation48_spill] sm:$0xff] %v4073_v10  ;;  %v1652_v38 = vsel %vm1644_vm5, %v4073_v10, %v1572_v43  ;;  %vm1690_vm5 = vcmp.eq.s32.totalorder %v3529_v39, 4 }
 0x16f   : > { %v4083_v1 = vpop.permute.xlu1 %876  ;;  %1272 = vrot.lane.b32.xlu0 %v3911_v23, %s3367_s5  ;;  %v4089_v56 = vsel %vm1692_vm6, %v3706_v63, %v1652_v38  ;;  %v5420_v23 = vld [vmem:[#allocation7_spill] sm:$0xff]  ;;  %vm1643_vm6 = vcmp.eq.s32.totalorder %v3559_v47, 3 }
 0x170   : > { %v1522_v33 = vsel %vm1514_vm7, %v4083_v1, %v3581_v53  ;;  %vm1691_vm7 = vcmp.eq.s32.totalorder %v3559_v47, 4 }
 0x171   : > { %v4094_v24 = vpop.permute.xlu0 %874  ;;  %1274 = vrot.lane.b32.xlu1 %v3931_v21, %s3367_s5  ;;  %v1570_v43 = vsel %vm1562_vm8, %v3574_v51, %v1522_v33  ;;  %v5416_v33 = vld [vmem:[#allocation11_spill] sm:$0xff]  ;;  %vm1646_vm8 = vcmp.eq.s32.totalorder %v3532_v40, 3 }
 0x172   : > { %v1521_v63 = vsel %vm1513_vm9, %v4094_v24, %v3550_v44  ;;  %vm1694_vm9 = vcmp.eq.s32.totalorder %v3532_v40, 4 }
 0x173   : > { %v1569_v53 = vsel %vm1561_vm11, %v3536_v41, %v1521_v63  ;;  %v4106_v34 = vpop.permute.xlu1 %878  ;;  %1220 = vrot.lane.b32.xlu0 %v3942_v55, %s3367_s5  ;;  %v5415_v41 = vld [vmem:[#allocation5_spill] sm:$0xff]  ;;  %vm1647_vm11 = vcmp.eq.s32.totalorder %v3562_v48, 3 }
 0x174   : > { %v1523_v51 = vsel %vm1515_vm12, %v4106_v34, %v3602_v61  ;;  %v1649_v44 = vsel %vm1641_vm13, %v4047_v31, %v1569_v53  ;;  %v5419_v53 = vld [vmem:[#allocation3_spill] sm:$0xff]  ;;  %vm1695_vm12 = vcmp.eq.s32.totalorder %v3562_v48, 4  ;;  %vm1768_vm13 = vcmp.eq.s32.totalorder %v3485_v25, 5 }
 0x175   : > { %v4115_v13 = vpop.permute.xlu0 %884  ;;  %1222 = vrot.lane.b32.xlu1 %v3957_v49, %s3367_s5  ;;  %v1571_v38 = vsel %vm1563_vm14, %v5415_v41, %v1523_v51  ;;  %v1697_v63 = vsel %vm1689_vm15, %v5416_v33, %v1649_v44  ;;  %vm1816_vm14 = vcmp.eq.s32.totalorder %v3485_v25, 6  ;;  %vm1769_vm15 = vcmp.eq.s32.totalorder %v3491_v27, 5 }
 0x176   : > { %5414 = vst [vmem:[#allocation49_spill] sm:$0xff] %v4115_v13  ;;  %v1526_v7 = vsel %vm1518_vm0, %v4115_v13, %v5417_v37  ;;  %v5421_v37 = vld [vmem:[#allocation6_spill] sm:$0xff]  ;;  %vm1817_vm0 = vcmp.eq.s32.totalorder %v3491_v27, 6 }
 0x177   : > { %v4125_v61 = vpop.permute.xlu1 %886  ;;  %1276 = vrot.lane.b32.xlu0 %v3953_v3, %s3367_s5  ;;  %v1574_v35 = vsel %vm1566_vm1, %v5419_v53, %v1526_v7  ;;  %v5422_v7 = vld [vmem:[#allocation15_spill] sm:$0xff]  ;;  %v5427_v3 = vld [vmem:[#allocation13_spill] sm:$0xff]  ;;  %vm1896_vm1 = vcmp.eq.s32.totalorder %v3485_v25, 7  ;;  %v5430_v13 = vld [vmem:[#allocation10_spill] sm:$0xff] }
 0x178   : > { %5418 = vst [vmem:[#allocation5_spill] sm:$0xff] %v4125_v61  ;;  %v1527_v21 = vsel %vm1519_vm2, %v4125_v61, %v5420_v23  ;;  %vm1944_vm2 = vcmp.eq.s32.totalorder %v3485_v25, 8 }
 0x179   : > { %v4134_v51 = vpop.permute.xlu0 %932  ;;  %1278 = vrot.lane.b32.xlu1 %v3970_v59, %s3367_s5  ;;  %v1575_v44 = vsel %vm1567_vm3, %v5421_v37, %v1527_v21  ;;  %v5424_v21 = vld [vmem:[#allocation19_spill] sm:$0xff]  ;;  %vm1897_vm3 = vcmp.eq.s32.totalorder %v3491_v27, 7 }
 0x17a   : > { %v1650_v41 = vsel %vm1642_vm4, %v4134_v51, %v1570_v43  ;;  %vm2024_vm4 = vcmp.eq.s32.totalorder %v3485_v25, 9 }
 0x17b   : > { %v4142_v33 = vpop.permute.xlu1 %934  ;;  %1332 = vrot.lane.b32.xlu0 %v3944_v20, %s3367_s5  ;;  %v1698_v23 = vsel %vm1690_vm5, %v5422_v7, %v1650_v41  ;;  %vm1945_vm5 = vcmp.eq.s32.totalorder %v3491_v27, 8 }
 0x17c   : > { %v1651_v53 = vsel %vm1643_vm6, %v4142_v33, %v1571_v38  ;;  %vm2072_vm6 = vcmp.eq.s32.totalorder %v3485_v25, 10 }
 0x17d   : > { %v4150_v59 = vpop.permute.xlu0 %940  ;;  %1334 = vrot.lane.b32.xlu1 %v3960_v29, %s3367_s5  ;;  %v1699_v43 = vsel %vm1691_vm7, %v5424_v21, %v1651_v53  ;;  %vm2152_vm7 = vcmp.eq.s32.totalorder %v3485_v25, 11 }
 0x17e   : > { %5423 = vst [vmem:[#allocation11_spill] sm:$0xff] %v4150_v59  ;;  %v1654_v37 = vsel %vm1646_vm8, %v4150_v59, %v1574_v35  ;;  %vm2025_vm8 = vcmp.eq.s32.totalorder %v3491_v27, 9 }
 0x17f   : > { %v4158_v20 = vpop.permute.xlu1 %942  ;;  %v4162_v38 = vsel %vm1694_vm9, %v3758_v18, %v1654_v37  ;;  %v5426_v18 = vld [vmem:[#allocation9_spill] sm:$0xff]  ;;  %vm2073_vm9 = vcmp.eq.s32.totalorder %v3491_v27, 10 }
 0x180   : > { %5425 = vst [vmem:[#allocation4_spill] sm:$0xff] %v4158_v20  ;;  %v1655_v41 = vsel %vm1647_vm11, %v4158_v20, %v1575_v44  ;;  %vm2200_vm11 = vcmp.eq.s32.totalorder %v3485_v25, 12 }
 0x181   : > { %v4166_v7 = vpop.permute.xlu0 %984  ;;  %v4170_v53 = vsel %vm1695_vm12, %v3777_v0, %v1655_v41  ;;  %vm2153_vm12 = vcmp.eq.s32.totalorder %v3491_v27, 11 }
 0x182   : > { %v1776_v35 = vsel %vm1768_vm13, %v4166_v7, %v4069_v32  ;;  %vm2201_vm13 = vcmp.eq.s32.totalorder %v3491_v27, 12 }
 0x183   : > { %v4175_v21 = vpop.permute.xlu1 %986  ;;  %v1824_v37 = vsel %vm1816_vm14, %v5426_v18, %v1776_v35  ;;  %vm1770_vm14 = vcmp.eq.s32.totalorder %v3529_v39, 5 }
 0x184   : > { %v1777_v44 = vsel %vm1769_vm15, %v4175_v21, %v1697_v63  ;;  %v5428_v63 = vld [vmem:[#allocation8_spill] sm:$0xff]  ;;  %vm1818_vm15 = vcmp.eq.s32.totalorder %v3529_v39, 6 }
 0x185   : > { %v4179_v29 = vpop.permute.xlu0 %1096  ;;  %v1825_v20 = vsel %vm1817_vm0, %v5427_v3, %v1777_v44  ;;  %vm1771_vm0 = vcmp.eq.s32.totalorder %v3559_v47, 5 }
 0x187   : > { %v4182_v59 = vpop.permute.xlu1 %1098 }
 0x189   : > { %v4186_v0 = vpop.permute.xlu0 %1040 }
 0x18a   : > { %v1904_v32 = vsel %vm1896_vm1, %v4186_v0, %v1824_v37  ;;  %v5429_v37 = vld [vmem:[#allocation12_spill] sm:$0xff]  ;;  %vm1819_vm1 = vcmp.eq.s32.totalorder %v3559_v47, 6 }
 0x18b   : > { %v1952_v3 = vsel %vm1944_vm2, %v5428_v63, %v1904_v32  ;;  %v4194_v41 = vpop.permute.xlu1 %1042  ;;  %vm1898_vm2 = vcmp.eq.s32.totalorder %v3529_v39, 7 }
 0x18c   : > { %v1905_v35 = vsel %vm1897_vm3, %v4194_v41, %v1825_v20  ;;  %v2032_v18 = vsel %vm2024_vm4, %v4179_v29, %v1952_v3  ;;  %v5431_v3 = vld [vmem:[#allocation14_spill] sm:$0xff]  ;;  %vm1946_vm3 = vcmp.eq.s32.totalorder %v3529_v39, 8  ;;  %vm1899_vm4 = vcmp.eq.s32.totalorder %v3559_v47, 7 }
 0x18d   : > { %v1953_v44 = vsel %vm1945_vm5, %v5429_v37, %v1905_v35  ;;  %v4203_v61 = vpop.permute.xlu0 %1152  ;;  %v2080_v32 = vsel %vm2072_vm6, %v5430_v13, %v2032_v18  ;;  %v5432_v37 = vld [vmem:[#allocation17_spill] sm:$0xff]  ;;  %vm2026_vm5 = vcmp.eq.s32.totalorder %v3529_v39, 9  ;;  %vm1947_vm6 = vcmp.eq.s32.totalorder %v3559_v47, 8 }
 0x18e   : > { %v2160_v63 = vsel %vm2152_vm7, %v4203_v61, %v2080_v32  ;;  %v2033_v11 = vsel %vm2025_vm8, %v4182_v59, %v1953_v44  ;;  %v5433_v32 = vld [vmem:[#allocation21_spill] sm:$0xff]  ;;  %vm2074_vm7 = vcmp.eq.s32.totalorder %v3529_v39, 10  ;;  %vm2154_vm8 = vcmp.eq.s32.totalorder %v3529_v39, 11 }
 0x18f   : > { %v4210_v20 = vpop.permute.xlu1 %1154  ;;  %v2081_v22 = vsel %vm2073_vm9, %v5431_v3, %v2033_v11  ;;  %v4215_v25 = vsel %vm2200_vm11, %v3810_v60, %v2160_v63  ;;  %vm2027_vm9 = vcmp.eq.s32.totalorder %v3559_v47, 9  ;;  %vm2075_vm11 = vcmp.eq.s32.totalorder %v3559_v47, 10 }
 0x190   : > { %v2161_v35 = vsel %vm2153_vm12, %v4210_v20, %v2081_v22  ;;  %vm2202_vm12 = vcmp.eq.s32.totalorder %v3529_v39, 12 }
 0x191   : > { %v4219_v13 = vpop.permute.xlu0 %988  ;;  %v4223_v18 = vsel %vm2201_vm13, %v3827_v54, %v2161_v35  ;;  %vm2155_vm13 = vcmp.eq.s32.totalorder %v3559_v47, 11 }
 0x192   : > { %v1778_v27 = vsel %vm1770_vm14, %v4219_v13, %v1698_v23  ;;  %vm2203_vm14 = vcmp.eq.s32.totalorder %v3559_v47, 12 }
 0x193   : > { %v4227_v11 = vpop.permute.xlu1 %990  ;;  %v1826_v60 = vsel %vm1818_vm15, %v5432_v37, %v1778_v27  ;;  %vm1772_vm15 = vcmp.eq.s32.totalorder %v3488_v26, 5 }
 0x194   : > { %v1779_v44 = vsel %vm1771_vm0, %v4227_v11, %v1699_v43  ;;  %v5434_v43 = vld [vmem:[#allocation16_spill] sm:$0xff]  ;;  %vm1820_vm0 = vcmp.eq.s32.totalorder %v3488_v26, 6 }
 0x195   : > { %v4231_v22 = vpop.permute.xlu0 %1100  ;;  %v1827_v63 = vsel %vm1819_vm1, %v5433_v32, %v1779_v44  ;;  %vm1773_vm1 = vcmp.eq.s32.totalorder %v3494_v28, 5 }
 0x197   : > { %v4234_v3 = vpop.permute.xlu1 %1102 }
 0x199   : > { %v4238_v54 = vpop.permute.xlu0 %1044 }
 0x19a   : > { %v1906_v23 = vsel %vm1898_vm2, %v4238_v54, %v1826_v60  ;;  %v5436_v60 = vld [vmem:[#allocation20_spill] sm:$0xff]  ;;  %vm1821_vm2 = vcmp.eq.s32.totalorder %v3494_v28, 6 }
 0x19b   : > { %v1954_v35 = vsel %vm1946_vm3, %v5434_v43, %v1906_v23  ;;  %v4246_v27 = vpop.permute.xlu1 %1046  ;;  %vm1900_vm3 = vcmp.eq.s32.totalorder %v3488_v26, 7 }
 0x19c   : > { %5435 = vst [vmem:[#allocation3_spill] sm:$0xff] %v4246_v27  ;;  %v1907_v37 = vsel %vm1899_vm4, %v4246_v27, %v1827_v63  ;;  %v2034_v44 = vsel %vm2026_vm5, %v4231_v22, %v1954_v35  ;;  %v5438_v35 = vld [vmem:[#allocation22_spill] sm:$0xff]  ;;  %vm1948_vm4 = vcmp.eq.s32.totalorder %v3488_v26, 8  ;;  %vm1901_vm5 = vcmp.eq.s32.totalorder %v3494_v28, 7 }
 0x19d   : > { %v1955_v32 = vsel %vm1947_vm6, %v5436_v60, %v1907_v37  ;;  %v4255_v10 = vpop.permute.xlu0 %1156  ;;  %v2082_v23 = vsel %vm2074_vm7, %v5437_v17, %v2034_v44  ;;  %vm2028_vm6 = vcmp.eq.s32.totalorder %v3488_v26, 9  ;;  %vm1949_vm7 = vcmp.eq.s32.totalorder %v3494_v28, 8 }
 0x19e   : > { %v2162_v43 = vsel %vm2154_vm8, %v4255_v10, %v2082_v23  ;;  %v2035_v57 = vsel %vm2027_vm9, %v4234_v3, %v1955_v32  ;;  %vm2076_vm8 = vcmp.eq.s32.totalorder %v3488_v26, 10  ;;  %vm2156_vm9 = vcmp.eq.s32.totalorder %v3488_v26, 11 }
 0x19f   : > { %v4262_v63 = vpop.permute.xlu1 %1158  ;;  %v2083_v27 = vsel %vm2075_vm11, %v5438_v35, %v2035_v57  ;;  %v4267_v39 = vsel %vm2202_vm12, %v3856_v50, %v2162_v43  ;;  %v5440_v50 = vld [vmem:[#allocation24_spill] sm:$0xff]  ;;  %vm2029_vm11 = vcmp.eq.s32.totalorder %v3494_v28, 9  ;;  %vm2077_vm12 = vcmp.eq.s32.totalorder %v3494_v28, 10 }
 0x1a0   : > { %v2163_v37 = vsel %vm2155_vm13, %v4262_v63, %v2083_v27  ;;  %vm2204_vm13 = vcmp.eq.s32.totalorder %v3488_v26, 12 }
 0x1a1   : > { %v4271_v17 = vpop.permute.xlu0 %992  ;;  %v4275_v44 = vsel %vm2203_vm14, %v3871_v15, %v2163_v37  ;;  %vm2157_vm14 = vcmp.eq.s32.totalorder %v3494_v28, 11 }
 0x1a2   : > { %v1780_v47 = vsel %vm1772_vm15, %v4271_v17, %v4089_v56 }
 0x1a3   : > { %v4280_v57 = vpop.permute.xlu1 %994  ;;  %v1828_v60 = vsel %vm1820_vm0, %v5440_v50, %v1780_v47  ;;  %v5443_v50 = vld [vmem:[#allocation25_spill] sm:$0xff]  ;;  %vm1774_vm0 = vcmp.eq.s32.totalorder %v3532_v40, 5 }
 0x1a4   : > { %5439 = vst [vmem:[#allocation7_spill] sm:$0xff] %v4280_v57  ;;  %v1781_v27 = vsel %vm1773_vm1, %v4280_v57, %v4079_v58  ;;  %v4316_v57 = vld [vmem:[%s3482_s4 + $0x28] sm:$0xff]  ;;  %vm1822_vm1 = vcmp.eq.s32.totalorder %v3532_v40, 6 }
 0x1a5   : > { %v4285_v32 = vpop.permute.xlu0 %1104  ;;  %v1829_v23 = vsel %vm1821_vm2, %v3738_v45, %v1781_v27  ;;  %v5442_v45 = vld [vmem:[#allocation23_spill] sm:$0xff]  ;;  %vm2205_vm15 = vcmp.eq.s32.totalorder %v4316_v57, 12  ;;  %vm1775_vm2 = vcmp.eq.s32.totalorder %v3562_v48, 5 }
 0x1a7   : > { %v4288_v43 = vpop.permute.xlu1 %1106 }
 0x1a9   : > { %v4292_v15 = vpop.permute.xlu0 %1048 }
 0x1aa   : > { %5441 = vst [vmem:[#allocation6_spill] sm:$0xff] %v4292_v15  ;;  %v1908_v56 = vsel %vm1900_vm3, %v4292_v15, %v1828_v60  ;;  %vm1823_vm3 = vcmp.eq.s32.totalorder %v3562_v48, 6 }
 0x1ab   : > { %v1956_v58 = vsel %vm1948_vm4, %v5442_v45, %v1908_v56  ;;  %v4300_v35 = vpop.permute.xlu1 %1050  ;;  %vm1902_vm4 = vcmp.eq.s32.totalorder %v3532_v40, 7 }
 0x1ac   : > { %v1909_v37 = vsel %vm1901_vm5, %v4300_v35, %v1829_v23  ;;  %v2036_v47 = vsel %vm2028_vm6, %v4285_v32, %v1956_v58  ;;  %vm1950_vm5 = vcmp.eq.s32.totalorder %v3532_v40, 8  ;;  %vm1903_vm6 = vcmp.eq.s32.totalorder %v3562_v48, 7 }
 0x1ad   : > { %v1957_v60 = vsel %vm1949_vm7, %v5443_v50, %v1909_v37  ;;  %v4309_v27 = vpop.permute.xlu0 %1160  ;;  %v2084_v56 = vsel %vm2076_vm8, %v3722_v19, %v2036_v47  ;;  %vm1951_vm7 = vcmp.eq.s32.totalorder %v3562_v48, 8 }
 0x1ae   : > { %v2164_v45 = vsel %vm2156_vm9, %v4309_v27, %v2084_v56  ;;  %v2037_v15 = vsel %vm2029_vm11, %v4288_v43, %v1957_v60 }
 0x1af   : > { %v4319_v23 = vpop.permute.xlu1 %1162  ;;  %v2085_v26 = vsel %vm2077_vm12, %v3741_v8, %v2037_v15  ;;  %v4324_v58 = vsel %vm2204_vm13, %v3900_v6, %v2164_v45  ;;  %vm2031_vm12 = vcmp.eq.s32.totalorder %v3562_v48, 9  ;;  %vm2079_vm13 = vcmp.eq.s32.totalorder %v3562_v48, 10 }
 0x1b0   : > { %v2165_v19 = vsel %vm2157_vm14, %v4319_v23, %v2085_v26  ;;  %v5445_v26 = vld [vmem:[#allocation27_spill] sm:$0xff] }
 0x1b1   : > { %v4328_v28 = vpop.permute.xlu0 %996  ;;  %v4332_v37 = vsel %vm2205_vm15, %v3915_v52, %v2165_v19 }
 0x1b2   : > { %v1782_v8 = vsel %vm1774_vm0, %v4328_v28, %v4162_v38  ;;  %v5444_v38 = vld [vmem:[#allocation26_spill] sm:$0xff] }
 0x1b3   : > { %v4337_v15 = vpop.permute.xlu1 %998  ;;  %v1830_v6 = vsel %vm1822_vm1, %v3771_v46, %v1782_v8  ;;  %v4354_v46 = vld [vmem:[%s3482_s4 + $0x30] sm:$0xff] }
 0x1b4   : > { %v1783_v47 = vsel %vm1775_vm2, %v4337_v15, %v4170_v53  ;;  %vm2030_vm8 = vcmp.eq.s32.totalorder %v4354_v46, 9  ;;  %v1120_v53 = vmax.f32 %v5444_v38, %v4022_v12  ;;  %vm2078_vm9 = vcmp.eq.s32.totalorder %v4354_v46, 10 }
 0x1b5   : > { %v4342_v50 = vpop.permute.xlu0 %1108  ;;  %v1831_v60 = vsel %vm1823_vm3, %v3790_v2, %v1783_v47  ;;  %vm2158_vm11 = vcmp.eq.s32.totalorder %v4354_v46, 11  ;;  %vm2206_vm14 = vcmp.eq.s32.totalorder %v4354_v46, 12  ;;  %v1121_v12 = vmax.f32 %v5445_v26, %v4047_v31 }
 0x1b6   : > { %v1136_v19 = vmax.f32 %v1120_v53, %v4056_v42 }
 0x1b7   : > { %v4345_v56 = vpop.permute.xlu1 %1110  ;;  %v1137_v31 = vmax.f32 %v1121_v12, %v4094_v24 }
 0x1b8   : > { %v1176_v42 = vmax.f32 %v1136_v19, %v4166_v7 }
 0x1b9   : > { %v4349_v52 = vpop.permute.xlu0 %1052  ;;  %v1177_v7 = vmax.f32 %v1137_v31, %v4175_v21 }
 0x1ba   : > { %v1910_v2 = vsel %vm1902_vm4, %v4349_v52, %v1830_v6  ;;  %v1192_v26 = vmax.f32 %v1176_v42, %v4179_v29 }
 0x1bb   : > { %v1958_v40 = vsel %vm1950_vm5, %v3760_v14, %v1910_v2  ;;  %v4363_v45 = vpop.permute.xlu1 %1054  ;;  %v4380_v2 = vld [vmem:[%s3482_s4 + $0x38] sm:$0xff] }
 0x1bc   : > { %v1911_v8 = vsel %vm1903_vm6, %v4363_v45, %v1831_v60  ;;  %v2038_v6 = vsel %vm2030_vm8, %v4342_v50, %v1958_v40  ;;  %vm2159_vm15 = vcmp.eq.s32.totalorder %v4380_v2, 11  ;;  %vm2207_vm0 = vcmp.eq.s32.totalorder %v4380_v2, 12  ;;  %v3249_v40 = vld [vmem:[%s3482_s4] sm:$0xff] }
 0x1bd   : > { %v1959_v14 = vsel %vm1951_vm7, %v3780_v30, %v1911_v8  ;;  %v4376_v47 = vpop.permute.xlu0 %1164  ;;  %v2086_v38 = vsel %vm2078_vm9, %v3774_v9, %v2038_v6  ;;  %vm2280_vm1 = vcmp.eq.s32.totalorder %v3249_v40, 13  ;;  %vm2328_vm2 = vcmp.eq.s32.totalorder %v3249_v40, 14  ;;  %v4407_v8 = vld [vmem:[%s3482_s4 + $0x8] sm:$0xff] }
 0x1be   : > { %v2166_v60 = vsel %vm2158_vm11, %v4376_v47, %v2086_v38  ;;  %v2039_v30 = vsel %vm2031_vm12, %v4345_v56, %v1959_v14  ;;  %vm2281_vm3 = vcmp.eq.s32.totalorder %v4407_v8, 13  ;;  %vm2329_vm4 = vcmp.eq.s32.totalorder %v4407_v8, 14 }
 0x1bf   : > { %v4392_v9 = vpop.permute.xlu1 %1166  ;;  %v2087_v53 = vsel %vm2079_vm13, %v3793_v4, %v2039_v30  ;;  %v4401_v24 = vsel %vm2206_vm14, %v3942_v55, %v2166_v60  ;;  %v1193_v4 = vmax.f32 %v1177_v7, %v4182_v59  ;;  %v1232_v55 = vmax.f32 %v1192_v26, %v4186_v0 }
 0x1c0   : > { %v2167_v12 = vsel %vm2159_vm15, %v4392_v9, %v2087_v53  ;;  %vm2408_vm5 = vcmp.eq.s32.totalorder %v3249_v40, 15  ;;  %vm2456_vm6 = vcmp.eq.s32.totalorder %v3249_v40, 16  ;;  %vm2536_vm7 = vcmp.eq.s32.totalorder %v3249_v40, 17 }
 0x1c1   : > { %v1209_v19 = vpop.permute.xlu0 %1208  ;;  %v4413_v48 = vsel %vm2207_vm0, %v3957_v49, %v2167_v12  ;;  %v1233_v14 = vmax.f32 %v1193_v4, %v4194_v41  ;;  %v1248_v38 = vmax.f32 %v1232_v55, %v4203_v61  ;;  %v5446_v49 = vld [vmem:[#allocation32_spill] sm:$0xff]  ;;  %vm2584_vm8 = vcmp.eq.s32.totalorder %v3249_v40, 18  ;;  %v4447_v55 = vld [vmem:[%s3482_s4 + $0x18] sm:$0xff] }
 0x1c2   : > { %v2288_v21 = vsel %vm2280_vm1, %v1209_v19, %v4215_v25  ;;  %v1122_v42 = vmax.f32 %v5446_v49, %v4083_v1  ;;  %vm2409_vm9 = vcmp.eq.s32.totalorder %v4407_v8, 15  ;;  %vm2457_vm11 = vcmp.eq.s32.totalorder %v4407_v8, 16 }
 0x1c3   : > { %v1211_v29 = vpop.permute.xlu1 %1210  ;;  %v2336_v6 = vsel %vm2328_vm2, %v3823_v36, %v2288_v21  ;;  %v1249_v0 = vmax.f32 %v1233_v14, %v4210_v20  ;;  %v1288_v25 = vmax.f32 %v1248_v38, %v1209_v19  ;;  %v5447_v36 = vld [vmem:[#allocation33_spill] sm:$0xff]  ;;  %vm2537_vm12 = vcmp.eq.s32.totalorder %v4407_v8, 17  ;;  %v1353_v38 = vld [vmem:[#allocation2 + $0x98] sm:$0xff] }
 0x1c4   : > { %v2289_v31 = vsel %vm2281_vm3, %v1211_v29, %v4223_v18  ;;  %v1123_v41 = vmax.f32 %v5447_v36, %v4106_v34  ;;  %v1138_v61 = vmax.f32 %v1122_v42, %v4134_v51  ;;  %vm2585_vm13 = vcmp.eq.s32.totalorder %v4407_v8, 18  ;;  %v4437_v34 = vld [vmem:[%s3482_s4 + $0x10] sm:$0xff]  ;;  %v5451_v8 = vld [vmem:[#allocation38_spill] sm:$0xff] }
 0x1c5   : > { %v1321_v60 = vpop.permute.xlu0 %1320  ;;  %v2337_v59 = vsel %vm2329_vm4, %v3840_v5, %v2289_v31  ;;  %v1289_v1 = vmax.f32 %v1249_v0, %v1211_v29  ;;  %vm2282_vm14 = vcmp.eq.s32.totalorder %v4437_v34, 13  ;;  %vm2330_vm15 = vcmp.eq.s32.totalorder %v4437_v34, 14  ;;  %v5449_v0 = vld [vmem:[#allocation3_spill] sm:$0xff] }
 0x1c6   : > { %v1304_v18 = vmax.f32 %v1288_v25, %v1321_v60  ;;  %v1139_v5 = vmax.f32 %v1123_v41, %v4142_v33  ;;  %v1178_v20 = vmax.f32 %v1138_v61, %v4219_v13  ;;  %v1352_v33 = vld [vmem:[#allocation2 + $0x48] sm:$0xff]  ;;  %vm2283_vm0 = vcmp.eq.s32.totalorder %v4447_v55, 13  ;;  %v5450_v41 = vld [vmem:[#allocation45_spill] sm:$0xff] }
 0x1c7   : > { %v1323_v30 = vpop.permute.xlu1 %1322  ;;  %vm2331_vm1 = vcmp.eq.s32.totalorder %v4447_v55, 14  ;;  %v1124_v61 = vmax.f32 %v5451_v8, %v5450_v41  ;;  %vm2410_vm2 = vcmp.eq.s32.totalorder %v4437_v34, 15  ;;  %vm2458_vm3 = vcmp.eq.s32.totalorder %v4437_v34, 16 }
 0x1c8   : > { %v1305_v51 = vmax.f32 %v1289_v1, %v1323_v30  ;;  %v1179_v12 = vmax.f32 %v1139_v5, %v4227_v11  ;;  %v1194_v19 = vmax.f32 %v1178_v20, %v4231_v22  ;;  %v5452_v1 = vld [vmem:[#allocation31_spill] sm:$0xff]  ;;  %vm2538_vm4 = vcmp.eq.s32.totalorder %v4437_v34, 17 }
 0x1c9   : > { %v1265_v53 = vpop.permute.xlu0 %1264 }
 0x1ca   : > { %v1344_v7 = vmax.f32 %v1304_v18, %v1265_v53  ;;  %v2416_v26 = vsel %vm2408_vm5, %v1265_v53, %v2336_v6  ;;  %v1195_v11 = vmax.f32 %v1179_v12, %v4234_v3  ;;  %v1234_v49 = vmax.f32 %v1194_v19, %v4238_v54  ;;  %v5456_v12 = vld [vmem:[#allocation37_spill] sm:$0xff] }
 0x1cb   : > { %v2464_v13 = vsel %vm2456_vm6, %v3812_v62, %v2416_v26  ;;  %v1267_v4 = vpop.permute.xlu1 %1266  ;;  %vm2586_vm5 = vcmp.eq.s32.totalorder %v4437_v34, 18  ;;  %vm2411_vm6 = vcmp.eq.s32.totalorder %v4447_v55, 15  ;;  %v5455_v26 = vld [vmem:[#allocation46_spill] sm:$0xff] }
 0x1cc   : > { %v4450_v21 = vmax.f32 %v1344_v7, %v1352_v33  ;;  %v2544_v29 = vsel %vm2536_vm7, %v1321_v60, %v2464_v13  ;;  %v1345_v6 = vmax.f32 %v1305_v51, %v1267_v4  ;;  %v2417_v14 = vsel %vm2409_vm9, %v1267_v4, %v2337_v59  ;;  %v5448_v59 = vld [vmem:[#allocation29_spill] sm:$0xff] }
 0x1cd   : > { %v4457_v22 = vsel %vm2584_vm8, %v1352_v33, %v2544_v29  ;;  %v2465_v62 = vsel %vm2457_vm11, %v3830_v16, %v2417_v14  ;;  %v1213_v31 = vpop.permute.xlu0 %1212  ;;  %v1235_v25 = vmax.f32 %v1195_v11, %v5449_v0  ;;  %v1250_v36 = vmax.f32 %v1234_v49, %v4255_v10  ;;  %v5453_v10 = vld [vmem:[#allocation48_spill] sm:$0xff]  ;;  %v4505_v29 = vld [vmem:[%s3482_s4 + $0x20] sm:$0xff] }
 0x1ce   : > { %v4464_v42 = vmax.f32 %v1345_v6, %v1353_v38  ;;  %v2545_v60 = vsel %vm2537_vm12, %v1323_v30, %v2465_v62  ;;  %v2290_v3 = vsel %vm2282_vm14, %v1213_v31, %v4267_v39  ;;  %1424 = vrot.lane.b32.xlu0 %v4450_v21, %s3367_s5  ;;  %v1140_v53 = vmax.f32 %v1124_v61, %v5453_v10  ;;  %v1354_v49 = vld [vmem:[#allocation2 + $0xe8] sm:$0xff]  ;;  %v5462_v61 = vld [vmem:[#allocation6_spill] sm:$0xff] }
 0x1cf   : > { %v4475_v16 = vsel %vm2585_vm13, %v1353_v38, %v2545_v60  ;;  %v1215_v40 = vpop.permute.xlu1 %1214  ;;  %v2338_v54 = vsel %vm2330_vm15, %v5448_v59, %v2290_v3  ;;  %v1251_v5 = vmax.f32 %v1235_v25, %v4262_v63  ;;  %v1290_v20 = vmax.f32 %v1250_v36, %v1213_v31  ;;  %v5454_v63 = vld [vmem:[#allocation47_spill] sm:$0xff]  ;;  %v1355_v25 = vld [vmem:[#allocation2 + $0x138] sm:$0xff] }
 0x1d0   : > { %v2291_v39 = vsel %vm2283_vm0, %v1215_v40, %v4275_v44  ;;  %1426 = vrot.lane.b32.xlu1 %v4464_v42, %s3367_s5  ;;  %vm2459_vm7 = vcmp.eq.s32.totalorder %v4447_v55, 16  ;;  %v5457_v19 = vmax.f32 %v5455_v26, %v5456_v12  ;;  %v1180_v13 = vmax.f32 %v1140_v53, %v4271_v17  ;;  %v5458_v38 = vld [vmem:[#allocation7_spill] sm:$0xff]  ;;  %v5459_v17 = vld [vmem:[#allocation28_spill] sm:$0xff]  ;;  %v5461_v36 = vld [vmem:[#allocation30_spill] sm:$0xff] }
 0x1d1   : > { %v1325_v30 = vpop.permute.xlu0 %1324  ;;  %v2339_v18 = vsel %vm2331_vm1, %v5452_v1, %v2291_v39  ;;  %v1291_v44 = vmax.f32 %v1251_v5, %v1215_v40  ;;  %vm2539_vm8 = vcmp.eq.s32.totalorder %v4447_v55, 17  ;;  %vm2284_vm9 = vcmp.eq.s32.totalorder %v4505_v29, 13 }
 0x1d2   : > { %v1306_v7 = vmax.f32 %v1290_v20, %v1325_v30  ;;  %v1141_v33 = vmax.f32 %v5457_v19, %v5454_v63  ;;  %vm2587_vm11 = vcmp.eq.s32.totalorder %v4447_v55, 18  ;;  %v1196_v31 = vmax.f32 %v1180_v13, %v4285_v32  ;;  %v5466_v63 = vld [vmem:[#allocation35_spill] sm:$0xff]  ;;  %v5468_v19 = vld [vmem:[#allocation44_spill] sm:$0xff] }
 0x1d3   : > { %v1327_v51 = vpop.permute.xlu1 %1326  ;;  %vm2332_vm12 = vcmp.eq.s32.totalorder %v4505_v29, 14  ;;  %vm2285_vm13 = vcmp.eq.s32.totalorder %v4316_v57, 13  ;;  %vm2333_vm14 = vcmp.eq.s32.totalorder %v4316_v57, 14  ;;  %vm2412_vm15 = vcmp.eq.s32.totalorder %v4505_v29, 15  ;;  %v5469_v13 = vld [vmem:[#allocation11_spill] sm:$0xff] }
 0x1d4   : > { %v1307_v6 = vmax.f32 %v1291_v44, %v1327_v51  ;;  %v1181_v62 = vmax.f32 %v1141_v33, %v5458_v38  ;;  %v5465_v44 = vld [vmem:[#allocation43_spill] sm:$0xff]  ;;  %vm2460_vm0 = vcmp.eq.s32.totalorder %v4505_v29, 16  ;;  %vm2540_vm1 = vcmp.eq.s32.totalorder %v4505_v29, 17 }
 0x1d5   : > { %v1269_v4 = vpop.permute.xlu0 %1268 }
 0x1d6   : > { %v1346_v14 = vmax.f32 %v1306_v7, %v1269_v4  ;;  %v2418_v11 = vsel %vm2410_vm2, %v1269_v4, %v2338_v54  ;;  %v1197_v8 = vmax.f32 %v1181_v62, %v4288_v43  ;;  %vm2588_vm2 = vcmp.eq.s32.totalorder %v4505_v29, 18 }
 0x1d7   : > { %v2466_v60 = vsel %vm2458_vm3, %v5459_v17, %v2418_v11  ;;  %v1271_v3 = vpop.permute.xlu1 %1270  ;;  %vm2413_vm3 = vcmp.eq.s32.totalorder %v4316_v57, 15 }
 0x1d8   : > { %v4517_v40 = vmax.f32 %v1346_v14, %v1354_v49  ;;  %v2546_v59 = vsel %vm2538_vm4, %v1325_v30, %v2466_v60  ;;  %v1347_v54 = vmax.f32 %v1307_v6, %v1271_v3  ;;  %v2419_v0 = vsel %vm2411_vm6, %v1271_v3, %v2339_v18 }
 0x1d9   : > { %v4525_v32 = vsel %vm2586_vm5, %v1354_v49, %v2546_v59  ;;  %v2467_v39 = vsel %vm2459_vm7, %v5461_v36, %v2419_v0  ;;  %v1217_v41 = vpop.permute.xlu0 %1216  ;;  %v1236_v30 = vmax.f32 %v1196_v31, %v5462_v61  ;;  %v1237_v43 = vmax.f32 %v1197_v8, %v4300_v35  ;;  %v1356_v59 = vld [vmem:[#allocation2 + $0x188] sm:$0xff] }
 0x1da   : > { %5460 = vst [vmem:[#allocation15_spill] sm:$0xff] %v4525_v32  ;;  %v4534_v1 = vmax.f32 %v1347_v54, %v1355_v25  ;;  %v2547_v34 = vsel %vm2539_vm8, %v1327_v51, %v2467_v39  ;;  %1428 = vrot.lane.b32.xlu0 %v4517_v40, %s3367_s5  ;;  %v2292_v5 = vsel %vm2284_vm9, %v1217_v41, %v4324_v58  ;;  %v5464_v51 = vld [vmem:[#allocation49_spill] sm:$0xff]  ;;  %vm2461_vm4 = vcmp.eq.s32.totalorder %v4316_v57, 16  ;;  %v5471_v54 = vld [vmem:[#allocation34_spill] sm:$0xff]  ;;  %v5473_v8 = vld [vmem:[#allocation36_spill] sm:$0xff] }
 0x1db   : > { %v4542_v18 = vsel %vm2587_vm11, %v1355_v25, %v2547_v34  ;;  %v1219_v20 = vpop.permute.xlu1 %1218  ;;  %v1252_v10 = vmax.f32 %v1236_v30, %v4309_v27  ;;  %v1126_v7 = vmax.f32 %v5465_v44, %v5464_v51  ;;  %v2340_v26 = vsel %vm2332_vm12, %v5466_v63, %v2292_v5  ;;  %v4926_v32 = vld [vmem:[#allocation2 + $0x1a8] sm:$0xff] }
 0x1dc   : > { %5463 = vst [vmem:[#allocation19_spill] sm:$0xff] %v4542_v18  ;;  %v2293_v53 = vsel %vm2285_vm13, %v1219_v20, %v4332_v37  ;;  %1430 = vrot.lane.b32.xlu1 %v4534_v1, %s3367_s5  ;;  %v1253_v35 = vmax.f32 %v1237_v43, %v4319_v23  ;;  %v5467_v37 = vld [vmem:[#allocation5_spill] sm:$0xff]  ;;  %v5470_v23 = vld [vmem:[#allocation4_spill] sm:$0xff]  ;;  %vm2541_vm5 = vcmp.eq.s32.totalorder %v4316_v57, 17  ;;  %vm2286_vm6 = vcmp.eq.s32.totalorder %v4354_v46, 13  ;;  %5488 = vst [vmem:[#allocation22_spill] sm:$0xff] %v4926_v32 }
 0x1dd   : > { %v1329_v55 = vpop.permute.xlu0 %1328  ;;  %v2341_v58 = vsel %vm2333_vm14, %v5456_v12, %v2293_v53  ;;  %v1292_v27 = vmax.f32 %v1252_v10, %v1217_v41  ;;  %v1127_v33 = vmax.f32 %v5468_v19, %v5467_v37  ;;  %v1142_v4 = vmax.f32 %v1126_v7, %v5469_v13 }
 0x1de   : > { %v1293_v14 = vmax.f32 %v1253_v35, %v1219_v20  ;;  %vm2589_vm7 = vcmp.eq.s32.totalorder %v4316_v57, 18  ;;  %vm2334_vm8 = vcmp.eq.s32.totalorder %v4354_v46, 14  ;;  %vm2287_vm9 = vcmp.eq.s32.totalorder %v4380_v2, 13  ;;  %v5475_v57 = vld [vmem:[#allocation40_spill] sm:$0xff] }
 0x1df   : > { %v1331_v6 = vpop.permute.xlu1 %1330  ;;  %v1308_v11 = vmax.f32 %v1292_v27, %v1329_v55  ;;  %v1143_v12 = vmax.f32 %v1127_v33, %v5470_v23  ;;  %v1182_v38 = vmax.f32 %v1142_v4, %v4328_v28  ;;  %vm2335_vm11 = vcmp.eq.s32.totalorder %v4380_v2, 14  ;;  %v5478_v33 = vld [vmem:[#allocation41_spill] sm:$0xff] }
 0x1e0   : > { %v1309_v31 = vmax.f32 %v1293_v14, %v1331_v6  ;;  %vm2414_vm12 = vcmp.eq.s32.totalorder %v4354_v46, 15  ;;  %vm2462_vm13 = vcmp.eq.s32.totalorder %v4354_v46, 16  ;;  %vm2415_vm14 = vcmp.eq.s32.totalorder %v4380_v2, 15 }
 0x1e1   : > { %v1273_v62 = vpop.permute.xlu0 %1272  ;;  %v1183_v60 = vmax.f32 %v1143_v12, %v4337_v15  ;;  %v1198_v3 = vmax.f32 %v1182_v38, %v4342_v50  ;;  %v1357_v50 = vld [vmem:[#allocation2 + $0x1d8] sm:$0xff] }
 0x1e2   : > { %v1348_v49 = vmax.f32 %v1308_v11, %v1273_v62  ;;  %v2420_v17 = vsel %vm2412_vm15, %v1273_v62, %v2340_v26  ;;  %vm2463_vm15 = vcmp.eq.s32.totalorder %v4380_v2, 16  ;;  %v5477_v26 = vld [vmem:[#allocation39_spill] sm:$0xff]  ;;  %v1359_v62 = vld [vmem:[#allocation2 + $0x278] sm:$0xff] }
 0x1e3   : > { %v2468_v28 = vsel %vm2460_vm0, %v5471_v54, %v2420_v17  ;;  %v1275_v0 = vpop.permute.xlu1 %1274  ;;  %v1199_v34 = vmax.f32 %v1183_v60, %v4345_v56  ;;  %v1238_v5 = vmax.f32 %v1198_v3, %v4349_v52  ;;  %vm2542_vm0 = vcmp.eq.s32.totalorder %v4354_v46, 17  ;;  %v4653_v3 = vld [vmem:[#allocation2 + $0x28] sm:$0xff]  ;;  %v4657_v54 = vld [vmem:[#allocation2 + $0x30] sm:$0xff] }
 0x1e4   : > { %v4583_v25 = vmax.f32 %v1348_v49, %v1356_v59  ;;  %v2548_v36 = vsel %vm2540_vm1, %v1329_v55, %v2468_v28  ;;  %v1349_v39 = vmax.f32 %v1309_v31, %v1275_v0  ;;  %v2421_v41 = vsel %vm2413_vm3, %v1275_v0, %v2341_v58  ;;  %v4661_v0 = vld [vmem:[#allocation2 + $0x38] sm:$0xff] }
 0x1e5   : > { %v4591_v15 = vsel %vm2588_vm2, %v1356_v59, %v2548_v36  ;;  %v2469_v61 = vsel %vm2461_vm4, %v5473_v8, %v2421_v41  ;;  %v1221_v30 = vpop.permute.xlu0 %1220  ;;  %v1239_v56 = vmax.f32 %v1199_v34, %v4363_v45  ;;  %v1254_v52 = vmax.f32 %v1238_v5, %v4376_v47  ;;  %v4667_v41 = vld [vmem:[#allocation2 + $0x8] sm:$0xff]  ;;  %v4671_v8 = vld [vmem:[#allocation2 + $0x40] sm:$0xff]  ;;  %v4679_v5 = vld [vmem:[#allocation2 + $0x58] sm:$0xff] }
 0x1e6   : > { %5472 = vst [vmem:[#allocation9_spill] sm:$0xff] %v4591_v15  ;;  %v4600_v20 = vmax.f32 %v1349_v39, %v1357_v50  ;;  %v2549_v29 = vsel %vm2541_vm5, %v1331_v6, %v2469_v61  ;;  %1432 = vrot.lane.b32.xlu0 %v4583_v25, %s3367_s5  ;;  %v2294_v10 = vsel %vm2286_vm6, %v1221_v30, %v4401_v24  ;;  %v5476_v24 = vld [vmem:[#allocation42_spill] sm:$0xff]  ;;  %vm2590_vm1 = vcmp.eq.s32.totalorder %v4354_v46, 18  ;;  %v1358_v6 = vld [vmem:[#allocation2 + $0x228] sm:$0xff] }
 0x1e7   : > { %v4608_v43 = vsel %vm2589_vm7, %v1357_v50, %v2549_v29  ;;  %v1223_v53 = vpop.permute.xlu1 %1222  ;;  %v2342_v44 = vsel %vm2334_vm8, %v5475_v57, %v2294_v10  ;;  %v1255_v45 = vmax.f32 %v1239_v56, %v4392_v9  ;;  %v1294_v47 = vmax.f32 %v1254_v52, %v1221_v30  ;;  %v4675_v30 = vld [vmem:[#allocation2 + $0x50] sm:$0xff]  ;;  %v4683_v10 = vld [vmem:[#allocation2 + $0x78] sm:$0xff]  ;;  %v4687_v56 = vld [vmem:[#allocation2 + $0x80] sm:$0xff] }
 0x1e8   : > { %5474 = vst [vmem:[#allocation13_spill] sm:$0xff] %v4608_v43  ;;  %v2295_v51 = vsel %vm2287_vm9, %v1223_v53, %v4413_v48  ;;  %1434 = vrot.lane.b32.xlu1 %v4600_v20, %s3367_s5  ;;  %vm2543_vm2 = vcmp.eq.s32.totalorder %v4380_v2, 17  ;;  %vm2591_vm3 = vcmp.eq.s32.totalorder %v4380_v2, 18  ;;  %v4649_v2 = vld [vmem:[#allocation2] sm:$0xff] }
 0x1e9   : > { %v1277_v7 = vpop.permute.xlu0 %1276  ;;  %v2343_v55 = vsel %vm2335_vm11, %v5476_v24, %v2295_v51  ;;  %v1295_v35 = vmax.f32 %v1255_v45, %v1223_v53  ;;  %v4691_v51 = vld [vmem:[#allocation2 + $0x88] sm:$0xff]  ;;  %v4699_v45 = vld [vmem:[#allocation2 + $0x10] sm:$0xff] }
 0x1ea   : > { %v2422_v48 = vsel %vm2414_vm12, %v1277_v7, %v2342_v44  ;;  %v1310_v27 = vmax.f32 %v1294_v47, %v1277_v7  ;;  %v4695_v44 = vld [vmem:[#allocation2 + $0x90] sm:$0xff] }
 0x1eb   : > { %v1279_v63 = vpop.permute.xlu1 %1278  ;;  %v2470_v58 = vsel %vm2462_vm13, %v5477_v26, %v2422_v48 }
 0x1ec   : > { %v2423_v37 = vsel %vm2415_vm14, %v1279_v63, %v2343_v55  ;;  %v1311_v9 = vmax.f32 %v1295_v35, %v1279_v63  ;;  %v4703_v63 = vld [vmem:[#allocation2 + $0x60] sm:$0xff] }
 0x1ed   : > { %v1333_v19 = vpop.permute.xlu0 %1332  ;;  %v2471_v13 = vsel %vm2463_vm15, %v5478_v33, %v2423_v37 }
 0x1ee   : > { %v1350_v4 = vmax.f32 %v1310_v27, %v1333_v19  ;;  %v2550_v14 = vsel %vm2542_vm0, %v1333_v19, %v2470_v58 }
 0x1ef   : > { %v4635_v11 = vsel %vm2590_vm1, %v1358_v6, %v2550_v14  ;;  %v1335_v23 = vpop.permute.xlu1 %1334 }
 0x1f0   : > { %5479 = vst [vmem:[#allocation8_spill] sm:$0xff] %v4635_v11  ;;  %v4637_v12 = vmax.f32 %v1350_v4, %v1358_v6  ;;  %v1351_v38 = vmax.f32 %v1311_v9, %v1335_v23  ;;  %v2551_v31 = vsel %vm2543_vm2, %v1335_v23, %v2471_v13  ;;  %v4713_v6 = vld [vmem:[#allocation2 + $0x18] sm:$0xff]  ;;  %v4717_v23 = vld [vmem:[#allocation2 + $0x68] sm:$0xff]  ;;  %v4868_v11 = vld [vmem:[#allocation2 + $0x130] sm:$0xff] }
 0x1f1   : > { %v4639_v46 = vsel %vm2591_vm3, %v1359_v62, %v2551_v31 }
 0x1f2   : > { %5480 = vst [vmem:[#allocation12_spill] sm:$0xff] %v4637_v12  ;;  %5481 = vst [vmem:[#allocation10_spill] sm:$0xff] %v4639_v46  ;;  %v4641_v49 = vmax.f32 %v1351_v38, %v1359_v62  ;;  %1436 = vrot.lane.b32.xlu0 %v4637_v12, %s3367_s5  ;;  %v4721_v62 = vld [vmem:[#allocation2 + $0x20] sm:$0xff] }
 0x1f4   : > { %5482 = vst [vmem:[#allocation14_spill] sm:$0xff] %v4641_v49  ;;  %1438 = vrot.lane.b32.xlu1 %v4641_v49, %s3367_s5 }
 0x240   : > { %v4647_v17 = vpop.permute.xlu0 %1424 }
 0x241   : > { %v1448_v60 = vsub.f32 %v4649_v2, %v4647_v17  ;;  %v2088_v59 = vsub.f32 %v4653_v3, %v4647_v17  ;;  %v2216_v28 = vsub.f32 %v4657_v54, %v4647_v17  ;;  %v2344_v36 = vsub.f32 %v4661_v0, %v4647_v17 }
 0x242   : > { %v4665_v39 = vpop.permute.xlu1 %1426  ;;  %v1576_v50 = vsub.f32 %v4667_v41, %v4647_v17  ;;  %v2472_v61 = vsub.f32 %v4671_v8, %v4647_v17  ;;  %v1704_v47 = vsub.f32 %v4699_v45, %v4647_v17  ;;  %v1832_v14 = vsub.f32 %v4713_v6, %v4647_v17 }
 0x243   : > { %v1449_v34 = vsub.f32 %v4675_v30, %v4665_v39  ;;  %v1577_v29 = vsub.f32 %v4679_v5, %v4665_v39  ;;  %v2089_v53 = vsub.f32 %v4683_v10, %v4665_v39  ;;  %v2217_v52 = vsub.f32 %v4687_v56, %v4665_v39 }
 0x244   : > { %v2345_v57 = vsub.f32 %v4691_v51, %v4665_v39  ;;  %v2473_v7 = vsub.f32 %v4695_v44, %v4665_v39  ;;  %v1456_v24 = vmul.f32 1.442695, %v1448_v60  ;;  %v1584_v48 = vmul.f32 1.442695, %v1576_v50 }
 0x245   : > { %v1458_v55 = vmul.f32 1.442695, %v1449_v34  ;;  %v1705_v26 = vsub.f32 %v4703_v63, %v4665_v39  ;;  %v1586_v58 = vmul.f32 1.442695, %v1577_v29  ;;  %v1712_v35 = vmul.f32 1.442695, %v1704_v47 }
 0x246   : > { %2926 = vpow2.f32 %v1456_v24  ;;  %v1833_v38 = vsub.f32 %v4717_v23, %v4665_v39  ;;  %v1960_v31 = vsub.f32 %v4721_v62, %v4647_v17  ;;  %v1840_v60 = vmul.f32 1.442695, %v1832_v14  ;;  %v4725_v29 = vld [vmem:[#allocation2 + $0x70] sm:$0xff] }
 0x247   : > { %2928 = vpow2.f32 %v1458_v55  ;;  %v1714_v27 = vmul.f32 1.442695, %v1705_v26  ;;  %v1961_v24 = vsub.f32 %v4725_v29, %v4665_v39 }
 0x248   : > { %2930 = vpow2.f32 %v1584_v48  ;;  %v1842_v50 = vmul.f32 1.442695, %v1833_v38  ;;  %v1968_v34 = vmul.f32 1.442695, %v1960_v31  ;;  %v4787_v31 = vld [vmem:[#allocation2 + $0xa8] sm:$0xff] }
 0x249   : > { %2932 = vpow2.f32 %v1586_v58  ;;  %v1970_v55 = vmul.f32 1.442695, %v1961_v24  ;;  %v2096_v58 = vmul.f32 1.442695, %v2088_v59 }
 0x24a   : > { %2934 = vpow2.f32 %v1712_v35  ;;  %v2098_v35 = vmul.f32 1.442695, %v2089_v53  ;;  %v4756_v53 = vld [vmem:[#allocation2 + $0xa0] sm:$0xff] }
 0x24b   : > { %2936 = vpow2.f32 %v1714_v27 }
 0x24c   : > { %2938 = vpow2.f32 %v1840_v60  ;;  %v4749_v59 = vpop.permute.xlu0 %1428 }
 0x24d   : > { %2940 = vpow2.f32 %v1842_v50  ;;  %v1578_v60 = vsub.f32 %v4787_v31, %v4749_v59 }
 0x24e   : > { %2942 = vpow2.f32 %v1968_v34  ;;  %v4792_v34 = vld [vmem:[#allocation2 + $0xf8] sm:$0xff] }
 0x24f   : > { %2944 = vpow2.f32 %v1970_v55  ;;  %v1588_v55 = vmul.f32 1.442695, %v1578_v60 }
 0x250   : > { %v2927_v37 = vpop.eup %2926  ;;  %2946 = vpow2.f32 %v2096_v58  ;;  %v4802_v58 = vld [vmem:[#allocation2 + $0x100] sm:$0xff] }
 0x251   : > { %v2929_v19 = vpop.eup %2928  ;;  %1480 = vrot.lane.b32.xlu0 %v2927_v37, %s3367_s5  ;;  %v2224_v37 = vmul.f32 1.442695, %v2216_v28  ;;  %2948 = vpow2.f32 %v2098_v35  ;;  %v2354_v28 = vmul.f32 1.442695, %v2345_v57  ;;  %v4779_v57 = vld [vmem:[#allocation2 + $0xf0] sm:$0xff] }
 0x252   : > { %1482 = vrot.lane.b32.xlu1 %v2929_v19, %s3367_s5  ;;  %v2931_v33 = vpop.eup %2930  ;;  %v2226_v19 = vmul.f32 1.442695, %v2217_v52  ;;  %v1450_v52 = vsub.f32 %v4756_v53, %v4749_v59 }
 0x253   : > { %v2933_v13 = vpop.eup %2932  ;;  %2950 = vpow2.f32 %v2224_v37 }
 0x254   : > { %v2935_v9 = vpop.eup %2934  ;;  %2952 = vpow2.f32 %v2226_v19  ;;  %v1460_v38 = vmul.f32 1.442695, %v1450_v52 }
 0x255   : > { %1608 = vrot.lane.b32.xlu0 %v2931_v33, %s3367_s5  ;;  %v2937_v4 = vpop.eup %2936  ;;  %v2352_v33 = vmul.f32 1.442695, %v2344_v36  ;;  %v4754_v36 = vpop.permute.xlu1 %1430 }
 0x256   : > { %1610 = vrot.lane.b32.xlu1 %v2933_v13, %s3367_s5  ;;  %v2939_v47 = vpop.eup %2938  ;;  %v2480_v13 = vmul.f32 1.442695, %v2472_v61  ;;  %v1451_v17 = vsub.f32 %v4779_v57, %v4754_v36  ;;  %v2482_v61 = vmul.f32 1.442695, %v2473_v7  ;;  %v1579_v39 = vsub.f32 %v4792_v34, %v4754_v36 }
 0x257   : > { %v2941_v48 = vpop.eup %2940  ;;  %2954 = vpow2.f32 %v2352_v33  ;;  %v1707_v35 = vsub.f32 %v4802_v58, %v4754_v36  ;;  %v4807_v33 = vld [vmem:[#allocation2 + $0xb8] sm:$0xff] }
 0x258   : > { %v2943_v26 = vpop.eup %2942  ;;  %2956 = vpow2.f32 %v2354_v28  ;;  %v1462_v50 = vmul.f32 1.442695, %v1451_v17  ;;  %v1834_v28 = vsub.f32 %v4807_v33, %v4749_v59 }
 0x259   : > { %1736 = vrot.lane.b32.xlu0 %v2935_v9, %s3367_s5  ;;  %v2945_v27 = vpop.eup %2944  ;;  %v3368_v9 = vmov 0.0   ;;  %2958 = vpow2.f32 %v2480_v13  ;;  %v1718_v52 = vmul.f32 1.442695, %v1707_v35  ;;  %v4812_v13 = vld [vmem:[#allocation2 + $0x108] sm:$0xff] }
 0x25a   : > { %1738 = vrot.lane.b32.xlu1 %v2937_v4, %s3367_s5  ;;  %292 = vst.msk [vmem:[%s4747_s8] sm:$0xff] %vm291_vm10, %v3368_v9  ;;  %293 = vst.msk [vmem:[%s4747_s8 + $0x8] sm:$0xff] %vm291_vm10, %v3368_v9  ;;  %v2947_v4 = vpop.eup %2946  ;;  %2960 = vpow2.f32 %v2482_v61 }
 0x25b   : > { %294 = vst.msk [vmem:[%s4747_s8 + $0x10] sm:$0xff] %vm291_vm10, %v3368_v9  ;;  %295 = vst.msk [vmem:[%s4747_s8 + $0x18] sm:$0xff] %vm291_vm10, %v3368_v9  ;;  %v2949_v14 = vpop.eup %2948  ;;  %2962 = vpow2.f32 %v1460_v38 }
 0x25c   : > { %296 = vst.msk [vmem:[%s4747_s8 + $0x20] sm:$0xff] %vm291_vm10, %v3368_v9  ;;  %297 = vst.msk [vmem:[%s4747_s8 + $0x28] sm:$0xff] %vm291_vm10, %v3368_v9  ;;  %2964 = vpow2.f32 %v1462_v50  ;;  %v4822_v50 = vld [vmem:[#allocation2 + $0x110] sm:$0xff] }
 0x25d   : > { %1864 = vrot.lane.b32.xlu0 %v2939_v47, %s3367_s5  ;;  %298 = vst.msk [vmem:[%s4747_s8 + $0x30] sm:$0xff] %vm291_vm10, %v3368_v9  ;;  %299 = vst.msk [vmem:[%s4747_s8 + $0x38] sm:$0xff] %vm291_vm10, %v3368_v9  ;;  %v2951_v7 = vpop.eup %2950  ;;  %v4797_v47 = vld [vmem:[#allocation2 + $0xb0] sm:$0xff]  ;;  %2966 = vpow2.f32 %v1588_v55  ;;  %v1835_v9 = vsub.f32 %v4812_v13, %v4754_v36 }
 0x25e   : > { %1866 = vrot.lane.b32.xlu1 %v2941_v48, %s3367_s5  ;;  %v2953_v24 = vpop.eup %2952  ;;  %v1706_v48 = vsub.f32 %v4797_v47, %v4749_v59 }
 0x25f   : > { %v1846_v60 = vmul.f32 1.442695, %v1835_v9  ;;  %v4837_v9 = vld [vmem:[#allocation2 + $0xd0] sm:$0xff] }
 0x260   : > { %v1716_v19 = vmul.f32 1.442695, %v1706_v48  ;;  %v4827_v48 = vld [vmem:[#allocation2 + $0xc8] sm:$0xff] }
 0x261   : > { %1992 = vrot.lane.b32.xlu0 %v2943_v26, %s3367_s5  ;;  %v1590_v26 = vmul.f32 1.442695, %v1579_v39  ;;  %v1963_v39 = vsub.f32 %v4822_v50, %v4754_v36 }
 0x262   : > { %1994 = vrot.lane.b32.xlu1 %v2945_v27, %s3367_s5  ;;  %v2955_v27 = vpop.eup %2954 }
 0x263   : > { %v2957_v37 = vpop.eup %2956  ;;  %2968 = vpow2.f32 %v1590_v26  ;;  %v2090_v26 = vsub.f32 %v4827_v48, %v4749_v59  ;;  %v1974_v35 = vmul.f32 1.442695, %v1963_v39 }
 0x264   : > { %v2959_v17 = vpop.eup %2958  ;;  %2970 = vpow2.f32 %v1716_v19 }
 0x265   : > { %2120 = vrot.lane.b32.xlu0 %v2947_v4, %s3367_s5  ;;  %v2961_v61 = vpop.eup %2960  ;;  %v1844_v4 = vmul.f32 1.442695, %v1834_v28  ;;  %2972 = vpow2.f32 %v1718_v52  ;;  %v2100_v52 = vmul.f32 1.442695, %v2090_v26 }
 0x266   : > { %2122 = vrot.lane.b32.xlu1 %v2949_v14, %s3367_s5  ;;  %v4817_v14 = vld [vmem:[#allocation2 + $0xc0] sm:$0xff] }
 0x267   : > { %v1962_v38 = vsub.f32 %v4817_v14, %v4749_v59  ;;  %2974 = vpow2.f32 %v1844_v4  ;;  %v4842_v4 = vld [vmem:[#allocation2 + $0x120] sm:$0xff] }
 0x268   : > { %2976 = vpow2.f32 %v1846_v60 }
 0x269   : > { %2248 = vrot.lane.b32.xlu0 %v2951_v7, %s3367_s5  ;;  %v2963_v7 = vpop.eup %2962  ;;  %v1972_v55 = vmul.f32 1.442695, %v1962_v38  ;;  %v2219_v38 = vsub.f32 %v4842_v4, %v4754_v36 }
 0x26a   : > { %2250 = vrot.lane.b32.xlu1 %v2953_v24, %s3367_s5  ;;  %v2965_v24 = vpop.eup %2964 }
 0x26b   : > { %v2967_v19 = vpop.eup %2966  ;;  %2978 = vpow2.f32 %v1972_v55  ;;  %v4849_v55 = vld [vmem:[#allocation2 + $0xd8] sm:$0xff] }
 0x26c   : > { %2980 = vpow2.f32 %v1974_v35  ;;  %v2346_v26 = vsub.f32 %v4849_v55, %v4749_v59  ;;  %v2230_v35 = vmul.f32 1.442695, %v2219_v38 }
 0x26d   : > { %2376 = vrot.lane.b32.xlu0 %v2955_v27, %s3367_s5  ;;  %v4832_v27 = vld [vmem:[#allocation2 + $0x118] sm:$0xff]  ;;  %v2969_v28 = vpop.eup %2968  ;;  %2982 = vpow2.f32 %v2100_v52 }
 0x26e   : > { %2378 = vrot.lane.b32.xlu1 %v2957_v37, %s3367_s5  ;;  %v2091_v37 = vsub.f32 %v4832_v27, %v4754_v36  ;;  %v2971_v60 = vpop.eup %2970 }
 0x26f   : > { %v2973_v39 = vpop.eup %2972 }
 0x271   : > { %2504 = vrot.lane.b32.xlu0 %v2959_v17, %s3367_s5  ;;  %v2218_v17 = vsub.f32 %v4837_v9, %v4749_v59 }
 0x272   : > { %2506 = vrot.lane.b32.xlu1 %v2961_v61, %s3367_s5  ;;  %v2102_v61 = vmul.f32 1.442695, %v2091_v37  ;;  %v4854_v37 = vld [vmem:[#allocation2 + $0x128] sm:$0xff] }
 0x274   : > { %2984 = vpow2.f32 %v2102_v61  ;;  %v4863_v61 = vld [vmem:[#allocation2 + $0xe0] sm:$0xff] }
 0x275   : > { %1484 = vrot.lane.b32.xlu0 %v2963_v7, %s3367_s5  ;;  %v1368_v7 = vsub.f32 %v4649_v2, %v4450_v21  ;;  %v1369_v2 = vsub.f32 %v4675_v30, %v4464_v42  ;;  %v2474_v38 = vsub.f32 %v4863_v61, %v4749_v59  ;;  %v2475_v30 = vsub.f32 %v4868_v11, %v4754_v36 }
 0x276   : > { %1486 = vrot.lane.b32.xlu1 %v2965_v24, %s3367_s5  ;;  %v2228_v24 = vmul.f32 1.442695, %v2218_v17 }
 0x277   : > { %v1376_v17 = vmul.f32 1.442695, %v1368_v7  ;;  %v4872_v7 = vpop.permute.xlu0 %1432 }
 0x278   : > { %2986 = vpow2.f32 %v2228_v24  ;;  %v1378_v24 = vmul.f32 1.442695, %v1369_v2  ;;  %v2486_v2 = vmul.f32 1.442695, %v2475_v30  ;;  %v4895_v30 = vld [vmem:[#allocation2 + $0x148] sm:$0xff] }
 0x279   : > { %1612 = vrot.lane.b32.xlu0 %v2967_v19, %s3367_s5  ;;  %v2347_v19 = vsub.f32 %v4854_v37, %v4754_v36  ;;  %2988 = vpow2.f32 %v2230_v35  ;;  %v1656_v35 = vsub.f32 %v4699_v45, %v4450_v21  ;;  %v4881_v36 = vld [vmem:[#allocation2 + $0x140] sm:$0xff]  ;;  %v1657_v45 = vsub.f32 %v4703_v63, %v4464_v42  ;;  %5483 = vst [vmem:[#allocation17_spill] sm:$0xff] %v4895_v30  ;;  %v4900_v63 = vld [vmem:[#allocation2 + $0x198] sm:$0xff] }
 0x27a   : > { %1614 = vrot.lane.b32.xlu1 %v2969_v28, %s3367_s5  ;;  %v2975_v28 = vpop.eup %2974  ;;  %2990 = vpow2.f32 %v1376_v17  ;;  %v1580_v15 = vsub.f32 %v4895_v30, %v4872_v7  ;;  %5484 = vst [vmem:[#allocation21_spill] sm:$0xff] %v4900_v63 }
 0x27b   : > { %v2977_v52 = vpop.eup %2976  ;;  %v2358_v46 = vmul.f32 1.442695, %v2347_v19  ;;  %v2484_v19 = vmul.f32 1.442695, %v2474_v38  ;;  %v1664_v38 = vmul.f32 1.442695, %v1656_v35 }
 0x27c   : > { %v1666_v35 = vmul.f32 1.442695, %v1657_v45  ;;  %v4912_v45 = vld [vmem:[#allocation2 + $0x1a0] sm:$0xff] }
 0x27d   : > { %1740 = vrot.lane.b32.xlu0 %v2971_v60, %s3367_s5  ;;  %v1528_v60 = vsub.f32 %v4667_v41, %v4450_v21  ;;  %v4874_v41 = vpop.permute.xlu1 %1434  ;;  %5486 = vst [vmem:[#allocation20_spill] sm:$0xff] %v4912_v45 }
 0x27e   : > { %1742 = vrot.lane.b32.xlu1 %v2973_v39, %s3367_s5  ;;  %v2356_v39 = vmul.f32 1.442695, %v2346_v26  ;;  %v1529_v26 = vsub.f32 %v4679_v5, %v4464_v42  ;;  %v4886_v5 = vld [vmem:[#allocation2 + $0x190] sm:$0xff] }
 0x27f   : > { %v1536_v59 = vmul.f32 1.442695, %v1528_v60  ;;  %v1453_v17 = vsub.f32 %v4886_v5, %v4874_v41 }
 0x280   : > { %2992 = vpow2.f32 %v2356_v39 }
 0x281   : > { %1868 = vrot.lane.b32.xlu0 %v2975_v28, %s3367_s5  ;;  %v2979_v28 = vpop.eup %2978  ;;  %2994 = vpow2.f32 %v2358_v46 }
 0x282   : > { %1870 = vrot.lane.b32.xlu1 %v2977_v52, %s3367_s5  ;;  %v2981_v43 = vpop.eup %2980  ;;  %v1452_v52 = vsub.f32 %v4881_v36, %v4872_v7  ;;  %2996 = vpow2.f32 %v1378_v24  ;;  %v1466_v24 = vmul.f32 1.442695, %v1453_v17 }
 0x283   : > { %v2983_v60 = vpop.eup %2982  ;;  %2998 = vpow2.f32 %v1536_v59 }
 0x284   : > { %v2985_v39 = vpop.eup %2984  ;;  %3000 = vpow2.f32 %v2484_v19  ;;  %v1464_v46 = vmul.f32 1.442695, %v1452_v52 }
 0x285   : > { %1996 = vrot.lane.b32.xlu0 %v2979_v28, %s3367_s5  ;;  %v1538_v28 = vmul.f32 1.442695, %v1529_v26  ;;  %3002 = vpow2.f32 %v2486_v2  ;;  %v1581_v26 = vsub.f32 %v4900_v63, %v4874_v41  ;;  %v2987_v59 = vpop.eup %2986  ;;  %v4907_v2 = vld [vmem:[#allocation2 + $0x150] sm:$0xff] }
 0x286   : > { %1998 = vrot.lane.b32.xlu1 %v2981_v43, %s3367_s5  ;;  %v1784_v43 = vsub.f32 %v4713_v6, %v4450_v21  ;;  %v1785_v6 = vsub.f32 %v4717_v23, %v4464_v42  ;;  %v2989_v19 = vpop.eup %2988  ;;  %5485 = vst [vmem:[#allocation16_spill] sm:$0xff] %v4907_v2  ;;  %v1708_v17 = vsub.f32 %v4907_v2, %v4872_v7  ;;  %v4931_v2 = vld [vmem:[#allocation2 + $0x160] sm:$0xff] }
 0x287   : > { %3004 = vpow2.f32 %v1538_v28  ;;  %v1594_v28 = vmul.f32 1.442695, %v1581_v26  ;;  %v1709_v23 = vsub.f32 %v4912_v45, %v4874_v41  ;;  %v4921_v26 = vld [vmem:[#allocation2 + $0x158] sm:$0xff]  ;;  %5489 = vst [vmem:[#allocation24_spill] sm:$0xff] %v4931_v2 }
 0x288   : > { %3006 = vpow2.f32 %v1664_v38  ;;  %v1792_v52 = vmul.f32 1.442695, %v1784_v43  ;;  %v4918_v43 = vpop.permute.xlu1 %1438  ;;  %5487 = vst [vmem:[#allocation18_spill] sm:$0xff] %v4921_v26  ;;  %v1836_v49 = vsub.f32 %v4921_v26, %v4872_v7 }
 0x289   : > { %2124 = vrot.lane.b32.xlu0 %v2983_v60, %s3367_s5  ;;  %3008 = vpow2.f32 %v1464_v46  ;;  %v1592_v60 = vmul.f32 1.442695, %v1580_v15  ;;  %v1794_v15 = vmul.f32 1.442695, %v1785_v6  ;;  %v1722_v18 = vmul.f32 1.442695, %v1709_v23 }
 0x28a   : > { %2126 = vrot.lane.b32.xlu1 %v2985_v39, %s3367_s5  ;;  %v2991_v39 = vpop.eup %2990  ;;  %3010 = vpow2.f32 %v1466_v24  ;;  %v1720_v24 = vmul.f32 1.442695, %v1708_v17 }
 0x28b   : > { %v2993_v38 = vpop.eup %2992  ;;  %3012 = vpow2.f32 %v1666_v35  ;;  %v1837_v35 = vsub.f32 %v4926_v32, %v4874_v41 }
 0x28c   : > { %v2995_v46 = vpop.eup %2994  ;;  %3014 = vpow2.f32 %v1792_v52 }
 0x28d   : > { %2252 = vrot.lane.b32.xlu0 %v2987_v59, %s3367_s5  ;;  %v4916_v59 = vpop.permute.xlu0 %1436  ;;  %3016 = vpow2.f32 %v1592_v60 }
 0x28e   : > { %2254 = vrot.lane.b32.xlu1 %v2989_v19, %s3367_s5  ;;  %v2997_v19 = vpop.eup %2996  ;;  %3018 = vpow2.f32 %v1594_v28  ;;  %v1964_v28 = vsub.f32 %v4931_v2, %v4872_v7 }
 0x28f   : > { %v2999_v12 = vpop.eup %2998  ;;  %3020 = vpow2.f32 %v1794_v15 }
 0x290   : > { %v3001_v52 = vpop.eup %3000  ;;  %3022 = vpow2.f32 %v1720_v24 }
 0x291   : > { %2380 = vrot.lane.b32.xlu0 %v2993_v38, %s3367_s5  ;;  %v3003_v17 = vpop.eup %3002  ;;  %3024 = vpow2.f32 %v1722_v18 }
 0x292   : > { %2382 = vrot.lane.b32.xlu1 %v2995_v46, %s3367_s5  ;;  %v3005_v26 = vpop.eup %3004  ;;  %v1848_v46 = vmul.f32 1.442695, %v1836_v49 }
 0x293   : > { %v3007_v32 = vpop.eup %3006 }
 0x294   : > { %v3009_v24 = vpop.eup %3008  ;;  %3026 = vpow2.f32 %v1848_v46 }
 0x295   : > { %2508 = vrot.lane.b32.xlu0 %v3001_v52, %s3367_s5  ;;  %v3011_v63 = vpop.eup %3010 }
 0x296   : > { %2510 = vrot.lane.b32.xlu1 %v3003_v17, %s3367_s5  ;;  %v3013_v30 = vpop.eup %3012 }
 0x297   : > { %v3015_v17 = vpop.eup %3014 }
 0x298   : > { %v3017_v46 = vpop.eup %3016 }
 0x299   : > { %1488 = vrot.lane.b32.xlu0 %v3009_v24, %s3367_s5 }
 0x29a   : > { %1490 = vrot.lane.b32.xlu1 %v3011_v63, %s3367_s5  ;;  %v4951_v63 = vld [vmem:[#allocation2 + $0x170] sm:$0xff] }
 0x29d   : > { %1616 = vrot.lane.b32.xlu0 %v3017_v46, %s3367_s5 }
 0x2c3   : > { %v1481_v6 = vpop.permute.xlu0 %1480 }
 0x2c4   : > { %v1504_v38 = vadd.f32 %v2991_v39, %v1481_v6  ;;  %v1483_v60 = vpop.permute.xlu1 %1482  ;;  %v1850_v39 = vmul.f32 1.442695, %v1837_v35  ;;  %v4936_v6 = vld [vmem:[#allocation2 + $0x1b0] sm:$0xff] }
 0x2c5   : > { %v1505_v45 = vadd.f32 %v2997_v19, %v1483_v60  ;;  %5490 = vst [vmem:[#allocation23_spill] sm:$0xff] %v4936_v6  ;;  %v1965_v15 = vsub.f32 %v4936_v6, %v4874_v41 }
 0x2c6   : > { %v1552_v23 = vadd.f32 %v2999_v12, %v1504_v38  ;;  %v1976_v12 = vmul.f32 1.442695, %v1964_v28  ;;  %v4941_v38 = vld [vmem:[#allocation2 + $0x168] sm:$0xff]  ;;  %3028 = vpow2.f32 %v1850_v39  ;;  %v2220_v39 = vsub.f32 %v4951_v63, %v4872_v7 }
 0x2c7   : > { %v1609_v19 = vpop.permute.xlu0 %1608  ;;  %v1553_v52 = vadd.f32 %v3005_v26, %v1505_v45  ;;  %5491 = vst [vmem:[#allocation25_spill] sm:$0xff] %v4941_v38  ;;  %v2092_v18 = vsub.f32 %v4941_v38, %v4872_v7  ;;  %v1978_v45 = vmul.f32 1.442695, %v1965_v15  ;;  %v4946_v26 = vld [vmem:[#allocation2 + $0x1b8] sm:$0xff] }
 0x2c8   : > { %v1632_v49 = vadd.f32 %v1609_v19, %v1552_v23  ;;  %v1611_v60 = vpop.permute.xlu1 %1610  ;;  %v2093_v23 = vsub.f32 %v4946_v26, %v4874_v41  ;;  %3030 = vpow2.f32 %v1976_v12 }
 0x2c9   : > { %v1633_v2 = vadd.f32 %v1611_v60, %v1553_v52  ;;  %v3019_v60 = vpop.eup %3018  ;;  %3032 = vpow2.f32 %v1978_v45 }
 0x2ca   : > { %v1680_v35 = vadd.f32 %v3007_v32, %v1632_v49  ;;  %v3021_v6 = vpop.eup %3020  ;;  %v2104_v32 = vmul.f32 1.442695, %v2092_v18  ;;  %1618 = vrot.lane.b32.xlu1 %v3019_v60, %s3367_s5 }
 0x2cb   : > { %v1737_v19 = vpop.permute.xlu0 %1736  ;;  %v1681_v52 = vadd.f32 %v3013_v30, %v1633_v2  ;;  %v2106_v30 = vmul.f32 1.442695, %v2093_v23  ;;  %v4958_v2 = vld [vmem:[#allocation2 + $0x1c0] sm:$0xff]  ;;  %v3023_v12 = vpop.eup %3022  ;;  %v4970_v23 = vld [vmem:[#allocation2 + $0x1c8] sm:$0xff] }
 0x2cc   : > { %v1760_v28 = vadd.f32 %v1737_v19, %v1680_v35  ;;  %v1739_v24 = vpop.permute.xlu1 %1738  ;;  %v2221_v49 = vsub.f32 %v4958_v2, %v4874_v41  ;;  %v3025_v18 = vpop.eup %3024  ;;  %1744 = vrot.lane.b32.xlu0 %v3023_v12, %s3367_s5  ;;  %3034 = vpow2.f32 %v2104_v32  ;;  %v2232_v19 = vmul.f32 1.442695, %v2220_v39  ;;  %v4980_v39 = vld [vmem:[#allocation2 + $0x1d0] sm:$0xff] }
 0x2cd   : > { %v1761_v38 = vadd.f32 %v1739_v24, %v1681_v52  ;;  %v4965_v52 = vld [vmem:[#allocation2 + $0x178] sm:$0xff]  ;;  %3036 = vpow2.f32 %v2106_v30  ;;  %v4975_v24 = vld [vmem:[#allocation2 + $0x180] sm:$0xff]  ;;  %v2477_v30 = vsub.f32 %v4980_v39, %v4874_v41 }
 0x2ce   : > { %v4956_v15 = vadd.f32 %v3015_v17, %v1760_v28  ;;  %v2348_v17 = vsub.f32 %v4965_v52, %v4872_v7  ;;  %1746 = vrot.lane.b32.xlu1 %v3025_v18, %s3367_s5  ;;  %v2234_v45 = vmul.f32 1.442695, %v2221_v49  ;;  %3038 = vpow2.f32 %v2232_v19  ;;  %v4985_v19 = vld [vmem:[#allocation2 + $0x1e0] sm:$0xff] }
 0x2cf   : > { %v4962_v35 = vadd.f32 %v3021_v6, %v1761_v38  ;;  %v2349_v6 = vsub.f32 %v4970_v23, %v4874_v41  ;;  %v3027_v38 = vpop.eup %3026  ;;  %v2476_v60 = vsub.f32 %v4975_v24, %v4872_v7  ;;  %5492 = vst [vmem:[#allocation26_spill] sm:$0xff] %v4985_v19  ;;  %v1454_v7 = vsub.f32 %v4985_v19, %v4916_v59 }
 0x2d0   : > { %v3029_v46 = vpop.eup %3028  ;;  %1872 = vrot.lane.b32.xlu0 %v3027_v38, %s3367_s5  ;;  %v2360_v28 = vmul.f32 1.442695, %v2348_v17  ;;  %3040 = vpow2.f32 %v2234_v45  ;;  %v2490_v17 = vmul.f32 1.442695, %v2477_v30  ;;  %v4990_v45 = vld [vmem:[#allocation2 + $0x230] sm:$0xff]  ;;  %v5000_v30 = vld [vmem:[#allocation2 + $0x238] sm:$0xff] }
 0x2d1   : > { %v2362_v32 = vmul.f32 1.442695, %v2349_v6  ;;  %v2488_v18 = vmul.f32 1.442695, %v2476_v60  ;;  %5493 = vst [vmem:[#allocation27_spill] sm:$0xff] %v4990_v45  ;;  %v1455_v41 = vsub.f32 %v4990_v45, %v4918_v43  ;;  %5495 = vst [vmem:[#allocation33_spill] sm:$0xff] %v5000_v30 }
 0x2d2   : > { %1874 = vrot.lane.b32.xlu1 %v3029_v46, %s3367_s5  ;;  %v3031_v49 = vpop.eup %3030  ;;  %3042 = vpow2.f32 %v2360_v28  ;;  %v1468_v46 = vmul.f32 1.442695, %v1454_v7  ;;  %v4995_v28 = vld [vmem:[#allocation2 + $0x1e8] sm:$0xff]  ;;  %v1913_v7 = vsub.f32 %v4725_v29, %v4464_v42 }
 0x2d3   : > { %v3033_v12 = vpop.eup %3032  ;;  %3044 = vpow2.f32 %v2362_v32  ;;  %5494 = vst [vmem:[#allocation32_spill] sm:$0xff] %v4995_v28  ;;  %v1582_v60 = vsub.f32 %v4995_v28, %v4916_v59  ;;  %v1470_v32 = vmul.f32 1.442695, %v1455_v41 }
 0x2d4   : > { %2000 = vrot.lane.b32.xlu0 %v3031_v49, %s3367_s5  ;;  %3046 = vpow2.f32 %v2488_v18  ;;  %v1583_v49 = vsub.f32 %v5000_v30, %v4918_v43  ;;  %v5014_v30 = vld [vmem:[#allocation2 + $0x240] sm:$0xff]  ;;  %v1922_v29 = vmul.f32 1.442695, %v1913_v7 }
 0x2d5   : > { %3048 = vpow2.f32 %v2490_v17  ;;  %v1596_v28 = vmul.f32 1.442695, %v1582_v60  ;;  %5497 = vst [vmem:[#allocation3_spill] sm:$0xff] %v5014_v30 }
 0x2d6   : > { %2002 = vrot.lane.b32.xlu1 %v3033_v12, %s3367_s5  ;;  %v3035_v6 = vpop.eup %3034  ;;  %3050 = vpow2.f32 %v1468_v46  ;;  %v1598_v41 = vmul.f32 1.442695, %v1583_v49  ;;  %v2040_v46 = vsub.f32 %v4653_v3, %v4450_v21 }
 0x2d7   : > { %v3037_v38 = vpop.eup %3036  ;;  %3052 = vpow2.f32 %v1470_v32 }
 0x2d8   : > { %2128 = vrot.lane.b32.xlu0 %v3035_v6, %s3367_s5  ;;  %v3039_v12 = vpop.eup %3038  ;;  %v1912_v6 = vsub.f32 %v4721_v62, %v4450_v21  ;;  %v1711_v62 = vsub.f32 %v5014_v30, %v4918_v43  ;;  %3054 = vpow2.f32 %v1596_v28  ;;  %v2048_v3 = vmul.f32 1.442695, %v2040_v46 }
 0x2d9   : > { %3056 = vpow2.f32 %v1598_v41 }
 0x2da   : > { %2130 = vrot.lane.b32.xlu1 %v3037_v38, %s3367_s5  ;;  %v3041_v18 = vpop.eup %3040  ;;  %v5009_v38 = vld [vmem:[#allocation2 + $0x1f0] sm:$0xff]  ;;  %v1920_v45 = vmul.f32 1.442695, %v1912_v6  ;;  %v1726_v49 = vmul.f32 1.442695, %v1711_v62 }
 0x2db   : > { %5496 = vst [vmem:[#allocation29_spill] sm:$0xff] %v5009_v38  ;;  %v1710_v17 = vsub.f32 %v5009_v38, %v4916_v59  ;;  %v5021_v38 = vld [vmem:[#allocation2 + $0x1f8] sm:$0xff]  ;;  %v5036_v62 = vld [vmem:[#allocation2 + $0x250] sm:$0xff] }
 0x2dc   : > { %2256 = vrot.lane.b32.xlu0 %v3039_v12, %s3367_s5  ;;  %v3043_v12 = vpop.eup %3042  ;;  %5498 = vst [vmem:[#allocation45_spill] sm:$0xff] %v5021_v38  ;;  %v1838_v32 = vsub.f32 %v5021_v38, %v4916_v59  ;;  %3058 = vpow2.f32 %v1920_v45  ;;  %5501 = vst [vmem:[#allocation48_spill] sm:$0xff] %v5036_v62  ;;  %v1967_v45 = vsub.f32 %v5036_v62, %v4918_v43  ;;  %v5059_v38 = vld [vmem:[#allocation2 + $0x260] sm:$0xff] }
 0x2dd   : > { %v3045_v19 = vpop.eup %3044  ;;  %v1724_v60 = vmul.f32 1.442695, %v1710_v17  ;;  %3060 = vpow2.f32 %v1922_v29  ;;  %v5031_v17 = vld [vmem:[#allocation2 + $0x200] sm:$0xff]  ;;  %v2041_v29 = vsub.f32 %v4683_v10, %v4464_v42  ;;  %v1865_v10 = vpop.permute.xlu0 %1864 }
 0x2de   : > { %2258 = vrot.lane.b32.xlu1 %v3041_v18, %s3367_s5  ;;  %v5026_v18 = vld [vmem:[#allocation2 + $0x248] sm:$0xff]  ;;  %v3047_v7 = vpop.eup %3046  ;;  %v1852_v28 = vmul.f32 1.442695, %v1838_v32  ;;  %5500 = vst [vmem:[#allocation31_spill] sm:$0xff] %v5031_v17 }
 0x2df   : > { %5499 = vst [vmem:[#allocation38_spill] sm:$0xff] %v5026_v18  ;;  %v1839_v6 = vsub.f32 %v5026_v18, %v4918_v43  ;;  %3062 = vpow2.f32 %v1724_v60  ;;  %v5043_v60 = vld [vmem:[#allocation2 + $0x208] sm:$0xff] }
 0x2e0   : > { %2384 = vrot.lane.b32.xlu0 %v3043_v12, %s3367_s5  ;;  %v3049_v12 = vpop.eup %3048  ;;  %3064 = vpow2.f32 %v1726_v49  ;;  %5502 = vst [vmem:[#allocation47_spill] sm:$0xff] %v5043_v60  ;;  %v2094_v32 = vsub.f32 %v5043_v60, %v4916_v59  ;;  %v1982_v49 = vmul.f32 1.442695, %v1967_v45  ;;  %v1888_v45 = vadd.f32 %v1865_v10, %v4956_v15 }
 0x2e1   : > { %v1854_v41 = vmul.f32 1.442695, %v1839_v6  ;;  %v3051_v18 = vpop.eup %3050  ;;  %3066 = vpow2.f32 %v2048_v3  ;;  %v5048_v6 = vld [vmem:[#allocation2 + $0x258] sm:$0xff]  ;;  %v2168_v15 = vsub.f32 %v4657_v54, %v4450_v21 }
 0x2e2   : > { %2386 = vrot.lane.b32.xlu1 %v3045_v19, %s3367_s5  ;;  %v1966_v19 = vsub.f32 %v5031_v17, %v4916_v59  ;;  %3068 = vpow2.f32 %v1852_v28  ;;  %5503 = vst [vmem:[#allocation46_spill] sm:$0xff] %v5048_v6  ;;  %v2050_v28 = vmul.f32 1.442695, %v2041_v29  ;;  %v2108_v62 = vmul.f32 1.442695, %v2094_v32  ;;  %v5053_v17 = vld [vmem:[#allocation2 + $0x210] sm:$0xff] }
 0x2e3   : > { %3070 = vpow2.f32 %v1854_v41  ;;  %5504 = vst [vmem:[#allocation37_spill] sm:$0xff] %v5053_v17  ;;  %v2222_v41 = vsub.f32 %v5053_v17, %v4916_v59  ;;  %v2223_v29 = vsub.f32 %v5059_v38, %v4918_v43  ;;  %v1993_v17 = vpop.permute.xlu0 %1992 }
 0x2e4   : > { %2512 = vrot.lane.b32.xlu0 %v3047_v7, %s3367_s5  ;;  %v3053_v7 = vpop.eup %3052  ;;  %v1980_v46 = vmul.f32 1.442695, %v1966_v19 }
 0x2e6   : > { %2514 = vrot.lane.b32.xlu1 %v3049_v12, %s3367_s5  ;;  %v3055_v12 = vpop.eup %3054  ;;  %3072 = vpow2.f32 %v1980_v46 }
 0x2e7   : > { %v3057_v3 = vpop.eup %3056  ;;  %3074 = vpow2.f32 %v1982_v49  ;;  %v2236_v49 = vmul.f32 1.442695, %v2222_v41 }
 0x2e8   : > { %1492 = vrot.lane.b32.xlu0 %v3051_v18, %s3367_s5  ;;  %v2095_v18 = vsub.f32 %v5048_v6, %v4918_v43  ;;  %v3059_v19 = vpop.eup %3058  ;;  %3076 = vpow2.f32 %v2050_v28 }
 0x2e9   : > { %v3061_v6 = vpop.eup %3060  ;;  %3078 = vpow2.f32 %v2108_v62  ;;  %v2169_v62 = vsub.f32 %v4687_v56, %v4464_v42 }
 0x2ea   : > { %1494 = vrot.lane.b32.xlu1 %v3053_v7, %s3367_s5  ;;  %v1867_v7 = vpop.permute.xlu1 %1866  ;;  %v2110_v60 = vmul.f32 1.442695, %v2095_v18  ;;  %v3063_v32 = vpop.eup %3062  ;;  %v5067_v18 = vld [vmem:[#allocation2 + $0x218] sm:$0xff] }
 0x2eb   : > { %v1889_v46 = vadd.f32 %v1867_v7, %v4962_v35  ;;  %v3065_v30 = vpop.eup %3064  ;;  %v2350_v10 = vsub.f32 %v5067_v18, %v4916_v59  ;;  %v5072_v7 = vld [vmem:[#allocation2 + $0x268] sm:$0xff] }
 0x2ec   : > { %1620 = vrot.lane.b32.xlu0 %v3055_v12, %s3367_s5  ;;  %v1936_v12 = vadd.f32 %v3059_v19, %v1888_v45  ;;  %v3067_v19 = vpop.eup %3066  ;;  %3080 = vpow2.f32 %v2110_v60  ;;  %v2238_v45 = vmul.f32 1.442695, %v2223_v29  ;;  %v5081_v60 = vld [vmem:[#allocation2 + $0x220] sm:$0xff] }
 0x2ed   : > { %v3069_v28 = vpop.eup %3068  ;;  %3082 = vpow2.f32 %v2236_v49  ;;  %v2478_v29 = vsub.f32 %v5081_v60, %v4916_v59 }
 0x2ee   : > { %1622 = vrot.lane.b32.xlu1 %v3057_v3, %s3367_s5  ;;  %v1937_v3 = vadd.f32 %v3061_v6, %v1889_v46  ;;  %v2016_v35 = vadd.f32 %v1993_v17, %v1936_v12  ;;  %v2351_v6 = vsub.f32 %v5072_v7, %v4918_v43  ;;  %v3071_v41 = vpop.eup %3070  ;;  %v2176_v46 = vmul.f32 1.442695, %v2168_v15  ;;  %v5086_v12 = vld [vmem:[#allocation2 + $0x270] sm:$0xff] }
 0x2ef   : > { %v2364_v17 = vmul.f32 1.442695, %v2350_v10  ;;  %3084 = vpow2.f32 %v2238_v45  ;;  %v2479_v56 = vsub.f32 %v5086_v12, %v4918_v43  ;;  %v1995_v10 = vpop.permute.xlu1 %1994  ;;  %v2424_v43 = vsub.f32 %v4671_v8, %v4450_v21 }
 0x2f0   : > { %1748 = vrot.lane.b32.xlu0 %v3063_v32, %s3367_s5  ;;  %v2064_v54 = vadd.f32 %v3067_v19, %v2016_v35  ;;  %v2366_v32 = vmul.f32 1.442695, %v2351_v6  ;;  %v3073_v15 = vpop.eup %3072  ;;  %v2178_v35 = vmul.f32 1.442695, %v2169_v62  ;;  %3086 = vpow2.f32 %v2176_v46 }
 0x2f1   : > { %v3075_v49 = vpop.eup %3074  ;;  %3088 = vpow2.f32 %v2364_v17  ;;  %v2492_v19 = vmul.f32 1.442695, %v2478_v29  ;;  %v2017_v45 = vadd.f32 %v1995_v10, %v1937_v3  ;;  %v2432_v3 = vmul.f32 1.442695, %v2424_v43  ;;  %v2121_v10 = vpop.permute.xlu0 %2120 }
 0x2f2   : > { %1750 = vrot.lane.b32.xlu1 %v3065_v30, %s3367_s5  ;;  %v2296_v30 = vsub.f32 %v4661_v0, %v4450_v21  ;;  %v2297_v0 = vsub.f32 %v4691_v51, %v4464_v42  ;;  %v3077_v6 = vpop.eup %3076  ;;  %3090 = vpow2.f32 %v2366_v32  ;;  %v3327_v32 = vld [vmem:[#allocation2 + $0x98] sm:$0xff] }
 0x2f3   : > { %v3079_v62 = vpop.eup %3078  ;;  %3092 = vpow2.f32 %v2178_v35 }
 0x2f4   : > { %1876 = vrot.lane.b32.xlu0 %v3069_v28, %s3367_s5  ;;  %v2304_v59 = vmul.f32 1.442695, %v2296_v30  ;;  %v2494_v28 = vmul.f32 1.442695, %v2479_v56  ;;  %v2306_v51 = vmul.f32 1.442695, %v2297_v0  ;;  %v2553_v56 = vsub.f32 %v3327_v32, %v4464_v42 }
 0x2f5   : > { %v3326_v30 = vld [vmem:[#allocation2 + $0x48] sm:$0xff]  ;;  %v1371_v0 = vsub.f32 %v4779_v57, %v4534_v1 }
 0x2f6   : > { %1878 = vrot.lane.b32.xlu1 %v3071_v41, %s3367_s5  ;;  %v2065_v41 = vadd.f32 %v3077_v6, %v2017_v45  ;;  %v3081_v46 = vpop.eup %3080  ;;  %3094 = vpow2.f32 %v2304_v59  ;;  %v2552_v17 = vsub.f32 %v3326_v30, %v4450_v21  ;;  %v2144_v6 = vadd.f32 %v2121_v10, %v2064_v54 }
 0x2f7   : > { %3096 = vpow2.f32 %v2492_v19  ;;  %v3083_v8 = vpop.eup %3082  ;;  %v1530_v19 = vsub.f32 %v4787_v31, %v4517_v40  ;;  %v2562_v43 = vmul.f32 1.442695, %v2553_v56  ;;  %v2249_v31 = vpop.permute.xlu0 %2248 }
 0x2f8   : > { %2004 = vrot.lane.b32.xlu0 %v3073_v15, %s3367_s5  ;;  %v2425_v15 = vsub.f32 %v4695_v44, %v4464_v42  ;;  %3098 = vpow2.f32 %v2494_v28  ;;  %v1370_v44 = vsub.f32 %v4756_v53, %v4517_v40  ;;  %v2560_v59 = vmul.f32 1.442695, %v2552_v17  ;;  %v2123_v28 = vpop.permute.xlu1 %2122 }
 0x2f9   : > { %3100 = vpow2.f32 %v2306_v51  ;;  %v3085_v35 = vpop.eup %3084  ;;  %v1531_v53 = vsub.f32 %v4792_v34, %v4534_v1  ;;  %v2145_v51 = vadd.f32 %v2123_v28, %v2065_v41  ;;  %v1540_v54 = vmul.f32 1.442695, %v1530_v19 }
 0x2fa   : > { %2006 = vrot.lane.b32.xlu1 %v3075_v49, %s3367_s5  ;;  %v2434_v29 = vmul.f32 1.442695, %v2425_v15  ;;  %v3087_v49 = vpop.eup %3086  ;;  %3102 = vpow2.f32 %v2432_v3  ;;  %v1380_v57 = vmul.f32 1.442695, %v1370_v44  ;;  %v1382_v3 = vmul.f32 1.442695, %v1371_v0 }
 0x2fb   : > { %v3089_v45 = vpop.eup %3088  ;;  %v1542_v56 = vmul.f32 1.442695, %v1531_v53  ;;  %v1659_v41 = vsub.f32 %v4802_v58, %v4534_v1  ;;  %v2377_v10 = vpop.permute.xlu0 %2376  ;;  %v1787_v58 = vsub.f32 %v4812_v13, %v4534_v1  ;;  %v1915_v13 = vsub.f32 %v4822_v50, %v4534_v1 }
 0x2fc   : > { %2132 = vrot.lane.b32.xlu0 %v3079_v62, %s3367_s5  ;;  %3104 = vpow2.f32 %v2434_v29  ;;  %v3091_v62 = vpop.eup %3090  ;;  %v2251_v32 = vpop.permute.xlu1 %2250  ;;  %v2043_v50 = vsub.f32 %v4832_v27, %v4534_v1 }
 0x2fd   : > { %v3093_v15 = vpop.eup %3092  ;;  %3106 = vpow2.f32 %v2560_v59  ;;  %v1670_v28 = vmul.f32 1.442695, %v1659_v41 }
 0x2fe   : > { %2134 = vrot.lane.b32.xlu1 %v3081_v46, %s3367_s5  ;;  %v2192_v46 = vadd.f32 %v3087_v49, %v2144_v6  ;;  %v2193_v17 = vadd.f32 %v3093_v15, %v2145_v51  ;;  %3108 = vpow2.f32 %v2562_v43 }
 0x2ff   : > { %3110 = vpow2.f32 %v1380_v57  ;;  %v2505_v15 = vpop.permute.xlu0 %2504 }
 0x300   : > { %2260 = vrot.lane.b32.xlu0 %v3083_v8, %s3367_s5  ;;  %v3095_v30 = vpop.eup %3094  ;;  %v1658_v8 = vsub.f32 %v4797_v47, %v4517_v40  ;;  %v2272_v34 = vadd.f32 %v2249_v31, %v2192_v46  ;;  %v2273_v44 = vadd.f32 %v2251_v32, %v2193_v17  ;;  %3112 = vpow2.f32 %v1382_v3  ;;  %v2379_v6 = vpop.permute.xlu1 %2378 }
 0x301   : > { %v3097_v29 = vpop.eup %3096  ;;  %v1786_v47 = vsub.f32 %v4807_v33, %v4517_v40  ;;  %3114 = vpow2.f32 %v1540_v54  ;;  %v1798_v33 = vmul.f32 1.442695, %v1787_v58  ;;  %v1914_v3 = vsub.f32 %v4817_v14, %v4517_v40 }
 0x302   : > { %2262 = vrot.lane.b32.xlu1 %v3085_v35, %s3367_s5  ;;  %v3099_v35 = vpop.eup %3098  ;;  %v2320_v49 = vadd.f32 %v3095_v30, %v2272_v34  ;;  %v1668_v19 = vmul.f32 1.442695, %v1658_v8  ;;  %3116 = vpow2.f32 %v1542_v56 }
 0x303   : > { %v3101_v0 = vpop.eup %3100  ;;  %v1796_v57 = vmul.f32 1.442695, %v1786_v47  ;;  %v1485_v56 = vpop.permute.xlu0 %1484  ;;  %v1924_v41 = vmul.f32 1.442695, %v1914_v3 }
 0x304   : > { %2388 = vrot.lane.b32.xlu0 %v3089_v45, %s3367_s5  ;;  %v2321_v59 = vadd.f32 %v3101_v0, %v2273_v44  ;;  %v2400_v45 = vadd.f32 %v2377_v10, %v2320_v49  ;;  %v3103_v43 = vpop.eup %3102  ;;  %3118 = vpow2.f32 %v1668_v19  ;;  %v2507_v31 = vpop.permute.xlu1 %2506  ;;  %v1926_v49 = vmul.f32 1.442695, %v1915_v13 }
 0x305   : > { %3120 = vpow2.f32 %v1670_v28 }
 0x306   : > { %2390 = vrot.lane.b32.xlu1 %v3091_v62, %s3367_s5  ;;  %v2401_v53 = vadd.f32 %v2379_v6, %v2321_v59  ;;  %v3105_v62 = vpop.eup %3104  ;;  %v2448_v51 = vadd.f32 %v3103_v43, %v2400_v45  ;;  %3122 = vpow2.f32 %v1796_v57 }
 0x307   : > { %v3107_v17 = vpop.eup %3106  ;;  %3124 = vpow2.f32 %v1798_v33  ;;  %v1613_v58 = vpop.permute.xlu0 %1612 }
 0x308   : > { %2516 = vrot.lane.b32.xlu0 %v3097_v29, %s3367_s5  ;;  %v2449_v46 = vadd.f32 %v3105_v62, %v2401_v53  ;;  %v2528_v30 = vadd.f32 %v2505_v15, %v2448_v51  ;;  %v3109_v8 = vpop.eup %3108  ;;  %v1487_v0 = vpop.permute.xlu1 %1486  ;;  %v2054_v53 = vmul.f32 1.442695, %v2043_v50  ;;  %v2171_v62 = vsub.f32 %v4842_v4, %v4534_v1 }
 0x309   : > { %v3111_v34 = vpop.eup %3110  ;;  %v2427_v50 = vsub.f32 %v4868_v11, %v4534_v1  ;;  %v2676_v11 = vld [vmem:[%s4747_s8] sm:$0xff] }
 0x30a   : > { %2518 = vrot.lane.b32.xlu1 %v3099_v35, %s3367_s5  ;;  %v2529_v54 = vadd.f32 %v2507_v31, %v2449_v46  ;;  %v2576_v29 = vadd.f32 %v3107_v17, %v2528_v30  ;;  %v2042_v35 = vsub.f32 %v4827_v48, %v4517_v40  ;;  %v3113_v14 = vpop.eup %3112  ;;  %v1506_v44 = vadd.f32 %v3111_v34, %v1485_v56 }
 0x30b   : > { %v3115_v47 = vpop.eup %3114  ;;  %v1507_v10 = vadd.f32 %v3113_v14, %v1487_v0  ;;  %v2170_v48 = vsub.f32 %v4837_v9, %v4517_v40  ;;  %v2298_v46 = vsub.f32 %v4849_v55, %v4517_v40  ;;  %v1741_v33 = vpop.permute.xlu0 %1740  ;;  %v2299_v9 = vsub.f32 %v4854_v37, %v4534_v1 }
 0x30c   : > { %v2577_v32 = vadd.f32 %v3109_v8, %v2529_v54  ;;  %3126 = vlog2.f32 %v2576_v29  ;;  %v3117_v59 = vpop.eup %3116  ;;  %v1554_v19 = vadd.f32 %v3115_v47, %v1506_v44  ;;  %v2052_v6 = vmul.f32 1.442695, %v2042_v35  ;;  %v1615_v43 = vpop.permute.xlu1 %1614 }
 0x30d   : > { %v1555_v45 = vadd.f32 %v3117_v59, %v1507_v10  ;;  %v2180_v30 = vmul.f32 1.442695, %v2170_v48  ;;  %v2182_v54 = vmul.f32 1.442695, %v2171_v62  ;;  %v2426_v55 = vsub.f32 %v4863_v61, %v4517_v40  ;;  %v3328_v10 = vld [vmem:[#allocation2 + $0xe8] sm:$0xff]  ;;  %v3329_v59 = vld [vmem:[#allocation2 + $0x138] sm:$0xff] }
 0x30e   : > { %3128 = vlog2.f32 %v2577_v32  ;;  %v1634_v28 = vadd.f32 %v1613_v58, %v1554_v19  ;;  %v3119_v27 = vpop.eup %3118  ;;  %v2308_v32 = vmul.f32 1.442695, %v2298_v46  ;;  %v2310_v37 = vmul.f32 1.442695, %v2299_v9  ;;  %v3330_v48 = vld [vmem:[%s3482_s4] sm:$0xff] }
 0x30f   : > { %3130 = vpow2.f32 %v1924_v41  ;;  %v1635_v51 = vadd.f32 %v1615_v43, %v1555_v45  ;;  %v3121_v57 = vpop.eup %3120  ;;  %v1869_v35 = vpop.permute.xlu0 %1868  ;;  %v2554_v61 = vsub.f32 %v3328_v10, %v4517_v40  ;;  %v2555_v19 = vsub.f32 %v3329_v59, %v4534_v1  ;;  %v5507_v59 = vld [vmem:[#allocation16_spill] sm:$0xff] }
 0x310   : > { %3132 = vpow2.f32 %v1926_v49  ;;  %v1682_v15 = vadd.f32 %v3119_v27, %v1634_v28  ;;  %v3123_v31 = vpop.eup %3122  ;;  %v1743_v17 = vpop.permute.xlu1 %1742  ;;  %vm2652_vm4 = vcmp.ne.s32.totalorder %v3330_v48, 255  ;;  %v3331_v27 = vld [vmem:[%s3482_s4 + $0x8] sm:$0xff] }
 0x311   : > { %v1683_v3 = vadd.f32 %v3121_v57, %v1635_v51  ;;  %3134 = vpow2.f32 %v2052_v6  ;;  %v3125_v4 = vpop.eup %3124  ;;  %vm2653_vm5 = vcmp.ne.s32.totalorder %v3331_v27, 255  ;;  %v5508_v48 = vld [vmem:[#allocation20_spill] sm:$0xff]  ;;  %v5509_v27 = vld [vmem:[#allocation18_spill] sm:$0xff] }
 0x312   : > { %v1762_v13 = vadd.f32 %v1741_v33, %v1682_v15  ;;  %3136 = vpow2.f32 %v2054_v53  ;;  %v2436_v53 = vmul.f32 1.442695, %v2426_v55  ;;  %v2677_v15 = vld [vmem:[%s4747_s8 + $0x8] sm:$0xff] }
 0x313   : > { %v1763_v8 = vadd.f32 %v1743_v17, %v1683_v3  ;;  %3138 = vpow2.f32 %v2180_v30  ;;  %v1997_v51 = vpop.permute.xlu0 %1996  ;;  %v2438_v3 = vmul.f32 1.442695, %v2427_v50 }
 0x314   : > { %v1810_v34 = vadd.f32 %v3123_v31, %v1762_v13  ;;  %v1871_v49 = vpop.permute.xlu1 %1870  ;;  %3140 = vpow2.f32 %v2182_v54 }
 0x315   : > { %v1811_v14 = vadd.f32 %v3125_v4, %v1763_v8  ;;  %3142 = vpow2.f32 %v2308_v32  ;;  %v5505_v32 = vld [vmem:[#allocation17_spill] sm:$0xff] }
 0x316   : > { %v3127_v29 = vpop.eup %3126  ;;  %v1890_v0 = vadd.f32 %v1869_v35, %v1810_v34  ;;  %3144 = vpow2.f32 %v2310_v37  ;;  %v1532_v55 = vsub.f32 %v5505_v32, %v4583_v25  ;;  %v5506_v35 = vld [vmem:[#allocation21_spill] sm:$0xff] }
 0x317   : > { %v2601_v41 = vmul.f32 0.6931472, %v3127_v29  ;;  %v1891_v45 = vadd.f32 %v1871_v49, %v1811_v14  ;;  %v2125_v29 = vpop.permute.xlu0 %2124  ;;  %3146 = vpow2.f32 %v2436_v53  ;;  %v1533_v14 = vsub.f32 %v5506_v35, %v4600_v20 }
 0x318   : > { %v3129_v56 = vpop.eup %3128  ;;  %v1999_v33 = vpop.permute.xlu1 %1998  ;;  %3148 = vpow2.f32 %v2438_v3 }
 0x319   : > { %v2603_v44 = vmul.f32 0.6931472, %v3129_v56  ;;  %v3131_v47 = vpop.eup %3130  ;;  %v2616_v58 = vadd.f32 %v2601_v41, %v4450_v21  ;;  %v2566_v56 = vmul.f32 1.442695, %v2555_v19  ;;  %v1660_v19 = vsub.f32 %v5507_v59, %v4583_v25 }
 0x31a   : > { %v3133_v6 = vpop.eup %3132  ;;  %v1938_v43 = vadd.f32 %v3131_v47, %v1890_v0 }
 0x31b   : > { %v2617_v28 = vadd.f32 %v2603_v44, %v4464_v42  ;;  %v2624_v62 = vsub.f32 %v2616_v58, %v4457_v22  ;;  %v1939_v57 = vadd.f32 %v3133_v6, %v1891_v45  ;;  %v3135_v30 = vpop.eup %3134  ;;  %v2564_v42 = vmul.f32 1.442695, %v2554_v61  ;;  %v2253_v47 = vpop.permute.xlu0 %2252 }
 0x31c   : > { %v2018_v21 = vadd.f32 %v1997_v51, %v1938_v43  ;;  %v1372_v22 = vsub.f32 %v4881_v36, %v4583_v25  ;;  %v3137_v13 = vpop.eup %3136  ;;  %v2127_v41 = vpop.permute.xlu1 %2126  ;;  %v1544_v61 = vmul.f32 1.442695, %v1532_v55  ;;  %v1546_v6 = vmul.f32 1.442695, %v1533_v14  ;;  %v5512_v55 = vld [vmem:[#allocation23_spill] sm:$0xff] }
 0x31d   : > { %v2625_v46 = vsub.f32 %v2617_v28, %v4475_v16  ;;  %v2684_v9 = vsel %vm2652_vm4, %v2624_v62, 0.0  ;;  %v2019_v31 = vadd.f32 %v1999_v33, %v1939_v57  ;;  %v1373_v16 = vsub.f32 %v4886_v5, %v4600_v20  ;;  %v3139_v37 = vpop.eup %3138 }
 0x31e   : > { %v2692_v17 = vadd.f32 %v2684_v9, %v2676_v11  ;;  %v2066_v4 = vadd.f32 %v3135_v30, %v2018_v21  ;;  %v1384_v44 = vmul.f32 1.442695, %v1372_v22  ;;  %v3141_v0 = vpop.eup %3140  ;;  %3150 = vpow2.f32 %v2564_v42  ;;  %v5510_v21 = vld [vmem:[#allocation22_spill] sm:$0xff] }
 0x31f   : > { %v2685_v54 = vsel %vm2653_vm5, %v2625_v46, 0.0  ;;  %v2067_v34 = vadd.f32 %v3137_v13, %v2019_v31  ;;  %v1386_v50 = vmul.f32 1.442695, %v1373_v16  ;;  %3152 = vpow2.f32 %v2566_v56  ;;  %v3143_v43 = vpop.eup %3142  ;;  %v2381_v57 = vpop.permute.xlu0 %2380 }
 0x320   : > { %v2693_v8 = vadd.f32 %v2685_v54, %v2677_v15  ;;  %2700 = vst.msk [vmem:[%s4747_s8] sm:$0xff] %vm291_vm10, %v2692_v17  ;;  %v2146_v36 = vadd.f32 %v2125_v29, %v2066_v4  ;;  %v2255_v45 = vpop.permute.xlu1 %2254  ;;  %v1661_v28 = vsub.f32 %v5508_v48, %v4600_v20  ;;  %3154 = vpow2.f32 %v1384_v44  ;;  %v3145_v11 = vpop.eup %3144 }
 0x321   : > { %v2147_v5 = vadd.f32 %v2127_v41, %v2067_v34  ;;  %3156 = vpow2.f32 %v1386_v50  ;;  %v1788_v51 = vsub.f32 %v5509_v27, %v4583_v25  ;;  %v1672_v46 = vmul.f32 1.442695, %v1660_v19  ;;  %v3147_v9 = vpop.eup %3146 }
 0x322   : > { %2701 = vst.msk [vmem:[%s4747_s8 + $0x8] sm:$0xff] %vm291_vm10, %v2693_v8  ;;  %v2194_v49 = vadd.f32 %v3139_v37, %v2146_v36  ;;  %3158 = vpow2.f32 %v1544_v61  ;;  %v1789_v33 = vsub.f32 %v5510_v21, %v4600_v20  ;;  %v1674_v42 = vmul.f32 1.442695, %v1661_v28  ;;  %v3149_v22 = vpop.eup %3148  ;;  %v5511_v8 = vld [vmem:[#allocation24_spill] sm:$0xff] }
 0x323   : > { %v2195_v10 = vadd.f32 %v3141_v0, %v2147_v5  ;;  %3160 = vpow2.f32 %v1546_v6  ;;  %v1800_v17 = vmul.f32 1.442695, %v1788_v51  ;;  %v2509_v54 = vpop.permute.xlu0 %2508  ;;  %v1916_v29 = vsub.f32 %v5511_v8, %v4583_v25 }
 0x324   : > { %v2274_v58 = vadd.f32 %v2253_v47, %v2194_v49  ;;  %v2383_v30 = vpop.permute.xlu1 %2382  ;;  %3162 = vpow2.f32 %v1672_v46  ;;  %v1802_v16 = vmul.f32 1.442695, %v1789_v33  ;;  %v1917_v56 = vsub.f32 %v5512_v55, %v4600_v20  ;;  %v5513_v49 = vld [vmem:[#allocation25_spill] sm:$0xff] }
 0x325   : > { %v2275_v53 = vadd.f32 %v2255_v45, %v2195_v10  ;;  %3164 = vpow2.f32 %v1674_v42  ;;  %v1928_v0 = vmul.f32 1.442695, %v1916_v29  ;;  %v2044_v50 = vsub.f32 %v5513_v49, %v4583_v25 }
 0x326   : > { %v2322_v62 = vadd.f32 %v3143_v43, %v2274_v58  ;;  %3166 = vpow2.f32 %v1800_v17  ;;  %v1930_v59 = vmul.f32 1.442695, %v1917_v56  ;;  %v2045_v19 = vsub.f32 %v4946_v26, %v4600_v20 }
 0x327   : > { %v2323_v15 = vadd.f32 %v3145_v11, %v2275_v53  ;;  %v1489_v44 = vpop.permute.xlu0 %1488  ;;  %3168 = vpow2.f32 %v1802_v16  ;;  %v2056_v53 = vmul.f32 1.442695, %v2044_v50  ;;  %v2172_v11 = vsub.f32 %v4951_v63, %v4583_v25  ;;  %v3334_v50 = vld [vmem:[%s3482_s4 + $0x10] sm:$0xff] }
 0x328   : > { %v2402_v3 = vadd.f32 %v2381_v57, %v2322_v62  ;;  %v2511_v32 = vpop.permute.xlu1 %2510  ;;  %v3151_v36 = vpop.eup %3150  ;;  %v2058_v51 = vmul.f32 1.442695, %v2045_v19  ;;  %v2173_v57 = vsub.f32 %v4958_v2, %v4600_v20  ;;  %v2300_v33 = vsub.f32 %v4965_v52, %v4583_v25 }
 0x329   : > { %v2403_v31 = vadd.f32 %v2383_v30, %v2323_v15  ;;  %v3153_v35 = vpop.eup %3152  ;;  %v2184_v42 = vmul.f32 1.442695, %v2172_v11  ;;  %v2301_v63 = vsub.f32 %v4970_v23, %v4600_v20  ;;  %v2428_v52 = vsub.f32 %v4975_v24, %v4583_v25 }
 0x32a   : > { %v2450_v13 = vadd.f32 %v3147_v9, %v2402_v3  ;;  %v3155_v37 = vpop.eup %3154  ;;  %v2312_v16 = vmul.f32 1.442695, %v2300_v33  ;;  %vm2654_vm6 = vcmp.ne.s32.totalorder %v3334_v50, 255 }
 0x32b   : > { %v2451_v4 = vadd.f32 %v3149_v22, %v2403_v31  ;;  %v3157_v47 = vpop.eup %3156  ;;  %v1508_v10 = vadd.f32 %v3155_v37, %v1489_v44  ;;  %v1617_v28 = vpop.permute.xlu0 %1616  ;;  %v2314_v23 = vmul.f32 1.442695, %v2301_v63  ;;  %v3333_v37 = vld [vmem:[#allocation2 + $0x1d8] sm:$0xff] }
 0x32c   : > { %v2530_v34 = vadd.f32 %v2509_v54, %v2450_v13  ;;  %v1491_v61 = vpop.permute.xlu1 %1490  ;;  %v3159_v58 = vpop.eup %3158  ;;  %v2186_v13 = vmul.f32 1.442695, %v2173_v57  ;;  %v5516_v57 = vld [vmem:[#allocation12_spill] sm:$0xff] }
 0x32d   : > { %v2531_v41 = vadd.f32 %v2511_v32, %v2451_v4  ;;  %v1509_v45 = vadd.f32 %v3157_v47, %v1491_v61  ;;  %v3161_v6 = vpop.eup %3160  ;;  %v1556_v48 = vadd.f32 %v3159_v58, %v1508_v10  ;;  %v2440_v61 = vmul.f32 1.442695, %v2428_v52  ;;  %v3335_v58 = vld [vmem:[%s3482_s4 + $0x18] sm:$0xff] }
 0x32e   : > { %v2578_v14 = vadd.f32 %v3151_v36, %v2530_v34  ;;  %v3163_v26 = vpop.eup %3162  ;;  %vm2655_vm7 = vcmp.ne.s32.totalorder %v3335_v58, 255 }
 0x32f   : > { %v2579_v5 = vadd.f32 %v3153_v35, %v2531_v41  ;;  %v1557_v43 = vadd.f32 %v3161_v6, %v1509_v45  ;;  %v1636_v62 = vadd.f32 %v1617_v28, %v1556_v48  ;;  %v3165_v46 = vpop.eup %3164  ;;  %v2429_v41 = vsub.f32 %v4980_v39, %v4600_v20  ;;  %v2678_v39 = vld [vmem:[%s4747_s8 + $0x10] sm:$0xff]  ;;  %v2679_v48 = vld [vmem:[%s4747_s8 + $0x18] sm:$0xff]  ;;  %v5515_v28 = vld [vmem:[#allocation19_spill] sm:$0xff] }
 0x330   : > { %3170 = vlog2.f32 %v2578_v14  ;;  %v3167_v9 = vpop.eup %3166  ;;  %v3332_v14 = vld [vmem:[#allocation2 + $0x188] sm:$0xff] }
 0x331   : > { %3172 = vlog2.f32 %v2579_v5  ;;  %v1684_v21 = vadd.f32 %v3163_v26, %v1636_v62  ;;  %v3169_v2 = vpop.eup %3168  ;;  %v2556_v24 = vsub.f32 %v3332_v14, %v4583_v25  ;;  %v2557_v5 = vsub.f32 %v3333_v37, %v4600_v20  ;;  %v5517_v26 = vld [vmem:[#allocation26_spill] sm:$0xff] }
 0x332   : > { %3174 = vpow2.f32 %v1928_v0  ;;  %v2442_v11 = vmul.f32 1.442695, %v2429_v41 }
 0x333   : > { %3176 = vpow2.f32 %v1930_v59  ;;  %v5514_v59 = vld [vmem:[#allocation15_spill] sm:$0xff] }
 0x334   : > { %3178 = vpow2.f32 %v2056_v53 }
 0x335   : > { %3180 = vpow2.f32 %v2058_v51 }
 0x336   : > { %3182 = vpow2.f32 %v2184_v42  ;;  %v5519_v42 = vld [vmem:[#allocation27_spill] sm:$0xff] }
 0x337   : > { %3184 = vpow2.f32 %v2186_v13  ;;  %v5520_v13 = vld [vmem:[#allocation32_spill] sm:$0xff] }
 0x338   : > { %3186 = vpow2.f32 %v2312_v16  ;;  %v5521_v16 = vld [vmem:[#allocation33_spill] sm:$0xff] }
 0x339   : > { %3188 = vpow2.f32 %v2314_v23 }
 0x33a   : > { %v3171_v54 = vpop.eup %3170  ;;  %3190 = vpow2.f32 %v2440_v61  ;;  %v5524_v61 = vld [vmem:[#allocation45_spill] sm:$0xff] }
 0x33b   : > { %v3173_v8 = vpop.eup %3172  ;;  %v2605_v29 = vmul.f32 0.6931472, %v3171_v54  ;;  %3192 = vpow2.f32 %v2442_v11 }
 0x33c   : > { %v1619_v27 = vpop.permute.xlu1 %1618  ;;  %v2607_v55 = vmul.f32 0.6931472, %v3173_v8  ;;  %v3175_v35 = vpop.eup %3174 }
 0x33d   : > { %v1637_v15 = vadd.f32 %v1619_v27, %v1557_v43  ;;  %v2618_v44 = vadd.f32 %v2605_v29, %v4517_v40  ;;  %v3177_v49 = vpop.eup %3176 }
 0x33e   : > { %v1745_v3 = vpop.permute.xlu0 %1744  ;;  %v2619_v47 = vadd.f32 %v2607_v55, %v4534_v1  ;;  %v3179_v62 = vpop.eup %3178  ;;  %v2568_v1 = vmul.f32 1.442695, %v2556_v24 }
 0x33f   : > { %v1685_v30 = vadd.f32 %v3165_v46, %v1637_v15  ;;  %v1764_v31 = vadd.f32 %v1745_v3, %v1684_v21  ;;  %v2626_v19 = vsub.f32 %v2618_v44, %v5514_v59  ;;  %v1374_v15 = vsub.f32 %v5517_v26, %v5516_v57  ;;  %v3181_v46 = vpop.eup %3180  ;;  %v5523_v44 = vld [vmem:[#allocation3_spill] sm:$0xff] }
 0x340   : > { %v1747_v22 = vpop.permute.xlu1 %1746  ;;  %v2627_v43 = vsub.f32 %v2619_v47, %v5515_v28  ;;  %v3183_v8 = vpop.eup %3182  ;;  %3194 = vpow2.f32 %v2568_v1 }
 0x341   : > { %v1765_v17 = vadd.f32 %v1747_v22, %v1685_v30  ;;  %v1812_v4 = vadd.f32 %v3167_v9, %v1764_v31  ;;  %v2686_v27 = vsel %vm2654_vm6, %v2626_v19, 0.0  ;;  %v5518_v30 = vld [vmem:[#allocation14_spill] sm:$0xff] }
 0x342   : > { %v1873_v34 = vpop.permute.xlu0 %1872  ;;  %v2694_v21 = vadd.f32 %v2686_v27, %v2678_v39  ;;  %v2687_v33 = vsel %vm2655_vm7, %v2627_v43, 0.0  ;;  %v1375_v63 = vsub.f32 %v5519_v42, %v5518_v30  ;;  %v1535_v52 = vsub.f32 %v5521_v16, %v5518_v30 }
 0x343   : > { %v1813_v32 = vadd.f32 %v3169_v2, %v1765_v17  ;;  %v1892_v56 = vadd.f32 %v1873_v34, %v1812_v4  ;;  %v2695_v9 = vadd.f32 %v2687_v33, %v2679_v48  ;;  %v1534_v2 = vsub.f32 %v5520_v13, %v5516_v57 }
 0x344   : > { %v1875_v36 = vpop.permute.xlu1 %1874  ;;  %v2570_v17 = vmul.f32 1.442695, %v2557_v5  ;;  %2702 = vst.msk [vmem:[%s4747_s8 + $0x10] sm:$0xff] %vm291_vm10, %v2694_v21  ;;  %v1388_v34 = vmul.f32 1.442695, %v1374_v15  ;;  %v1790_v39 = vsub.f32 %v5524_v61, %v5516_v57  ;;  %v5526_v15 = vld [vmem:[#allocation31_spill] sm:$0xff] }
 0x345   : > { %v1893_v0 = vadd.f32 %v1875_v36, %v1813_v32  ;;  %v1940_v10 = vadd.f32 %v3175_v35, %v1892_v56  ;;  %2703 = vst.msk [vmem:[%s4747_s8 + $0x18] sm:$0xff] %vm291_vm10, %v2695_v9  ;;  %v3185_v32 = vpop.eup %3184  ;;  %v1390_v55 = vmul.f32 1.442695, %v1375_v63  ;;  %v1548_v41 = vmul.f32 1.442695, %v1534_v2  ;;  %v5522_v35 = vld [vmem:[#allocation29_spill] sm:$0xff] }
 0x346   : > { %v2001_v45 = vpop.permute.xlu0 %2000  ;;  %v1662_v14 = vsub.f32 %v5522_v35, %v5516_v57  ;;  %3196 = vpow2.f32 %v2570_v17  ;;  %v1550_v5 = vmul.f32 1.442695, %v1535_v52  ;;  %v1804_v1 = vmul.f32 1.442695, %v1790_v39 }
 0x347   : > { %v1941_v6 = vadd.f32 %v3177_v49, %v1893_v0  ;;  %v2020_v40 = vadd.f32 %v2001_v45, %v1940_v10  ;;  %v1663_v0 = vsub.f32 %v5523_v44, %v5518_v30  ;;  %v3187_v49 = vpop.eup %3186  ;;  %3198 = vpow2.f32 %v1388_v34  ;;  %v5525_v45 = vld [vmem:[#allocation38_spill] sm:$0xff] }
 0x348   : > { %v2003_v53 = vpop.permute.xlu1 %2002  ;;  %v3189_v47 = vpop.eup %3188  ;;  %3200 = vpow2.f32 %v1390_v55  ;;  %v1676_v58 = vmul.f32 1.442695, %v1662_v14 }
 0x349   : > { %v2021_v51 = vadd.f32 %v2003_v53, %v1941_v6  ;;  %v2068_v3 = vadd.f32 %v3179_v62, %v2020_v40  ;;  %3202 = vpow2.f32 %v1548_v41  ;;  %v1791_v6 = vsub.f32 %v5525_v45, %v5518_v30  ;;  %v3191_v40 = vpop.eup %3190 }
 0x34a   : > { %v2129_v31 = vpop.permute.xlu0 %2128  ;;  %3204 = vpow2.f32 %v1550_v5  ;;  %v1678_v43 = vmul.f32 1.442695, %v1663_v0  ;;  %v3193_v11 = vpop.eup %3192 }
 0x34b   : > { %v2069_v22 = vadd.f32 %v3181_v46, %v2021_v51  ;;  %v2148_v54 = vadd.f32 %v2129_v31, %v2068_v3  ;;  %3206 = vpow2.f32 %v1676_v58  ;;  %v1806_v26 = vmul.f32 1.442695, %v1791_v6  ;;  %v5527_v3 = vld [vmem:[#allocation48_spill] sm:$0xff]  ;;  %v3195_v63 = vpop.eup %3194 }
 0x34c   : > { %v2131_v4 = vpop.permute.xlu1 %2130  ;;  %v1918_v46 = vsub.f32 %v5526_v15, %v5516_v57  ;;  %3208 = vpow2.f32 %v1678_v43  ;;  %v1919_v42 = vsub.f32 %v5527_v3, %v5518_v30  ;;  %v2303_v6 = vsub.f32 %v5072_v7, %v5518_v30 }
 0x34d   : > { %v2149_v29 = vadd.f32 %v2131_v4, %v2069_v22  ;;  %v2196_v23 = vadd.f32 %v3183_v8, %v2148_v54  ;;  %3210 = vpow2.f32 %v1804_v1  ;;  %v5528_v4 = vld [vmem:[#allocation47_spill] sm:$0xff]  ;;  %v2431_v3 = vsub.f32 %v5086_v12, %v5518_v30 }
 0x34e   : > { %v2257_v56 = vpop.permute.xlu0 %2256  ;;  %3212 = vpow2.f32 %v1806_v26  ;;  %v1932_v54 = vmul.f32 1.442695, %v1918_v46  ;;  %v2046_v16 = vsub.f32 %v5528_v4, %v5516_v57  ;;  %v1934_v34 = vmul.f32 1.442695, %v1919_v42  ;;  %v2680_v12 = vld [vmem:[%s4747_s8 + $0x20] sm:$0xff] }
 0x34f   : > { %v2197_v36 = vadd.f32 %v3185_v32, %v2149_v29  ;;  %v2276_v24 = vadd.f32 %v2257_v56, %v2196_v23  ;;  %v5529_v32 = vld [vmem:[#allocation46_spill] sm:$0xff]  ;;  %v2318_v7 = vmul.f32 1.442695, %v2303_v6 }
 0x350   : > { %v2259_v37 = vpop.permute.xlu1 %2258  ;;  %v3197_v31 = vpop.eup %3196  ;;  %v2047_v23 = vsub.f32 %v5529_v32, %v5518_v30 }
 0x351   : > { %v2277_v50 = vadd.f32 %v2259_v37, %v2197_v36  ;;  %v2324_v10 = vadd.f32 %v3187_v49, %v2276_v24  ;;  %v3199_v13 = vpop.eup %3198  ;;  %v2060_v24 = vmul.f32 1.442695, %v2046_v16  ;;  %v5530_v37 = vld [vmem:[#allocation37_spill] sm:$0xff] }
 0x352   : > { %v2385_v59 = vpop.permute.xlu0 %2384  ;;  %v3201_v52 = vpop.eup %3200  ;;  %v2174_v5 = vsub.f32 %v5530_v37, %v5516_v57  ;;  %v2062_v49 = vmul.f32 1.442695, %v2047_v23  ;;  %v2681_v23 = vld [vmem:[%s4747_s8 + $0x28] sm:$0xff] }
 0x353   : > { %v2325_v19 = vadd.f32 %v3189_v47, %v2277_v50  ;;  %v2404_v48 = vadd.f32 %v2385_v59, %v2324_v10  ;;  %v3203_v55 = vpop.eup %3202  ;;  %v2175_v50 = vsub.f32 %v5059_v38, %v5518_v30  ;;  %v2302_v59 = vsub.f32 %v5067_v18, %v5516_v57 }
 0x354   : > { %v2387_v28 = vpop.permute.xlu1 %2386  ;;  %v3205_v36 = vpop.eup %3204  ;;  %v2188_v45 = vmul.f32 1.442695, %v2174_v5  ;;  %v2430_v18 = vsub.f32 %v5081_v60, %v5516_v57 }
 0x355   : > { %v2405_v53 = vadd.f32 %v2387_v28, %v2325_v19  ;;  %v2452_v62 = vadd.f32 %v3191_v40, %v2404_v48  ;;  %v3207_v47 = vpop.eup %3206  ;;  %v2190_v40 = vmul.f32 1.442695, %v2175_v50  ;;  %v2316_v1 = vmul.f32 1.442695, %v2302_v59 }
 0x356   : > { %v2513_v27 = vpop.permute.xlu0 %2512  ;;  %v3209_v61 = vpop.eup %3208  ;;  %v2444_v16 = vmul.f32 1.442695, %v2430_v18 }
 0x357   : > { %v2453_v51 = vadd.f32 %v3193_v11, %v2405_v53  ;;  %v2532_v21 = vadd.f32 %v2513_v27, %v2452_v62  ;;  %v3211_v48 = vpop.eup %3210 }
 0x358   : > { %v2515_v33 = vpop.permute.xlu1 %2514  ;;  %v3213_v38 = vpop.eup %3212 }
 0x359   : > { %v2533_v9 = vadd.f32 %v2515_v33, %v2453_v51  ;;  %v2580_v22 = vadd.f32 %v3195_v63, %v2532_v21  ;;  %v3336_v63 = vld [vmem:[#allocation2 + $0x228] sm:$0xff] }
 0x35a   : > { %v1493_v17 = vpop.permute.xlu0 %1492  ;;  %v2558_v60 = vsub.f32 %v3336_v63, %v5516_v57 }
 0x35b   : > { %v2581_v2 = vadd.f32 %v3197_v31, %v2533_v9  ;;  %3214 = vlog2.f32 %v2580_v22  ;;  %v1510_v8 = vadd.f32 %v3199_v13, %v1493_v17  ;;  %v3337_v9 = vld [vmem:[#allocation2 + $0x278] sm:$0xff]  ;;  %v3338_v17 = vld [vmem:[%s3482_s4 + $0x20] sm:$0xff] }
 0x35c   : > { %v1495_v29 = vpop.permute.xlu1 %1494  ;;  %v2559_v31 = vsub.f32 %v3337_v9, %v5518_v30  ;;  %vm2656_vm8 = vcmp.ne.s32.totalorder %v3338_v17, 255 }
 0x35d   : > { %3216 = vlog2.f32 %v2581_v2  ;;  %v1511_v56 = vadd.f32 %v3201_v52, %v1495_v29  ;;  %v1558_v41 = vadd.f32 %v3203_v55, %v1510_v8  ;;  %v5531_v52 = vld [vmem:[#allocation9_spill] sm:$0xff]  ;;  %v3339_v29 = vld [vmem:[%s3482_s4 + $0x28] sm:$0xff] }
 0x35e   : > { %v1621_v35 = vpop.permute.xlu0 %1620  ;;  %3218 = vpow2.f32 %v1932_v54  ;;  %vm2657_vm9 = vcmp.ne.s32.totalorder %v3339_v29, 255  ;;  %v5532_v55 = vld [vmem:[#allocation13_spill] sm:$0xff]  ;;  %v3341_v29 = vld [vmem:[%s3482_s4 + $0x38] sm:$0xff] }
 0x35f   : > { %v1559_v14 = vadd.f32 %v3205_v36, %v1511_v56  ;;  %v1638_v44 = vadd.f32 %v1621_v35, %v1558_v41  ;;  %3220 = vpow2.f32 %v1934_v34  ;;  %v2446_v41 = vmul.f32 1.442695, %v2431_v3 }
 0x360   : > { %v1623_v0 = vpop.permute.xlu1 %1622  ;;  %3222 = vpow2.f32 %v2060_v24  ;;  %vm2659_vm12 = vcmp.ne.s32.totalorder %v3341_v29, 255 }
 0x361   : > { %v1639_v10 = vadd.f32 %v1623_v0, %v1559_v14  ;;  %v1686_v39 = vadd.f32 %v3207_v47, %v1638_v44  ;;  %3224 = vpow2.f32 %v2062_v49  ;;  %v2572_v0 = vmul.f32 1.442695, %v2558_v60 }
 0x362   : > { %v1749_v19 = vpop.permute.xlu0 %1748  ;;  %3226 = vpow2.f32 %v2188_v45 }
 0x363   : > { %v1687_v58 = vadd.f32 %v3209_v61, %v1639_v10  ;;  %v1766_v28 = vadd.f32 %v1749_v19, %v1686_v39  ;;  %3228 = vpow2.f32 %v2190_v40  ;;  %v2574_v10 = vmul.f32 1.442695, %v2559_v31 }
 0x364   : > { %v1751_v43 = vpop.permute.xlu1 %1750  ;;  %3230 = vpow2.f32 %v2316_v1 }
 0x365   : > { %v1767_v53 = vadd.f32 %v1751_v43, %v1687_v58  ;;  %v3215_v11 = vpop.eup %3214  ;;  %v1814_v62 = vadd.f32 %v3211_v48, %v1766_v28  ;;  %3232 = vpow2.f32 %v2318_v7 }
 0x366   : > { %v2609_v51 = vmul.f32 0.6931472, %v3215_v11  ;;  %v1877_v26 = vpop.permute.xlu0 %1876  ;;  %3234 = vpow2.f32 %v2444_v16 }
 0x367   : > { %v3217_v27 = vpop.eup %3216  ;;  %v1815_v15 = vadd.f32 %v3213_v38, %v1767_v53  ;;  %v1894_v21 = vadd.f32 %v1877_v26, %v1814_v62  ;;  %3236 = vpow2.f32 %v2446_v41 }
 0x368   : > { %v2611_v46 = vmul.f32 0.6931472, %v3217_v27  ;;  %v1879_v33 = vpop.permute.xlu1 %1878  ;;  %v3219_v42 = vpop.eup %3218  ;;  %v2620_v22 = vadd.f32 %v2609_v51, %v4583_v25  ;;  %3238 = vpow2.f32 %v2572_v0 }
 0x369   : > { %v1895_v13 = vadd.f32 %v1879_v33, %v1815_v15  ;;  %v3221_v2 = vpop.eup %3220  ;;  %v1942_v4 = vadd.f32 %v3219_v42, %v1894_v21  ;;  %3240 = vpow2.f32 %v2574_v10 }
 0x36a   : > { %v2621_v54 = vadd.f32 %v2611_v46, %v4600_v20  ;;  %v2628_v8 = vsub.f32 %v2620_v22, %v5531_v52  ;;  %v2005_v34 = vpop.permute.xlu0 %2004  ;;  %v3223_v35 = vpop.eup %3222  ;;  %v5533_v52 = vld [vmem:[#allocation8_spill] sm:$0xff] }
 0x36b   : > { %v1943_v32 = vadd.f32 %v3221_v2, %v1895_v13  ;;  %v2022_v25 = vadd.f32 %v2005_v34, %v1942_v4  ;;  %v3225_v24 = vpop.eup %3224  ;;  %v3340_v4 = vld [vmem:[%s3482_s4 + $0x30] sm:$0xff]  ;;  %v2683_v34 = vld [vmem:[%s4747_s8 + $0x38] sm:$0xff] }
 0x36c   : > { %v2629_v56 = vsub.f32 %v2621_v54, %v5532_v55  ;;  %v2007_v36 = vpop.permute.xlu1 %2006  ;;  %v2688_v20 = vsel %vm2656_vm8, %v2628_v8, 0.0  ;;  %v3227_v59 = vpop.eup %3226  ;;  %vm2658_vm11 = vcmp.ne.s32.totalorder %v3340_v4, 255 }
 0x36d   : > { %v2023_v14 = vadd.f32 %v2007_v36, %v1943_v32  ;;  %v2696_v37 = vadd.f32 %v2688_v20, %v2680_v12  ;;  %v2070_v44 = vadd.f32 %v3223_v35, %v2022_v25  ;;  %v3229_v58 = vpop.eup %3228  ;;  %v2682_v12 = vld [vmem:[%s4747_s8 + $0x30] sm:$0xff]  ;;  %v5534_v32 = vld [vmem:[#allocation10_spill] sm:$0xff] }
 0x36e   : > { %v2689_v5 = vsel %vm2657_vm9, %v2629_v56, 0.0  ;;  %v2133_v50 = vpop.permute.xlu0 %2132  ;;  %v3231_v40 = vpop.eup %3230 }
 0x36f   : > { %v2697_v49 = vadd.f32 %v2689_v5, %v2681_v23  ;;  %v2071_v47 = vadd.f32 %v3225_v24, %v2023_v14  ;;  %2704 = vst.msk [vmem:[%s4747_s8 + $0x20] sm:$0xff] %vm291_vm10, %v2696_v37  ;;  %v2150_v61 = vadd.f32 %v2133_v50, %v2070_v44  ;;  %v3233_v53 = vpop.eup %3232 }
 0x370   : > { %v2135_v39 = vpop.permute.xlu1 %2134  ;;  %v3235_v51 = vpop.eup %3234 }
 0x371   : > { %2705 = vst.msk [vmem:[%s4747_s8 + $0x28] sm:$0xff] %vm291_vm10, %v2697_v49  ;;  %v2151_v19 = vadd.f32 %v2135_v39, %v2071_v47  ;;  %v2198_v45 = vadd.f32 %v3227_v59, %v2150_v61  ;;  %v3237_v15 = vpop.eup %3236 }
 0x372   : > { %v2261_v6 = vpop.permute.xlu0 %2260  ;;  %v3239_v42 = vpop.eup %3238 }
 0x373   : > { %v2199_v48 = vadd.f32 %v3229_v58, %v2151_v19  ;;  %v2278_v28 = vadd.f32 %v2261_v6, %v2198_v45  ;;  %v3241_v60 = vpop.eup %3240 }
 0x374   : > { %v2263_v43 = vpop.permute.xlu1 %2262 }
 0x375   : > { %v2279_v38 = vadd.f32 %v2263_v43, %v2199_v48  ;;  %v2326_v11 = vadd.f32 %v3231_v40, %v2278_v28 }
 0x376   : > { %v2389_v62 = vpop.permute.xlu0 %2388 }
 0x377   : > { %v2327_v1 = vadd.f32 %v3233_v53, %v2279_v38  ;;  %v2406_v18 = vadd.f32 %v2389_v62, %v2326_v11 }
 0x378   : > { %v2391_v27 = vpop.permute.xlu1 %2390 }
 0x379   : > { %v2407_v26 = vadd.f32 %v2391_v27, %v2327_v1  ;;  %v2454_v7 = vadd.f32 %v3235_v51, %v2406_v18 }
 0x37a   : > { %v2517_v46 = vpop.permute.xlu0 %2516 }
 0x37b   : > { %v2455_v21 = vadd.f32 %v3237_v15, %v2407_v26  ;;  %v2534_v33 = vadd.f32 %v2517_v46, %v2454_v7 }
 0x37c   : > { %v2519_v3 = vpop.permute.xlu1 %2518 }
 0x37d   : > { %v2535_v63 = vadd.f32 %v2519_v3, %v2455_v21  ;;  %v2582_v9 = vadd.f32 %v3239_v42, %v2534_v33 }
 0x37f   : > { %v2583_v31 = vadd.f32 %v3241_v60, %v2535_v63  ;;  %3242 = vlog2.f32 %v2582_v9 }
 0x381   : > { %3244 = vlog2.f32 %v2583_v31 }
 0x389   : > { %v3243_v22 = vpop.eup %3242 }
 0x38a   : > { %v2613_v2 = vmul.f32 0.6931472, %v3243_v22 }
 0x38b   : > { %v3245_v13 = vpop.eup %3244 }
 0x38c   : > { %v2615_v17 = vmul.f32 0.6931472, %v3245_v13  ;;  %v2622_v54 = vadd.f32 %v2613_v2, %v5516_v57 }
 0x38e   : > { %v2623_v16 = vadd.f32 %v2615_v17, %v5518_v30  ;;  %v2630_v8 = vsub.f32 %v2622_v54, %v5533_v52 }
 0x390   : > { %v2631_v23 = vsub.f32 %v2623_v16, %v5534_v32  ;;  %v2690_v55 = vsel %vm2658_vm11, %v2630_v8, 0.0 }
 0x391   : > { %v2698_v56 = vadd.f32 %v2690_v55, %v2682_v12 }
 0x392   : > { %v2691_v25 = vsel %vm2659_vm12, %v2631_v23, 0.0 }
 0x393   : > { %v2699_v36 = vadd.f32 %v2691_v25, %v2683_v34  ;;  %2706 = vst.msk [vmem:[%s4747_s8 + $0x30] sm:$0xff] %vm291_vm10, %v2698_v56 }
 0x395   : > { %2707 = vst.msk [vmem:[%s4747_s8 + $0x38] sm:$0xff] %vm291_vm10, %v2699_v36 }
 0x396 PF: > { %s13_s14 = sadd.s32 1, %s3364_s14   ;;  %s5535_s12 = smov %s3360_s13 }
 0x397   : > { %p10_p5 = scmp.ge.s32.totalorder %s13_s14, 4   ;;  %s5536_s13 = smov %s5538_s15 }
 0x399   :  { %12 = sbr.rel (!%p10_p5) target bundleno = 2 (0x2), region = 72 }

</bundles_post_ra>
